<compile_context>
chip_gen: v7x
topology: tpu7x:2x2x1
jax: 0.10.0
libtpu: 0.0.40
codegen_flags: <defaults>
</compile_context>

<pallas_src>
import functools

import jax
import jax.numpy as jnp
from jax.experimental import pallas as pl
from jax.experimental.pallas import tpu as pltpu


VMEM_LIMIT_BYTES = 32 * 1024 * 1024   # explicit; all tiles stay far below this

CONV1_K = 7 * 7 * 3                   # 147
CONV1_K_PAD = 256                     # pad K (lane dim of the patches) to 2*128
CONV1_COUT = 96
CONV1_COUT_PAD = 128                  # lane-dense conv1 output store
CLS_COUT_PAD = 128                    # pad n_class up to one full lane width


def _round_up(x, m):
    return ((x + m - 1) // m) * m


# ---------------------------------------------------------------------------
# Pallas kernel: the whole network is conv-as-matmul, so one kernel suffices.
# ---------------------------------------------------------------------------
def _matmul_bias_act_kernel(x_ref, w_ref, b_ref, o_ref, *, apply_relu):
    """(tm,K) @ (K,N) with bf16 operands, f32 MXU accumulate, f32 bias+ReLU."""
    acc = jnp.dot(x_ref[...], w_ref[...], preferred_element_type=jnp.float32)
    acc = acc + b_ref[...]
    if apply_relu:
        acc = jnp.maximum(acc, 0.0)
    o_ref[...] = acc.astype(o_ref.dtype)


def matmul_bias_act(x, w, b, *, apply_relu=True, out_dtype=jnp.bfloat16, tm=512):
    """(M,K) @ (K,N) + b, optional ReLU.  Tiled over M; K and N kept whole
    (every layer here fits comfortably under the 16/32 MiB scoped VMEM)."""
    M, K = x.shape
    K2, N = w.shape
    assert K == K2
    tm = min(tm, _round_up(M, 8))
    grid_m = pl.cdiv(M, tm)
    kernel = functools.partial(_matmul_bias_act_kernel, apply_relu=apply_relu)
    return pl.pallas_call(
        kernel,
        out_shape=jax.ShapeDtypeStruct((M, N), out_dtype),
        grid=(grid_m,),
        in_specs=[
            pl.BlockSpec((tm, K), lambda i: (i, 0)),
            pl.BlockSpec((K, N), lambda i: (0, 0)),
            pl.BlockSpec((1, N), lambda i: (0, 0)),
        ],
        out_specs=pl.BlockSpec((tm, N), lambda i: (i, 0)),
        compiler_params=pltpu.CompilerParams(
            dimension_semantics=("parallel",),
            vmem_limit_bytes=VMEM_LIMIT_BYTES,
        ),
    )(x.astype(jnp.bfloat16), w.astype(jnp.bfloat16),
      b.astype(jnp.float32).reshape(1, N))


# ---------------------------------------------------------------------------
# Layer glue (plain JAX: padding / window taps / reshapes)
# ---------------------------------------------------------------------------
def _im2col(x, kh, kw, *, stride=1, padding=0, k_pad_to=None):
    """NHWC -> (N*Ho*Wo, KH*KW*Cin) patches (tap-major), optional zero K pad."""
    if padding:
        x = jnp.pad(x, ((0, 0), (padding, padding), (padding, padding), (0, 0)))
    N, H, W, C = x.shape
    Ho = (H - kh) // stride + 1
    Wo = (W - kw) // stride + 1
    taps = []
    for i in range(kh):
        for j in range(kw):
            taps.append(x[:, i:i + stride * Ho:stride, j:j + stride * Wo:stride, :])
    K = kh * kw * C
    if k_pad_to is not None and k_pad_to > K:
        taps.append(jnp.zeros((N, Ho, Wo, k_pad_to - K), x.dtype))
        K = k_pad_to
    patches = jnp.concatenate(taps, axis=-1).reshape(N * Ho * Wo, K)
    return patches, Ho, Wo


def conv2d_matmul(x, w, b, *, kh, kw, stride=1, padding=0, relu=True,
                  out_dtype=jnp.bfloat16, k_pad_to=None):
    """Conv as im2col + fused Pallas matmul.  x: NHWC, w: (KH*KW*Cin[+pad], Cout)."""
    N = x.shape[0]
    if kh == 1 and kw == 1 and stride == 1 and padding == 0:
        H, W = x.shape[1], x.shape[2]
        patches = x.reshape(N * H * W, x.shape[3])
        Ho, Wo = H, W
    else:
        patches, Ho, Wo = _im2col(x, kh, kw, stride=stride, padding=padding,
                                  k_pad_to=k_pad_to)
    out = matmul_bias_act(patches, w, b, apply_relu=relu, out_dtype=out_dtype)
    return out.reshape(N, Ho, Wo, w.shape[1])


def maxpool2d_ceil(x, *, k=3, s=2):
    """MaxPool2d(kernel=3, stride=2, ceil_mode=True) via a jnp.maximum fold over
    the k*k strided window taps (no patch materialization, no Pallas reduce)."""
    N, H, W, C = x.shape
    Ho = -(-(H - k) // s) + 1
    Wo = -(-(W - k) // s) + 1
    Hp = (Ho - 1) * s + k
    Wp = (Wo - 1) * s + k
    neg = float(jnp.finfo(x.dtype).min)
    xp = jnp.pad(x, ((0, 0), (0, Hp - H), (0, Wp - W), (0, 0)), constant_values=neg)
    out = None
    for i in range(k):
        for j in range(k):
            tap = xp[:, i:i + s * Ho:s, j:j + s * Wo:s, :]
            out = tap if out is None else jnp.maximum(out, tap)
    return out


def fire(x, p):
    """Fire module: squeeze (1x1 matmul), then ONE fused expand matmul.

    The 1x1 expand weight is packed into the center-tap rows of the fused
    (9*sq, e1+e3) expand weight, so e1 and e3 come out of a single MXU dot
    with a single lane-dense (128/256/384/512-wide) store.
    """
    N, H, W, Cin = x.shape
    sq = p["sq_w"].shape[1]
    s_flat = matmul_bias_act(x.reshape(N * H * W, Cin), p["sq_w"], p["sq_b"],
                             apply_relu=True)
    s = s_flat.reshape(N, H, W, sq)
    # Shared im2col patches (stride 1, pad 1 -> same H, W); center tap == s.
    patches, _, _ = _im2col(s, 3, 3, stride=1, padding=1)
    out = matmul_bias_act(patches, p["ex_w"], p["ex_b"], apply_relu=True)
    return out.reshape(N, H, W, out.shape[-1])


# ---------------------------------------------------------------------------
# Model: SqueezeNet-1.0 features + (replaced) classifier + Flatten
# ---------------------------------------------------------------------------
def squeezenet_forward(params, x_nchw, n_class=10):
    x = jnp.transpose(x_nchw, (0, 2, 3, 1)).astype(jnp.bfloat16)  # NCHW -> NHWC bf16
    # features
    x = conv2d_matmul(x, params["conv1_w"], params["conv1_b"], kh=7, kw=7,
                      stride=2, padding=0, relu=True, k_pad_to=CONV1_K_PAD)
    x = maxpool2d_ceil(x)
    for name in ("fire2", "fire3", "fire4"):
        x = fire(x, params[name])
    x = maxpool2d_ceil(x)
    for name in ("fire5", "fire6", "fire7", "fire8"):
        x = fire(x, params[name])
    x = maxpool2d_ceil(x)
    x = fire(x, params["fire9"])

    # classifier: Dropout(p=0.5) is identity in inference mode.
    # TODO(synk): training-mode dropout not implemented (forward pass is eval-mode).
    N, H, W, _ = x.shape
    logits_map = conv2d_matmul(x, params["cls_w"], params["cls_b"], kh=3, kw=3,
                               stride=1, padding=1, relu=True,
                               out_dtype=jnp.float32)          # (N, H, W, 128)
    # AdaptiveAvgPool2d((1,1)) + Flatten; classifier channels were zero-padded
    # to 128 for lane-dense stores -> slice the real classes back out.
    pooled = jnp.mean(logits_map.reshape(N, H * W, CLS_COUT_PAD), axis=1)
    return pooled[:, :n_class]


# ---------------------------------------------------------------------------
# Deterministic parameter init (synthetic; no checkpoint loading)
# ---------------------------------------------------------------------------
def _dense_params(key, k_in, c_out):
    kw_key, kb_key = jax.random.split(key)
    w = jax.random.normal(kw_key, (k_in, c_out), jnp.float32) / jnp.sqrt(float(k_in))
    b = jax.random.normal(kb_key, (c_out,), jnp.float32) * 0.01
    return w, b


def init_params(key, n_class=10):
    params = {}
    keys = jax.random.split(key, 10)

    # conv1: 7x7x3 -> 96.  K zero-padded 147 -> 256 (lane-aligned) and Cout
    # zero-padded 96 -> 128 (lane-dense store); both pads are numerically free.
    w, b = _dense_params(keys[0], CONV1_K, CONV1_COUT)
    w = jnp.pad(w, ((0, CONV1_K_PAD - CONV1_K), (0, CONV1_COUT_PAD - CONV1_COUT)))
    b = jnp.pad(b, (0, CONV1_COUT_PAD - CONV1_COUT))
    params["conv1_w"] = w.astype(jnp.bfloat16)
    params["conv1_b"] = b

    fire_cfg = [
        ("fire2", 96, 16, 64, 64),
        ("fire3", 128, 16, 64, 64),
        ("fire4", 128, 32, 128, 128),
        ("fire5", 256, 32, 128, 128),
        ("fire6", 256, 48, 192, 192),
        ("fire7", 384, 48, 192, 192),
        ("fire8", 384, 64, 256, 256),
        ("fire9", 512, 64, 256, 256),
    ]
    for idx, (name, cin, sq, e1, e3) in enumerate(fire_cfg):
        kk = jax.random.split(keys[1 + idx // 4], 3 * (1 + idx))
        k_sq, k_e1, k_e3 = kk[-3], kk[-2], kk[-1]
        sq_w, sq_b = _dense_params(k_sq, cin, sq)
        e1_w, e1_b = _dense_params(k_e1, sq, e1)
        e3_w, e3_b = _dense_params(k_e3, 9 * sq, e3)
        if name == "fire2":
            # conv1's output channels were padded 96 -> 128; matching zero rows.
            sq_w = jnp.pad(sq_w, ((0, CONV1_COUT_PAD - cin), (0, 0)))
        # Fuse the 1x1 expand into the 3x3 expand's weight: the center im2col
        # tap (rows 4*sq : 5*sq) of the 3x3 patches is exactly the squeeze
        # output, so e1 lives there and e3 fills the remaining columns.
        ex_w = jnp.zeros((9 * sq, e1 + e3), jnp.float32)
        ex_w = ex_w.at[4 * sq:5 * sq, :e1].set(e1_w)
        ex_w = ex_w.at[:, e1:].set(e3_w)
        params[name] = {
            "sq_w": sq_w.astype(jnp.bfloat16),
            "sq_b": sq_b,
            "ex_w": ex_w.astype(jnp.bfloat16),
            "ex_b": jnp.concatenate([e1_b, e3_b]),
        }

    # classifier conv: 3x3x512 -> n_class, Cout zero-padded to 128 for lane-dense
    # stores; logits are sliced back to n_class after pooling.
    w, b = _dense_params(keys[9], 9 * 512, n_class)
    w = jnp.pad(w, ((0, 0), (0, CLS_COUT_PAD - n_class)))
    b = jnp.pad(b, (0, CLS_COUT_PAD - n_class))
    params["cls_w"] = w.astype(jnp.bfloat16)
    params["cls_b"] = b
    return params


if __name__ == "__main__":
    n_class = 10
    key = jax.random.PRNGKey(0)
    pkey, xkey = jax.random.split(key)
    params = init_params(pkey, n_class=n_class)

    # PyTorch-style NCHW input: batch=2, 3 channels, 64x64 (small, but large
    # enough to survive conv1(stride 2) + three ceil-mode 3x3/2 max-pools).
    x = jax.random.normal(xkey, (2, 3, 64, 64), jnp.float32)

    fwd = jax.jit(functools.partial(squeezenet_forward, n_class=n_class))
    out = fwd(params, x)
    out = jax.block_until_ready(out)
    assert out.shape == (2, n_class), out.shape
    assert jnp.all(jnp.isfinite(out))
    print("KERNEL_OK")
</pallas_src>

<mosaic_0001>
module attributes {stable_mosaic.version = 11 : i64} {
  func.func @_matmul_bias_act_kernel(%arg0: i32, %arg1: memref<512x256xbf16, #tpu.memory_space<vmem>>, %arg2: memref<256x128xbf16, #tpu.memory_space<vmem>>, %arg3: memref<1x128xf32, #tpu.memory_space<vmem>>, %arg4: memref<512x128xbf16, #tpu.memory_space<vmem>>) attributes {dimension_semantics = [#tpu.dimension_semantics<parallel>], iteration_bounds = array<i64: 4>, scalar_prefetch = 0 : i64, scratch_operands = 0 : i64, tpu.core_type = #tpu.core_type<tc>, window_params = [{transform_indices = @transform_0, window_bounds = array<i64: 512, 256>}, {pipeline_mode = #tpu.pipeline_mode<synchronous>, transform_indices = @transform_1, window_bounds = array<i64: 256, 128>}, {pipeline_mode = #tpu.pipeline_mode<synchronous>, transform_indices = @transform_2, window_bounds = array<i64: 1, 128>}, {transform_indices = @transform_3, window_bounds = array<i64: 512, 128>}]} {
    %c0 = arith.constant 0 : index
    %c0_0 = arith.constant 0 : index
    %0 = vector.load %arg1[%c0, %c0_0] : memref<512x256xbf16, #tpu.memory_space<vmem>>, vector<512x256xbf16>
    %c0_1 = arith.constant 0 : index
    %c0_2 = arith.constant 0 : index
    %1 = vector.load %arg2[%c0_1, %c0_2] : memref<256x128xbf16, #tpu.memory_space<vmem>>, vector<256x128xbf16>
    %cst = arith.constant dense<0.000000e+00> : vector<512x128xf32>
    %2 = tpu.matmul %0, %1, %cst {dimension_numbers = #tpu.dot_dimension_numbers<[1], [0], [0], [1], [0, 0, 1, 1], [], []>} : vector<512x256xbf16>, vector<256x128xbf16>, vector<512x128xf32> -> vector<512x128xf32>
    %c0_3 = arith.constant 0 : index
    %c0_4 = arith.constant 0 : index
    %3 = vector.load %arg3[%c0_3, %c0_4] : memref<1x128xf32, #tpu.memory_space<vmem>>, vector<1x128xf32>
    %4 = vector.broadcast %3 : vector<1x128xf32> to vector<512x128xf32>
    %5 = arith.addf %2, %4 : vector<512x128xf32>
    %cst_5 = arith.constant 0.000000e+00 : f32
    %6 = vector.broadcast %cst_5 : f32 to vector<512x128xf32>
    %7 = arith.maximumf %5, %6 : vector<512x128xf32>
    %8 = arith.truncf %7 : vector<512x128xf32> to vector<512x128xbf16>
    %c0_6 = arith.constant 0 : index
    %c0_7 = arith.constant 0 : index
    %9 = vector.load %arg4[%c0_6, %c0_7] : memref<512x128xbf16, #tpu.memory_space<vmem>>, vector<512x128xbf16>
    tpu.vector_store %arg4[%c0_6, %c0_7], %8 {strides = array<i32>} : memref<512x128xbf16, #tpu.memory_space<vmem>>, vector<512x128xbf16>,
    return
  }
  func.func @transform_0(%arg0: i32) -> (i32, i32) {
    %c0_i32 = arith.constant 0 : i32
    %c0_i32_0 = arith.constant 0 : i32
    return %arg0, %c0_i32 : i32, i32
  }
  func.func @transform_1(%arg0: i32) -> (i32, i32) {
    %c0_i32 = arith.constant 0 : i32
    %c0_i32_0 = arith.constant 0 : i32
    %c0_i32_1 = arith.constant 0 : i32
    return %c0_i32, %c0_i32_0 : i32, i32
  }
  func.func @transform_2(%arg0: i32) -> (i32, i32) {
    %c0_i32 = arith.constant 0 : i32
    %c0_i32_0 = arith.constant 0 : i32
    %c0_i32_1 = arith.constant 0 : i32
    return %c0_i32, %c0_i32_0 : i32, i32
  }
  func.func @transform_3(%arg0: i32) -> (i32, i32) {
    %c0_i32 = arith.constant 0 : i32
    %c0_i32_0 = arith.constant 0 : i32
    return %arg0, %c0_i32 : i32, i32
  }
}

module attributes {stable_mosaic.version = 11 : i64} {
  func.func @_matmul_bias_act_kernel(%arg0: i32, %arg1: memref<392x128xbf16, #tpu.memory_space<vmem>>, %arg2: memref<128x16xbf16, #tpu.memory_space<vmem>>, %arg3: memref<1x16xf32, #tpu.memory_space<vmem>>, %arg4: memref<392x16xbf16, #tpu.memory_space<vmem>>) attributes {dimension_semantics = [#tpu.dimension_semantics<parallel>], iteration_bounds = array<i64: 1>, scalar_prefetch = 0 : i64, scratch_operands = 0 : i64, tpu.core_type = #tpu.core_type<tc>, window_params = [{transform_indices = @transform_0, window_bounds = array<i64: 392, 128>}, {pipeline_mode = #tpu.pipeline_mode<synchronous>, transform_indices = @transform_1, window_bounds = array<i64: 128, 16>}, {pipeline_mode = #tpu.pipeline_mode<synchronous>, transform_indices = @transform_2, window_bounds = array<i64: 1, 16>}, {transform_indices = @transform_3, window_bounds = array<i64: 392, 16>}]} {
    %c0 = arith.constant 0 : index
    %c0_0 = arith.constant 0 : index
    %0 = vector.load %arg1[%c0, %c0_0] : memref<392x128xbf16, #tpu.memory_space<vmem>>, vector<392x128xbf16>
    %c0_1 = arith.constant 0 : index
    %c0_2 = arith.constant 0 : index
    %1 = vector.load %arg2[%c0_1, %c0_2] : memref<128x16xbf16, #tpu.memory_space<vmem>>, vector<128x16xbf16>
    %cst = arith.constant dense<0.000000e+00> : vector<392x16xf32>
    %2 = tpu.matmul %0, %1, %cst {dimension_numbers = #tpu.dot_dimension_numbers<[1], [0], [0], [1], [0, 0, 1, 1], [], []>} : vector<392x128xbf16>, vector<128x16xbf16>, vector<392x16xf32> -> vector<392x16xf32>
    %c0_3 = arith.constant 0 : index
    %c0_4 = arith.constant 0 : index
    %3 = vector.load %arg3[%c0_3, %c0_4] : memref<1x16xf32, #tpu.memory_space<vmem>>, vector<1x16xf32>
    %4 = vector.broadcast %3 : vector<1x16xf32> to vector<392x16xf32>
    %5 = arith.addf %2, %4 : vector<392x16xf32>
    %cst_5 = arith.constant 0.000000e+00 : f32
    %6 = vector.broadcast %cst_5 : f32 to vector<392x16xf32>
    %7 = arith.maximumf %5, %6 : vector<392x16xf32>
    %8 = arith.truncf %7 : vector<392x16xf32> to vector<392x16xbf16>
    %c0_6 = arith.constant 0 : index
    %c0_7 = arith.constant 0 : index
    %9 = vector.load %arg4[%c0_6, %c0_7] : memref<392x16xbf16, #tpu.memory_space<vmem>>, vector<392x16xbf16>
    tpu.vector_store %arg4[%c0_6, %c0_7], %8 {strides = array<i32>} : memref<392x16xbf16, #tpu.memory_space<vmem>>, vector<392x16xbf16>,
    return
  }
  func.func @transform_0(%arg0: i32) -> (i32, i32) {
    %c0_i32 = arith.constant 0 : i32
    %c0_i32_0 = arith.constant 0 : i32
    return %arg0, %c0_i32 : i32, i32
  }
  func.func @transform_1(%arg0: i32) -> (i32, i32) {
    %c0_i32 = arith.constant 0 : i32
    %c0_i32_0 = arith.constant 0 : i32
    %c0_i32_1 = arith.constant 0 : i32
    return %c0_i32, %c0_i32_0 : i32, i32
  }
  func.func @transform_2(%arg0: i32) -> (i32, i32) {
    %c0_i32 = arith.constant 0 : i32
    %c0_i32_0 = arith.constant 0 : i32
    %c0_i32_1 = arith.constant 0 : i32
    return %c0_i32, %c0_i32_0 : i32, i32
  }
  func.func @transform_3(%arg0: i32) -> (i32, i32) {
    %c0_i32 = arith.constant 0 : i32
    %c0_i32_0 = arith.constant 0 : i32
    return %arg0, %c0_i32 : i32, i32
  }
}

module attributes {stable_mosaic.version = 11 : i64} {
  func.func @_matmul_bias_act_kernel(%arg0: i32, %arg1: memref<392x144xbf16, #tpu.memory_space<vmem>>, %arg2: memref<144x128xbf16, #tpu.memory_space<vmem>>, %arg3: memref<1x128xf32, #tpu.memory_space<vmem>>, %arg4: memref<392x128xbf16, #tpu.memory_space<vmem>>) attributes {dimension_semantics = [#tpu.dimension_semantics<parallel>], iteration_bounds = array<i64: 1>, scalar_prefetch = 0 : i64, scratch_operands = 0 : i64, tpu.core_type = #tpu.core_type<tc>, window_params = [{transform_indices = @transform_0, window_bounds = array<i64: 392, 144>}, {pipeline_mode = #tpu.pipeline_mode<synchronous>, transform_indices = @transform_1, window_bounds = array<i64: 144, 128>}, {pipeline_mode = #tpu.pipeline_mode<synchronous>, transform_indices = @transform_2, window_bounds = array<i64: 1, 128>}, {transform_indices = @transform_3, window_bounds = array<i64: 392, 128>}]} {
    %c0 = arith.constant 0 : index
    %c0_0 = arith.constant 0 : index
    %0 = vector.load %arg1[%c0, %c0_0] : memref<392x144xbf16, #tpu.memory_space<vmem>>, vector<392x144xbf16>
    %c0_1 = arith.constant 0 : index
    %c0_2 = arith.constant 0 : index
    %1 = vector.load %arg2[%c0_1, %c0_2] : memref<144x128xbf16, #tpu.memory_space<vmem>>, vector<144x128xbf16>
    %cst = arith.constant dense<0.000000e+00> : vector<392x128xf32>
    %2 = tpu.matmul %0, %1, %cst {dimension_numbers = #tpu.dot_dimension_numbers<[1], [0], [0], [1], [0, 0, 1, 1], [], []>} : vector<392x144xbf16>, vector<144x128xbf16>, vector<392x128xf32> -> vector<392x128xf32>
    %c0_3 = arith.constant 0 : index
    %c0_4 = arith.constant 0 : index
    %3 = vector.load %arg3[%c0_3, %c0_4] : memref<1x128xf32, #tpu.memory_space<vmem>>, vector<1x128xf32>
    %4 = vector.broadcast %3 : vector<1x128xf32> to vector<392x128xf32>
    %5 = arith.addf %2, %4 : vector<392x128xf32>
    %cst_5 = arith.constant 0.000000e+00 : f32
    %6 = vector.broadcast %cst_5 : f32 to vector<392x128xf32>
    %7 = arith.maximumf %5, %6 : vector<392x128xf32>
    %8 = arith.truncf %7 : vector<392x128xf32> to vector<392x128xbf16>
    %c0_6 = arith.constant 0 : index
    %c0_7 = arith.constant 0 : index
    %9 = vector.load %arg4[%c0_6, %c0_7] : memref<392x128xbf16, #tpu.memory_space<vmem>>, vector<392x128xbf16>
    tpu.vector_store %arg4[%c0_6, %c0_7], %8 {strides = array<i32>} : memref<392x128xbf16, #tpu.memory_space<vmem>>, vector<392x128xbf16>,
    return
  }
  func.func @transform_0(%arg0: i32) -> (i32, i32) {
    %c0_i32 = arith.constant 0 : i32
    %c0_i32_0 = arith.constant 0 : i32
    return %arg0, %c0_i32 : i32, i32
  }
  func.func @transform_1(%arg0: i32) -> (i32, i32) {
    %c0_i32 = arith.constant 0 : i32
    %c0_i32_0 = arith.constant 0 : i32
    %c0_i32_1 = arith.constant 0 : i32
    return %c0_i32, %c0_i32_0 : i32, i32
  }
  func.func @transform_2(%arg0: i32) -> (i32, i32) {
    %c0_i32 = arith.constant 0 : i32
    %c0_i32_0 = arith.constant 0 : i32
    %c0_i32_1 = arith.constant 0 : i32
    return %c0_i32, %c0_i32_0 : i32, i32
  }
  func.func @transform_3(%arg0: i32) -> (i32, i32) {
    %c0_i32 = arith.constant 0 : i32
    %c0_i32_0 = arith.constant 0 : i32
    return %arg0, %c0_i32 : i32, i32
  }
}

module attributes {stable_mosaic.version = 11 : i64} {
  func.func @_matmul_bias_act_kernel(%arg0: i32, %arg1: memref<392x128xbf16, #tpu.memory_space<vmem>>, %arg2: memref<128x32xbf16, #tpu.memory_space<vmem>>, %arg3: memref<1x32xf32, #tpu.memory_space<vmem>>, %arg4: memref<392x32xbf16, #tpu.memory_space<vmem>>) attributes {dimension_semantics = [#tpu.dimension_semantics<parallel>], iteration_bounds = array<i64: 1>, scalar_prefetch = 0 : i64, scratch_operands = 0 : i64, tpu.core_type = #tpu.core_type<tc>, window_params = [{transform_indices = @transform_0, window_bounds = array<i64: 392, 128>}, {pipeline_mode = #tpu.pipeline_mode<synchronous>, transform_indices = @transform_1, window_bounds = array<i64: 128, 32>}, {pipeline_mode = #tpu.pipeline_mode<synchronous>, transform_indices = @transform_2, window_bounds = array<i64: 1, 32>}, {transform_indices = @transform_3, window_bounds = array<i64: 392, 32>}]} {
    %c0 = arith.constant 0 : index
    %c0_0 = arith.constant 0 : index
    %0 = vector.load %arg1[%c0, %c0_0] : memref<392x128xbf16, #tpu.memory_space<vmem>>, vector<392x128xbf16>
    %c0_1 = arith.constant 0 : index
    %c0_2 = arith.constant 0 : index
    %1 = vector.load %arg2[%c0_1, %c0_2] : memref<128x32xbf16, #tpu.memory_space<vmem>>, vector<128x32xbf16>
    %cst = arith.constant dense<0.000000e+00> : vector<392x32xf32>
    %2 = tpu.matmul %0, %1, %cst {dimension_numbers = #tpu.dot_dimension_numbers<[1], [0], [0], [1], [0, 0, 1, 1], [], []>} : vector<392x128xbf16>, vector<128x32xbf16>, vector<392x32xf32> -> vector<392x32xf32>
    %c0_3 = arith.constant 0 : index
    %c0_4 = arith.constant 0 : index
    %3 = vector.load %arg3[%c0_3, %c0_4] : memref<1x32xf32, #tpu.memory_space<vmem>>, vector<1x32xf32>
    %4 = vector.broadcast %3 : vector<1x32xf32> to vector<392x32xf32>
    %5 = arith.addf %2, %4 : vector<392x32xf32>
    %cst_5 = arith.constant 0.000000e+00 : f32
    %6 = vector.broadcast %cst_5 : f32 to vector<392x32xf32>
    %7 = arith.maximumf %5, %6 : vector<392x32xf32>
    %8 = arith.truncf %7 : vector<392x32xf32> to vector<392x32xbf16>
    %c0_6 = arith.constant 0 : index
    %c0_7 = arith.constant 0 : index
    %9 = vector.load %arg4[%c0_6, %c0_7] : memref<392x32xbf16, #tpu.memory_space<vmem>>, vector<392x32xbf16>
    tpu.vector_store %arg4[%c0_6, %c0_7], %8 {strides = array<i32>} : memref<392x32xbf16, #tpu.memory_space<vmem>>, vector<392x32xbf16>,
    return
  }
  func.func @transform_0(%arg0: i32) -> (i32, i32) {
    %c0_i32 = arith.constant 0 : i32
    %c0_i32_0 = arith.constant 0 : i32
    return %arg0, %c0_i32 : i32, i32
  }
  func.func @transform_1(%arg0: i32) -> (i32, i32) {
    %c0_i32 = arith.constant 0 : i32
    %c0_i32_0 = arith.constant 0 : i32
    %c0_i32_1 = arith.constant 0 : i32
    return %c0_i32, %c0_i32_0 : i32, i32
  }
  func.func @transform_2(%arg0: i32) -> (i32, i32) {
    %c0_i32 = arith.constant 0 : i32
    %c0_i32_0 = arith.constant 0 : i32
    %c0_i32_1 = arith.constant 0 : i32
    return %c0_i32, %c0_i32_0 : i32, i32
  }
  func.func @transform_3(%arg0: i32) -> (i32, i32) {
    %c0_i32 = arith.constant 0 : i32
    %c0_i32_0 = arith.constant 0 : i32
    return %arg0, %c0_i32 : i32, i32
  }
}

module attributes {stable_mosaic.version = 11 : i64} {
  func.func @_matmul_bias_act_kernel(%arg0: i32, %arg1: memref<392x288xbf16, #tpu.memory_space<vmem>>, %arg2: memref<288x256xbf16, #tpu.memory_space<vmem>>, %arg3: memref<1x256xf32, #tpu.memory_space<vmem>>, %arg4: memref<392x256xbf16, #tpu.memory_space<vmem>>) attributes {dimension_semantics = [#tpu.dimension_semantics<parallel>], iteration_bounds = array<i64: 1>, scalar_prefetch = 0 : i64, scratch_operands = 0 : i64, tpu.core_type = #tpu.core_type<tc>, window_params = [{transform_indices = @transform_0, window_bounds = array<i64: 392, 288>}, {pipeline_mode = #tpu.pipeline_mode<synchronous>, transform_indices = @transform_1, window_bounds = array<i64: 288, 256>}, {pipeline_mode = #tpu.pipeline_mode<synchronous>, transform_indices = @transform_2, window_bounds = array<i64: 1, 256>}, {transform_indices = @transform_3, window_bounds = array<i64: 392, 256>}]} {
    %c0 = arith.constant 0 : index
    %c0_0 = arith.constant 0 : index
    %0 = vector.load %arg1[%c0, %c0_0] : memref<392x288xbf16, #tpu.memory_space<vmem>>, vector<392x288xbf16>
    %c0_1 = arith.constant 0 : index
    %c0_2 = arith.constant 0 : index
    %1 = vector.load %arg2[%c0_1, %c0_2] : memref<288x256xbf16, #tpu.memory_space<vmem>>, vector<288x256xbf16>
    %cst = arith.constant dense<0.000000e+00> : vector<392x256xf32>
    %2 = tpu.matmul %0, %1, %cst {dimension_numbers = #tpu.dot_dimension_numbers<[1], [0], [0], [1], [0, 0, 1, 1], [], []>} : vector<392x288xbf16>, vector<288x256xbf16>, vector<392x256xf32> -> vector<392x256xf32>
    %c0_3 = arith.constant 0 : index
    %c0_4 = arith.constant 0 : index
    %3 = vector.load %arg3[%c0_3, %c0_4] : memref<1x256xf32, #tpu.memory_space<vmem>>, vector<1x256xf32>
    %4 = vector.broadcast %3 : vector<1x256xf32> to vector<392x256xf32>
    %5 = arith.addf %2, %4 : vector<392x256xf32>
    %cst_5 = arith.constant 0.000000e+00 : f32
    %6 = vector.broadcast %cst_5 : f32 to vector<392x256xf32>
    %7 = arith.maximumf %5, %6 : vector<392x256xf32>
    %8 = arith.truncf %7 : vector<392x256xf32> to vector<392x256xbf16>
    %c0_6 = arith.constant 0 : index
    %c0_7 = arith.constant 0 : index
    %9 = vector.load %arg4[%c0_6, %c0_7] : memref<392x256xbf16, #tpu.memory_space<vmem>>, vector<392x256xbf16>
    tpu.vector_store %arg4[%c0_6, %c0_7], %8 {strides = array<i32>} : memref<392x256xbf16, #tpu.memory_space<vmem>>, vector<392x256xbf16>,
    return
  }
  func.func @transform_0(%arg0: i32) -> (i32, i32) {
    %c0_i32 = arith.constant 0 : i32
    %c0_i32_0 = arith.constant 0 : i32
    return %arg0, %c0_i32 : i32, i32
  }
  func.func @transform_1(%arg0: i32) -> (i32, i32) {
    %c0_i32 = arith.constant 0 : i32
    %c0_i32_0 = arith.constant 0 : i32
    %c0_i32_1 = arith.constant 0 : i32
    return %c0_i32, %c0_i32_0 : i32, i32
  }
  func.func @transform_2(%arg0: i32) -> (i32, i32) {
    %c0_i32 = arith.constant 0 : i32
    %c0_i32_0 = arith.constant 0 : i32
    %c0_i32_1 = arith.constant 0 : i32
    return %c0_i32, %c0_i32_0 : i32, i32
  }
  func.func @transform_3(%arg0: i32) -> (i32, i32) {
    %c0_i32 = arith.constant 0 : i32
    %c0_i32_0 = arith.constant 0 : i32
    return %arg0, %c0_i32 : i32, i32
  }
}

module attributes {stable_mosaic.version = 11 : i64} {
  func.func @_matmul_bias_act_kernel(%arg0: i32, %arg1: memref<104x256xbf16, #tpu.memory_space<vmem>>, %arg2: memref<256x32xbf16, #tpu.memory_space<vmem>>, %arg3: memref<1x32xf32, #tpu.memory_space<vmem>>, %arg4: memref<104x32xbf16, #tpu.memory_space<vmem>>) attributes {dimension_semantics = [#tpu.dimension_semantics<parallel>], iteration_bounds = array<i64: 1>, scalar_prefetch = 0 : i64, scratch_operands = 0 : i64, tpu.core_type = #tpu.core_type<tc>, window_params = [{transform_indices = @transform_0, window_bounds = array<i64: 104, 256>}, {pipeline_mode = #tpu.pipeline_mode<synchronous>, transform_indices = @transform_1, window_bounds = array<i64: 256, 32>}, {pipeline_mode = #tpu.pipeline_mode<synchronous>, transform_indices = @transform_2, window_bounds = array<i64: 1, 32>}, {transform_indices = @transform_3, window_bounds = array<i64: 104, 32>}]} {
    %c0 = arith.constant 0 : index
    %c0_0 = arith.constant 0 : index
    %0 = vector.load %arg1[%c0, %c0_0] : memref<104x256xbf16, #tpu.memory_space<vmem>>, vector<104x256xbf16>
    %c0_1 = arith.constant 0 : index
    %c0_2 = arith.constant 0 : index
    %1 = vector.load %arg2[%c0_1, %c0_2] : memref<256x32xbf16, #tpu.memory_space<vmem>>, vector<256x32xbf16>
    %cst = arith.constant dense<0.000000e+00> : vector<104x32xf32>
    %2 = tpu.matmul %0, %1, %cst {dimension_numbers = #tpu.dot_dimension_numbers<[1], [0], [0], [1], [0, 0, 1, 1], [], []>} : vector<104x256xbf16>, vector<256x32xbf16>, vector<104x32xf32> -> vector<104x32xf32>
    %c0_3 = arith.constant 0 : index
    %c0_4 = arith.constant 0 : index
    %3 = vector.load %arg3[%c0_3, %c0_4] : memref<1x32xf32, #tpu.memory_space<vmem>>, vector<1x32xf32>
    %4 = vector.broadcast %3 : vector<1x32xf32> to vector<104x32xf32>
    %5 = arith.addf %2, %4 : vector<104x32xf32>
    %cst_5 = arith.constant 0.000000e+00 : f32
    %6 = vector.broadcast %cst_5 : f32 to vector<104x32xf32>
    %7 = arith.maximumf %5, %6 : vector<104x32xf32>
    %8 = arith.truncf %7 : vector<104x32xf32> to vector<104x32xbf16>
    %c0_6 = arith.constant 0 : index
    %c0_7 = arith.constant 0 : index
    %9 = vector.load %arg4[%c0_6, %c0_7] : memref<104x32xbf16, #tpu.memory_space<vmem>>, vector<104x32xbf16>
    tpu.vector_store %arg4[%c0_6, %c0_7], %8 {strides = array<i32>} : memref<104x32xbf16, #tpu.memory_space<vmem>>, vector<104x32xbf16>,
    return
  }
  func.func @transform_0(%arg0: i32) -> (i32, i32) {
    %c0_i32 = arith.constant 0 : i32
    %c0_i32_0 = arith.constant 0 : i32
    return %arg0, %c0_i32 : i32, i32
  }
  func.func @transform_1(%arg0: i32) -> (i32, i32) {
    %c0_i32 = arith.constant 0 : i32
    %c0_i32_0 = arith.constant 0 : i32
    %c0_i32_1 = arith.constant 0 : i32
    return %c0_i32, %c0_i32_0 : i32, i32
  }
  func.func @transform_2(%arg0: i32) -> (i32, i32) {
    %c0_i32 = arith.constant 0 : i32
    %c0_i32_0 = arith.constant 0 : i32
    %c0_i32_1 = arith.constant 0 : i32
    return %c0_i32, %c0_i32_0 : i32, i32
  }
  func.func @transform_3(%arg0: i32) -> (i32, i32) {
    %c0_i32 = arith.constant 0 : i32
    %c0_i32_0 = arith.constant 0 : i32
    return %arg0, %c0_i32 : i32, i32
  }
}

module attributes {stable_mosaic.version = 11 : i64} {
  func.func @_matmul_bias_act_kernel(%arg0: i32, %arg1: memref<104x288xbf16, #tpu.memory_space<vmem>>, %arg2: memref<288x256xbf16, #tpu.memory_space<vmem>>, %arg3: memref<1x256xf32, #tpu.memory_space<vmem>>, %arg4: memref<104x256xbf16, #tpu.memory_space<vmem>>) attributes {dimension_semantics = [#tpu.dimension_semantics<parallel>], iteration_bounds = array<i64: 1>, scalar_prefetch = 0 : i64, scratch_operands = 0 : i64, tpu.core_type = #tpu.core_type<tc>, window_params = [{transform_indices = @transform_0, window_bounds = array<i64: 104, 288>}, {pipeline_mode = #tpu.pipeline_mode<synchronous>, transform_indices = @transform_1, window_bounds = array<i64: 288, 256>}, {pipeline_mode = #tpu.pipeline_mode<synchronous>, transform_indices = @transform_2, window_bounds = array<i64: 1, 256>}, {transform_indices = @transform_3, window_bounds = array<i64: 104, 256>}]} {
    %c0 = arith.constant 0 : index
    %c0_0 = arith.constant 0 : index
    %0 = vector.load %arg1[%c0, %c0_0] : memref<104x288xbf16, #tpu.memory_space<vmem>>, vector<104x288xbf16>
    %c0_1 = arith.constant 0 : index
    %c0_2 = arith.constant 0 : index
    %1 = vector.load %arg2[%c0_1, %c0_2] : memref<288x256xbf16, #tpu.memory_space<vmem>>, vector<288x256xbf16>
    %cst = arith.constant dense<0.000000e+00> : vector<104x256xf32>
    %2 = tpu.matmul %0, %1, %cst {dimension_numbers = #tpu.dot_dimension_numbers<[1], [0], [0], [1], [0, 0, 1, 1], [], []>} : vector<104x288xbf16>, vector<288x256xbf16>, vector<104x256xf32> -> vector<104x256xf32>
    %c0_3 = arith.constant 0 : index
    %c0_4 = arith.constant 0 : index
    %3 = vector.load %arg3[%c0_3, %c0_4] : memref<1x256xf32, #tpu.memory_space<vmem>>, vector<1x256xf32>
    %4 = vector.broadcast %3 : vector<1x256xf32> to vector<104x256xf32>
    %5 = arith.addf %2, %4 : vector<104x256xf32>
    %cst_5 = arith.constant 0.000000e+00 : f32
    %6 = vector.broadcast %cst_5 : f32 to vector<104x256xf32>
    %7 = arith.maximumf %5, %6 : vector<104x256xf32>
    %8 = arith.truncf %7 : vector<104x256xf32> to vector<104x256xbf16>
    %c0_6 = arith.constant 0 : index
    %c0_7 = arith.constant 0 : index
    %9 = vector.load %arg4[%c0_6, %c0_7] : memref<104x256xbf16, #tpu.memory_space<vmem>>, vector<104x256xbf16>
    tpu.vector_store %arg4[%c0_6, %c0_7], %8 {strides = array<i32>} : memref<104x256xbf16, #tpu.memory_space<vmem>>, vector<104x256xbf16>,
    return
  }
  func.func @transform_0(%arg0: i32) -> (i32, i32) {
    %c0_i32 = arith.constant 0 : i32
    %c0_i32_0 = arith.constant 0 : i32
    return %arg0, %c0_i32 : i32, i32
  }
  func.func @transform_1(%arg0: i32) -> (i32, i32) {
    %c0_i32 = arith.constant 0 : i32
    %c0_i32_0 = arith.constant 0 : i32
    %c0_i32_1 = arith.constant 0 : i32
    return %c0_i32, %c0_i32_0 : i32, i32
  }
  func.func @transform_2(%arg0: i32) -> (i32, i32) {
    %c0_i32 = arith.constant 0 : i32
    %c0_i32_0 = arith.constant 0 : i32
    %c0_i32_1 = arith.constant 0 : i32
    return %c0_i32, %c0_i32_0 : i32, i32
  }
  func.func @transform_3(%arg0: i32) -> (i32, i32) {
    %c0_i32 = arith.constant 0 : i32
    %c0_i32_0 = arith.constant 0 : i32
    return %arg0, %c0_i32 : i32, i32
  }
}

module attributes {stable_mosaic.version = 11 : i64} {
  func.func @_matmul_bias_act_kernel(%arg0: i32, %arg1: memref<104x256xbf16, #tpu.memory_space<vmem>>, %arg2: memref<256x48xbf16, #tpu.memory_space<vmem>>, %arg3: memref<1x48xf32, #tpu.memory_space<vmem>>, %arg4: memref<104x48xbf16, #tpu.memory_space<vmem>>) attributes {dimension_semantics = [#tpu.dimension_semantics<parallel>], iteration_bounds = array<i64: 1>, scalar_prefetch = 0 : i64, scratch_operands = 0 : i64, tpu.core_type = #tpu.core_type<tc>, window_params = [{transform_indices = @transform_0, window_bounds = array<i64: 104, 256>}, {pipeline_mode = #tpu.pipeline_mode<synchronous>, transform_indices = @transform_1, window_bounds = array<i64: 256, 48>}, {pipeline_mode = #tpu.pipeline_mode<synchronous>, transform_indices = @transform_2, window_bounds = array<i64: 1, 48>}, {transform_indices = @transform_3, window_bounds = array<i64: 104, 48>}]} {
    %c0 = arith.constant 0 : index
    %c0_0 = arith.constant 0 : index
    %0 = vector.load %arg1[%c0, %c0_0] : memref<104x256xbf16, #tpu.memory_space<vmem>>, vector<104x256xbf16>
    %c0_1 = arith.constant 0 : index
    %c0_2 = arith.constant 0 : index
    %1 = vector.load %arg2[%c0_1, %c0_2] : memref<256x48xbf16, #tpu.memory_space<vmem>>, vector<256x48xbf16>
    %cst = arith.constant dense<0.000000e+00> : vector<104x48xf32>
    %2 = tpu.matmul %0, %1, %cst {dimension_numbers = #tpu.dot_dimension_numbers<[1], [0], [0], [1], [0, 0, 1, 1], [], []>} : vector<104x256xbf16>, vector<256x48xbf16>, vector<104x48xf32> -> vector<104x48xf32>
    %c0_3 = arith.constant 0 : index
    %c0_4 = arith.constant 0 : index
    %3 = vector.load %arg3[%c0_3, %c0_4] : memref<1x48xf32, #tpu.memory_space<vmem>>, vector<1x48xf32>
    %4 = vector.broadcast %3 : vector<1x48xf32> to vector<104x48xf32>
    %5 = arith.addf %2, %4 : vector<104x48xf32>
    %cst_5 = arith.constant 0.000000e+00 : f32
    %6 = vector.broadcast %cst_5 : f32 to vector<104x48xf32>
    %7 = arith.maximumf %5, %6 : vector<104x48xf32>
    %8 = arith.truncf %7 : vector<104x48xf32> to vector<104x48xbf16>
    %c0_6 = arith.constant 0 : index
    %c0_7 = arith.constant 0 : index
    %9 = vector.load %arg4[%c0_6, %c0_7] : memref<104x48xbf16, #tpu.memory_space<vmem>>, vector<104x48xbf16>
    tpu.vector_store %arg4[%c0_6, %c0_7], %8 {strides = array<i32>} : memref<104x48xbf16, #tpu.memory_space<vmem>>, vector<104x48xbf16>,
    return
  }
  func.func @transform_0(%arg0: i32) -> (i32, i32) {
    %c0_i32 = arith.constant 0 : i32
    %c0_i32_0 = arith.constant 0 : i32
    return %arg0, %c0_i32 : i32, i32
  }
  func.func @transform_1(%arg0: i32) -> (i32, i32) {
    %c0_i32 = arith.constant 0 : i32
    %c0_i32_0 = arith.constant 0 : i32
    %c0_i32_1 = arith.constant 0 : i32
    return %c0_i32, %c0_i32_0 : i32, i32
  }
  func.func @transform_2(%arg0: i32) -> (i32, i32) {
    %c0_i32 = arith.constant 0 : i32
    %c0_i32_0 = arith.constant 0 : i32
    %c0_i32_1 = arith.constant 0 : i32
    return %c0_i32, %c0_i32_0 : i32, i32
  }
  func.func @transform_3(%arg0: i32) -> (i32, i32) {
    %c0_i32 = arith.constant 0 : i32
    %c0_i32_0 = arith.constant 0 : i32
    return %arg0, %c0_i32 : i32, i32
  }
}

module attributes {stable_mosaic.version = 11 : i64} {
  func.func @_matmul_bias_act_kernel(%arg0: i32, %arg1: memref<104x432xbf16, #tpu.memory_space<vmem>>, %arg2: memref<432x384xbf16, #tpu.memory_space<vmem>>, %arg3: memref<1x384xf32, #tpu.memory_space<vmem>>, %arg4: memref<104x384xbf16, #tpu.memory_space<vmem>>) attributes {dimension_semantics = [#tpu.dimension_semantics<parallel>], iteration_bounds = array<i64: 1>, scalar_prefetch = 0 : i64, scratch_operands = 0 : i64, tpu.core_type = #tpu.core_type<tc>, window_params = [{transform_indices = @transform_0, window_bounds = array<i64: 104, 432>}, {pipeline_mode = #tpu.pipeline_mode<synchronous>, transform_indices = @transform_1, window_bounds = array<i64: 432, 384>}, {pipeline_mode = #tpu.pipeline_mode<synchronous>, transform_indices = @transform_2, window_bounds = array<i64: 1, 384>}, {transform_indices = @transform_3, window_bounds = array<i64: 104, 384>}]} {
    %c0 = arith.constant 0 : index
    %c0_0 = arith.constant 0 : index
    %0 = vector.load %arg1[%c0, %c0_0] : memref<104x432xbf16, #tpu.memory_space<vmem>>, vector<104x432xbf16>
    %c0_1 = arith.constant 0 : index
    %c0_2 = arith.constant 0 : index
    %1 = vector.load %arg2[%c0_1, %c0_2] : memref<432x384xbf16, #tpu.memory_space<vmem>>, vector<432x384xbf16>
    %cst = arith.constant dense<0.000000e+00> : vector<104x384xf32>
    %2 = tpu.matmul %0, %1, %cst {dimension_numbers = #tpu.dot_dimension_numbers<[1], [0], [0], [1], [0, 0, 1, 1], [], []>} : vector<104x432xbf16>, vector<432x384xbf16>, vector<104x384xf32> -> vector<104x384xf32>
    %c0_3 = arith.constant 0 : index
    %c0_4 = arith.constant 0 : index
    %3 = vector.load %arg3[%c0_3, %c0_4] : memref<1x384xf32, #tpu.memory_space<vmem>>, vector<1x384xf32>
    %4 = vector.broadcast %3 : vector<1x384xf32> to vector<104x384xf32>
    %5 = arith.addf %2, %4 : vector<104x384xf32>
    %cst_5 = arith.constant 0.000000e+00 : f32
    %6 = vector.broadcast %cst_5 : f32 to vector<104x384xf32>
    %7 = arith.maximumf %5, %6 : vector<104x384xf32>
    %8 = arith.truncf %7 : vector<104x384xf32> to vector<104x384xbf16>
    %c0_6 = arith.constant 0 : index
    %c0_7 = arith.constant 0 : index
    %9 = vector.load %arg4[%c0_6, %c0_7] : memref<104x384xbf16, #tpu.memory_space<vmem>>, vector<104x384xbf16>
    tpu.vector_store %arg4[%c0_6, %c0_7], %8 {strides = array<i32>} : memref<104x384xbf16, #tpu.memory_space<vmem>>, vector<104x384xbf16>,
    return
  }
  func.func @transform_0(%arg0: i32) -> (i32, i32) {
    %c0_i32 = arith.constant 0 : i32
    %c0_i32_0 = arith.constant 0 : i32
    return %arg0, %c0_i32 : i32, i32
  }
  func.func @transform_1(%arg0: i32) -> (i32, i32) {
    %c0_i32 = arith.constant 0 : i32
    %c0_i32_0 = arith.constant 0 : i32
    %c0_i32_1 = arith.constant 0 : i32
    return %c0_i32, %c0_i32_0 : i32, i32
  }
  func.func @transform_2(%arg0: i32) -> (i32, i32) {
    %c0_i32 = arith.constant 0 : i32
    %c0_i32_0 = arith.constant 0 : i32
    %c0_i32_1 = arith.constant 0 : i32
    return %c0_i32, %c0_i32_0 : i32, i32
  }
  func.func @transform_3(%arg0: i32) -> (i32, i32) {
    %c0_i32 = arith.constant 0 : i32
    %c0_i32_0 = arith.constant 0 : i32
    return %arg0, %c0_i32 : i32, i32
  }
}

module attributes {stable_mosaic.version = 11 : i64} {
  func.func @_matmul_bias_act_kernel(%arg0: i32, %arg1: memref<104x384xbf16, #tpu.memory_space<vmem>>, %arg2: memref<384x48xbf16, #tpu.memory_space<vmem>>, %arg3: memref<1x48xf32, #tpu.memory_space<vmem>>, %arg4: memref<104x48xbf16, #tpu.memory_space<vmem>>) attributes {dimension_semantics = [#tpu.dimension_semantics<parallel>], iteration_bounds = array<i64: 1>, scalar_prefetch = 0 : i64, scratch_operands = 0 : i64, tpu.core_type = #tpu.core_type<tc>, window_params = [{transform_indices = @transform_0, window_bounds = array<i64: 104, 384>}, {pipeline_mode = #tpu.pipeline_mode<synchronous>, transform_indices = @transform_1, window_bounds = array<i64: 384, 48>}, {pipeline_mode = #tpu.pipeline_mode<synchronous>, transform_indices = @transform_2, window_bounds = array<i64: 1, 48>}, {transform_indices = @transform_3, window_bounds = array<i64: 104, 48>}]} {
    %c0 = arith.constant 0 : index
    %c0_0 = arith.constant 0 : index
    %0 = vector.load %arg1[%c0, %c0_0] : memref<104x384xbf16, #tpu.memory_space<vmem>>, vector<104x384xbf16>
    %c0_1 = arith.constant 0 : index
    %c0_2 = arith.constant 0 : index
    %1 = vector.load %arg2[%c0_1, %c0_2] : memref<384x48xbf16, #tpu.memory_space<vmem>>, vector<384x48xbf16>
    %cst = arith.constant dense<0.000000e+00> : vector<104x48xf32>
    %2 = tpu.matmul %0, %1, %cst {dimension_numbers = #tpu.dot_dimension_numbers<[1], [0], [0], [1], [0, 0, 1, 1], [], []>} : vector<104x384xbf16>, vector<384x48xbf16>, vector<104x48xf32> -> vector<104x48xf32>
    %c0_3 = arith.constant 0 : index
    %c0_4 = arith.constant 0 : index
    %3 = vector.load %arg3[%c0_3, %c0_4] : memref<1x48xf32, #tpu.memory_space<vmem>>, vector<1x48xf32>
    %4 = vector.broadcast %3 : vector<1x48xf32> to vector<104x48xf32>
    %5 = arith.addf %2, %4 : vector<104x48xf32>
    %cst_5 = arith.constant 0.000000e+00 : f32
    %6 = vector.broadcast %cst_5 : f32 to vector<104x48xf32>
    %7 = arith.maximumf %5, %6 : vector<104x48xf32>
    %8 = arith.truncf %7 : vector<104x48xf32> to vector<104x48xbf16>
    %c0_6 = arith.constant 0 : index
    %c0_7 = arith.constant 0 : index
    %9 = vector.load %arg4[%c0_6, %c0_7] : memref<104x48xbf16, #tpu.memory_space<vmem>>, vector<104x48xbf16>
    tpu.vector_store %arg4[%c0_6, %c0_7], %8 {strides = array<i32>} : memref<104x48xbf16, #tpu.memory_space<vmem>>, vector<104x48xbf16>,
    return
  }
  func.func @transform_0(%arg0: i32) -> (i32, i32) {
    %c0_i32 = arith.constant 0 : i32
    %c0_i32_0 = arith.constant 0 : i32
    return %arg0, %c0_i32 : i32, i32
  }
  func.func @transform_1(%arg0: i32) -> (i32, i32) {
    %c0_i32 = arith.constant 0 : i32
    %c0_i32_0 = arith.constant 0 : i32
    %c0_i32_1 = arith.constant 0 : i32
    return %c0_i32, %c0_i32_0 : i32, i32
  }
  func.func @transform_2(%arg0: i32) -> (i32, i32) {
    %c0_i32 = arith.constant 0 : i32
    %c0_i32_0 = arith.constant 0 : i32
    %c0_i32_1 = arith.constant 0 : i32
    return %c0_i32, %c0_i32_0 : i32, i32
  }
  func.func @transform_3(%arg0: i32) -> (i32, i32) {
    %c0_i32 = arith.constant 0 : i32
    %c0_i32_0 = arith.constant 0 : i32
    return %arg0, %c0_i32 : i32, i32
  }
}

module attributes {stable_mosaic.version = 11 : i64} {
  func.func @_matmul_bias_act_kernel(%arg0: i32, %arg1: memref<104x384xbf16, #tpu.memory_space<vmem>>, %arg2: memref<384x64xbf16, #tpu.memory_space<vmem>>, %arg3: memref<1x64xf32, #tpu.memory_space<vmem>>, %arg4: memref<104x64xbf16, #tpu.memory_space<vmem>>) attributes {dimension_semantics = [#tpu.dimension_semantics<parallel>], iteration_bounds = array<i64: 1>, scalar_prefetch = 0 : i64, scratch_operands = 0 : i64, tpu.core_type = #tpu.core_type<tc>, window_params = [{transform_indices = @transform_0, window_bounds = array<i64: 104, 384>}, {pipeline_mode = #tpu.pipeline_mode<synchronous>, transform_indices = @transform_1, window_bounds = array<i64: 384, 64>}, {pipeline_mode = #tpu.pipeline_mode<synchronous>, transform_indices = @transform_2, window_bounds = array<i64: 1, 64>}, {transform_indices = @transform_3, window_bounds = array<i64: 104, 64>}]} {
    %c0 = arith.constant 0 : index
    %c0_0 = arith.constant 0 : index
    %0 = vector.load %arg1[%c0, %c0_0] : memref<104x384xbf16, #tpu.memory_space<vmem>>, vector<104x384xbf16>
    %c0_1 = arith.constant 0 : index
    %c0_2 = arith.constant 0 : index
    %1 = vector.load %arg2[%c0_1, %c0_2] : memref<384x64xbf16, #tpu.memory_space<vmem>>, vector<384x64xbf16>
    %cst = arith.constant dense<0.000000e+00> : vector<104x64xf32>
    %2 = tpu.matmul %0, %1, %cst {dimension_numbers = #tpu.dot_dimension_numbers<[1], [0], [0], [1], [0, 0, 1, 1], [], []>} : vector<104x384xbf16>, vector<384x64xbf16>, vector<104x64xf32> -> vector<104x64xf32>
    %c0_3 = arith.constant 0 : index
    %c0_4 = arith.constant 0 : index
    %3 = vector.load %arg3[%c0_3, %c0_4] : memref<1x64xf32, #tpu.memory_space<vmem>>, vector<1x64xf32>
    %4 = vector.broadcast %3 : vector<1x64xf32> to vector<104x64xf32>
    %5 = arith.addf %2, %4 : vector<104x64xf32>
    %cst_5 = arith.constant 0.000000e+00 : f32
    %6 = vector.broadcast %cst_5 : f32 to vector<104x64xf32>
    %7 = arith.maximumf %5, %6 : vector<104x64xf32>
    %8 = arith.truncf %7 : vector<104x64xf32> to vector<104x64xbf16>
    %c0_6 = arith.constant 0 : index
    %c0_7 = arith.constant 0 : index
    %9 = vector.load %arg4[%c0_6, %c0_7] : memref<104x64xbf16, #tpu.memory_space<vmem>>, vector<104x64xbf16>
    tpu.vector_store %arg4[%c0_6, %c0_7], %8 {strides = array<i32>} : memref<104x64xbf16, #tpu.memory_space<vmem>>, vector<104x64xbf16>,
    return
  }
  func.func @transform_0(%arg0: i32) -> (i32, i32) {
    %c0_i32 = arith.constant 0 : i32
    %c0_i32_0 = arith.constant 0 : i32
    return %arg0, %c0_i32 : i32, i32
  }
  func.func @transform_1(%arg0: i32) -> (i32, i32) {
    %c0_i32 = arith.constant 0 : i32
    %c0_i32_0 = arith.constant 0 : i32
    %c0_i32_1 = arith.constant 0 : i32
    return %c0_i32, %c0_i32_0 : i32, i32
  }
  func.func @transform_2(%arg0: i32) -> (i32, i32) {
    %c0_i32 = arith.constant 0 : i32
    %c0_i32_0 = arith.constant 0 : i32
    %c0_i32_1 = arith.constant 0 : i32
    return %c0_i32, %c0_i32_0 : i32, i32
  }
  func.func @transform_3(%arg0: i32) -> (i32, i32) {
    %c0_i32 = arith.constant 0 : i32
    %c0_i32_0 = arith.constant 0 : i32
    return %arg0, %c0_i32 : i32, i32
  }
}

module attributes {stable_mosaic.version = 11 : i64} {
  func.func @_matmul_bias_act_kernel(%arg0: i32, %arg1: memref<104x576xbf16, #tpu.memory_space<vmem>>, %arg2: memref<576x512xbf16, #tpu.memory_space<vmem>>, %arg3: memref<1x512xf32, #tpu.memory_space<vmem>>, %arg4: memref<104x512xbf16, #tpu.memory_space<vmem>>) attributes {dimension_semantics = [#tpu.dimension_semantics<parallel>], iteration_bounds = array<i64: 1>, scalar_prefetch = 0 : i64, scratch_operands = 0 : i64, tpu.core_type = #tpu.core_type<tc>, window_params = [{transform_indices = @transform_0, window_bounds = array<i64: 104, 576>}, {pipeline_mode = #tpu.pipeline_mode<synchronous>, transform_indices = @transform_1, window_bounds = array<i64: 576, 512>}, {pipeline_mode = #tpu.pipeline_mode<synchronous>, transform_indices = @transform_2, window_bounds = array<i64: 1, 512>}, {transform_indices = @transform_3, window_bounds = array<i64: 104, 512>}]} {
    %c0 = arith.constant 0 : index
    %c0_0 = arith.constant 0 : index
    %0 = vector.load %arg1[%c0, %c0_0] : memref<104x576xbf16, #tpu.memory_space<vmem>>, vector<104x576xbf16>
    %c0_1 = arith.constant 0 : index
    %c0_2 = arith.constant 0 : index
    %1 = vector.load %arg2[%c0_1, %c0_2] : memref<576x512xbf16, #tpu.memory_space<vmem>>, vector<576x512xbf16>
    %cst = arith.constant dense<0.000000e+00> : vector<104x512xf32>
    %2 = tpu.matmul %0, %1, %cst {dimension_numbers = #tpu.dot_dimension_numbers<[1], [0], [0], [1], [0, 0, 1, 1], [], []>} : vector<104x576xbf16>, vector<576x512xbf16>, vector<104x512xf32> -> vector<104x512xf32>
    %c0_3 = arith.constant 0 : index
    %c0_4 = arith.constant 0 : index
    %3 = vector.load %arg3[%c0_3, %c0_4] : memref<1x512xf32, #tpu.memory_space<vmem>>, vector<1x512xf32>
    %4 = vector.broadcast %3 : vector<1x512xf32> to vector<104x512xf32>
    %5 = arith.addf %2, %4 : vector<104x512xf32>
    %cst_5 = arith.constant 0.000000e+00 : f32
    %6 = vector.broadcast %cst_5 : f32 to vector<104x512xf32>
    %7 = arith.maximumf %5, %6 : vector<104x512xf32>
    %8 = arith.truncf %7 : vector<104x512xf32> to vector<104x512xbf16>
    %c0_6 = arith.constant 0 : index
    %c0_7 = arith.constant 0 : index
    %9 = vector.load %arg4[%c0_6, %c0_7] : memref<104x512xbf16, #tpu.memory_space<vmem>>, vector<104x512xbf16>
    tpu.vector_store %arg4[%c0_6, %c0_7], %8 {strides = array<i32>} : memref<104x512xbf16, #tpu.memory_space<vmem>>, vector<104x512xbf16>,
    return
  }
  func.func @transform_0(%arg0: i32) -> (i32, i32) {
    %c0_i32 = arith.constant 0 : i32
    %c0_i32_0 = arith.constant 0 : i32
    return %arg0, %c0_i32 : i32, i32
  }
  func.func @transform_1(%arg0: i32) -> (i32, i32) {
    %c0_i32 = arith.constant 0 : i32
    %c0_i32_0 = arith.constant 0 : i32
    %c0_i32_1 = arith.constant 0 : i32
    return %c0_i32, %c0_i32_0 : i32, i32
  }
  func.func @transform_2(%arg0: i32) -> (i32, i32) {
    %c0_i32 = arith.constant 0 : i32
    %c0_i32_0 = arith.constant 0 : i32
    %c0_i32_1 = arith.constant 0 : i32
    return %c0_i32, %c0_i32_0 : i32, i32
  }
  func.func @transform_3(%arg0: i32) -> (i32, i32) {
    %c0_i32 = arith.constant 0 : i32
    %c0_i32_0 = arith.constant 0 : i32
    return %arg0, %c0_i32 : i32, i32
  }
}

module attributes {stable_mosaic.version = 11 : i64} {
  func.func @_matmul_bias_act_kernel(%arg0: i32, %arg1: memref<24x512xbf16, #tpu.memory_space<vmem>>, %arg2: memref<512x64xbf16, #tpu.memory_space<vmem>>, %arg3: memref<1x64xf32, #tpu.memory_space<vmem>>, %arg4: memref<24x64xbf16, #tpu.memory_space<vmem>>) attributes {dimension_semantics = [#tpu.dimension_semantics<parallel>], iteration_bounds = array<i64: 1>, scalar_prefetch = 0 : i64, scratch_operands = 0 : i64, tpu.core_type = #tpu.core_type<tc>, window_params = [{transform_indices = @transform_0, window_bounds = array<i64: 24, 512>}, {pipeline_mode = #tpu.pipeline_mode<synchronous>, transform_indices = @transform_1, window_bounds = array<i64: 512, 64>}, {pipeline_mode = #tpu.pipeline_mode<synchronous>, transform_indices = @transform_2, window_bounds = array<i64: 1, 64>}, {transform_indices = @transform_3, window_bounds = array<i64: 24, 64>}]} {
    %c0 = arith.constant 0 : index
    %c0_0 = arith.constant 0 : index
    %0 = vector.load %arg1[%c0, %c0_0] : memref<24x512xbf16, #tpu.memory_space<vmem>>, vector<24x512xbf16>
    %c0_1 = arith.constant 0 : index
    %c0_2 = arith.constant 0 : index
    %1 = vector.load %arg2[%c0_1, %c0_2] : memref<512x64xbf16, #tpu.memory_space<vmem>>, vector<512x64xbf16>
    %cst = arith.constant dense<0.000000e+00> : vector<24x64xf32>
    %2 = tpu.matmul %0, %1, %cst {dimension_numbers = #tpu.dot_dimension_numbers<[1], [0], [0], [1], [0, 0, 1, 1], [], []>} : vector<24x512xbf16>, vector<512x64xbf16>, vector<24x64xf32> -> vector<24x64xf32>
    %c0_3 = arith.constant 0 : index
    %c0_4 = arith.constant 0 : index
    %3 = vector.load %arg3[%c0_3, %c0_4] : memref<1x64xf32, #tpu.memory_space<vmem>>, vector<1x64xf32>
    %4 = vector.broadcast %3 : vector<1x64xf32> to vector<24x64xf32>
    %5 = arith.addf %2, %4 : vector<24x64xf32>
    %cst_5 = arith.constant 0.000000e+00 : f32
    %6 = vector.broadcast %cst_5 : f32 to vector<24x64xf32>
    %7 = arith.maximumf %5, %6 : vector<24x64xf32>
    %8 = arith.truncf %7 : vector<24x64xf32> to vector<24x64xbf16>
    %c0_6 = arith.constant 0 : index
    %c0_7 = arith.constant 0 : index
    %9 = vector.load %arg4[%c0_6, %c0_7] : memref<24x64xbf16, #tpu.memory_space<vmem>>, vector<24x64xbf16>
    tpu.vector_store %arg4[%c0_6, %c0_7], %8 {strides = array<i32>} : memref<24x64xbf16, #tpu.memory_space<vmem>>, vector<24x64xbf16>,
    return
  }
  func.func @transform_0(%arg0: i32) -> (i32, i32) {
    %c0_i32 = arith.constant 0 : i32
    %c0_i32_0 = arith.constant 0 : i32
    return %arg0, %c0_i32 : i32, i32
  }
  func.func @transform_1(%arg0: i32) -> (i32, i32) {
    %c0_i32 = arith.constant 0 : i32
    %c0_i32_0 = arith.constant 0 : i32
    %c0_i32_1 = arith.constant 0 : i32
    return %c0_i32, %c0_i32_0 : i32, i32
  }
  func.func @transform_2(%arg0: i32) -> (i32, i32) {
    %c0_i32 = arith.constant 0 : i32
    %c0_i32_0 = arith.constant 0 : i32
    %c0_i32_1 = arith.constant 0 : i32
    return %c0_i32, %c0_i32_0 : i32, i32
  }
  func.func @transform_3(%arg0: i32) -> (i32, i32) {
    %c0_i32 = arith.constant 0 : i32
    %c0_i32_0 = arith.constant 0 : i32
    return %arg0, %c0_i32 : i32, i32
  }
}

module attributes {stable_mosaic.version = 11 : i64} {
  func.func @_matmul_bias_act_kernel(%arg0: i32, %arg1: memref<24x576xbf16, #tpu.memory_space<vmem>>, %arg2: memref<576x512xbf16, #tpu.memory_space<vmem>>, %arg3: memref<1x512xf32, #tpu.memory_space<vmem>>, %arg4: memref<24x512xbf16, #tpu.memory_space<vmem>>) attributes {dimension_semantics = [#tpu.dimension_semantics<parallel>], iteration_bounds = array<i64: 1>, scalar_prefetch = 0 : i64, scratch_operands = 0 : i64, tpu.core_type = #tpu.core_type<tc>, window_params = [{transform_indices = @transform_0, window_bounds = array<i64: 24, 576>}, {pipeline_mode = #tpu.pipeline_mode<synchronous>, transform_indices = @transform_1, window_bounds = array<i64: 576, 512>}, {pipeline_mode = #tpu.pipeline_mode<synchronous>, transform_indices = @transform_2, window_bounds = array<i64: 1, 512>}, {transform_indices = @transform_3, window_bounds = array<i64: 24, 512>}]} {
    %c0 = arith.constant 0 : index
    %c0_0 = arith.constant 0 : index
    %0 = vector.load %arg1[%c0, %c0_0] : memref<24x576xbf16, #tpu.memory_space<vmem>>, vector<24x576xbf16>
    %c0_1 = arith.constant 0 : index
    %c0_2 = arith.constant 0 : index
    %1 = vector.load %arg2[%c0_1, %c0_2] : memref<576x512xbf16, #tpu.memory_space<vmem>>, vector<576x512xbf16>
    %cst = arith.constant dense<0.000000e+00> : vector<24x512xf32>
    %2 = tpu.matmul %0, %1, %cst {dimension_numbers = #tpu.dot_dimension_numbers<[1], [0], [0], [1], [0, 0, 1, 1], [], []>} : vector<24x576xbf16>, vector<576x512xbf16>, vector<24x512xf32> -> vector<24x512xf32>
    %c0_3 = arith.constant 0 : index
    %c0_4 = arith.constant 0 : index
    %3 = vector.load %arg3[%c0_3, %c0_4] : memref<1x512xf32, #tpu.memory_space<vmem>>, vector<1x512xf32>
    %4 = vector.broadcast %3 : vector<1x512xf32> to vector<24x512xf32>
    %5 = arith.addf %2, %4 : vector<24x512xf32>
    %cst_5 = arith.constant 0.000000e+00 : f32
    %6 = vector.broadcast %cst_5 : f32 to vector<24x512xf32>
    %7 = arith.maximumf %5, %6 : vector<24x512xf32>
    %8 = arith.truncf %7 : vector<24x512xf32> to vector<24x512xbf16>
    %c0_6 = arith.constant 0 : index
    %c0_7 = arith.constant 0 : index
    %9 = vector.load %arg4[%c0_6, %c0_7] : memref<24x512xbf16, #tpu.memory_space<vmem>>, vector<24x512xbf16>
    tpu.vector_store %arg4[%c0_6, %c0_7], %8 {strides = array<i32>} : memref<24x512xbf16, #tpu.memory_space<vmem>>, vector<24x512xbf16>,
    return
  }
  func.func @transform_0(%arg0: i32) -> (i32, i32) {
    %c0_i32 = arith.constant 0 : i32
    %c0_i32_0 = arith.constant 0 : i32
    return %arg0, %c0_i32 : i32, i32
  }
  func.func @transform_1(%arg0: i32) -> (i32, i32) {
    %c0_i32 = arith.constant 0 : i32
    %c0_i32_0 = arith.constant 0 : i32
    %c0_i32_1 = arith.constant 0 : i32
    return %c0_i32, %c0_i32_0 : i32, i32
  }
  func.func @transform_2(%arg0: i32) -> (i32, i32) {
    %c0_i32 = arith.constant 0 : i32
    %c0_i32_0 = arith.constant 0 : i32
    %c0_i32_1 = arith.constant 0 : i32
    return %c0_i32, %c0_i32_0 : i32, i32
  }
  func.func @transform_3(%arg0: i32) -> (i32, i32) {
    %c0_i32 = arith.constant 0 : i32
    %c0_i32_0 = arith.constant 0 : i32
    return %arg0, %c0_i32 : i32, i32
  }
}

module attributes {stable_mosaic.version = 11 : i64} {
  func.func @_matmul_bias_act_kernel(%arg0: i32, %arg1: memref<24x4608xbf16, #tpu.memory_space<vmem>>, %arg2: memref<4608x128xbf16, #tpu.memory_space<vmem>>, %arg3: memref<1x128xf32, #tpu.memory_space<vmem>>, %arg4: memref<24x128xf32, #tpu.memory_space<vmem>>) attributes {dimension_semantics = [#tpu.dimension_semantics<parallel>], iteration_bounds = array<i64: 1>, scalar_prefetch = 0 : i64, scratch_operands = 0 : i64, tpu.core_type = #tpu.core_type<tc>, window_params = [{transform_indices = @transform_0, window_bounds = array<i64: 24, 4608>}, {pipeline_mode = #tpu.pipeline_mode<synchronous>, transform_indices = @transform_1, window_bounds = array<i64: 4608, 128>}, {pipeline_mode = #tpu.pipeline_mode<synchronous>, transform_indices = @transform_2, window_bounds = array<i64: 1, 128>}, {transform_indices = @transform_3, window_bounds = array<i64: 24, 128>}]} {
    %c0 = arith.constant 0 : index
    %c0_0 = arith.constant 0 : index
    %0 = vector.load %arg1[%c0, %c0_0] : memref<24x4608xbf16, #tpu.memory_space<vmem>>, vector<24x4608xbf16>
    %c0_1 = arith.constant 0 : index
    %c0_2 = arith.constant 0 : index
    %1 = vector.load %arg2[%c0_1, %c0_2] : memref<4608x128xbf16, #tpu.memory_space<vmem>>, vector<4608x128xbf16>
    %cst = arith.constant dense<0.000000e+00> : vector<24x128xf32>
    %2 = tpu.matmul %0, %1, %cst {dimension_numbers = #tpu.dot_dimension_numbers<[1], [0], [0], [1], [0, 0, 1, 1], [], []>} : vector<24x4608xbf16>, vector<4608x128xbf16>, vector<24x128xf32> -> vector<24x128xf32>
    %c0_3 = arith.constant 0 : index
    %c0_4 = arith.constant 0 : index
    %3 = vector.load %arg3[%c0_3, %c0_4] : memref<1x128xf32, #tpu.memory_space<vmem>>, vector<1x128xf32>
    %4 = vector.broadcast %3 : vector<1x128xf32> to vector<24x128xf32>
    %5 = arith.addf %2, %4 : vector<24x128xf32>
    %cst_5 = arith.constant 0.000000e+00 : f32
    %6 = vector.broadcast %cst_5 : f32 to vector<24x128xf32>
    %7 = arith.maximumf %5, %6 : vector<24x128xf32>
    %c0_6 = arith.constant 0 : index
    %c0_7 = arith.constant 0 : index
    %8 = vector.load %arg4[%c0_6, %c0_7] : memref<24x128xf32, #tpu.memory_space<vmem>>, vector<24x128xf32>
    tpu.vector_store %arg4[%c0_6, %c0_7], %7 {strides = array<i32>} : memref<24x128xf32, #tpu.memory_space<vmem>>, vector<24x128xf32>,
    return
  }
  func.func @transform_0(%arg0: i32) -> (i32, i32) {
    %c0_i32 = arith.constant 0 : i32
    %c0_i32_0 = arith.constant 0 : i32
    return %arg0, %c0_i32 : i32, i32
  }
  func.func @transform_1(%arg0: i32) -> (i32, i32) {
    %c0_i32 = arith.constant 0 : i32
    %c0_i32_0 = arith.constant 0 : i32
    %c0_i32_1 = arith.constant 0 : i32
    return %c0_i32, %c0_i32_0 : i32, i32
  }
  func.func @transform_2(%arg0: i32) -> (i32, i32) {
    %c0_i32 = arith.constant 0 : i32
    %c0_i32_0 = arith.constant 0 : i32
    %c0_i32_1 = arith.constant 0 : i32
    return %c0_i32, %c0_i32_0 : i32, i32
  }
  func.func @transform_3(%arg0: i32) -> (i32, i32) {
    %c0_i32 = arith.constant 0 : i32
    %c0_i32_0 = arith.constant 0 : i32
    return %arg0, %c0_i32 : i32, i32
  }
}

</mosaic_0001>

<bundles_post_ra>
// kernel: squeezenet_forward.18
= control target key start
LH: loop header
LB: loop body
LE: loop exit
PB: predicated region body
PF: predicated region fallthrough
CT: control target
= control target key end

     0   :  { %s2630_s12 = smov 0   ;;  %s2632_s13 = smov 0   ;;  %s3116_s0 = inlined_call_operand.vmem [shape: bf16[1682,256], index: 0, kind: input, shape index: {}]   ;;  %s3117_s1 = inlined_call_operand.vmem [shape: bf16[256,128], index: 1, kind: input, shape index: {}]   ;;  %s3118_s2 = inlined_call_operand.vmem [shape: f32[1,128], index: 2, kind: input, shape index: {}]   ;;  %s3119_s3 = inlined_call_operand.vmem [shape: bf16[1682,128], index: 3, kind: output, shape index: {}]  }
   0x1   :  { %s2634_s14 = smov 0  }
   0x2 LB: > { %s2643_s15 = sadd.s32 4294967295, %s2575_s14   ;;  %s2645_s16 = sadd.s32 1, %s2575_s14   ;;  %s2575_s14 = sphi %s2634_s14, %s3126_s14   ;;  %s2571_s13 = sphi %s2632_s13, %s3125_s13   ;;  %s2567_s12 = sphi %s2630_s12, %s3124_s12  }
   0x3   : > { %s85_s17 = ssub.s32 %s2575_s14, %s2645_s16  ;;  %s88_s18 = sadd.s32 1, %s2571_s13 }
   0x4   : > { %p86_p0 = scmp.eq.s32.totalorder %s85_s17, 0  ;;  %p98_p1 = scmp.ne.s32.totalorder %s2571_s13, %s2567_s12 }
   0x5   : > { %p99_p2 = scmp.eq.s32.totalorder %s2643_s15, 3  ;;  %p1862_p3 = scmp.ge.s32.totalorder %s2575_s14, 1 }
   0x6   : > { %s2653_s19 = scalar_select %p86_p0, %s2571_s13, %s88_s18  }
   0x7   : > { %p2655_p4 = por %p99_p2, %p98_p1  ;;  %p149_p5 = scmp.lt.s32.totalorder %s2575_s14, 5 }
   0x9   : > { %p150_p6 = pnand %p1862_p3, %p149_p5 }
   0xa   : > { %v2409_v0 = vld [vmem:[%s3117_s1] sm:$0xff] (!%p150_p6)   ;;  %v2609_v1 = vmov (!%p150_p6), 0   ;;  %s2665_s23 = sshll.u32 (!%p150_p6), %s2643_s15, 6  ;;  %v2410_v2 = vld [vmem:[%s3117_s1 + $0x8] sm:$0xff] (!%p150_p6)   ;;  %v2411_v3 = vld [vmem:[%s3117_s1 + $0x10] sm:$0xff] (!%p150_p6)   ;;  %s175_s21 = sand.u32 (!%p150_p6), 1, %s2567_s12  }
   0xb   : > { %153 = sbr.rel (%p150_p6) target bundleno = 507 (0x1fb), region = 32  ;;  %720 = vmatprep.subr.bf16.mxu0 (!%p150_p6), %v2609_v1  ;;  %2288 = vmatprep.subr.bf16.mxu1 (!%p150_p6), %v2609_v1  ;;  %p184_p7 = scmp.lt.s32.totalorder (!%p150_p6), %s2665_s23, 210  ;;  %v2412_v4 = vld [vmem:[%s3117_s1 + $0x18] sm:$0xff] (!%p150_p6)   ;;  %v2413_v5 = vld [vmem:[%s3117_s1 + $0x20] sm:$0xff] (!%p150_p6)   ;;  %v2414_v7 = vld [vmem:[%s3117_s1 + $0x28] sm:$0xff] (!%p150_p6)  }
   0xc   : > { %721 = vmatpush1.bf16.msra.mxu0 (!%p150_p6), %v2409_v0  ;;  %2304 = vmatpush1.bf16.msra.mxu1 (!%p150_p6), %v2409_v0  ;;  %v2415_v9 = vld [vmem:[%s3117_s1 + $0x30] sm:$0xff] (!%p150_p6)   ;;  %v2416_v10 = vld [vmem:[%s3117_s1 + $0x38] sm:$0xff] (!%p150_p6)   ;;  %v2417_v11 = vld [vmem:[%s3117_s1 + $0x40] sm:$0xff] (!%p150_p6)   ;;  %s1863_s22 = sshll.u32 (!%p150_p6), %s175_s21, 8 }
   0xd   : > { %722 = vmatprep.subr.bf16.mxu0 (!%p150_p6), %v2609_v1  ;;  %2289 = vmatprep.subr.bf16.mxu1 (!%p150_p6), %v2609_v1  ;;  %v2418_v12 = vld [vmem:[%s3117_s1 + $0x48] sm:$0xff] (!%p150_p6)   ;;  %v2419_v13 = vld [vmem:[%s3117_s1 + $0x50] sm:$0xff] (!%p150_p6)   ;;  %v2420_v14 = vld [vmem:[%s3117_s1 + $0x58] sm:$0xff] (!%p150_p6)   ;;  %s2823_s12 = scalar_lea.vmem (!%p150_p6), [#allocation2], %s1863_s22  }
   0xe   : > { %v2421_v15 = vld [vmem:[%s3117_s1 + $0x60] sm:$0xff] (!%p150_p6)   ;;  %v2422_v16 = vld [vmem:[%s3117_s1 + $0x68] sm:$0xff] (!%p150_p6)   ;;  %v2423_v17 = vld [vmem:[%s3117_s1 + $0x70] sm:$0xff] (!%p150_p6)  }
   0xf   : > { %v2424_v18 = vld [vmem:[%s3117_s1 + $0x78] sm:$0xff] (!%p150_p6)  }
  0x10   : > { %723 = vmatpush1.bf16.msra.mxu0 (!%p150_p6), %v2410_v2  ;;  %2305 = vmatpush1.bf16.msra.mxu1 (!%p150_p6), %v2410_v2 }
  0x11   : > { %724 = vmatprep.subr.bf16.mxu0 (!%p150_p6), %v2609_v1  ;;  %2290 = vmatprep.subr.bf16.mxu1 (!%p150_p6), %v2609_v1 }
  0x12   : > { %s185_s28 = scalar_select %p184_p7, %s2665_s23, 210 }
  0x13   : > { %s2094_s24 = sshll.u32 (%p2655_p4), %s2643_s15, 8 }
  0x14   : > { %725 = vmatpush1.bf16.msra.mxu0 %v2411_v3  ;;  %2306 = vmatpush1.bf16.msra.mxu1 %v2411_v3  ;;  %s2029_s4 = sshll.u32 %s185_s28, 3  ;;  %s2924_s27 = scalar_lea.vmem (%p2655_p4), %s3119_s3, %s2094_s24  }
  0x15   : > { %726 = vmatprep.subr.bf16.mxu0 %v2609_v1  ;;  %2291 = vmatprep.subr.bf16.mxu1 %v2609_v1  ;;  %s2690_s9 = scalar_lea.vmem %s3116_s0, %s2029_s4 }
  0x16   : > { %v2427_v6 = vld [vmem:[%s2690_s9 + $0x4] ss:$8 sps:$4 sm:$0xff]   ;;  %v2425_v19 = vld [vmem:[%s2690_s9] ss:$8 sps:$4 sm:$0xff]   ;;  %v2431_v21 = vld [vmem:[%s2690_s9 + $0x14] ss:$8 sps:$4 sm:$0xff]  }
  0x17   : > { %v2430_v8 = vld [vmem:[%s2690_s9 + $0x104] ss:$8 sps:$4 sm:$0xff]   ;;  %752 = vmatprep.mubr.bf16.mxu0 %v2427_v6  ;;  %v2428_v20 = vld [vmem:[%s2690_s9 + $0x100] ss:$8 sps:$4 sm:$0xff]   ;;  %v2433_v22 = vld [vmem:[%s2690_s9 + $0x114] ss:$8 sps:$4 sm:$0xff]  }
  0x18   : > { %727 = vmatpush1.bf16.msra.mxu0 %v2412_v4  ;;  %2307 = vmatpush1.bf16.msra.mxu1 %v2412_v4  ;;  %v2435_v23 = vld [vmem:[%s2690_s9 + $0x10] ss:$8 sps:$4 sm:$0xff]   ;;  %v2437_v25 = vld [vmem:[%s2690_s9 + $0x24] ss:$8 sps:$4 sm:$0xff]   ;;  %v2441_v27 = vld [vmem:[%s2690_s9 + $0x20] ss:$8 sps:$4 sm:$0xff]  }
  0x19   : > { %728 = vmatprep.subr.bf16.mxu0 %v2609_v1  ;;  %2292 = vmatprep.subr.bf16.mxu1 %v2609_v1  ;;  %v2436_v24 = vld [vmem:[%s2690_s9 + $0x110] ss:$8 sps:$4 sm:$0xff]   ;;  %v2439_v26 = vld [vmem:[%s2690_s9 + $0x124] ss:$8 sps:$4 sm:$0xff]   ;;  %v2442_v28 = vld [vmem:[%s2690_s9 + $0x120] ss:$8 sps:$4 sm:$0xff]  }
  0x1a   : > { %880 = vmatprep.mubr.bf16.mxu1 %v2430_v8  ;;  %v2443_v29 = vld [vmem:[%s2690_s9 + $0x34] ss:$8 sps:$4 sm:$0xff]   ;;  %v2447_v31 = vld [vmem:[%s2690_s9 + $0x30] ss:$8 sps:$4 sm:$0xff]   ;;  %v2449_v33 = vld [vmem:[%s2690_s9 + $0x44] ss:$8 sps:$4 sm:$0xff]  }
  0x1b   : > { %v2445_v30 = vld [vmem:[%s2690_s9 + $0x134] ss:$8 sps:$4 sm:$0xff]   ;;  %v2448_v32 = vld [vmem:[%s2690_s9 + $0x130] ss:$8 sps:$4 sm:$0xff]   ;;  %v2451_v34 = vld [vmem:[%s2690_s9 + $0x144] ss:$8 sps:$4 sm:$0xff]  }
  0x1c   : > { %729 = vmatpush1.bf16.msra.mxu0 %v2413_v5  ;;  %2308 = vmatpush1.bf16.msra.mxu1 %v2413_v5  ;;  %v2453_v35 = vld [vmem:[%s2690_s9 + $0x40] ss:$8 sps:$4 sm:$0xff]   ;;  %v2455_v37 = vld [vmem:[%s2690_s9 + $0x54] ss:$8 sps:$4 sm:$0xff]   ;;  %v2459_v39 = vld [vmem:[%s2690_s9 + $0x50] ss:$8 sps:$4 sm:$0xff]  }
  0x1d   : > { %730 = vmatprep.subr.bf16.mxu0 %v2609_v1  ;;  %2293 = vmatprep.subr.bf16.mxu1 %v2609_v1  ;;  %v2454_v36 = vld [vmem:[%s2690_s9 + $0x140] ss:$8 sps:$4 sm:$0xff]   ;;  %v2457_v38 = vld [vmem:[%s2690_s9 + $0x154] ss:$8 sps:$4 sm:$0xff]   ;;  %v2460_v40 = vld [vmem:[%s2690_s9 + $0x150] ss:$8 sps:$4 sm:$0xff]  }
  0x1e   : > { %v2461_v41 = vld [vmem:[%s2690_s9 + $0x64] ss:$8 sps:$4 sm:$0xff]   ;;  %v2465_v43 = vld [vmem:[%s2690_s9 + $0x60] ss:$8 sps:$4 sm:$0xff]   ;;  %v2467_v45 = vld [vmem:[%s2690_s9 + $0x74] ss:$8 sps:$4 sm:$0xff]  }
  0x1f   : > { %v2463_v42 = vld [vmem:[%s2690_s9 + $0x164] ss:$8 sps:$4 sm:$0xff]   ;;  %v2466_v44 = vld [vmem:[%s2690_s9 + $0x160] ss:$8 sps:$4 sm:$0xff]   ;;  %v2469_v46 = vld [vmem:[%s2690_s9 + $0x174] ss:$8 sps:$4 sm:$0xff]  }
  0x20   : > { %731 = vmatpush1.bf16.msra.mxu0 %v2414_v7  ;;  %2309 = vmatpush1.bf16.msra.mxu1 %v2414_v7  ;;  %v2471_v47 = vld [vmem:[%s2690_s9 + $0x70] ss:$8 sps:$4 sm:$0xff]   ;;  %v2473_v49 = vld [vmem:[%s2690_s9 + $0x84] ss:$8 sps:$4 sm:$0xff]   ;;  %v2477_v51 = vld [vmem:[%s2690_s9 + $0x80] ss:$8 sps:$4 sm:$0xff]  }
  0x21   : > { %732 = vmatprep.subr.bf16.mxu0 %v2609_v1  ;;  %2294 = vmatprep.subr.bf16.mxu1 %v2609_v1  ;;  %v2472_v48 = vld [vmem:[%s2690_s9 + $0x170] ss:$8 sps:$4 sm:$0xff]   ;;  %v2475_v50 = vld [vmem:[%s2690_s9 + $0x184] ss:$8 sps:$4 sm:$0xff]   ;;  %v2478_v52 = vld [vmem:[%s2690_s9 + $0x180] ss:$8 sps:$4 sm:$0xff]  }
  0x22   : > { %v2479_v53 = vld [vmem:[%s2690_s9 + $0x94] ss:$8 sps:$4 sm:$0xff]   ;;  %v2483_v55 = vld [vmem:[%s2690_s9 + $0x90] ss:$8 sps:$4 sm:$0xff]   ;;  %v2485_v57 = vld [vmem:[%s2690_s9 + $0xa4] ss:$8 sps:$4 sm:$0xff]  }
  0x23   : > { %v2481_v54 = vld [vmem:[%s2690_s9 + $0x194] ss:$8 sps:$4 sm:$0xff]   ;;  %v2484_v56 = vld [vmem:[%s2690_s9 + $0x190] ss:$8 sps:$4 sm:$0xff]   ;;  %v2487_v58 = vld [vmem:[%s2690_s9 + $0x1a4] ss:$8 sps:$4 sm:$0xff]  }
  0x24   : > { %733 = vmatpush1.bf16.msra.mxu0 %v2415_v9  ;;  %2310 = vmatpush1.bf16.msra.mxu1 %v2415_v9  ;;  %v2489_v59 = vld [vmem:[%s2690_s9 + $0xa0] ss:$8 sps:$4 sm:$0xff]   ;;  %v2491_v61 = vld [vmem:[%s2690_s9 + $0xb4] ss:$8 sps:$4 sm:$0xff]   ;;  %v2495_v63 = vld [vmem:[%s2690_s9 + $0xb0] ss:$8 sps:$4 sm:$0xff]  }
  0x25   : > { %734 = vmatprep.subr.bf16.mxu0 %v2609_v1  ;;  %2295 = vmatprep.subr.bf16.mxu1 %v2609_v1  ;;  %v2490_v60 = vld [vmem:[%s2690_s9 + $0x1a0] ss:$8 sps:$4 sm:$0xff]   ;;  %v2493_v62 = vld [vmem:[%s2690_s9 + $0x1b4] ss:$8 sps:$4 sm:$0xff]   ;;  %v2496_v0 = vld [vmem:[%s2690_s9 + $0x1b0] ss:$8 sps:$4 sm:$0xff]  }
  0x26   : > { %v2499_v2 = vld [vmem:[%s2690_s9 + $0x1c4] ss:$8 sps:$4 sm:$0xff]   ;;  %v2501_v3 = vld [vmem:[%s2690_s9 + $0xc0] ss:$8 sps:$4 sm:$0xff]   ;;  %v2503_v5 = vld [vmem:[%s2690_s9 + $0xd4] ss:$8 sps:$4 sm:$0xff]  }
  0x27   : > { %v2502_v4 = vld [vmem:[%s2690_s9 + $0x1c0] ss:$8 sps:$4 sm:$0xff]   ;;  %v2505_v6 = vld [vmem:[%s2690_s9 + $0x1d4] ss:$8 sps:$4 sm:$0xff]   ;;  %v2507_v7 = vld [vmem:[%s2690_s9 + $0xd0] ss:$8 sps:$4 sm:$0xff]  }
  0x28   : > { %735 = vmatpush1.bf16.msra.mxu0 %v2416_v10  ;;  %2311 = vmatpush1.bf16.msra.mxu1 %v2416_v10  ;;  %v2508_v8 = vld [vmem:[%s2690_s9 + $0x1d0] ss:$8 sps:$4 sm:$0xff]   ;;  %v2509_v9 = vld [vmem:[%s2690_s9 + $0xe4] ss:$8 sps:$4 sm:$0xff]  }
  0x29   : > { %736 = vmatprep.subr.bf16.mxu0 %v2609_v1  ;;  %2296 = vmatprep.subr.bf16.mxu1 %v2609_v1  ;;  %v2511_v10 = vld [vmem:[%s2690_s9 + $0x1e4] ss:$8 sps:$4 sm:$0xff]  }
  0x2c   : > { %737 = vmatpush1.bf16.msra.mxu0 %v2417_v11  ;;  %2312 = vmatpush1.bf16.msra.mxu1 %v2417_v11  ;;  %v2513_v11 = vld [vmem:[%s2690_s9 + $0xe0] ss:$8 sps:$4 sm:$0xff]  }
  0x2d   : > { %738 = vmatprep.subr.bf16.mxu0 %v2609_v1  ;;  %2297 = vmatprep.subr.bf16.mxu1 %v2609_v1 }
  0x30   : > { %739 = vmatpush1.bf16.msra.mxu0 %v2418_v12  ;;  %2313 = vmatpush1.bf16.msra.mxu1 %v2418_v12  ;;  %v2514_v12 = vld [vmem:[%s2690_s9 + $0x1e0] ss:$8 sps:$4 sm:$0xff]  }
  0x31   : > { %740 = vmatprep.subr.bf16.mxu0 %v2609_v1  ;;  %2298 = vmatprep.subr.bf16.mxu1 %v2609_v1 }
  0x34   : > { %741 = vmatpush1.bf16.msra.mxu0 %v2419_v13  ;;  %2314 = vmatpush1.bf16.msra.mxu1 %v2419_v13  ;;  %v2515_v13 = vld [vmem:[%s2690_s9 + $0xf4] ss:$8 sps:$4 sm:$0xff]  }
  0x35   : > { %742 = vmatprep.subr.bf16.mxu0 %v2609_v1  ;;  %2299 = vmatprep.subr.bf16.mxu1 %v2609_v1 }
  0x38   : > { %743 = vmatpush1.bf16.msra.mxu0 %v2420_v14  ;;  %2315 = vmatpush1.bf16.msra.mxu1 %v2420_v14  ;;  %v2517_v14 = vld [vmem:[%s2690_s9 + $0x1f4] ss:$8 sps:$4 sm:$0xff]  }
  0x39   : > { %744 = vmatprep.subr.bf16.mxu0 %v2609_v1  ;;  %2300 = vmatprep.subr.bf16.mxu1 %v2609_v1 }
  0x3c   : > { %745 = vmatpush1.bf16.msra.mxu0 %v2421_v15  ;;  %2316 = vmatpush1.bf16.msra.mxu1 %v2421_v15  ;;  %v2519_v15 = vld [vmem:[%s2690_s9 + $0xf0] ss:$8 sps:$4 sm:$0xff]  }
  0x3d   : > { %746 = vmatprep.subr.bf16.mxu0 %v2609_v1  ;;  %2301 = vmatprep.subr.bf16.mxu1 %v2609_v1 }
  0x40   : > { %747 = vmatpush1.bf16.msra.mxu0 %v2422_v16  ;;  %2317 = vmatpush1.bf16.msra.mxu1 %v2422_v16  ;;  %v2520_v16 = vld [vmem:[%s2690_s9 + $0x1f0] ss:$8 sps:$4 sm:$0xff]  }
  0x41   : > { %748 = vmatprep.subr.bf16.mxu0 %v2609_v1  ;;  %2302 = vmatprep.subr.bf16.mxu1 %v2609_v1 }
  0x44   : > { %749 = vmatpush1.bf16.msra.mxu0 %v2423_v17  ;;  %2318 = vmatpush1.bf16.msra.mxu1 %v2423_v17  ;;  %v2816_v17 = vld [vmem:[%s3118_s2] ss:$0 sm:$0xff] }
  0x45   : > { %750 = vmatprep.subr.bf16.mxu0 %v2609_v1  ;;  %2303 = vmatprep.subr.bf16.mxu1 %v2609_v1  ;;  %v2497_v1 = vld [vmem:[%s2690_s9 + $0xc4] ss:$8 sps:$4 sm:$0xff]   ;;  %s1401_s9 = ssub.s32 (%p2655_p4), 211, %s2665_s23 }
  0x46   : > { %p1402_p8 = scmp.lt.s32.totalorder (%p2655_p4), %s1401_s9, 64 }
  0x48   : > { %751 = vmatpush1.bf16.msra.mxu0 %v2424_v18  ;;  %2319 = vmatpush1.bf16.msra.mxu1 %v2424_v18 }
  0x4b   : > { %753 = vmatmul.mubr.bf16.vlgmr.msra.gmra.mrb[0].mxu0 %v2425_v19  ;;  %881 = vmatmul.mubr.bf16.vlgmr.msra.gmra.mrb[0].mxu1 %v2428_v20 }
  0x4c   : > { %760 = vmatprep.mubr.bf16.mxu0 %v2431_v21  ;;  %888 = vmatprep.mubr.bf16.mxu1 %v2433_v22 }
  0x53   : > { %761 = vmatmul.mubr.bf16.gmra.mrb[4].mxu0 %v2435_v23  ;;  %889 = vmatmul.mubr.bf16.gmra.mrb[4].mxu1 %v2436_v24 }
  0x54   : > { %768 = vmatprep.mubr.bf16.mxu0 %v2437_v25  ;;  %896 = vmatprep.mubr.bf16.mxu1 %v2439_v26 }
  0x5b   : > { %769 = vmatmul.mubr.bf16.gmra.mrb[8].mxu0 %v2441_v27  ;;  %897 = vmatmul.mubr.bf16.gmra.mrb[8].mxu1 %v2442_v28 }
  0x5c   : > { %776 = vmatprep.mubr.bf16.mxu0 %v2443_v29  ;;  %904 = vmatprep.mubr.bf16.mxu1 %v2445_v30 }
  0x63   : > { %777 = vmatmul.mubr.bf16.gmra.mrb[12].mxu0 %v2447_v31  ;;  %905 = vmatmul.mubr.bf16.gmra.mrb[12].mxu1 %v2448_v32 }
  0x64   : > { %784 = vmatprep.mubr.bf16.mxu0 %v2449_v33  ;;  %912 = vmatprep.mubr.bf16.mxu1 %v2451_v34 }
  0x6b   : > { %785 = vmatmul.mubr.bf16.gmra.mrb[16].mxu0 %v2453_v35  ;;  %913 = vmatmul.mubr.bf16.gmra.mrb[16].mxu1 %v2454_v36 }
  0x6c   : > { %792 = vmatprep.mubr.bf16.mxu0 %v2455_v37  ;;  %920 = vmatprep.mubr.bf16.mxu1 %v2457_v38 }
  0x73   : > { %793 = vmatmul.mubr.bf16.gmra.mrb[20].mxu0 %v2459_v39  ;;  %921 = vmatmul.mubr.bf16.gmra.mrb[20].mxu1 %v2460_v40 }
  0x74   : > { %800 = vmatprep.mubr.bf16.mxu0 %v2461_v41  ;;  %928 = vmatprep.mubr.bf16.mxu1 %v2463_v42 }
  0x7b   : > { %801 = vmatmul.mubr.bf16.gmra.mrb[24].mxu0 %v2465_v43  ;;  %929 = vmatmul.mubr.bf16.gmra.mrb[24].mxu1 %v2466_v44 }
  0x7c   : > { %808 = vmatprep.mubr.bf16.mxu0 %v2467_v45  ;;  %936 = vmatprep.mubr.bf16.mxu1 %v2469_v46 }
  0x83   : > { %809 = vmatmul.mubr.bf16.gmra.mrb[28].mxu0 %v2471_v47  ;;  %937 = vmatmul.mubr.bf16.gmra.mrb[28].mxu1 %v2472_v48 }
  0x84   : > { %816 = vmatprep.mubr.bf16.mxu0 %v2473_v49  ;;  %944 = vmatprep.mubr.bf16.mxu1 %v2475_v50 }
  0x8b   : > { %817 = vmatmul.mubr.bf16.gmra.mrb[32].mxu0 %v2477_v51  ;;  %945 = vmatmul.mubr.bf16.gmra.mrb[32].mxu1 %v2478_v52 }
  0x8c   : > { %824 = vmatprep.mubr.bf16.mxu0 %v2479_v53  ;;  %952 = vmatprep.mubr.bf16.mxu1 %v2481_v54 }
  0x93   : > { %825 = vmatmul.mubr.bf16.gmra.mrb[36].mxu0 %v2483_v55  ;;  %953 = vmatmul.mubr.bf16.gmra.mrb[36].mxu1 %v2484_v56 }
  0x94   : > { %832 = vmatprep.mubr.bf16.mxu0 %v2485_v57  ;;  %960 = vmatprep.mubr.bf16.mxu1 %v2487_v58 }
  0x9b   : > { %833 = vmatmul.mubr.bf16.gmra.mrb[40].mxu0 %v2489_v59  ;;  %961 = vmatmul.mubr.bf16.gmra.mrb[40].mxu1 %v2490_v60 }
  0x9c   : > { %840 = vmatprep.mubr.bf16.mxu0 %v2491_v61  ;;  %968 = vmatprep.mubr.bf16.mxu1 %v2493_v62 }
  0xa3   : > { %841 = vmatmul.mubr.bf16.gmra.mrb[44].mxu0 %v2495_v63  ;;  %969 = vmatmul.mubr.bf16.gmra.mrb[44].mxu1 %v2496_v0 }
  0xa4   : > { %848 = vmatprep.mubr.bf16.mxu0 %v2497_v1  ;;  %976 = vmatprep.mubr.bf16.mxu1 %v2499_v2 }
  0xab   : > { %849 = vmatmul.mubr.bf16.gmra.mrb[48].mxu0 %v2501_v3  ;;  %977 = vmatmul.mubr.bf16.gmra.mrb[48].mxu1 %v2502_v4 }
  0xac   : > { %856 = vmatprep.mubr.bf16.mxu0 %v2503_v5  ;;  %984 = vmatprep.mubr.bf16.mxu1 %v2505_v6 }
  0xb3   : > { %857 = vmatmul.mubr.bf16.gmra.mrb[52].mxu0 %v2507_v7  ;;  %985 = vmatmul.mubr.bf16.gmra.mrb[52].mxu1 %v2508_v8 }
  0xb4   : > { %864 = vmatprep.mubr.bf16.mxu0 %v2509_v9  ;;  %992 = vmatprep.mubr.bf16.mxu1 %v2511_v10 }
  0xbb   : > { %865 = vmatmul.mubr.bf16.gmra.mrb[56].mxu0 %v2513_v11  ;;  %993 = vmatmul.mubr.bf16.gmra.mrb[56].mxu1 %v2514_v12 }
  0xbc   : > { %872 = vmatprep.mubr.bf16.mxu0 %v2515_v13  ;;  %1000 = vmatprep.mubr.bf16.mxu1 %v2517_v14 }
  0xc3   : > { %873 = vmatmul.mubr.bf16.gmra.mrb[60].mxu0 %v2519_v15  ;;  %1001 = vmatmul.mubr.bf16.gmra.mrb[60].mxu1 %v2520_v16 }
 0x11e   : > { %v754_v18 = vpop.f32.mrb[0].mxu0  ;;  %v882_v19 = vpop.f32.mrb[0].mxu1 }
 0x11f   : > { %v755_v20 = vadd.f32 %v2816_v17, %v754_v18  ;;  %v883_v21 = vadd.f32 %v2816_v17, %v882_v19  ;;  %v756_v22 = vpop.f32.mrb[1].mxu0  ;;  %v884_v23 = vpop.f32.mrb[1].mxu1 }
 0x120   : > { %v757_v24 = vpop.f32.mrb[2].mxu0  ;;  %v885_v25 = vpop.f32.mrb[2].mxu1 }
 0x121   : > { %v758_v26 = vadd.f32 %v2816_v17, %v757_v24  ;;  %v886_v27 = vadd.f32 %v2816_v17, %v885_v25  ;;  %v759_v28 = vpop.f32.mrb[3].mxu0  ;;  %v887_v29 = vpop.f32.mrb[3].mxu1  ;;  %v1009_v30 = vmax.f32 %v755_v20, 0.0  ;;  %v1041_v31 = vmax.f32 %v883_v21, 0.0 }
 0x123   : > { %v1010_v32 = vmax.f32 %v758_v26, 0.0  ;;  %v1042_v33 = vmax.f32 %v886_v27, 0.0 }
 0x125   : > { %v2100_v34 = vpack.c.bf16 %v1010_v32, %v1009_v30  ;;  %v2180_v35 = vpack.c.bf16 %v1042_v33, %v1041_v31 }
 0x126   : > { %v762_v36 = vpop.f32.mrb[4].mxu0  ;;  %v890_v37 = vpop.f32.mrb[4].mxu1 }
 0x127   : > { %2101 = vst [vmem:[%s2823_s12] sm:$0xff] %v2100_v34   ;;  %2272 = vst [vmem:[%s2823_s12 + $0x80] sm:$0xff] %v2180_v35   ;;  %v763_v38 = vadd.f32 %v2816_v17, %v762_v36  ;;  %v891_v39 = vadd.f32 %v2816_v17, %v890_v37  ;;  %v764_v40 = vpop.f32.mrb[5].mxu0  ;;  %v892_v41 = vpop.f32.mrb[5].mxu1 }
 0x128   : > { %v765_v42 = vpop.f32.mrb[6].mxu0  ;;  %v893_v43 = vpop.f32.mrb[6].mxu1 }
 0x129   : > { %v766_v44 = vadd.f32 %v2816_v17, %v765_v42  ;;  %v894_v45 = vadd.f32 %v2816_v17, %v893_v43  ;;  %v767_v46 = vpop.f32.mrb[7].mxu0  ;;  %v895_v47 = vpop.f32.mrb[7].mxu1  ;;  %v1011_v48 = vmax.f32 %v763_v38, 0.0  ;;  %v1043_v49 = vmax.f32 %v891_v39, 0.0 }
 0x12b   : > { %v1012_v50 = vmax.f32 %v766_v44, 0.0  ;;  %v1044_v51 = vmax.f32 %v894_v45, 0.0 }
 0x12d   : > { %v2105_v52 = vpack.c.bf16 %v1012_v50, %v1011_v48  ;;  %v2185_v53 = vpack.c.bf16 %v1044_v51, %v1043_v49 }
 0x12e   : > { %v770_v54 = vpop.f32.mrb[8].mxu0  ;;  %v898_v55 = vpop.f32.mrb[8].mxu1 }
 0x12f   : > { %2257 = vst [vmem:[%s2823_s12 + $0x8] sm:$0xff] %v2105_v52   ;;  %2273 = vst [vmem:[%s2823_s12 + $0x88] sm:$0xff] %v2185_v53   ;;  %v771_v56 = vadd.f32 %v2816_v17, %v770_v54  ;;  %v899_v57 = vadd.f32 %v2816_v17, %v898_v55  ;;  %v772_v58 = vpop.f32.mrb[9].mxu0  ;;  %v900_v59 = vpop.f32.mrb[9].mxu1 }
 0x130   : > { %v773_v60 = vpop.f32.mrb[10].mxu0  ;;  %v901_v61 = vpop.f32.mrb[10].mxu1 }
 0x131   : > { %v774_v62 = vadd.f32 %v2816_v17, %v773_v60  ;;  %v902_v63 = vadd.f32 %v2816_v17, %v901_v61  ;;  %v775_v0 = vpop.f32.mrb[11].mxu0  ;;  %v903_v1 = vpop.f32.mrb[11].mxu1  ;;  %v1013_v2 = vmax.f32 %v771_v56, 0.0  ;;  %v1045_v3 = vmax.f32 %v899_v57, 0.0 }
 0x133   : > { %v1014_v4 = vmax.f32 %v774_v62, 0.0  ;;  %v1046_v5 = vmax.f32 %v902_v63, 0.0 }
 0x135   : > { %v2110_v6 = vpack.c.bf16 %v1014_v4, %v1013_v2  ;;  %v2190_v7 = vpack.c.bf16 %v1046_v5, %v1045_v3 }
 0x136   : > { %v778_v8 = vpop.f32.mrb[12].mxu0  ;;  %v906_v9 = vpop.f32.mrb[12].mxu1 }
 0x137   : > { %2258 = vst [vmem:[%s2823_s12 + $0x10] sm:$0xff] %v2110_v6   ;;  %2274 = vst [vmem:[%s2823_s12 + $0x90] sm:$0xff] %v2190_v7   ;;  %v779_v10 = vadd.f32 %v2816_v17, %v778_v8  ;;  %v907_v11 = vadd.f32 %v2816_v17, %v906_v9  ;;  %v780_v12 = vpop.f32.mrb[13].mxu0  ;;  %v908_v13 = vpop.f32.mrb[13].mxu1 }
 0x138   : > { %v781_v14 = vpop.f32.mrb[14].mxu0  ;;  %v909_v15 = vpop.f32.mrb[14].mxu1 }
 0x139   : > { %v782_v16 = vadd.f32 %v2816_v17, %v781_v14  ;;  %v910_v18 = vadd.f32 %v2816_v17, %v909_v15  ;;  %v783_v19 = vpop.f32.mrb[15].mxu0  ;;  %v911_v20 = vpop.f32.mrb[15].mxu1  ;;  %v1015_v21 = vmax.f32 %v779_v10, 0.0  ;;  %v1047_v22 = vmax.f32 %v907_v11, 0.0 }
 0x13b   : > { %v1016_v23 = vmax.f32 %v782_v16, 0.0  ;;  %v1048_v24 = vmax.f32 %v910_v18, 0.0 }
 0x13d   : > { %v2115_v25 = vpack.c.bf16 %v1016_v23, %v1015_v21  ;;  %v2195_v26 = vpack.c.bf16 %v1048_v24, %v1047_v22 }
 0x13e   : > { %v786_v27 = vpop.f32.mrb[16].mxu0  ;;  %v914_v28 = vpop.f32.mrb[16].mxu1 }
 0x13f   : > { %2259 = vst [vmem:[%s2823_s12 + $0x18] sm:$0xff] %v2115_v25   ;;  %2275 = vst [vmem:[%s2823_s12 + $0x98] sm:$0xff] %v2195_v26   ;;  %v787_v29 = vadd.f32 %v2816_v17, %v786_v27  ;;  %v915_v30 = vadd.f32 %v2816_v17, %v914_v28  ;;  %v788_v31 = vpop.f32.mrb[17].mxu0  ;;  %v916_v32 = vpop.f32.mrb[17].mxu1 }
 0x140   : > { %v789_v33 = vpop.f32.mrb[18].mxu0  ;;  %v917_v34 = vpop.f32.mrb[18].mxu1 }
 0x141   : > { %v790_v35 = vadd.f32 %v2816_v17, %v789_v33  ;;  %v918_v36 = vadd.f32 %v2816_v17, %v917_v34  ;;  %v791_v37 = vpop.f32.mrb[19].mxu0  ;;  %v919_v38 = vpop.f32.mrb[19].mxu1  ;;  %v1017_v39 = vmax.f32 %v787_v29, 0.0  ;;  %v1049_v40 = vmax.f32 %v915_v30, 0.0 }
 0x143   : > { %v1018_v41 = vmax.f32 %v790_v35, 0.0  ;;  %v1050_v42 = vmax.f32 %v918_v36, 0.0 }
 0x145   : > { %v2120_v43 = vpack.c.bf16 %v1018_v41, %v1017_v39  ;;  %v2200_v44 = vpack.c.bf16 %v1050_v42, %v1049_v40 }
 0x146   : > { %v794_v45 = vpop.f32.mrb[20].mxu0  ;;  %v922_v46 = vpop.f32.mrb[20].mxu1 }
 0x147   : > { %2260 = vst [vmem:[%s2823_s12 + $0x20] sm:$0xff] %v2120_v43   ;;  %2276 = vst [vmem:[%s2823_s12 + $0xa0] sm:$0xff] %v2200_v44   ;;  %v795_v47 = vadd.f32 %v2816_v17, %v794_v45  ;;  %v923_v48 = vadd.f32 %v2816_v17, %v922_v46  ;;  %v796_v49 = vpop.f32.mrb[21].mxu0  ;;  %v924_v50 = vpop.f32.mrb[21].mxu1 }
 0x148   : > { %v797_v51 = vpop.f32.mrb[22].mxu0  ;;  %v925_v52 = vpop.f32.mrb[22].mxu1 }
 0x149   : > { %v798_v53 = vadd.f32 %v2816_v17, %v797_v51  ;;  %v926_v54 = vadd.f32 %v2816_v17, %v925_v52  ;;  %v799_v55 = vpop.f32.mrb[23].mxu0  ;;  %v927_v56 = vpop.f32.mrb[23].mxu1  ;;  %v1019_v57 = vmax.f32 %v795_v47, 0.0  ;;  %v1051_v58 = vmax.f32 %v923_v48, 0.0 }
 0x14b   : > { %v1020_v59 = vmax.f32 %v798_v53, 0.0  ;;  %v1052_v60 = vmax.f32 %v926_v54, 0.0 }
 0x14d   : > { %v2125_v61 = vpack.c.bf16 %v1020_v59, %v1019_v57  ;;  %v2205_v62 = vpack.c.bf16 %v1052_v60, %v1051_v58 }
 0x14e   : > { %v802_v63 = vpop.f32.mrb[24].mxu0  ;;  %v930_v0 = vpop.f32.mrb[24].mxu1 }
 0x14f   : > { %2261 = vst [vmem:[%s2823_s12 + $0x28] sm:$0xff] %v2125_v61   ;;  %2277 = vst [vmem:[%s2823_s12 + $0xa8] sm:$0xff] %v2205_v62   ;;  %v803_v1 = vadd.f32 %v2816_v17, %v802_v63  ;;  %v931_v2 = vadd.f32 %v2816_v17, %v930_v0  ;;  %v804_v3 = vpop.f32.mrb[25].mxu0  ;;  %v932_v4 = vpop.f32.mrb[25].mxu1 }
 0x150   : > { %v805_v5 = vpop.f32.mrb[26].mxu0  ;;  %v933_v6 = vpop.f32.mrb[26].mxu1 }
 0x151   : > { %v806_v7 = vadd.f32 %v2816_v17, %v805_v5  ;;  %v934_v8 = vadd.f32 %v2816_v17, %v933_v6  ;;  %v807_v9 = vpop.f32.mrb[27].mxu0  ;;  %v935_v10 = vpop.f32.mrb[27].mxu1  ;;  %v1021_v11 = vmax.f32 %v803_v1, 0.0  ;;  %v1053_v12 = vmax.f32 %v931_v2, 0.0 }
 0x153   : > { %v1022_v13 = vmax.f32 %v806_v7, 0.0  ;;  %v1054_v14 = vmax.f32 %v934_v8, 0.0 }
 0x155   : > { %v2130_v15 = vpack.c.bf16 %v1022_v13, %v1021_v11  ;;  %v2210_v16 = vpack.c.bf16 %v1054_v14, %v1053_v12 }
 0x156   : > { %v810_v18 = vpop.f32.mrb[28].mxu0  ;;  %v938_v19 = vpop.f32.mrb[28].mxu1 }
 0x157   : > { %2262 = vst [vmem:[%s2823_s12 + $0x30] sm:$0xff] %v2130_v15   ;;  %2278 = vst [vmem:[%s2823_s12 + $0xb0] sm:$0xff] %v2210_v16   ;;  %v811_v20 = vadd.f32 %v2816_v17, %v810_v18  ;;  %v939_v21 = vadd.f32 %v2816_v17, %v938_v19  ;;  %v812_v22 = vpop.f32.mrb[29].mxu0  ;;  %v940_v23 = vpop.f32.mrb[29].mxu1 }
 0x158   : > { %v813_v24 = vpop.f32.mrb[30].mxu0  ;;  %v941_v25 = vpop.f32.mrb[30].mxu1 }
 0x159   : > { %v814_v26 = vadd.f32 %v2816_v17, %v813_v24  ;;  %v942_v27 = vadd.f32 %v2816_v17, %v941_v25  ;;  %v815_v28 = vpop.f32.mrb[31].mxu0  ;;  %v943_v29 = vpop.f32.mrb[31].mxu1  ;;  %v1023_v30 = vmax.f32 %v811_v20, 0.0  ;;  %v1055_v31 = vmax.f32 %v939_v21, 0.0 }
 0x15b   : > { %v1024_v32 = vmax.f32 %v814_v26, 0.0  ;;  %v1056_v33 = vmax.f32 %v942_v27, 0.0 }
 0x15d   : > { %v2135_v34 = vpack.c.bf16 %v1024_v32, %v1023_v30  ;;  %v2215_v35 = vpack.c.bf16 %v1056_v33, %v1055_v31 }
 0x15e   : > { %v818_v36 = vpop.f32.mrb[32].mxu0  ;;  %v946_v37 = vpop.f32.mrb[32].mxu1 }
 0x15f   : > { %2263 = vst [vmem:[%s2823_s12 + $0x38] sm:$0xff] %v2135_v34   ;;  %2279 = vst [vmem:[%s2823_s12 + $0xb8] sm:$0xff] %v2215_v35   ;;  %v819_v38 = vadd.f32 %v2816_v17, %v818_v36  ;;  %v947_v39 = vadd.f32 %v2816_v17, %v946_v37  ;;  %v820_v40 = vpop.f32.mrb[33].mxu0  ;;  %v948_v41 = vpop.f32.mrb[33].mxu1 }
 0x160   : > { %v821_v42 = vpop.f32.mrb[34].mxu0  ;;  %v949_v43 = vpop.f32.mrb[34].mxu1 }
 0x161   : > { %v822_v44 = vadd.f32 %v2816_v17, %v821_v42  ;;  %v950_v45 = vadd.f32 %v2816_v17, %v949_v43  ;;  %v823_v46 = vpop.f32.mrb[35].mxu0  ;;  %v951_v47 = vpop.f32.mrb[35].mxu1  ;;  %v1025_v48 = vmax.f32 %v819_v38, 0.0  ;;  %v1057_v49 = vmax.f32 %v947_v39, 0.0 }
 0x163   : > { %v1026_v50 = vmax.f32 %v822_v44, 0.0  ;;  %v1058_v51 = vmax.f32 %v950_v45, 0.0 }
 0x165   : > { %v2140_v52 = vpack.c.bf16 %v1026_v50, %v1025_v48  ;;  %v2220_v53 = vpack.c.bf16 %v1058_v51, %v1057_v49 }
 0x166   : > { %v826_v54 = vpop.f32.mrb[36].mxu0  ;;  %v954_v55 = vpop.f32.mrb[36].mxu1 }
 0x167   : > { %2264 = vst [vmem:[%s2823_s12 + $0x40] sm:$0xff] %v2140_v52   ;;  %2280 = vst [vmem:[%s2823_s12 + $0xc0] sm:$0xff] %v2220_v53   ;;  %v827_v56 = vadd.f32 %v2816_v17, %v826_v54  ;;  %v955_v57 = vadd.f32 %v2816_v17, %v954_v55  ;;  %v828_v58 = vpop.f32.mrb[37].mxu0  ;;  %v956_v59 = vpop.f32.mrb[37].mxu1 }
 0x168   : > { %v829_v60 = vpop.f32.mrb[38].mxu0  ;;  %v957_v61 = vpop.f32.mrb[38].mxu1 }
 0x169   : > { %v830_v62 = vadd.f32 %v2816_v17, %v829_v60  ;;  %v958_v63 = vadd.f32 %v2816_v17, %v957_v61  ;;  %v831_v0 = vpop.f32.mrb[39].mxu0  ;;  %v959_v1 = vpop.f32.mrb[39].mxu1  ;;  %v1027_v2 = vmax.f32 %v827_v56, 0.0  ;;  %v1059_v3 = vmax.f32 %v955_v57, 0.0 }
 0x16b   : > { %v1028_v4 = vmax.f32 %v830_v62, 0.0  ;;  %v1060_v5 = vmax.f32 %v958_v63, 0.0 }
 0x16d   : > { %v2145_v6 = vpack.c.bf16 %v1028_v4, %v1027_v2  ;;  %v2225_v7 = vpack.c.bf16 %v1060_v5, %v1059_v3 }
 0x16e   : > { %v834_v8 = vpop.f32.mrb[40].mxu0  ;;  %v962_v9 = vpop.f32.mrb[40].mxu1 }
 0x16f   : > { %2265 = vst [vmem:[%s2823_s12 + $0x48] sm:$0xff] %v2145_v6   ;;  %2281 = vst [vmem:[%s2823_s12 + $0xc8] sm:$0xff] %v2225_v7   ;;  %v835_v10 = vadd.f32 %v2816_v17, %v834_v8  ;;  %v963_v11 = vadd.f32 %v2816_v17, %v962_v9  ;;  %v836_v12 = vpop.f32.mrb[41].mxu0  ;;  %v964_v13 = vpop.f32.mrb[41].mxu1 }
 0x170   : > { %v837_v14 = vpop.f32.mrb[42].mxu0  ;;  %v965_v15 = vpop.f32.mrb[42].mxu1 }
 0x171   : > { %v838_v16 = vadd.f32 %v2816_v17, %v837_v14  ;;  %v966_v18 = vadd.f32 %v2816_v17, %v965_v15  ;;  %v839_v19 = vpop.f32.mrb[43].mxu0  ;;  %v967_v20 = vpop.f32.mrb[43].mxu1  ;;  %v1029_v21 = vmax.f32 %v835_v10, 0.0  ;;  %v1061_v22 = vmax.f32 %v963_v11, 0.0 }
 0x173   : > { %v1030_v23 = vmax.f32 %v838_v16, 0.0  ;;  %v1062_v24 = vmax.f32 %v966_v18, 0.0 }
 0x175   : > { %v2150_v25 = vpack.c.bf16 %v1030_v23, %v1029_v21  ;;  %v2230_v26 = vpack.c.bf16 %v1062_v24, %v1061_v22 }
 0x176   : > { %v842_v27 = vpop.f32.mrb[44].mxu0  ;;  %v970_v28 = vpop.f32.mrb[44].mxu1 }
 0x177   : > { %2266 = vst [vmem:[%s2823_s12 + $0x50] sm:$0xff] %v2150_v25   ;;  %2282 = vst [vmem:[%s2823_s12 + $0xd0] sm:$0xff] %v2230_v26   ;;  %v843_v29 = vadd.f32 %v2816_v17, %v842_v27  ;;  %v971_v30 = vadd.f32 %v2816_v17, %v970_v28  ;;  %v844_v31 = vpop.f32.mrb[45].mxu0  ;;  %v972_v32 = vpop.f32.mrb[45].mxu1 }
 0x178   : > { %v845_v33 = vpop.f32.mrb[46].mxu0  ;;  %v973_v34 = vpop.f32.mrb[46].mxu1 }
 0x179   : > { %v846_v35 = vadd.f32 %v2816_v17, %v845_v33  ;;  %v974_v36 = vadd.f32 %v2816_v17, %v973_v34  ;;  %v847_v37 = vpop.f32.mrb[47].mxu0  ;;  %v975_v38 = vpop.f32.mrb[47].mxu1  ;;  %v1031_v39 = vmax.f32 %v843_v29, 0.0  ;;  %v1063_v40 = vmax.f32 %v971_v30, 0.0 }
 0x17b   : > { %v1032_v41 = vmax.f32 %v846_v35, 0.0  ;;  %v1064_v42 = vmax.f32 %v974_v36, 0.0 }
 0x17d   : > { %v2155_v43 = vpack.c.bf16 %v1032_v41, %v1031_v39  ;;  %v2235_v44 = vpack.c.bf16 %v1064_v42, %v1063_v40 }
 0x17e   : > { %v850_v45 = vpop.f32.mrb[48].mxu0  ;;  %v978_v46 = vpop.f32.mrb[48].mxu1 }
 0x17f   : > { %2267 = vst [vmem:[%s2823_s12 + $0x58] sm:$0xff] %v2155_v43   ;;  %2283 = vst [vmem:[%s2823_s12 + $0xd8] sm:$0xff] %v2235_v44   ;;  %v851_v47 = vadd.f32 %v2816_v17, %v850_v45  ;;  %v979_v48 = vadd.f32 %v2816_v17, %v978_v46  ;;  %v852_v49 = vpop.f32.mrb[49].mxu0  ;;  %v980_v50 = vpop.f32.mrb[49].mxu1 }
 0x180   : > { %v853_v51 = vpop.f32.mrb[50].mxu0  ;;  %v981_v52 = vpop.f32.mrb[50].mxu1 }
 0x181   : > { %v854_v53 = vadd.f32 %v2816_v17, %v853_v51  ;;  %v982_v54 = vadd.f32 %v2816_v17, %v981_v52  ;;  %v855_v55 = vpop.f32.mrb[51].mxu0  ;;  %v983_v56 = vpop.f32.mrb[51].mxu1  ;;  %v1033_v57 = vmax.f32 %v851_v47, 0.0  ;;  %v1065_v58 = vmax.f32 %v979_v48, 0.0 }
 0x183   : > { %v1034_v59 = vmax.f32 %v854_v53, 0.0  ;;  %v1066_v60 = vmax.f32 %v982_v54, 0.0 }
 0x185   : > { %v2160_v61 = vpack.c.bf16 %v1034_v59, %v1033_v57  ;;  %v2240_v62 = vpack.c.bf16 %v1066_v60, %v1065_v58 }
 0x186   : > { %v858_v63 = vpop.f32.mrb[52].mxu0  ;;  %v986_v0 = vpop.f32.mrb[52].mxu1 }
 0x187   : > { %2268 = vst [vmem:[%s2823_s12 + $0x60] sm:$0xff] %v2160_v61   ;;  %2284 = vst [vmem:[%s2823_s12 + $0xe0] sm:$0xff] %v2240_v62   ;;  %v859_v1 = vadd.f32 %v2816_v17, %v858_v63  ;;  %v987_v2 = vadd.f32 %v2816_v17, %v986_v0  ;;  %v860_v3 = vpop.f32.mrb[53].mxu0  ;;  %v988_v4 = vpop.f32.mrb[53].mxu1 }
 0x188   : > { %v861_v5 = vpop.f32.mrb[54].mxu0  ;;  %v989_v6 = vpop.f32.mrb[54].mxu1 }
 0x189   : > { %v862_v7 = vadd.f32 %v2816_v17, %v861_v5  ;;  %v990_v8 = vadd.f32 %v2816_v17, %v989_v6  ;;  %v863_v9 = vpop.f32.mrb[55].mxu0  ;;  %v991_v10 = vpop.f32.mrb[55].mxu1  ;;  %v1035_v11 = vmax.f32 %v859_v1, 0.0  ;;  %v1067_v12 = vmax.f32 %v987_v2, 0.0 }
 0x18b   : > { %v1036_v13 = vmax.f32 %v862_v7, 0.0  ;;  %v1068_v14 = vmax.f32 %v990_v8, 0.0 }
 0x18d   : > { %v2165_v15 = vpack.c.bf16 %v1036_v13, %v1035_v11  ;;  %v2245_v16 = vpack.c.bf16 %v1068_v14, %v1067_v12 }
 0x18e   : > { %v866_v18 = vpop.f32.mrb[56].mxu0  ;;  %v994_v19 = vpop.f32.mrb[56].mxu1 }
 0x18f   : > { %2269 = vst [vmem:[%s2823_s12 + $0x68] sm:$0xff] %v2165_v15   ;;  %2285 = vst [vmem:[%s2823_s12 + $0xe8] sm:$0xff] %v2245_v16   ;;  %v867_v20 = vadd.f32 %v2816_v17, %v866_v18  ;;  %v995_v21 = vadd.f32 %v2816_v17, %v994_v19  ;;  %v868_v22 = vpop.f32.mrb[57].mxu0  ;;  %v996_v23 = vpop.f32.mrb[57].mxu1 }
 0x190   : > { %v869_v24 = vpop.f32.mrb[58].mxu0  ;;  %v997_v25 = vpop.f32.mrb[58].mxu1 }
 0x191   : > { %v870_v26 = vadd.f32 %v2816_v17, %v869_v24  ;;  %v998_v27 = vadd.f32 %v2816_v17, %v997_v25  ;;  %v871_v28 = vpop.f32.mrb[59].mxu0  ;;  %v999_v29 = vpop.f32.mrb[59].mxu1  ;;  %v1037_v30 = vmax.f32 %v867_v20, 0.0  ;;  %v1069_v31 = vmax.f32 %v995_v21, 0.0 }
 0x193   : > { %v1038_v32 = vmax.f32 %v870_v26, 0.0  ;;  %v1070_v33 = vmax.f32 %v998_v27, 0.0 }
 0x195   : > { %v2170_v34 = vpack.c.bf16 %v1038_v32, %v1037_v30  ;;  %v2250_v35 = vpack.c.bf16 %v1070_v33, %v1069_v31 }
 0x196   : > { %v874_v36 = vpop.f32.mrb[60].mxu0  ;;  %v1002_v37 = vpop.f32.mrb[60].mxu1 }
 0x197   : > { %2270 = vst [vmem:[%s2823_s12 + $0x70] sm:$0xff] %v2170_v34   ;;  %2286 = vst [vmem:[%s2823_s12 + $0xf0] sm:$0xff] %v2250_v35   ;;  %v875_v38 = vadd.f32 %v2816_v17, %v874_v36  ;;  %v1003_v39 = vadd.f32 %v2816_v17, %v1002_v37  ;;  %v876_v40 = vpop.f32.mrb[61].mxu0  ;;  %v1004_v41 = vpop.f32.mrb[61].mxu1 }
 0x198   : > { %v877_v42 = vpop.f32.mrb[62].mxu0  ;;  %v1005_v43 = vpop.f32.mrb[62].mxu1 }
 0x199   : > { %v878_v44 = vadd.f32 %v2816_v17, %v877_v42  ;;  %v1006_v45 = vadd.f32 %v2816_v17, %v1005_v43  ;;  %v879_v46 = vpop.f32.mrb[63].mxu0  ;;  %v1007_v47 = vpop.f32.mrb[63].mxu1  ;;  %v1039_v48 = vmax.f32 %v875_v38, 0.0  ;;  %v1071_v49 = vmax.f32 %v1003_v39, 0.0  ;;  %1399 = sbr.rel (!%p2655_p4) target bundleno = 507 (0x1fb), region = 36 }
 0x19b   : > { %v1040_v50 = vmax.f32 %v878_v44, 0.0  ;;  %v1072_v51 = vmax.f32 %v1006_v45, 0.0 }
 0x19d   : > { %v2175_v52 = vpack.c.bf16 %v1040_v50, %v1039_v48  ;;  %v2255_v53 = vpack.c.bf16 %v1072_v51, %v1071_v49 }
 0x19f   : > { %2271 = vst [vmem:[%s2823_s12 + $0x78] sm:$0xff] %v2175_v52   ;;  %2287 = vst [vmem:[%s2823_s12 + $0xf8] sm:$0xff] %v2255_v53  }
 0x1a0   : > { %s3128_s9 = smov (!%p1402_p8, %s1401_s9), 64 }
 0x1a1   : > { %s2014_s28 = sshll.u32 %s3128_s9, 6 }
 0x1a2   : > { %p2017_p9 = scmp.eq.s32.totalorder %s2014_s28, 0 }
 0x1a3   : > { %s2930_s29 = sshrl.u32 (!%p2017_p9), %s3128_s9, 6 }
 0x1a4   : > { %1410 = sbr.rel (%p2017_p9) target bundleno = 507 (0x1fb), region = 40  ;;  %p2018_p10 = scmp.le.s32.totalorder (!%p2017_p9), %s2930_s29, 0 }
 0x1ab   : > { %1815 = sbr.rel (%p2018_p10) target bundleno = 486 (0x1e6), region = 112  ;;  %s3121_s15 = smov (!%p2018_p10), %s2924_s27 }
 0x1ac   : > { %s3122_s20 = smov (!%p2018_p10), %s2823_s12  ;;  %s2939_s23 = smov (!%p2018_p10), 0  }
 0x1ad   : > { %s2941_s30 = smov (!%p2018_p10), 0  }
 0x1b2 LB: >> { %v1426_v17 = vld [vmem:[%s2583_s20] sm:$0xf]  ;;  %v1428_v54 = vld [vmem:[%s2583_s20 + $0x4] sm:$0xf]  ;;  %v1430_v55 = vld [vmem:[%s2583_s20 + $0x8] sm:$0xf]  ;;  %s2591_s30 = sphi %s2941_s30, %s1420_s30   ;;  %s2587_s23 = sphi %s2939_s23, %s3123_s23   ;;  %s2583_s20 = sphi %s3122_s20, %s1559_s20   ;;  %s2579_s15 = sphi %s3121_s15, %s1560_s15  }
 0x1b3   : >> { %1427 = vst [vmem:[%s2579_s15] sm:$0xf] %v1426_v17  ;;  %1429 = vst [vmem:[%s2579_s15 + $0x4] sm:$0xf] %v1428_v54  ;;  %v1432_v56 = vld [vmem:[%s2583_s20 + $0xc] sm:$0xf]  ;;  %s1554_s4 = sadd.s32 1, %s2587_s23 }
 0x1b4   : >> { %1431 = vst [vmem:[%s2579_s15 + $0x8] sm:$0xf] %v1430_v55  ;;  %v1434_v57 = vld [vmem:[%s2583_s20 + $0x10] sm:$0xf]  ;;  %v1436_v58 = vld [vmem:[%s2583_s20 + $0x14] sm:$0xf]  ;;  %p1555_p11 = scmp.ge.s32.totalorder %s1554_s4, %s2930_s29 }
 0x1b5   : >> { %1433 = vst [vmem:[%s2579_s15 + $0xc] sm:$0xf] %v1432_v56  ;;  %1435 = vst [vmem:[%s2579_s15 + $0x10] sm:$0xf] %v1434_v57  ;;  %v1438_v59 = vld [vmem:[%s2583_s20 + $0x18] sm:$0xf] }
 0x1b6   : >> { %1437 = vst [vmem:[%s2579_s15 + $0x14] sm:$0xf] %v1436_v58  ;;  %v1440_v60 = vld [vmem:[%s2583_s20 + $0x1c] sm:$0xf]  ;;  %v1442_v61 = vld [vmem:[%s2583_s20 + $0x20] sm:$0xf] }
 0x1b7   : >> { %1439 = vst [vmem:[%s2579_s15 + $0x18] sm:$0xf] %v1438_v59  ;;  %1441 = vst [vmem:[%s2579_s15 + $0x1c] sm:$0xf] %v1440_v60  ;;  %v1444_v62 = vld [vmem:[%s2583_s20 + $0x24] sm:$0xf] }
 0x1b8   : >> { %1443 = vst [vmem:[%s2579_s15 + $0x20] sm:$0xf] %v1442_v61  ;;  %v1446_v63 = vld [vmem:[%s2583_s20 + $0x28] sm:$0xf]  ;;  %v1448_v0 = vld [vmem:[%s2583_s20 + $0x2c] sm:$0xf] }
 0x1b9   : >> { %1445 = vst [vmem:[%s2579_s15 + $0x24] sm:$0xf] %v1444_v62  ;;  %1447 = vst [vmem:[%s2579_s15 + $0x28] sm:$0xf] %v1446_v63  ;;  %v1450_v1 = vld [vmem:[%s2583_s20 + $0x30] sm:$0xf] }
 0x1ba   : >> { %1449 = vst [vmem:[%s2579_s15 + $0x2c] sm:$0xf] %v1448_v0  ;;  %v1452_v2 = vld [vmem:[%s2583_s20 + $0x34] sm:$0xf]  ;;  %v1454_v3 = vld [vmem:[%s2583_s20 + $0x38] sm:$0xf] }
 0x1bb   : >> { %1451 = vst [vmem:[%s2579_s15 + $0x30] sm:$0xf] %v1450_v1  ;;  %1453 = vst [vmem:[%s2579_s15 + $0x34] sm:$0xf] %v1452_v2  ;;  %v1456_v4 = vld [vmem:[%s2583_s20 + $0x3c] sm:$0xf] }
 0x1bc   : >> { %1455 = vst [vmem:[%s2579_s15 + $0x38] sm:$0xf] %v1454_v3  ;;  %v1458_v5 = vld [vmem:[%s2583_s20 + $0x40] sm:$0xf]  ;;  %v1460_v6 = vld [vmem:[%s2583_s20 + $0x44] sm:$0xf] }
 0x1bd   : >> { %1457 = vst [vmem:[%s2579_s15 + $0x3c] sm:$0xf] %v1456_v4  ;;  %1459 = vst [vmem:[%s2579_s15 + $0x40] sm:$0xf] %v1458_v5  ;;  %v1462_v7 = vld [vmem:[%s2583_s20 + $0x48] sm:$0xf] }
 0x1be   : >> { %1461 = vst [vmem:[%s2579_s15 + $0x44] sm:$0xf] %v1460_v6  ;;  %v1464_v8 = vld [vmem:[%s2583_s20 + $0x4c] sm:$0xf]  ;;  %v1466_v9 = vld [vmem:[%s2583_s20 + $0x50] sm:$0xf] }
 0x1bf   : >> { %1463 = vst [vmem:[%s2579_s15 + $0x48] sm:$0xf] %v1462_v7  ;;  %1465 = vst [vmem:[%s2579_s15 + $0x4c] sm:$0xf] %v1464_v8  ;;  %v1468_v10 = vld [vmem:[%s2583_s20 + $0x54] sm:$0xf] }
 0x1c0   : >> { %1467 = vst [vmem:[%s2579_s15 + $0x50] sm:$0xf] %v1466_v9  ;;  %v1470_v11 = vld [vmem:[%s2583_s20 + $0x58] sm:$0xf]  ;;  %v1472_v12 = vld [vmem:[%s2583_s20 + $0x5c] sm:$0xf] }
 0x1c1   : >> { %1469 = vst [vmem:[%s2579_s15 + $0x54] sm:$0xf] %v1468_v10  ;;  %1471 = vst [vmem:[%s2579_s15 + $0x58] sm:$0xf] %v1470_v11  ;;  %v1474_v13 = vld [vmem:[%s2583_s20 + $0x60] sm:$0xf] }
 0x1c2   : >> { %1473 = vst [vmem:[%s2579_s15 + $0x5c] sm:$0xf] %v1472_v12  ;;  %v1476_v14 = vld [vmem:[%s2583_s20 + $0x64] sm:$0xf]  ;;  %v1478_v15 = vld [vmem:[%s2583_s20 + $0x68] sm:$0xf] }
 0x1c3   : >> { %1475 = vst [vmem:[%s2579_s15 + $0x60] sm:$0xf] %v1474_v13  ;;  %1477 = vst [vmem:[%s2579_s15 + $0x64] sm:$0xf] %v1476_v14  ;;  %v1480_v16 = vld [vmem:[%s2583_s20 + $0x6c] sm:$0xf] }
 0x1c4   : >> { %1479 = vst [vmem:[%s2579_s15 + $0x68] sm:$0xf] %v1478_v15  ;;  %v1482_v18 = vld [vmem:[%s2583_s20 + $0x70] sm:$0xf]  ;;  %v1484_v19 = vld [vmem:[%s2583_s20 + $0x74] sm:$0xf] }
 0x1c5   : >> { %1481 = vst [vmem:[%s2579_s15 + $0x6c] sm:$0xf] %v1480_v16  ;;  %1483 = vst [vmem:[%s2579_s15 + $0x70] sm:$0xf] %v1482_v18  ;;  %v1486_v20 = vld [vmem:[%s2583_s20 + $0x78] sm:$0xf] }
 0x1c6   : >> { %1485 = vst [vmem:[%s2579_s15 + $0x74] sm:$0xf] %v1484_v19  ;;  %v1488_v21 = vld [vmem:[%s2583_s20 + $0x7c] sm:$0xf]  ;;  %v1490_v22 = vld [vmem:[%s2583_s20 + $0x80] sm:$0xf] }
 0x1c7   : >> { %1487 = vst [vmem:[%s2579_s15 + $0x78] sm:$0xf] %v1486_v20  ;;  %1489 = vst [vmem:[%s2579_s15 + $0x7c] sm:$0xf] %v1488_v21  ;;  %v1492_v23 = vld [vmem:[%s2583_s20 + $0x84] sm:$0xf] }
 0x1c8   : >> { %1491 = vst [vmem:[%s2579_s15 + $0x80] sm:$0xf] %v1490_v22  ;;  %v1494_v24 = vld [vmem:[%s2583_s20 + $0x88] sm:$0xf]  ;;  %v1496_v25 = vld [vmem:[%s2583_s20 + $0x8c] sm:$0xf] }
 0x1c9   : >> { %1493 = vst [vmem:[%s2579_s15 + $0x84] sm:$0xf] %v1492_v23  ;;  %1495 = vst [vmem:[%s2579_s15 + $0x88] sm:$0xf] %v1494_v24  ;;  %v1498_v26 = vld [vmem:[%s2583_s20 + $0x90] sm:$0xf] }
 0x1ca   : >> { %1497 = vst [vmem:[%s2579_s15 + $0x8c] sm:$0xf] %v1496_v25  ;;  %v1500_v27 = vld [vmem:[%s2583_s20 + $0x94] sm:$0xf]  ;;  %v1502_v28 = vld [vmem:[%s2583_s20 + $0x98] sm:$0xf] }
 0x1cb   : >> { %1499 = vst [vmem:[%s2579_s15 + $0x90] sm:$0xf] %v1498_v26  ;;  %1501 = vst [vmem:[%s2579_s15 + $0x94] sm:$0xf] %v1500_v27  ;;  %v1504_v29 = vld [vmem:[%s2583_s20 + $0x9c] sm:$0xf] }
 0x1cc   : >> { %1503 = vst [vmem:[%s2579_s15 + $0x98] sm:$0xf] %v1502_v28  ;;  %v1506_v30 = vld [vmem:[%s2583_s20 + $0xa0] sm:$0xf]  ;;  %v1508_v31 = vld [vmem:[%s2583_s20 + $0xa4] sm:$0xf] }
 0x1cd   : >> { %1505 = vst [vmem:[%s2579_s15 + $0x9c] sm:$0xf] %v1504_v29  ;;  %1507 = vst [vmem:[%s2579_s15 + $0xa0] sm:$0xf] %v1506_v30  ;;  %v1510_v32 = vld [vmem:[%s2583_s20 + $0xa8] sm:$0xf] }
 0x1ce   : >> { %1509 = vst [vmem:[%s2579_s15 + $0xa4] sm:$0xf] %v1508_v31  ;;  %v1512_v33 = vld [vmem:[%s2583_s20 + $0xac] sm:$0xf]  ;;  %v1514_v34 = vld [vmem:[%s2583_s20 + $0xb0] sm:$0xf] }
 0x1cf   : >> { %1511 = vst [vmem:[%s2579_s15 + $0xa8] sm:$0xf] %v1510_v32  ;;  %1513 = vst [vmem:[%s2579_s15 + $0xac] sm:$0xf] %v1512_v33  ;;  %v1516_v35 = vld [vmem:[%s2583_s20 + $0xb4] sm:$0xf] }
 0x1d0   : >> { %1515 = vst [vmem:[%s2579_s15 + $0xb0] sm:$0xf] %v1514_v34  ;;  %v1518_v36 = vld [vmem:[%s2583_s20 + $0xb8] sm:$0xf]  ;;  %v1520_v37 = vld [vmem:[%s2583_s20 + $0xbc] sm:$0xf] }
 0x1d1   : >> { %1517 = vst [vmem:[%s2579_s15 + $0xb4] sm:$0xf] %v1516_v35  ;;  %1519 = vst [vmem:[%s2579_s15 + $0xb8] sm:$0xf] %v1518_v36  ;;  %v1522_v38 = vld [vmem:[%s2583_s20 + $0xc0] sm:$0xf] }
 0x1d2   : >> { %1521 = vst [vmem:[%s2579_s15 + $0xbc] sm:$0xf] %v1520_v37  ;;  %v1524_v39 = vld [vmem:[%s2583_s20 + $0xc4] sm:$0xf]  ;;  %v1526_v40 = vld [vmem:[%s2583_s20 + $0xc8] sm:$0xf] }
 0x1d3   : >> { %1523 = vst [vmem:[%s2579_s15 + $0xc0] sm:$0xf] %v1522_v38  ;;  %1525 = vst [vmem:[%s2579_s15 + $0xc4] sm:$0xf] %v1524_v39  ;;  %v1528_v41 = vld [vmem:[%s2583_s20 + $0xcc] sm:$0xf] }
 0x1d4   : >> { %1527 = vst [vmem:[%s2579_s15 + $0xc8] sm:$0xf] %v1526_v40  ;;  %v1530_v42 = vld [vmem:[%s2583_s20 + $0xd0] sm:$0xf]  ;;  %v1532_v43 = vld [vmem:[%s2583_s20 + $0xd4] sm:$0xf] }
 0x1d5   : >> { %1529 = vst [vmem:[%s2579_s15 + $0xcc] sm:$0xf] %v1528_v41  ;;  %1531 = vst [vmem:[%s2579_s15 + $0xd0] sm:$0xf] %v1530_v42  ;;  %v1534_v44 = vld [vmem:[%s2583_s20 + $0xd8] sm:$0xf] }
 0x1d6   : >> { %1533 = vst [vmem:[%s2579_s15 + $0xd4] sm:$0xf] %v1532_v43  ;;  %v1536_v45 = vld [vmem:[%s2583_s20 + $0xdc] sm:$0xf]  ;;  %v1538_v46 = vld [vmem:[%s2583_s20 + $0xe0] sm:$0xf] }
 0x1d7   : >> { %1535 = vst [vmem:[%s2579_s15 + $0xd8] sm:$0xf] %v1534_v44  ;;  %1537 = vst [vmem:[%s2579_s15 + $0xdc] sm:$0xf] %v1536_v45  ;;  %v1540_v47 = vld [vmem:[%s2583_s20 + $0xe4] sm:$0xf] }
 0x1d8   : >> { %1539 = vst [vmem:[%s2579_s15 + $0xe0] sm:$0xf] %v1538_v46  ;;  %v1542_v48 = vld [vmem:[%s2583_s20 + $0xe8] sm:$0xf]  ;;  %v1544_v49 = vld [vmem:[%s2583_s20 + $0xec] sm:$0xf] }
 0x1d9   : >> { %1541 = vst [vmem:[%s2579_s15 + $0xe4] sm:$0xf] %v1540_v47  ;;  %1543 = vst [vmem:[%s2579_s15 + $0xe8] sm:$0xf] %v1542_v48  ;;  %v1546_v50 = vld [vmem:[%s2583_s20 + $0xf0] sm:$0xf] }
 0x1da   : >> { %1545 = vst [vmem:[%s2579_s15 + $0xec] sm:$0xf] %v1544_v49  ;;  %v1548_v51 = vld [vmem:[%s2583_s20 + $0xf4] sm:$0xf]  ;;  %v1550_v52 = vld [vmem:[%s2583_s20 + $0xf8] sm:$0xf] }
 0x1db   : >> { %1547 = vst [vmem:[%s2579_s15 + $0xf0] sm:$0xf] %v1546_v50  ;;  %1549 = vst [vmem:[%s2579_s15 + $0xf4] sm:$0xf] %v1548_v51  ;;  %v1552_v53 = vld [vmem:[%s2583_s20 + $0xfc] sm:$0xf] }
 0x1dc   : >> { %1551 = vst [vmem:[%s2579_s15 + $0xf8] sm:$0xf] %v1550_v52  ;;  %1553 = vst [vmem:[%s2579_s15 + $0xfc] sm:$0xf] %v1552_v53  ;;  %s3130_s4 = smov (%p1555_p11, %s1554_s4), 0  ;;  %s1420_s30 = sadd.s32 1, %s2591_s30  }
 0x1dd   : >> { %s2019_s5 = sshll.u32 %s3130_s4, 8  ;;  %p1419_p12 = scmp.ge.s32.totalorder %s1420_s30, %s2930_s29 }
 0x1de   : >> { %s1559_s20 = scalar_lea.vmem %s2823_s12, %s2019_s5 [#allocation2]   ;;  %s1560_s15 = scalar_lea.vmem %s2924_s27, %s2019_s5  }
 0x1df   : >> { %s3123_s23 = smov %s3130_s4  ;;  %1422 = sbr.rel (!%p1419_p12) target bundleno = 434 (0x1b2), region = 118 }
 0x1e6 PF: > { %s3098_s6 = sand.u32 63, %s3128_s9   ;;  %s2095_s7 = sshll.u32 %s2930_s29, 8 }
 0x1e7   : > { %s1565_s8 = scalar_lea.vmem %s2823_s12, %s2095_s7 [#allocation2]   ;;  %s1567_s10 = scalar_lea.vmem %s2924_s27, %s2095_s7  }
 0x1e8   : > { %p2024_p13 = scmp.le.s32.totalorder %s3098_s6, 0 }
 0x1e9   : > { %s2593_s11 = smov (!%p2024_p13), %s1567_s10   ;;  %s2597_s14 = smov (!%p2024_p13), %s1565_s8  }
 0x1ea   : > { %1829 = sbr.rel (%p2024_p13) target bundleno = 507 (0x1fb), region = 123  ;;  %s2601_s17 = smov (!%p2024_p13), 0  }
 0x1eb   : > { %s2605_s18 = smov (!%p2024_p13), 0  }
 0x1f1 LB: >> { %v1577_v17 = vld [vmem:[%s2599_s14] sm:$0xf]  ;;  %s1579_s21 = sadd.s32 1, %s2603_s17  ;;  %s1571_s18 = sadd.s32 1, %s2607_s18   ;;  %s2607_s18 = sphi %s2605_s18, %s1571_s18   ;;  %s2603_s17 = sphi %s2601_s17, %s2602_s17   ;;  %s2599_s14 = sphi %s2597_s14, %s1584_s14   ;;  %s2595_s11 = sphi %s2593_s11, %s1585_s11  }
 0x1f2   : >> { %1578 = vst [vmem:[%s2595_s11] sm:$0xf] %v1577_v17  ;;  %p1580_p0 = scmp.ge.s32.totalorder %s1579_s21, %s3098_s6  ;;  %p1570_p1 = scmp.ge.s32.totalorder %s1571_s18, %s3098_s6 }
 0x1f4   : >> { %s3132_s21 = smov (%p1580_p0, %s1579_s21), 0  ;;  %1573 = sbr.rel (!%p1570_p1) target bundleno = 497 (0x1f1), region = 129 }
 0x1f5   : >> { %s2025_s22 = sshll.u32 %s3132_s21, 2  ;;  %s2602_s17 = smov %s3132_s21  }
 0x1f6   : >> { %s1584_s14 = scalar_lea.vmem %s1565_s8, %s2025_s22 [#allocation2]   ;;  %s1585_s11 = scalar_lea.vmem %s1567_s10, %s2025_s22  }
 0x1fb PF: > { %p10_p2 = scmp.ge.s32.totalorder %s2645_s16, 6   ;;  %s3124_s12 = smov %s2571_s13 }
 0x1fc   : > { %s3125_s13 = smov %s2653_s19  ;;  %s3126_s14 = smov %s2645_s16 }
 0x1fd   :  { %12 = sbr.rel (!%p10_p2) target bundleno = 2 (0x2), region = 140 }

// kernel: squeezenet_forward.19
= control target key start
LH: loop header
LB: loop body
LE: loop exit
PB: predicated region body
PF: predicated region fallthrough
CT: control target
= control target key end

     0   :  { %v1147_v0 = vmov 0.0   ;;  %vm1148_vm0 = vmmov 0   ;;  %vm761_vm1 = vcmask 125952   ;;  %s1584_s1 = inlined_call_operand.vmem [shape: bf16[128,16], index: 1, kind: input, shape index: {}]   ;;  %s1585_s0 = inlined_call_operand.vmem [shape: bf16[392,128], index: 0, kind: input, shape index: {}]   ;;  %s1586_s2 = inlined_call_operand.vmem [shape: f32[1,16], index: 2, kind: input, shape index: {}]   ;;  %s1587_s3 = inlined_call_operand.vmem [shape: bf16[392,16], index: 3, kind: output, shape index: {}]  }
   0x1   :  { %980 = vmatprep.subr.bf16.mxu0 %v1147_v0  ;;  %v1114_v1 = vld [vmem:[%s1584_s1] sm:$0xff]   ;;  %1096 = vmatprep.subr.bf16.mxu1 %v1147_v0  ;;  %v1115_v2 = vld [vmem:[%s1584_s1 + $0x8] sm:$0xff]   ;;  %v1116_v3 = vld [vmem:[%s1584_s1 + $0x10] sm:$0xff]  }
   0x2   :  { %996 = vmatprep.mubr.msk.bf16.mxu0 %vm1148_vm0, %v1147_v0  ;;  %1048 = vmatprep.mubr.msk.bf16.mxu1 %vm1148_vm0, %v1147_v0  ;;  %v1117_v4 = vld [vmem:[%s1584_s1 + $0x18] sm:$0xff]   ;;  %v1118_v5 = vld [vmem:[%s1584_s1 + $0x20] sm:$0xff]   ;;  %v1119_v6 = vld [vmem:[%s1584_s1 + $0x28] sm:$0xff]  }
   0x3   :  { %981 = vmatpush3.bf16.msra.mxu0 %v1114_v1  ;;  %1104 = vmatpush3.bf16.msra.mxu1 %v1114_v1  ;;  %v1120_v7 = vld [vmem:[%s1584_s1 + $0x30] sm:$0xff]   ;;  %v1121_v8 = vld [vmem:[%s1584_s1 + $0x38] sm:$0xff]   ;;  %v1122_v9 = vld [vmem:[%s1585_s0] sm:$0xff]  }
   0x4   :  { %982 = vmatprep.subr.bf16.mxu0 %v1147_v0  ;;  %1097 = vmatprep.subr.bf16.mxu1 %v1147_v0  ;;  %v1123_v10 = vld [vmem:[%s1585_s0 + $0x68] sm:$0xff]   ;;  %v1125_v12 = vld [vmem:[%s1585_s0 + $0x70] sm:$0xff]   ;;  %v1127_v14 = vld [vmem:[%s1585_s0 + $0x78] sm:$0xff]  }
   0x5   :  { %v1124_v11 = vld [vmem:[%s1585_s0 + $0x8] sm:$0xff]   ;;  %v1126_v13 = vld [vmem:[%s1585_s0 + $0x10] sm:$0xff]   ;;  %v1128_v15 = vld [vmem:[%s1585_s0 + $0x18] sm:$0xff]  }
   0x6   :  { %v1129_v16 = vld [vmem:[%s1585_s0 + $0x80] sm:$0xff]   ;;  %v1131_v18 = vld [vmem:[%s1585_s0 + $0x88] sm:$0xff]   ;;  %v1133_v20 = vld [vmem:[%s1585_s0 + $0x90] sm:$0xff]  }
   0x7   :  { %983 = vmatpush3.bf16.msra.mxu0 %v1115_v2  ;;  %1105 = vmatpush3.bf16.msra.mxu1 %v1115_v2  ;;  %v1130_v17 = vld [vmem:[%s1585_s0 + $0x20] sm:$0xff]   ;;  %v1132_v19 = vld [vmem:[%s1585_s0 + $0x28] sm:$0xff]   ;;  %v1134_v21 = vld [vmem:[%s1585_s0 + $0x30] sm:$0xff]  }
   0x8   :  { %984 = vmatprep.subr.bf16.mxu0 %v1147_v0  ;;  %1098 = vmatprep.subr.bf16.mxu1 %v1147_v0  ;;  %v1135_v22 = vld [vmem:[%s1585_s0 + $0x98] sm:$0xff]   ;;  %v1137_v24 = vld [vmem:[%s1585_s0 + $0xa0] sm:$0xff]   ;;  %v1139_v26 = vld [vmem:[%s1585_s0 + $0xa8] sm:$0xff]  }
   0x9   :  { %v1136_v23 = vld [vmem:[%s1585_s0 + $0x38] sm:$0xff]   ;;  %v1138_v25 = vld [vmem:[%s1585_s0 + $0x40] sm:$0xff]   ;;  %v1140_v27 = vld [vmem:[%s1585_s0 + $0x48] sm:$0xff]  }
   0xa   :  { %v1141_v28 = vld [vmem:[%s1585_s0 + $0xb0] sm:$0xff]   ;;  %v1143_v30 = vld [vmem:[%s1585_s0 + $0xb8] sm:$0xff]   ;;  %v1145_v32 = vld [vmem:[%s1585_s0 + $0xc0] ss:$0 sps:$4 sm:$0xff]  }
   0xb   :  { %985 = vmatpush3.bf16.msra.mxu0 %v1116_v3  ;;  %1106 = vmatpush3.bf16.msra.mxu1 %v1116_v3  ;;  %v1142_v29 = vld [vmem:[%s1585_s0 + $0x50] sm:$0xff]   ;;  %v1144_v31 = vld [vmem:[%s1585_s0 + $0x58] sm:$0xff]   ;;  %v1146_v33 = vld [vmem:[%s1585_s0 + $0x60] sm:$0xff]  }
   0xc   :  { %986 = vmatprep.subr.bf16.mxu0 %v1147_v0  ;;  %1099 = vmatprep.subr.bf16.mxu1 %v1147_v0  ;;  %v1337_v34 = vld [vmem:[%s1586_s2] ss:$0 sm:$0xff] }
   0xf   :  { %987 = vmatpush3.bf16.msra.mxu0 %v1117_v4  ;;  %1107 = vmatpush3.bf16.msra.mxu1 %v1117_v4 }
  0x10   :  { %988 = vmatprep.subr.bf16.mxu0 %v1147_v0  ;;  %1100 = vmatprep.subr.bf16.mxu1 %v1147_v0 }
  0x13   :  { %989 = vmatpush3.bf16.msra.mxu0 %v1118_v5  ;;  %1108 = vmatpush3.bf16.msra.mxu1 %v1118_v5 }
  0x14   :  { %990 = vmatprep.subr.bf16.mxu0 %v1147_v0  ;;  %1101 = vmatprep.subr.bf16.mxu1 %v1147_v0 }
  0x17   :  { %991 = vmatpush3.bf16.msra.mxu0 %v1119_v6  ;;  %1109 = vmatpush3.bf16.msra.mxu1 %v1119_v6 }
  0x18   :  { %992 = vmatprep.subr.bf16.mxu0 %v1147_v0  ;;  %1102 = vmatprep.subr.bf16.mxu1 %v1147_v0 }
  0x1b   :  { %993 = vmatpush3.bf16.msra.mxu0 %v1120_v7  ;;  %1110 = vmatpush3.bf16.msra.mxu1 %v1120_v7 }
  0x1c   :  { %994 = vmatprep.subr.bf16.mxu0 %v1147_v0  ;;  %1103 = vmatprep.subr.bf16.mxu1 %v1147_v0 }
  0x1f   :  { %995 = vmatpush3.bf16.msra.mxu0 %v1121_v8  ;;  %1111 = vmatpush3.bf16.msra.mxu1 %v1121_v8 }
  0x22   :  { %997 = vmatmul.mubr.bf16.vlgmr.msra.gmra.mrb[0].mxu0 %v1122_v9  ;;  %1049 = vmatmul.mubr.bf16.vlgmr.msra.gmra.mrb[0].mxu1 %v1123_v10 }
  0x23   :  { %1000 = vmatprep.mubr.msk.bf16.mxu0 %vm1148_vm0, %v1147_v0  ;;  %1052 = vmatprep.mubr.msk.bf16.mxu1 %vm1148_vm0, %v1147_v0 }
  0x2a   :  { %1001 = vmatmul.mubr.bf16.gmra.mrb[4].mxu0 %v1124_v11  ;;  %1053 = vmatmul.mubr.bf16.gmra.mrb[4].mxu1 %v1125_v12 }
  0x2b   :  { %1004 = vmatprep.mubr.msk.bf16.mxu0 %vm1148_vm0, %v1147_v0  ;;  %1056 = vmatprep.mubr.msk.bf16.mxu1 %vm1148_vm0, %v1147_v0 }
  0x32   :  { %1005 = vmatmul.mubr.bf16.gmra.mrb[8].mxu0 %v1126_v13  ;;  %1057 = vmatmul.mubr.bf16.gmra.mrb[8].mxu1 %v1127_v14 }
  0x33   :  { %1008 = vmatprep.mubr.msk.bf16.mxu0 %vm1148_vm0, %v1147_v0  ;;  %1060 = vmatprep.mubr.msk.bf16.mxu1 %vm1148_vm0, %v1147_v0 }
  0x3a   :  { %1009 = vmatmul.mubr.bf16.gmra.mrb[12].mxu0 %v1128_v15  ;;  %1061 = vmatmul.mubr.bf16.gmra.mrb[12].mxu1 %v1129_v16 }
  0x3b   :  { %1012 = vmatprep.mubr.msk.bf16.mxu0 %vm1148_vm0, %v1147_v0  ;;  %1064 = vmatprep.mubr.msk.bf16.mxu1 %vm1148_vm0, %v1147_v0 }
  0x42   :  { %1013 = vmatmul.mubr.bf16.gmra.mrb[16].mxu0 %v1130_v17  ;;  %1065 = vmatmul.mubr.bf16.gmra.mrb[16].mxu1 %v1131_v18 }
  0x43   :  { %1016 = vmatprep.mubr.msk.bf16.mxu0 %vm1148_vm0, %v1147_v0  ;;  %1068 = vmatprep.mubr.msk.bf16.mxu1 %vm1148_vm0, %v1147_v0 }
  0x4a   :  { %1017 = vmatmul.mubr.bf16.gmra.mrb[20].mxu0 %v1132_v19  ;;  %1069 = vmatmul.mubr.bf16.gmra.mrb[20].mxu1 %v1133_v20 }
  0x4b   :  { %1020 = vmatprep.mubr.msk.bf16.mxu0 %vm1148_vm0, %v1147_v0  ;;  %1072 = vmatprep.mubr.msk.bf16.mxu1 %vm1148_vm0, %v1147_v0 }
  0x52   :  { %1021 = vmatmul.mubr.bf16.gmra.mrb[24].mxu0 %v1134_v21  ;;  %1073 = vmatmul.mubr.bf16.gmra.mrb[24].mxu1 %v1135_v22 }
  0x53   :  { %1024 = vmatprep.mubr.msk.bf16.mxu0 %vm1148_vm0, %v1147_v0  ;;  %1076 = vmatprep.mubr.msk.bf16.mxu1 %vm1148_vm0, %v1147_v0 }
  0x5a   :  { %1025 = vmatmul.mubr.bf16.gmra.mrb[28].mxu0 %v1136_v23  ;;  %1077 = vmatmul.mubr.bf16.gmra.mrb[28].mxu1 %v1137_v24 }
  0x5b   :  { %1028 = vmatprep.mubr.msk.bf16.mxu0 %vm1148_vm0, %v1147_v0  ;;  %1080 = vmatprep.mubr.msk.bf16.mxu1 %vm1148_vm0, %v1147_v0 }
  0x62   :  { %1029 = vmatmul.mubr.bf16.gmra.mrb[32].mxu0 %v1138_v25  ;;  %1081 = vmatmul.mubr.bf16.gmra.mrb[32].mxu1 %v1139_v26 }
  0x63   :  { %1032 = vmatprep.mubr.msk.bf16.mxu0 %vm1148_vm0, %v1147_v0  ;;  %1084 = vmatprep.mubr.msk.bf16.mxu1 %vm1148_vm0, %v1147_v0 }
  0x6a   :  { %1033 = vmatmul.mubr.bf16.gmra.mrb[36].mxu0 %v1140_v27  ;;  %1085 = vmatmul.mubr.bf16.gmra.mrb[36].mxu1 %v1141_v28 }
  0x6b   :  { %1036 = vmatprep.mubr.msk.bf16.mxu0 %vm1148_vm0, %v1147_v0  ;;  %1088 = vmatprep.mubr.msk.bf16.mxu1 %vm1148_vm0, %v1147_v0 }
  0x72   :  { %1037 = vmatmul.mubr.bf16.gmra.mrb[40].mxu0 %v1142_v29  ;;  %1089 = vmatmul.mubr.bf16.gmra.mrb[40].mxu1 %v1143_v30 }
  0x73   :  { %1040 = vmatprep.mubr.msk.bf16.mxu0 %vm1148_vm0, %v1147_v0  ;;  %1092 = vmatprep.mubr.msk.bf16.mxu1 %vm1148_vm0, %v1147_v0 }
  0x7a   :  { %1041 = vmatmul.mubr.bf16.gmra.mrb[44].mxu0 %v1144_v31  ;;  %1093 = vmatmul.mubr.bf16.gmra.mrb[44].mxu1 %v1145_v32 }
  0x7b   :  { %1044 = vmatprep.mubr.msk.bf16.mxu0 %vm1148_vm0, %v1147_v0 }
  0x82   :  { %1045 = vmatmul.mubr.bf16.gmra.mrb[48].mxu0 %v1146_v33 }
  0xf5   :  { %v317_v35 = vpop.f32.mrb[0].mxu0  ;;  %v421_v36 = vpop.f32.mrb[0].mxu1 }
  0xf6   :  { %v318_v37 = vadd.f32 %v1337_v34, %v317_v35  ;;  %v998_v38 = vpop.f32.mrb[1].mxu0  ;;  %v422_v39 = vadd.f32 %v1337_v34, %v421_v36  ;;  %v1050_v40 = vpop.f32.mrb[1].mxu1 }
  0xf7   :  { %v320_v41 = vpop.f32.mrb[2].mxu0  ;;  %v424_v42 = vpop.f32.mrb[2].mxu1 }
  0xf8   :  { %v515_v43 = vmax.f32 %v318_v37, 0.0  ;;  %v321_v44 = vadd.f32 %v1337_v34, %v320_v41  ;;  %v999_v45 = vpop.f32.mrb[3].mxu0  ;;  %v541_v46 = vmax.f32 %v422_v39, 0.0  ;;  %v425_v47 = vadd.f32 %v1337_v34, %v424_v42  ;;  %v1051_v48 = vpop.f32.mrb[3].mxu1 }
  0xfa   :  { %v898_v49 = vpack.c.bf16 %v515_v43, %v515_v43  ;;  %v516_v50 = vmax.f32 %v321_v44, 0.0  ;;  %v924_v51 = vpack.c.bf16 %v541_v46, %v541_v46  ;;  %v542_v52 = vmax.f32 %v425_v47, 0.0 }
  0xfc   :  { %762 = vst.msk [vmem:[%s1587_s3] sm:$0xf] %vm761_vm1, %v898_v49  ;;  %v899_v53 = vpack.c.bf16 %v516_v50, %v516_v50  ;;  %788 = vst.msk [vmem:[%s1587_s3 + $0x68] sm:$0xf] %vm761_vm1, %v924_v51  ;;  %v925_v54 = vpack.c.bf16 %v542_v52, %v542_v52 }
  0xfd   :  { %v325_v55 = vpop.f32.mrb[4].mxu0  ;;  %v429_v56 = vpop.f32.mrb[4].mxu1 }
  0xfe   :  { %763 = vst.msk [vmem:[%s1587_s3 + $0x4] sm:$0xf] %vm761_vm1, %v899_v53  ;;  %v326_v57 = vadd.f32 %v1337_v34, %v325_v55  ;;  %v1002_v58 = vpop.f32.mrb[5].mxu0  ;;  %789 = vst.msk [vmem:[%s1587_s3 + $0x6c] sm:$0xf] %vm761_vm1, %v925_v54  ;;  %v430_v59 = vadd.f32 %v1337_v34, %v429_v56  ;;  %v1054_v60 = vpop.f32.mrb[5].mxu1 }
  0xff   :  { %v328_v61 = vpop.f32.mrb[6].mxu0  ;;  %v432_v62 = vpop.f32.mrb[6].mxu1 }
 0x100   :  { %v517_v63 = vmax.f32 %v326_v57, 0.0  ;;  %v329_v0 = vadd.f32 %v1337_v34, %v328_v61  ;;  %v1003_v1 = vpop.f32.mrb[7].mxu0  ;;  %v543_v2 = vmax.f32 %v430_v59, 0.0  ;;  %v433_v3 = vadd.f32 %v1337_v34, %v432_v62  ;;  %v1055_v4 = vpop.f32.mrb[7].mxu1 }
 0x102   :  { %v900_v5 = vpack.c.bf16 %v517_v63, %v517_v63  ;;  %v518_v6 = vmax.f32 %v329_v0, 0.0  ;;  %v926_v7 = vpack.c.bf16 %v543_v2, %v543_v2  ;;  %v544_v8 = vmax.f32 %v433_v3, 0.0 }
 0x104   :  { %764 = vst.msk [vmem:[%s1587_s3 + $0x8] sm:$0xf] %vm761_vm1, %v900_v5  ;;  %v901_v9 = vpack.c.bf16 %v518_v6, %v518_v6  ;;  %790 = vst.msk [vmem:[%s1587_s3 + $0x70] sm:$0xf] %vm761_vm1, %v926_v7  ;;  %v927_v10 = vpack.c.bf16 %v544_v8, %v544_v8 }
 0x105   :  { %v333_v11 = vpop.f32.mrb[8].mxu0  ;;  %v437_v12 = vpop.f32.mrb[8].mxu1 }
 0x106   :  { %765 = vst.msk [vmem:[%s1587_s3 + $0xc] sm:$0xf] %vm761_vm1, %v901_v9  ;;  %v334_v13 = vadd.f32 %v1337_v34, %v333_v11  ;;  %v1006_v14 = vpop.f32.mrb[9].mxu0  ;;  %791 = vst.msk [vmem:[%s1587_s3 + $0x74] sm:$0xf] %vm761_vm1, %v927_v10  ;;  %v438_v15 = vadd.f32 %v1337_v34, %v437_v12  ;;  %v1058_v16 = vpop.f32.mrb[9].mxu1 }
 0x107   :  { %v336_v17 = vpop.f32.mrb[10].mxu0  ;;  %v440_v18 = vpop.f32.mrb[10].mxu1 }
 0x108   :  { %v519_v19 = vmax.f32 %v334_v13, 0.0  ;;  %v337_v20 = vadd.f32 %v1337_v34, %v336_v17  ;;  %v1007_v21 = vpop.f32.mrb[11].mxu0  ;;  %v545_v22 = vmax.f32 %v438_v15, 0.0  ;;  %v441_v23 = vadd.f32 %v1337_v34, %v440_v18  ;;  %v1059_v24 = vpop.f32.mrb[11].mxu1 }
 0x10a   :  { %v902_v25 = vpack.c.bf16 %v519_v19, %v519_v19  ;;  %v520_v26 = vmax.f32 %v337_v20, 0.0  ;;  %v928_v27 = vpack.c.bf16 %v545_v22, %v545_v22  ;;  %v546_v28 = vmax.f32 %v441_v23, 0.0 }
 0x10c   :  { %766 = vst.msk [vmem:[%s1587_s3 + $0x10] sm:$0xf] %vm761_vm1, %v902_v25  ;;  %v903_v29 = vpack.c.bf16 %v520_v26, %v520_v26  ;;  %792 = vst.msk [vmem:[%s1587_s3 + $0x78] sm:$0xf] %vm761_vm1, %v928_v27  ;;  %v929_v30 = vpack.c.bf16 %v546_v28, %v546_v28 }
 0x10d   :  { %v341_v31 = vpop.f32.mrb[12].mxu0  ;;  %v445_v32 = vpop.f32.mrb[12].mxu1 }
 0x10e   :  { %767 = vst.msk [vmem:[%s1587_s3 + $0x14] sm:$0xf] %vm761_vm1, %v903_v29  ;;  %v342_v33 = vadd.f32 %v1337_v34, %v341_v31  ;;  %v1010_v35 = vpop.f32.mrb[13].mxu0  ;;  %793 = vst.msk [vmem:[%s1587_s3 + $0x7c] sm:$0xf] %vm761_vm1, %v929_v30  ;;  %v446_v36 = vadd.f32 %v1337_v34, %v445_v32  ;;  %v1062_v37 = vpop.f32.mrb[13].mxu1 }
 0x10f   :  { %v344_v38 = vpop.f32.mrb[14].mxu0  ;;  %v448_v39 = vpop.f32.mrb[14].mxu1 }
 0x110   :  { %v521_v40 = vmax.f32 %v342_v33, 0.0  ;;  %v345_v41 = vadd.f32 %v1337_v34, %v344_v38  ;;  %v1011_v42 = vpop.f32.mrb[15].mxu0  ;;  %v547_v43 = vmax.f32 %v446_v36, 0.0  ;;  %v449_v44 = vadd.f32 %v1337_v34, %v448_v39  ;;  %v1063_v45 = vpop.f32.mrb[15].mxu1 }
 0x112   :  { %v904_v46 = vpack.c.bf16 %v521_v40, %v521_v40  ;;  %v522_v47 = vmax.f32 %v345_v41, 0.0  ;;  %v930_v48 = vpack.c.bf16 %v547_v43, %v547_v43  ;;  %v548_v49 = vmax.f32 %v449_v44, 0.0 }
 0x114   :  { %768 = vst.msk [vmem:[%s1587_s3 + $0x18] sm:$0xf] %vm761_vm1, %v904_v46  ;;  %v905_v50 = vpack.c.bf16 %v522_v47, %v522_v47  ;;  %794 = vst.msk [vmem:[%s1587_s3 + $0x80] sm:$0xf] %vm761_vm1, %v930_v48  ;;  %v931_v51 = vpack.c.bf16 %v548_v49, %v548_v49 }
 0x115   :  { %v349_v52 = vpop.f32.mrb[16].mxu0  ;;  %v453_v53 = vpop.f32.mrb[16].mxu1 }
 0x116   :  { %769 = vst.msk [vmem:[%s1587_s3 + $0x1c] sm:$0xf] %vm761_vm1, %v905_v50  ;;  %v350_v54 = vadd.f32 %v1337_v34, %v349_v52  ;;  %v1014_v55 = vpop.f32.mrb[17].mxu0  ;;  %795 = vst.msk [vmem:[%s1587_s3 + $0x84] sm:$0xf] %vm761_vm1, %v931_v51  ;;  %v454_v56 = vadd.f32 %v1337_v34, %v453_v53  ;;  %v1066_v57 = vpop.f32.mrb[17].mxu1 }
 0x117   :  { %v352_v58 = vpop.f32.mrb[18].mxu0  ;;  %v456_v59 = vpop.f32.mrb[18].mxu1 }
 0x118   :  { %v523_v60 = vmax.f32 %v350_v54, 0.0  ;;  %v353_v61 = vadd.f32 %v1337_v34, %v352_v58  ;;  %v1015_v62 = vpop.f32.mrb[19].mxu0  ;;  %v549_v63 = vmax.f32 %v454_v56, 0.0  ;;  %v457_v0 = vadd.f32 %v1337_v34, %v456_v59  ;;  %v1067_v1 = vpop.f32.mrb[19].mxu1 }
 0x11a   :  { %v906_v2 = vpack.c.bf16 %v523_v60, %v523_v60  ;;  %v524_v3 = vmax.f32 %v353_v61, 0.0  ;;  %v932_v4 = vpack.c.bf16 %v549_v63, %v549_v63  ;;  %v550_v5 = vmax.f32 %v457_v0, 0.0 }
 0x11c   :  { %770 = vst.msk [vmem:[%s1587_s3 + $0x20] sm:$0xf] %vm761_vm1, %v906_v2  ;;  %v907_v6 = vpack.c.bf16 %v524_v3, %v524_v3  ;;  %796 = vst.msk [vmem:[%s1587_s3 + $0x88] sm:$0xf] %vm761_vm1, %v932_v4  ;;  %v933_v7 = vpack.c.bf16 %v550_v5, %v550_v5 }
 0x11d   :  { %v357_v8 = vpop.f32.mrb[20].mxu0  ;;  %v461_v9 = vpop.f32.mrb[20].mxu1 }
 0x11e   :  { %771 = vst.msk [vmem:[%s1587_s3 + $0x24] sm:$0xf] %vm761_vm1, %v907_v6  ;;  %v358_v10 = vadd.f32 %v1337_v34, %v357_v8  ;;  %v1018_v11 = vpop.f32.mrb[21].mxu0  ;;  %797 = vst.msk [vmem:[%s1587_s3 + $0x8c] sm:$0xf] %vm761_vm1, %v933_v7  ;;  %v462_v12 = vadd.f32 %v1337_v34, %v461_v9  ;;  %v1070_v13 = vpop.f32.mrb[21].mxu1 }
 0x11f   :  { %v360_v14 = vpop.f32.mrb[22].mxu0  ;;  %v464_v15 = vpop.f32.mrb[22].mxu1 }
 0x120   :  { %v525_v16 = vmax.f32 %v358_v10, 0.0  ;;  %v361_v17 = vadd.f32 %v1337_v34, %v360_v14  ;;  %v1019_v18 = vpop.f32.mrb[23].mxu0  ;;  %v551_v19 = vmax.f32 %v462_v12, 0.0  ;;  %v465_v20 = vadd.f32 %v1337_v34, %v464_v15  ;;  %v1071_v21 = vpop.f32.mrb[23].mxu1 }
 0x122   :  { %v908_v22 = vpack.c.bf16 %v525_v16, %v525_v16  ;;  %v526_v23 = vmax.f32 %v361_v17, 0.0  ;;  %v934_v24 = vpack.c.bf16 %v551_v19, %v551_v19  ;;  %v552_v25 = vmax.f32 %v465_v20, 0.0 }
 0x124   :  { %772 = vst.msk [vmem:[%s1587_s3 + $0x28] sm:$0xf] %vm761_vm1, %v908_v22  ;;  %v909_v26 = vpack.c.bf16 %v526_v23, %v526_v23  ;;  %798 = vst.msk [vmem:[%s1587_s3 + $0x90] sm:$0xf] %vm761_vm1, %v934_v24  ;;  %v935_v27 = vpack.c.bf16 %v552_v25, %v552_v25 }
 0x125   :  { %v365_v28 = vpop.f32.mrb[24].mxu0  ;;  %v469_v29 = vpop.f32.mrb[24].mxu1 }
 0x126   :  { %773 = vst.msk [vmem:[%s1587_s3 + $0x2c] sm:$0xf] %vm761_vm1, %v909_v26  ;;  %v366_v30 = vadd.f32 %v1337_v34, %v365_v28  ;;  %v1022_v31 = vpop.f32.mrb[25].mxu0  ;;  %799 = vst.msk [vmem:[%s1587_s3 + $0x94] sm:$0xf] %vm761_vm1, %v935_v27  ;;  %v470_v32 = vadd.f32 %v1337_v34, %v469_v29  ;;  %v1074_v33 = vpop.f32.mrb[25].mxu1 }
 0x127   :  { %v368_v35 = vpop.f32.mrb[26].mxu0  ;;  %v472_v36 = vpop.f32.mrb[26].mxu1 }
 0x128   :  { %v527_v37 = vmax.f32 %v366_v30, 0.0  ;;  %v369_v38 = vadd.f32 %v1337_v34, %v368_v35  ;;  %v1023_v39 = vpop.f32.mrb[27].mxu0  ;;  %v553_v40 = vmax.f32 %v470_v32, 0.0  ;;  %v473_v41 = vadd.f32 %v1337_v34, %v472_v36  ;;  %v1075_v42 = vpop.f32.mrb[27].mxu1 }
 0x12a   :  { %v910_v43 = vpack.c.bf16 %v527_v37, %v527_v37  ;;  %v528_v44 = vmax.f32 %v369_v38, 0.0  ;;  %v936_v45 = vpack.c.bf16 %v553_v40, %v553_v40  ;;  %v554_v46 = vmax.f32 %v473_v41, 0.0 }
 0x12c   :  { %774 = vst.msk [vmem:[%s1587_s3 + $0x30] sm:$0xf] %vm761_vm1, %v910_v43  ;;  %v911_v47 = vpack.c.bf16 %v528_v44, %v528_v44  ;;  %800 = vst.msk [vmem:[%s1587_s3 + $0x98] sm:$0xf] %vm761_vm1, %v936_v45  ;;  %v937_v48 = vpack.c.bf16 %v554_v46, %v554_v46 }
 0x12d   :  { %v373_v49 = vpop.f32.mrb[28].mxu0  ;;  %v477_v50 = vpop.f32.mrb[28].mxu1 }
 0x12e   :  { %775 = vst.msk [vmem:[%s1587_s3 + $0x34] sm:$0xf] %vm761_vm1, %v911_v47  ;;  %v374_v51 = vadd.f32 %v1337_v34, %v373_v49  ;;  %v1026_v52 = vpop.f32.mrb[29].mxu0  ;;  %801 = vst.msk [vmem:[%s1587_s3 + $0x9c] sm:$0xf] %vm761_vm1, %v937_v48  ;;  %v478_v53 = vadd.f32 %v1337_v34, %v477_v50  ;;  %v1078_v54 = vpop.f32.mrb[29].mxu1 }
 0x12f   :  { %v376_v55 = vpop.f32.mrb[30].mxu0  ;;  %v480_v56 = vpop.f32.mrb[30].mxu1 }
 0x130   :  { %v529_v57 = vmax.f32 %v374_v51, 0.0  ;;  %v377_v58 = vadd.f32 %v1337_v34, %v376_v55  ;;  %v1027_v59 = vpop.f32.mrb[31].mxu0  ;;  %v555_v60 = vmax.f32 %v478_v53, 0.0  ;;  %v481_v61 = vadd.f32 %v1337_v34, %v480_v56  ;;  %v1079_v62 = vpop.f32.mrb[31].mxu1 }
 0x132   :  { %v912_v63 = vpack.c.bf16 %v529_v57, %v529_v57  ;;  %v530_v0 = vmax.f32 %v377_v58, 0.0  ;;  %v938_v1 = vpack.c.bf16 %v555_v60, %v555_v60  ;;  %v556_v2 = vmax.f32 %v481_v61, 0.0 }
 0x134   :  { %776 = vst.msk [vmem:[%s1587_s3 + $0x38] sm:$0xf] %vm761_vm1, %v912_v63  ;;  %v913_v3 = vpack.c.bf16 %v530_v0, %v530_v0  ;;  %802 = vst.msk [vmem:[%s1587_s3 + $0xa0] sm:$0xf] %vm761_vm1, %v938_v1  ;;  %v939_v4 = vpack.c.bf16 %v556_v2, %v556_v2 }
 0x135   :  { %v381_v5 = vpop.f32.mrb[32].mxu0  ;;  %v485_v6 = vpop.f32.mrb[32].mxu1 }
 0x136   :  { %777 = vst.msk [vmem:[%s1587_s3 + $0x3c] sm:$0xf] %vm761_vm1, %v913_v3  ;;  %v382_v7 = vadd.f32 %v1337_v34, %v381_v5  ;;  %v1030_v8 = vpop.f32.mrb[33].mxu0  ;;  %803 = vst.msk [vmem:[%s1587_s3 + $0xa4] sm:$0xf] %vm761_vm1, %v939_v4  ;;  %v486_v9 = vadd.f32 %v1337_v34, %v485_v6  ;;  %v1082_v10 = vpop.f32.mrb[33].mxu1 }
 0x137   :  { %v384_v11 = vpop.f32.mrb[34].mxu0  ;;  %v488_v12 = vpop.f32.mrb[34].mxu1 }
 0x138   :  { %v531_v13 = vmax.f32 %v382_v7, 0.0  ;;  %v385_v14 = vadd.f32 %v1337_v34, %v384_v11  ;;  %v1031_v15 = vpop.f32.mrb[35].mxu0  ;;  %v557_v16 = vmax.f32 %v486_v9, 0.0  ;;  %v489_v17 = vadd.f32 %v1337_v34, %v488_v12  ;;  %v1083_v18 = vpop.f32.mrb[35].mxu1 }
 0x13a   :  { %v914_v19 = vpack.c.bf16 %v531_v13, %v531_v13  ;;  %v532_v20 = vmax.f32 %v385_v14, 0.0  ;;  %v940_v21 = vpack.c.bf16 %v557_v16, %v557_v16  ;;  %v558_v22 = vmax.f32 %v489_v17, 0.0 }
 0x13c   :  { %778 = vst.msk [vmem:[%s1587_s3 + $0x40] sm:$0xf] %vm761_vm1, %v914_v19  ;;  %v915_v23 = vpack.c.bf16 %v532_v20, %v532_v20  ;;  %804 = vst.msk [vmem:[%s1587_s3 + $0xa8] sm:$0xf] %vm761_vm1, %v940_v21  ;;  %v941_v24 = vpack.c.bf16 %v558_v22, %v558_v22 }
 0x13d   :  { %v389_v25 = vpop.f32.mrb[36].mxu0  ;;  %v493_v26 = vpop.f32.mrb[36].mxu1 }
 0x13e   :  { %779 = vst.msk [vmem:[%s1587_s3 + $0x44] sm:$0xf] %vm761_vm1, %v915_v23  ;;  %v390_v27 = vadd.f32 %v1337_v34, %v389_v25  ;;  %v1034_v28 = vpop.f32.mrb[37].mxu0  ;;  %805 = vst.msk [vmem:[%s1587_s3 + $0xac] sm:$0xf] %vm761_vm1, %v941_v24  ;;  %v494_v29 = vadd.f32 %v1337_v34, %v493_v26  ;;  %v1086_v30 = vpop.f32.mrb[37].mxu1 }
 0x13f   :  { %v392_v31 = vpop.f32.mrb[38].mxu0  ;;  %v496_v32 = vpop.f32.mrb[38].mxu1 }
 0x140   :  { %v533_v33 = vmax.f32 %v390_v27, 0.0  ;;  %v393_v35 = vadd.f32 %v1337_v34, %v392_v31  ;;  %v1035_v36 = vpop.f32.mrb[39].mxu0  ;;  %v559_v37 = vmax.f32 %v494_v29, 0.0  ;;  %v497_v38 = vadd.f32 %v1337_v34, %v496_v32  ;;  %v1087_v39 = vpop.f32.mrb[39].mxu1 }
 0x142   :  { %v916_v40 = vpack.c.bf16 %v533_v33, %v533_v33  ;;  %v534_v41 = vmax.f32 %v393_v35, 0.0  ;;  %v942_v42 = vpack.c.bf16 %v559_v37, %v559_v37  ;;  %v560_v43 = vmax.f32 %v497_v38, 0.0 }
 0x144   :  { %780 = vst.msk [vmem:[%s1587_s3 + $0x48] sm:$0xf] %vm761_vm1, %v916_v40  ;;  %v917_v44 = vpack.c.bf16 %v534_v41, %v534_v41  ;;  %806 = vst.msk [vmem:[%s1587_s3 + $0xb0] sm:$0xf] %vm761_vm1, %v942_v42  ;;  %v943_v45 = vpack.c.bf16 %v560_v43, %v560_v43 }
 0x145   :  { %v397_v46 = vpop.f32.mrb[40].mxu0  ;;  %v501_v47 = vpop.f32.mrb[40].mxu1 }
 0x146   :  { %781 = vst.msk [vmem:[%s1587_s3 + $0x4c] sm:$0xf] %vm761_vm1, %v917_v44  ;;  %v398_v48 = vadd.f32 %v1337_v34, %v397_v46  ;;  %v1038_v49 = vpop.f32.mrb[41].mxu0  ;;  %807 = vst.msk [vmem:[%s1587_s3 + $0xb4] sm:$0xf] %vm761_vm1, %v943_v45  ;;  %v502_v50 = vadd.f32 %v1337_v34, %v501_v47  ;;  %v1090_v51 = vpop.f32.mrb[41].mxu1 }
 0x147   :  { %v400_v52 = vpop.f32.mrb[42].mxu0  ;;  %v504_v53 = vpop.f32.mrb[42].mxu1 }
 0x148   :  { %v535_v54 = vmax.f32 %v398_v48, 0.0  ;;  %v401_v55 = vadd.f32 %v1337_v34, %v400_v52  ;;  %v1039_v56 = vpop.f32.mrb[43].mxu0  ;;  %v561_v57 = vmax.f32 %v502_v50, 0.0  ;;  %v505_v58 = vadd.f32 %v1337_v34, %v504_v53  ;;  %v1091_v59 = vpop.f32.mrb[43].mxu1 }
 0x14a   :  { %v918_v60 = vpack.c.bf16 %v535_v54, %v535_v54  ;;  %v536_v61 = vmax.f32 %v401_v55, 0.0  ;;  %v944_v62 = vpack.c.bf16 %v561_v57, %v561_v57  ;;  %v562_v63 = vmax.f32 %v505_v58, 0.0 }
 0x14c   :  { %782 = vst.msk [vmem:[%s1587_s3 + $0x50] sm:$0xf] %vm761_vm1, %v918_v60  ;;  %v919_v0 = vpack.c.bf16 %v536_v61, %v536_v61  ;;  %808 = vst.msk [vmem:[%s1587_s3 + $0xb8] sm:$0xf] %vm761_vm1, %v944_v62  ;;  %v945_v1 = vpack.c.bf16 %v562_v63, %v562_v63 }
 0x14d   :  { %v405_v2 = vpop.f32.mrb[44].mxu0  ;;  %v509_v3 = vpop.f32.mrb[44].mxu1 }
 0x14e   :  { %783 = vst.msk [vmem:[%s1587_s3 + $0x54] sm:$0xf] %vm761_vm1, %v919_v0  ;;  %v406_v4 = vadd.f32 %v1337_v34, %v405_v2  ;;  %v1042_v5 = vpop.f32.mrb[45].mxu0  ;;  %809 = vst.msk [vmem:[%s1587_s3 + $0xbc] sm:$0xf] %vm761_vm1, %v945_v1  ;;  %v510_v6 = vadd.f32 %v1337_v34, %v509_v3  ;;  %v1094_v7 = vpop.f32.mrb[45].mxu1 }
 0x14f   :  { %v408_v8 = vpop.f32.mrb[46].mxu0  ;;  %v512_v9 = vpop.f32.mrb[46].mxu1 }
 0x150   :  { %v537_v10 = vmax.f32 %v406_v4, 0.0  ;;  %v409_v11 = vadd.f32 %v1337_v34, %v408_v8  ;;  %v1043_v12 = vpop.f32.mrb[47].mxu0  ;;  %v563_v13 = vmax.f32 %v510_v6, 0.0  ;;  %v1095_v14 = vpop.f32.mrb[47].mxu1 }
 0x152   :  { %v920_v15 = vpack.c.bf16 %v537_v10, %v537_v10  ;;  %v538_v16 = vmax.f32 %v409_v11, 0.0  ;;  %v946_v17 = vpack.c.bf16 %v563_v13, %v563_v13 }
 0x154   :  { %784 = vst.msk [vmem:[%s1587_s3 + $0x58] sm:$0xf] %vm761_vm1, %v920_v15  ;;  %v921_v18 = vpack.c.bf16 %v538_v16, %v538_v16  ;;  %810 = vst.msk [vmem:[%s1587_s3 + $0xc0] sm:$0xf] %vm761_vm1, %v946_v17 }
 0x155   :  { %v413_v19 = vpop.f32.mrb[48].mxu0 }
 0x156   :  { %785 = vst.msk [vmem:[%s1587_s3 + $0x5c] sm:$0xf] %vm761_vm1, %v921_v18  ;;  %v414_v20 = vadd.f32 %v1337_v34, %v413_v19  ;;  %v1046_v21 = vpop.f32.mrb[49].mxu0 }
 0x157   :  { %v416_v22 = vpop.f32.mrb[50].mxu0 }
 0x158   :  { %v539_v23 = vmax.f32 %v414_v20, 0.0  ;;  %v417_v24 = vadd.f32 %v1337_v34, %v416_v22  ;;  %v1047_v25 = vpop.f32.mrb[51].mxu0 }
 0x15a   :  { %v922_v26 = vpack.c.bf16 %v539_v23, %v539_v23  ;;  %v540_v27 = vmax.f32 %v417_v24, 0.0 }
 0x15c   :  { %786 = vst.msk [vmem:[%s1587_s3 + $0x60] sm:$0xf] %vm761_vm1, %v922_v26  ;;  %v923_v28 = vpack.c.bf16 %v540_v27, %v540_v27 }
 0x15e   :  { %787 = vst.msk [vmem:[%s1587_s3 + $0x64] sm:$0xf] %vm761_vm1, %v923_v28 }

// kernel: squeezenet_forward.20
= control target key start
LH: loop header
LB: loop body
LE: loop exit
PB: predicated region body
PF: predicated region fallthrough
CT: control target
= control target key end

     0   :  { %v1400_v0 = vmov 0   ;;  %vm365_vm0 = vcmask 130048   ;;  %s1749_s1 = inlined_call_operand.vmem [shape: bf16[144,128], index: 1, kind: input, shape index: {}]   ;;  %s1750_s0 = inlined_call_operand.vmem [shape: bf16[392,144], index: 0, kind: input, shape index: {}]   ;;  %s1751_s2 = inlined_call_operand.vmem [shape: f32[1,128], index: 2, kind: input, shape index: {}]   ;;  %s1752_s3 = inlined_call_operand.vmem [shape: bf16[392,128], index: 3, kind: output, shape index: {}]  }
   0x1   :  { %441 = vmatprep.subr.bf16.mxu0 %v1400_v0  ;;  %v1317_v1 = vld [vmem:[%s1749_s1] sm:$0xff]   ;;  %1298 = vmatprep.subr.bf16.mxu1 %v1400_v0  ;;  %v1318_v2 = vld [vmem:[%s1749_s1 + $0x8] sm:$0xff]   ;;  %v1319_v3 = vld [vmem:[%s1749_s1 + $0x10] sm:$0xff]  }
   0x2   :  { %442 = vmatpush1.bf16.msra.mxu0 %v1317_v1  ;;  %1307 = vmatpush1.bf16.msra.mxu1 %v1317_v1  ;;  %v1320_v4 = vld [vmem:[%s1749_s1 + $0x18] sm:$0xff]   ;;  %v1328_v5 = vld [vmem:[%s1750_s0 + $0x4] ss:$8 sps:$4 sm:$0xff]   ;;  %v1323_v9 = vld [vmem:[%s1749_s1 + $0x30] sm:$0xff]  }
   0x3   :  { %443 = vmatprep.subr.bf16.mxu0 %v1400_v0  ;;  %1299 = vmatprep.subr.bf16.mxu1 %v1400_v0  ;;  %v1331_v6 = vld [vmem:[%s1750_s0 + $0xd4] ss:$8 sps:$4 sm:$0xff]   ;;  %v1321_v7 = vld [vmem:[%s1749_s1 + $0x20] sm:$0xff]   ;;  %v1322_v8 = vld [vmem:[%s1749_s1 + $0x28] sm:$0xff]  }
   0x4   :  { %1032 = vmatprep.mubr.msk.bf16.mxu0 %vm365_vm0, %v1328_v5  ;;  %1045 = vmatprep.mubr.msk.bf16.mxu1 %vm365_vm0, %v1331_v6  ;;  %v1324_v10 = vld [vmem:[%s1749_s1 + $0x38] sm:$0xff]   ;;  %v1325_v11 = vld [vmem:[%s1749_s1 + $0x40] sm:$0xff]  }
   0x5   :  { %v1326_v12 = vld [vmem:[%s1750_s0] ss:$8 sps:$4 sm:$0xff]   ;;  %v1329_v13 = vld [vmem:[%s1750_s0 + $0xd0] ss:$8 sps:$4 sm:$0xff]   ;;  %v1332_v14 = vld [vmem:[%s1750_s0 + $0x14] ss:$8 sps:$4 sm:$0xff]  }
   0x6   :  { %444 = vmatpush1.bf16.msra.mxu0 %v1318_v2  ;;  %1308 = vmatpush1.bf16.msra.mxu1 %v1318_v2  ;;  %v1335_v15 = vld [vmem:[%s1750_s0 + $0xe4] ss:$8 sps:$4 sm:$0xff]   ;;  %v1334_v16 = vld [vmem:[%s1750_s0 + $0x10] ss:$8 sps:$4 sm:$0xff]   ;;  %v1339_v17 = vld [vmem:[%s1750_s0 + $0xe0] ss:$8 sps:$4 sm:$0xff]  }
   0x7   :  { %445 = vmatprep.subr.bf16.mxu0 %v1400_v0  ;;  %1300 = vmatprep.subr.bf16.mxu1 %v1400_v0  ;;  %v1337_v18 = vld [vmem:[%s1750_s0 + $0x24] ss:$8 sps:$4 sm:$0xff]   ;;  %v1341_v19 = vld [vmem:[%s1750_s0 + $0xf4] ss:$8 sps:$4 sm:$0xff]   ;;  %v1340_v20 = vld [vmem:[%s1750_s0 + $0x20] ss:$8 sps:$4 sm:$0xff]  }
   0x8   :  { %v1345_v21 = vld [vmem:[%s1750_s0 + $0xf0] ss:$8 sps:$4 sm:$0xff]   ;;  %v1343_v22 = vld [vmem:[%s1750_s0 + $0x34] ss:$8 sps:$4 sm:$0xff]   ;;  %v1347_v23 = vld [vmem:[%s1750_s0 + $0x104] ss:$8 sps:$4 sm:$0xff]  }
   0x9   :  { %v1346_v24 = vld [vmem:[%s1750_s0 + $0x30] ss:$8 sps:$4 sm:$0xff]   ;;  %v1351_v25 = vld [vmem:[%s1750_s0 + $0x100] ss:$8 sps:$4 sm:$0xff]   ;;  %v1349_v26 = vld [vmem:[%s1750_s0 + $0x44] ss:$8 sps:$4 sm:$0xff]  }
   0xa   :  { %446 = vmatpush1.bf16.msra.mxu0 %v1319_v3  ;;  %1309 = vmatpush1.bf16.msra.mxu1 %v1319_v3  ;;  %v1353_v27 = vld [vmem:[%s1750_s0 + $0x114] ss:$8 sps:$4 sm:$0xff]   ;;  %v1352_v28 = vld [vmem:[%s1750_s0 + $0x40] ss:$8 sps:$4 sm:$0xff]   ;;  %v1357_v29 = vld [vmem:[%s1750_s0 + $0x110] ss:$8 sps:$4 sm:$0xff]  }
   0xb   :  { %447 = vmatprep.subr.bf16.mxu0 %v1400_v0  ;;  %1301 = vmatprep.subr.bf16.mxu1 %v1400_v0  ;;  %v1355_v30 = vld [vmem:[%s1750_s0 + $0x54] ss:$8 sps:$4 sm:$0xff]   ;;  %v1359_v31 = vld [vmem:[%s1750_s0 + $0x124] ss:$8 sps:$4 sm:$0xff]   ;;  %v1358_v32 = vld [vmem:[%s1750_s0 + $0x50] ss:$8 sps:$4 sm:$0xff]  }
   0xc   :  { %v1363_v33 = vld [vmem:[%s1750_s0 + $0x120] ss:$8 sps:$4 sm:$0xff]   ;;  %v1361_v34 = vld [vmem:[%s1750_s0 + $0x64] ss:$8 sps:$4 sm:$0xff]   ;;  %v1365_v35 = vld [vmem:[%s1750_s0 + $0x134] ss:$8 sps:$4 sm:$0xff]  }
   0xd   :  { %v1364_v36 = vld [vmem:[%s1750_s0 + $0x60] ss:$8 sps:$4 sm:$0xff]   ;;  %v1369_v37 = vld [vmem:[%s1750_s0 + $0x130] ss:$8 sps:$4 sm:$0xff]   ;;  %v1367_v38 = vld [vmem:[%s1750_s0 + $0x74] ss:$8 sps:$4 sm:$0xff]  }
   0xe   :  { %448 = vmatpush1.bf16.msra.mxu0 %v1320_v4  ;;  %1310 = vmatpush1.bf16.msra.mxu1 %v1320_v4  ;;  %v1371_v39 = vld [vmem:[%s1750_s0 + $0x144] ss:$8 sps:$4 sm:$0xff]   ;;  %v1370_v40 = vld [vmem:[%s1750_s0 + $0x70] ss:$8 sps:$4 sm:$0xff]   ;;  %v1375_v41 = vld [vmem:[%s1750_s0 + $0x140] ss:$8 sps:$4 sm:$0xff]  }
   0xf   :  { %449 = vmatprep.subr.bf16.mxu0 %v1400_v0  ;;  %1302 = vmatprep.subr.bf16.mxu1 %v1400_v0  ;;  %v1373_v42 = vld [vmem:[%s1750_s0 + $0x84] ss:$8 sps:$4 sm:$0xff]   ;;  %v1377_v43 = vld [vmem:[%s1750_s0 + $0x154] ss:$8 sps:$4 sm:$0xff]   ;;  %v1376_v44 = vld [vmem:[%s1750_s0 + $0x80] ss:$8 sps:$4 sm:$0xff]  }
  0x10   :  { %v1381_v45 = vld [vmem:[%s1750_s0 + $0x150] ss:$8 sps:$4 sm:$0xff]   ;;  %v1379_v46 = vld [vmem:[%s1750_s0 + $0x94] ss:$8 sps:$4 sm:$0xff]   ;;  %v1383_v47 = vld [vmem:[%s1750_s0 + $0x164] ss:$8 sps:$4 sm:$0xff]  }
  0x11   :  { %v1382_v48 = vld [vmem:[%s1750_s0 + $0x90] ss:$8 sps:$4 sm:$0xff]   ;;  %v1387_v49 = vld [vmem:[%s1750_s0 + $0x160] ss:$8 sps:$4 sm:$0xff]   ;;  %v1385_v50 = vld [vmem:[%s1750_s0 + $0xa4] ss:$8 sps:$4 sm:$0xff]  }
  0x12   :  { %450 = vmatpush1.bf16.msra.mxu0 %v1321_v7  ;;  %1311 = vmatpush1.bf16.msra.mxu1 %v1321_v7  ;;  %v1389_v51 = vld [vmem:[%s1750_s0 + $0x174] ss:$8 sps:$4 sm:$0xff]   ;;  %v63_v52 = vld [vmem:[%s1750_s0 + $0x180] sm:$0xff]  ;;  %v1393_v54 = vld [vmem:[%s1750_s0 + $0x170] ss:$8 sps:$4 sm:$0xff]  }
  0x13   :  { %451 = vmatprep.subr.bf16.mxu0 %v1400_v0  ;;  %1303 = vmatprep.subr.bf16.mxu1 %v1400_v0  ;;  %v1388_v53 = vld [vmem:[%s1750_s0 + $0xa0] ss:$8 sps:$4 sm:$0xff]   ;;  %v1391_v55 = vld [vmem:[%s1750_s0 + $0xb4] ss:$8 sps:$4 sm:$0xff]   ;;  %v1022_v56 = vcombine.high %v63_v52, %v63_v52  ;;  %v1394_v57 = vld [vmem:[%s1750_s0 + $0xb0] ss:$8 sps:$4 sm:$0xff]   ;;  %v1021_v58 = vcombine.low %v63_v52, %v63_v52 }
  0x14   :  { %v1396_v59 = vld [vmem:[%s1750_s0 + $0xc4] ss:$8 sps:$4 sm:$0xff]   ;;  %v1399_v60 = vld [vmem:[%s1750_s0 + $0xc0] ss:$8 sps:$4 sm:$0xff]  }
  0x15   :  { %v1623_v61 = vld [vmem:[%s1751_s2] ss:$0 sm:$0xff] }
  0x16   :  { %452 = vmatpush1.bf16.msra.mxu0 %v1322_v8  ;;  %1312 = vmatpush1.bf16.msra.mxu1 %v1322_v8 }
  0x17   :  { %453 = vmatprep.subr.bf16.mxu0 %v1400_v0  ;;  %1304 = vmatprep.subr.bf16.mxu1 %v1400_v0 }
  0x1a   :  { %454 = vmatpush1.bf16.msra.mxu0 %v1323_v9  ;;  %1313 = vmatpush1.bf16.msra.mxu1 %v1323_v9 }
  0x1b   :  { %455 = vmatprep.subr.bf16.mxu0 %v1400_v0  ;;  %1305 = vmatprep.subr.bf16.mxu1 %v1400_v0 }
  0x1e   :  { %456 = vmatpush1.bf16.msra.mxu0 %v1324_v10  ;;  %1314 = vmatpush1.bf16.msra.mxu1 %v1324_v10 }
  0x1f   :  { %457 = vmatprep.subr.bf16.mxu0 %v1400_v0  ;;  %1306 = vmatprep.subr.bf16.mxu1 %v1400_v0 }
  0x22   :  { %458 = vmatpush1.bf16.msra.mxu0 %v1325_v11  ;;  %1315 = vmatpush1.bf16.msra.mxu1 %v1325_v11 }
  0x25   :  { %474 = vmatmul.mubr.bf16.vlgmr.msra.gmra.mrb[0].mxu0 %v1326_v12  ;;  %578 = vmatmul.mubr.bf16.vlgmr.msra.gmra.mrb[0].mxu1 %v1329_v13 }
  0x26   :  { %1033 = vmatprep.mubr.msk.bf16.mxu0 %vm365_vm0, %v1332_v14  ;;  %1046 = vmatprep.mubr.msk.bf16.mxu1 %vm365_vm0, %v1335_v15 }
  0x2d   :  { %482 = vmatmul.mubr.bf16.gmra.mrb[4].mxu0 %v1334_v16  ;;  %586 = vmatmul.mubr.bf16.gmra.mrb[4].mxu1 %v1339_v17 }
  0x2e   :  { %1034 = vmatprep.mubr.msk.bf16.mxu0 %vm365_vm0, %v1337_v18  ;;  %1047 = vmatprep.mubr.msk.bf16.mxu1 %vm365_vm0, %v1341_v19 }
  0x35   :  { %490 = vmatmul.mubr.bf16.gmra.mrb[8].mxu0 %v1340_v20  ;;  %594 = vmatmul.mubr.bf16.gmra.mrb[8].mxu1 %v1345_v21 }
  0x36   :  { %1035 = vmatprep.mubr.msk.bf16.mxu0 %vm365_vm0, %v1343_v22  ;;  %1048 = vmatprep.mubr.msk.bf16.mxu1 %vm365_vm0, %v1347_v23 }
  0x3d   :  { %498 = vmatmul.mubr.bf16.gmra.mrb[12].mxu0 %v1346_v24  ;;  %602 = vmatmul.mubr.bf16.gmra.mrb[12].mxu1 %v1351_v25 }
  0x3e   :  { %1036 = vmatprep.mubr.msk.bf16.mxu0 %vm365_vm0, %v1349_v26  ;;  %1049 = vmatprep.mubr.msk.bf16.mxu1 %vm365_vm0, %v1353_v27 }
  0x45   :  { %506 = vmatmul.mubr.bf16.gmra.mrb[16].mxu0 %v1352_v28  ;;  %610 = vmatmul.mubr.bf16.gmra.mrb[16].mxu1 %v1357_v29 }
  0x46   :  { %1037 = vmatprep.mubr.msk.bf16.mxu0 %vm365_vm0, %v1355_v30  ;;  %1050 = vmatprep.mubr.msk.bf16.mxu1 %vm365_vm0, %v1359_v31 }
  0x4d   :  { %514 = vmatmul.mubr.bf16.gmra.mrb[20].mxu0 %v1358_v32  ;;  %618 = vmatmul.mubr.bf16.gmra.mrb[20].mxu1 %v1363_v33 }
  0x4e   :  { %1038 = vmatprep.mubr.msk.bf16.mxu0 %vm365_vm0, %v1361_v34  ;;  %1051 = vmatprep.mubr.msk.bf16.mxu1 %vm365_vm0, %v1365_v35 }
  0x55   :  { %522 = vmatmul.mubr.bf16.gmra.mrb[24].mxu0 %v1364_v36  ;;  %626 = vmatmul.mubr.bf16.gmra.mrb[24].mxu1 %v1369_v37 }
  0x56   :  { %1039 = vmatprep.mubr.msk.bf16.mxu0 %vm365_vm0, %v1367_v38  ;;  %1052 = vmatprep.mubr.msk.bf16.mxu1 %vm365_vm0, %v1371_v39 }
  0x5d   :  { %530 = vmatmul.mubr.bf16.gmra.mrb[28].mxu0 %v1370_v40  ;;  %634 = vmatmul.mubr.bf16.gmra.mrb[28].mxu1 %v1375_v41 }
  0x5e   :  { %1040 = vmatprep.mubr.msk.bf16.mxu0 %vm365_vm0, %v1373_v42  ;;  %1053 = vmatprep.mubr.msk.bf16.mxu1 %vm365_vm0, %v1377_v43 }
  0x65   :  { %538 = vmatmul.mubr.bf16.gmra.mrb[32].mxu0 %v1376_v44  ;;  %642 = vmatmul.mubr.bf16.gmra.mrb[32].mxu1 %v1381_v45 }
  0x66   :  { %1041 = vmatprep.mubr.msk.bf16.mxu0 %vm365_vm0, %v1379_v46  ;;  %1054 = vmatprep.mubr.msk.bf16.mxu1 %vm365_vm0, %v1383_v47 }
  0x6d   :  { %546 = vmatmul.mubr.bf16.gmra.mrb[36].mxu0 %v1382_v48  ;;  %650 = vmatmul.mubr.bf16.gmra.mrb[36].mxu1 %v1387_v49 }
  0x6e   :  { %1042 = vmatprep.mubr.msk.bf16.mxu0 %vm365_vm0, %v1385_v50  ;;  %1055 = vmatprep.mubr.msk.bf16.mxu1 %vm365_vm0, %v1389_v51 }
  0x75   :  { %554 = vmatmul.mubr.bf16.gmra.mrb[40].mxu0 %v1388_v53  ;;  %658 = vmatmul.mubr.bf16.gmra.mrb[40].mxu1 %v1393_v54 }
  0x76   :  { %1043 = vmatprep.mubr.msk.bf16.mxu0 %vm365_vm0, %v1391_v55  ;;  %1056 = vmatprep.mubr.msk.bf16.mxu1 %vm365_vm0, %v1022_v56 }
  0x7d   :  { %562 = vmatmul.mubr.bf16.gmra.mrb[44].mxu0 %v1394_v57  ;;  %666 = vmatmul.mubr.bf16.gmra.mrb[44].mxu1 %v1021_v58 }
  0x7e   :  { %1044 = vmatprep.mubr.msk.bf16.mxu0 %vm365_vm0, %v1396_v59 }
  0x85   :  { %570 = vmatmul.mubr.bf16.gmra.mrb[48].mxu0 %v1399_v60 }
  0xf8   :  { %v475_v62 = vpop.f32.mrb[0].mxu0  ;;  %v579_v63 = vpop.f32.mrb[0].mxu1 }
  0xf9   :  { %v476_v0 = vadd.f32 %v1623_v61, %v475_v62  ;;  %v477_v1 = vpop.f32.mrb[1].mxu0  ;;  %v580_v2 = vadd.f32 %v1623_v61, %v579_v63  ;;  %v581_v3 = vpop.f32.mrb[1].mxu1 }
  0xfa   :  { %v478_v4 = vpop.f32.mrb[2].mxu0  ;;  %v582_v5 = vpop.f32.mrb[2].mxu1 }
  0xfb   :  { %v479_v6 = vadd.f32 %v1623_v61, %v478_v4  ;;  %v480_v7 = vpop.f32.mrb[3].mxu0  ;;  %v699_v8 = vmax.f32 %v580_v2, 0.0  ;;  %v583_v9 = vadd.f32 %v1623_v61, %v582_v5  ;;  %v584_v10 = vpop.f32.mrb[3].mxu1  ;;  %v673_v11 = vmax.f32 %v476_v0, 0.0 }
  0xfd   :  { %v674_v12 = vmax.f32 %v479_v6, 0.0  ;;  %v700_v13 = vmax.f32 %v583_v9, 0.0 }
  0xff   :  { %v1158_v14 = vpack.c.bf16 %v674_v12, %v673_v11  ;;  %v1223_v15 = vpack.c.bf16 %v700_v13, %v699_v8 }
 0x100   :  { %v483_v16 = vpop.f32.mrb[4].mxu0  ;;  %v587_v17 = vpop.f32.mrb[4].mxu1 }
 0x101   :  { %1159 = vst [vmem:[%s1752_s3] sm:$0xff] %v1158_v14   ;;  %v484_v18 = vadd.f32 %v1623_v61, %v483_v16  ;;  %v485_v19 = vpop.f32.mrb[5].mxu0  ;;  %1287 = vst [vmem:[%s1752_s3 + $0x68] sm:$0xff] %v1223_v15   ;;  %v588_v20 = vadd.f32 %v1623_v61, %v587_v17  ;;  %v589_v21 = vpop.f32.mrb[5].mxu1 }
 0x102   :  { %v486_v22 = vpop.f32.mrb[6].mxu0  ;;  %v590_v23 = vpop.f32.mrb[6].mxu1 }
 0x103   :  { %v487_v24 = vadd.f32 %v1623_v61, %v486_v22  ;;  %v488_v25 = vpop.f32.mrb[7].mxu0  ;;  %v701_v26 = vmax.f32 %v588_v20, 0.0  ;;  %v591_v27 = vadd.f32 %v1623_v61, %v590_v23  ;;  %v592_v28 = vpop.f32.mrb[7].mxu1  ;;  %v675_v29 = vmax.f32 %v484_v18, 0.0 }
 0x105   :  { %v676_v30 = vmax.f32 %v487_v24, 0.0  ;;  %v702_v31 = vmax.f32 %v591_v27, 0.0 }
 0x107   :  { %v1163_v32 = vpack.c.bf16 %v676_v30, %v675_v29  ;;  %v1228_v33 = vpack.c.bf16 %v702_v31, %v701_v26 }
 0x108   :  { %v491_v34 = vpop.f32.mrb[8].mxu0  ;;  %v595_v35 = vpop.f32.mrb[8].mxu1 }
 0x109   :  { %1275 = vst [vmem:[%s1752_s3 + $0x8] sm:$0xff] %v1163_v32   ;;  %v492_v36 = vadd.f32 %v1623_v61, %v491_v34  ;;  %v493_v37 = vpop.f32.mrb[9].mxu0  ;;  %1288 = vst [vmem:[%s1752_s3 + $0x70] sm:$0xff] %v1228_v33   ;;  %v596_v38 = vadd.f32 %v1623_v61, %v595_v35  ;;  %v597_v39 = vpop.f32.mrb[9].mxu1 }
 0x10a   :  { %v494_v40 = vpop.f32.mrb[10].mxu0  ;;  %v598_v41 = vpop.f32.mrb[10].mxu1 }
 0x10b   :  { %v495_v42 = vadd.f32 %v1623_v61, %v494_v40  ;;  %v496_v43 = vpop.f32.mrb[11].mxu0  ;;  %v703_v44 = vmax.f32 %v596_v38, 0.0  ;;  %v599_v45 = vadd.f32 %v1623_v61, %v598_v41  ;;  %v600_v46 = vpop.f32.mrb[11].mxu1  ;;  %v677_v47 = vmax.f32 %v492_v36, 0.0 }
 0x10d   :  { %v678_v48 = vmax.f32 %v495_v42, 0.0  ;;  %v704_v49 = vmax.f32 %v599_v45, 0.0 }
 0x10f   :  { %v1168_v50 = vpack.c.bf16 %v678_v48, %v677_v47  ;;  %v1233_v51 = vpack.c.bf16 %v704_v49, %v703_v44 }
 0x110   :  { %v499_v52 = vpop.f32.mrb[12].mxu0  ;;  %v603_v53 = vpop.f32.mrb[12].mxu1 }
 0x111   :  { %1276 = vst [vmem:[%s1752_s3 + $0x10] sm:$0xff] %v1168_v50   ;;  %v500_v54 = vadd.f32 %v1623_v61, %v499_v52  ;;  %v501_v55 = vpop.f32.mrb[13].mxu0  ;;  %1289 = vst [vmem:[%s1752_s3 + $0x78] sm:$0xff] %v1233_v51   ;;  %v604_v56 = vadd.f32 %v1623_v61, %v603_v53  ;;  %v605_v57 = vpop.f32.mrb[13].mxu1 }
 0x112   :  { %v502_v58 = vpop.f32.mrb[14].mxu0  ;;  %v606_v59 = vpop.f32.mrb[14].mxu1 }
 0x113   :  { %v503_v60 = vadd.f32 %v1623_v61, %v502_v58  ;;  %v504_v62 = vpop.f32.mrb[15].mxu0  ;;  %v705_v63 = vmax.f32 %v604_v56, 0.0  ;;  %v607_v0 = vadd.f32 %v1623_v61, %v606_v59  ;;  %v608_v1 = vpop.f32.mrb[15].mxu1  ;;  %v679_v2 = vmax.f32 %v500_v54, 0.0 }
 0x115   :  { %v680_v3 = vmax.f32 %v503_v60, 0.0  ;;  %v706_v4 = vmax.f32 %v607_v0, 0.0 }
 0x117   :  { %v1173_v5 = vpack.c.bf16 %v680_v3, %v679_v2  ;;  %v1238_v6 = vpack.c.bf16 %v706_v4, %v705_v63 }
 0x118   :  { %v507_v7 = vpop.f32.mrb[16].mxu0  ;;  %v611_v8 = vpop.f32.mrb[16].mxu1 }
 0x119   :  { %1277 = vst [vmem:[%s1752_s3 + $0x18] sm:$0xff] %v1173_v5   ;;  %v508_v9 = vadd.f32 %v1623_v61, %v507_v7  ;;  %v509_v10 = vpop.f32.mrb[17].mxu0  ;;  %1290 = vst [vmem:[%s1752_s3 + $0x80] sm:$0xff] %v1238_v6   ;;  %v612_v11 = vadd.f32 %v1623_v61, %v611_v8  ;;  %v613_v12 = vpop.f32.mrb[17].mxu1 }
 0x11a   :  { %v510_v13 = vpop.f32.mrb[18].mxu0  ;;  %v614_v14 = vpop.f32.mrb[18].mxu1 }
 0x11b   :  { %v511_v15 = vadd.f32 %v1623_v61, %v510_v13  ;;  %v512_v16 = vpop.f32.mrb[19].mxu0  ;;  %v707_v17 = vmax.f32 %v612_v11, 0.0  ;;  %v615_v18 = vadd.f32 %v1623_v61, %v614_v14  ;;  %v616_v19 = vpop.f32.mrb[19].mxu1  ;;  %v681_v20 = vmax.f32 %v508_v9, 0.0 }
 0x11d   :  { %v682_v21 = vmax.f32 %v511_v15, 0.0  ;;  %v708_v22 = vmax.f32 %v615_v18, 0.0 }
 0x11f   :  { %v1178_v23 = vpack.c.bf16 %v682_v21, %v681_v20  ;;  %v1243_v24 = vpack.c.bf16 %v708_v22, %v707_v17 }
 0x120   :  { %v515_v25 = vpop.f32.mrb[20].mxu0  ;;  %v619_v26 = vpop.f32.mrb[20].mxu1 }
 0x121   :  { %1278 = vst [vmem:[%s1752_s3 + $0x20] sm:$0xff] %v1178_v23   ;;  %v516_v27 = vadd.f32 %v1623_v61, %v515_v25  ;;  %v517_v28 = vpop.f32.mrb[21].mxu0  ;;  %1291 = vst [vmem:[%s1752_s3 + $0x88] sm:$0xff] %v1243_v24   ;;  %v620_v29 = vadd.f32 %v1623_v61, %v619_v26  ;;  %v621_v30 = vpop.f32.mrb[21].mxu1 }
 0x122   :  { %v518_v31 = vpop.f32.mrb[22].mxu0  ;;  %v622_v32 = vpop.f32.mrb[22].mxu1 }
 0x123   :  { %v519_v33 = vadd.f32 %v1623_v61, %v518_v31  ;;  %v520_v34 = vpop.f32.mrb[23].mxu0  ;;  %v709_v35 = vmax.f32 %v620_v29, 0.0  ;;  %v623_v36 = vadd.f32 %v1623_v61, %v622_v32  ;;  %v624_v37 = vpop.f32.mrb[23].mxu1  ;;  %v683_v38 = vmax.f32 %v516_v27, 0.0 }
 0x125   :  { %v684_v39 = vmax.f32 %v519_v33, 0.0  ;;  %v710_v40 = vmax.f32 %v623_v36, 0.0 }
 0x127   :  { %v1183_v41 = vpack.c.bf16 %v684_v39, %v683_v38  ;;  %v1248_v42 = vpack.c.bf16 %v710_v40, %v709_v35 }
 0x128   :  { %v523_v43 = vpop.f32.mrb[24].mxu0  ;;  %v627_v44 = vpop.f32.mrb[24].mxu1 }
 0x129   :  { %1279 = vst [vmem:[%s1752_s3 + $0x28] sm:$0xff] %v1183_v41   ;;  %v524_v45 = vadd.f32 %v1623_v61, %v523_v43  ;;  %v525_v46 = vpop.f32.mrb[25].mxu0  ;;  %1292 = vst [vmem:[%s1752_s3 + $0x90] sm:$0xff] %v1248_v42   ;;  %v628_v47 = vadd.f32 %v1623_v61, %v627_v44  ;;  %v629_v48 = vpop.f32.mrb[25].mxu1 }
 0x12a   :  { %v526_v49 = vpop.f32.mrb[26].mxu0  ;;  %v630_v50 = vpop.f32.mrb[26].mxu1 }
 0x12b   :  { %v527_v51 = vadd.f32 %v1623_v61, %v526_v49  ;;  %v528_v52 = vpop.f32.mrb[27].mxu0  ;;  %v711_v53 = vmax.f32 %v628_v47, 0.0  ;;  %v631_v54 = vadd.f32 %v1623_v61, %v630_v50  ;;  %v632_v55 = vpop.f32.mrb[27].mxu1  ;;  %v685_v56 = vmax.f32 %v524_v45, 0.0 }
 0x12d   :  { %v686_v57 = vmax.f32 %v527_v51, 0.0  ;;  %v712_v58 = vmax.f32 %v631_v54, 0.0 }
 0x12f   :  { %v1188_v59 = vpack.c.bf16 %v686_v57, %v685_v56  ;;  %v1253_v60 = vpack.c.bf16 %v712_v58, %v711_v53 }
 0x130   :  { %v531_v62 = vpop.f32.mrb[28].mxu0  ;;  %v635_v63 = vpop.f32.mrb[28].mxu1 }
 0x131   :  { %1280 = vst [vmem:[%s1752_s3 + $0x30] sm:$0xff] %v1188_v59   ;;  %v532_v0 = vadd.f32 %v1623_v61, %v531_v62  ;;  %v533_v1 = vpop.f32.mrb[29].mxu0  ;;  %1293 = vst [vmem:[%s1752_s3 + $0x98] sm:$0xff] %v1253_v60   ;;  %v636_v2 = vadd.f32 %v1623_v61, %v635_v63  ;;  %v637_v3 = vpop.f32.mrb[29].mxu1 }
 0x132   :  { %v534_v4 = vpop.f32.mrb[30].mxu0  ;;  %v638_v5 = vpop.f32.mrb[30].mxu1 }
 0x133   :  { %v535_v6 = vadd.f32 %v1623_v61, %v534_v4  ;;  %v536_v7 = vpop.f32.mrb[31].mxu0  ;;  %v713_v8 = vmax.f32 %v636_v2, 0.0  ;;  %v639_v9 = vadd.f32 %v1623_v61, %v638_v5  ;;  %v640_v10 = vpop.f32.mrb[31].mxu1  ;;  %v687_v11 = vmax.f32 %v532_v0, 0.0 }
 0x135   :  { %v688_v12 = vmax.f32 %v535_v6, 0.0  ;;  %v714_v13 = vmax.f32 %v639_v9, 0.0 }
 0x137   :  { %v1193_v14 = vpack.c.bf16 %v688_v12, %v687_v11  ;;  %v1258_v15 = vpack.c.bf16 %v714_v13, %v713_v8 }
 0x138   :  { %v539_v16 = vpop.f32.mrb[32].mxu0  ;;  %v643_v17 = vpop.f32.mrb[32].mxu1 }
 0x139   :  { %1281 = vst [vmem:[%s1752_s3 + $0x38] sm:$0xff] %v1193_v14   ;;  %v540_v18 = vadd.f32 %v1623_v61, %v539_v16  ;;  %v541_v19 = vpop.f32.mrb[33].mxu0  ;;  %1294 = vst [vmem:[%s1752_s3 + $0xa0] sm:$0xff] %v1258_v15   ;;  %v644_v20 = vadd.f32 %v1623_v61, %v643_v17  ;;  %v645_v21 = vpop.f32.mrb[33].mxu1 }
 0x13a   :  { %v542_v22 = vpop.f32.mrb[34].mxu0  ;;  %v646_v23 = vpop.f32.mrb[34].mxu1 }
 0x13b   :  { %v543_v24 = vadd.f32 %v1623_v61, %v542_v22  ;;  %v544_v25 = vpop.f32.mrb[35].mxu0  ;;  %v715_v26 = vmax.f32 %v644_v20, 0.0  ;;  %v647_v27 = vadd.f32 %v1623_v61, %v646_v23  ;;  %v648_v28 = vpop.f32.mrb[35].mxu1  ;;  %v689_v29 = vmax.f32 %v540_v18, 0.0 }
 0x13d   :  { %v690_v30 = vmax.f32 %v543_v24, 0.0  ;;  %v716_v31 = vmax.f32 %v647_v27, 0.0 }
 0x13f   :  { %v1198_v32 = vpack.c.bf16 %v690_v30, %v689_v29  ;;  %v1263_v33 = vpack.c.bf16 %v716_v31, %v715_v26 }
 0x140   :  { %v547_v34 = vpop.f32.mrb[36].mxu0  ;;  %v651_v35 = vpop.f32.mrb[36].mxu1 }
 0x141   :  { %1282 = vst [vmem:[%s1752_s3 + $0x40] sm:$0xff] %v1198_v32   ;;  %v548_v36 = vadd.f32 %v1623_v61, %v547_v34  ;;  %v549_v37 = vpop.f32.mrb[37].mxu0  ;;  %1295 = vst [vmem:[%s1752_s3 + $0xa8] sm:$0xff] %v1263_v33   ;;  %v652_v38 = vadd.f32 %v1623_v61, %v651_v35  ;;  %v653_v39 = vpop.f32.mrb[37].mxu1 }
 0x142   :  { %v550_v40 = vpop.f32.mrb[38].mxu0  ;;  %v654_v41 = vpop.f32.mrb[38].mxu1 }
 0x143   :  { %v551_v42 = vadd.f32 %v1623_v61, %v550_v40  ;;  %v552_v43 = vpop.f32.mrb[39].mxu0  ;;  %v717_v44 = vmax.f32 %v652_v38, 0.0  ;;  %v655_v45 = vadd.f32 %v1623_v61, %v654_v41  ;;  %v656_v46 = vpop.f32.mrb[39].mxu1  ;;  %v691_v47 = vmax.f32 %v548_v36, 0.0 }
 0x145   :  { %v692_v48 = vmax.f32 %v551_v42, 0.0  ;;  %v718_v49 = vmax.f32 %v655_v45, 0.0 }
 0x147   :  { %v1203_v50 = vpack.c.bf16 %v692_v48, %v691_v47  ;;  %v1268_v51 = vpack.c.bf16 %v718_v49, %v717_v44 }
 0x148   :  { %v555_v52 = vpop.f32.mrb[40].mxu0  ;;  %v659_v53 = vpop.f32.mrb[40].mxu1 }
 0x149   :  { %1283 = vst [vmem:[%s1752_s3 + $0x48] sm:$0xff] %v1203_v50   ;;  %v556_v54 = vadd.f32 %v1623_v61, %v555_v52  ;;  %v557_v55 = vpop.f32.mrb[41].mxu0  ;;  %1296 = vst [vmem:[%s1752_s3 + $0xb0] sm:$0xff] %v1268_v51   ;;  %v660_v56 = vadd.f32 %v1623_v61, %v659_v53  ;;  %v661_v57 = vpop.f32.mrb[41].mxu1 }
 0x14a   :  { %v558_v58 = vpop.f32.mrb[42].mxu0  ;;  %v662_v59 = vpop.f32.mrb[42].mxu1 }
 0x14b   :  { %v559_v60 = vadd.f32 %v1623_v61, %v558_v58  ;;  %v560_v62 = vpop.f32.mrb[43].mxu0  ;;  %v719_v63 = vmax.f32 %v660_v56, 0.0  ;;  %v663_v0 = vadd.f32 %v1623_v61, %v662_v59  ;;  %v664_v1 = vpop.f32.mrb[43].mxu1  ;;  %v693_v2 = vmax.f32 %v556_v54, 0.0 }
 0x14d   :  { %v694_v3 = vmax.f32 %v559_v60, 0.0  ;;  %v720_v4 = vmax.f32 %v663_v0, 0.0 }
 0x14f   :  { %v1208_v5 = vpack.c.bf16 %v694_v3, %v693_v2  ;;  %v1273_v6 = vpack.c.bf16 %v720_v4, %v719_v63 }
 0x150   :  { %v563_v7 = vpop.f32.mrb[44].mxu0  ;;  %v667_v8 = vpop.f32.mrb[44].mxu1 }
 0x151   :  { %1284 = vst [vmem:[%s1752_s3 + $0x50] sm:$0xff] %v1208_v5   ;;  %v564_v9 = vadd.f32 %v1623_v61, %v563_v7  ;;  %v565_v10 = vpop.f32.mrb[45].mxu0  ;;  %1297 = vst [vmem:[%s1752_s3 + $0xb8] sm:$0xff] %v1273_v6   ;;  %v668_v11 = vadd.f32 %v1623_v61, %v667_v8  ;;  %v669_v12 = vpop.f32.mrb[45].mxu1 }
 0x152   :  { %v566_v13 = vpop.f32.mrb[46].mxu0  ;;  %v670_v14 = vpop.f32.mrb[46].mxu1 }
 0x153   :  { %v567_v15 = vadd.f32 %v1623_v61, %v566_v13  ;;  %v568_v16 = vpop.f32.mrb[47].mxu0  ;;  %v721_v17 = vmax.f32 %v668_v11, 0.0  ;;  %v671_v18 = vpop.f32.mrb[47].mxu1  ;;  %v695_v19 = vmax.f32 %v564_v9, 0.0 }
 0x155   :  { %v696_v20 = vmax.f32 %v567_v15, 0.0  ;;  %v1154_v21 = vpack.c.bf16 %v721_v17, %v721_v17 }
 0x157   :  { %v1213_v22 = vpack.c.bf16 %v696_v20, %v695_v19  ;;  %967 = vst [vmem:[%s1752_s3 + $0xc0] sm:$0xf] %v1154_v21 }
 0x158   :  { %v571_v23 = vpop.f32.mrb[48].mxu0 }
 0x159   :  { %1285 = vst [vmem:[%s1752_s3 + $0x58] sm:$0xff] %v1213_v22   ;;  %v572_v24 = vadd.f32 %v1623_v61, %v571_v23  ;;  %v573_v25 = vpop.f32.mrb[49].mxu0 }
 0x15a   :  { %v574_v26 = vpop.f32.mrb[50].mxu0 }
 0x15b   :  { %v575_v27 = vadd.f32 %v1623_v61, %v574_v26  ;;  %v576_v28 = vpop.f32.mrb[51].mxu0  ;;  %v697_v29 = vmax.f32 %v572_v24, 0.0 }
 0x15d   :  { %v698_v30 = vmax.f32 %v575_v27, 0.0 }
 0x15f   :  { %v1218_v31 = vpack.c.bf16 %v698_v30, %v697_v29 }
 0x161   :  { %1286 = vst [vmem:[%s1752_s3 + $0x60] sm:$0xff] %v1218_v31  }

// kernel: squeezenet_forward.23
= control target key start
LH: loop header
LB: loop body
LE: loop exit
PB: predicated region body
PF: predicated region fallthrough
CT: control target
= control target key end

     0   :  { %v1147_v0 = vmov 0.0   ;;  %vm1148_vm0 = vmmov 0   ;;  %vm761_vm1 = vcmask 257024   ;;  %s1584_s1 = inlined_call_operand.vmem [shape: bf16[128,32], index: 1, kind: input, shape index: {}]   ;;  %s1585_s0 = inlined_call_operand.vmem [shape: bf16[392,128], index: 0, kind: input, shape index: {}]   ;;  %s1586_s2 = inlined_call_operand.vmem [shape: f32[1,32], index: 2, kind: input, shape index: {}]   ;;  %s1587_s3 = inlined_call_operand.vmem [shape: bf16[392,32], index: 3, kind: output, shape index: {}]  }
   0x1   :  { %980 = vmatprep.subr.bf16.mxu0 %v1147_v0  ;;  %v1114_v1 = vld [vmem:[%s1584_s1] sm:$0xff]   ;;  %1096 = vmatprep.subr.bf16.mxu1 %v1147_v0  ;;  %v1115_v2 = vld [vmem:[%s1584_s1 + $0x8] sm:$0xff]   ;;  %v1116_v3 = vld [vmem:[%s1584_s1 + $0x10] sm:$0xff]  }
   0x2   :  { %996 = vmatprep.mubr.msk.bf16.mxu0 %vm1148_vm0, %v1147_v0  ;;  %1048 = vmatprep.mubr.msk.bf16.mxu1 %vm1148_vm0, %v1147_v0  ;;  %v1117_v4 = vld [vmem:[%s1584_s1 + $0x18] sm:$0xff]   ;;  %v1118_v5 = vld [vmem:[%s1584_s1 + $0x20] sm:$0xff]   ;;  %v1119_v6 = vld [vmem:[%s1584_s1 + $0x28] sm:$0xff]  }
   0x3   :  { %981 = vmatpush3.bf16.msra.mxu0 %v1114_v1  ;;  %1104 = vmatpush3.bf16.msra.mxu1 %v1114_v1  ;;  %v1120_v7 = vld [vmem:[%s1584_s1 + $0x30] sm:$0xff]   ;;  %v1121_v8 = vld [vmem:[%s1584_s1 + $0x38] sm:$0xff]   ;;  %v1122_v9 = vld [vmem:[%s1585_s0] sm:$0xff]  }
   0x4   :  { %982 = vmatprep.subr.bf16.mxu0 %v1147_v0  ;;  %1097 = vmatprep.subr.bf16.mxu1 %v1147_v0  ;;  %v1123_v10 = vld [vmem:[%s1585_s0 + $0x68] sm:$0xff]   ;;  %v1125_v12 = vld [vmem:[%s1585_s0 + $0x70] sm:$0xff]   ;;  %v1127_v14 = vld [vmem:[%s1585_s0 + $0x78] sm:$0xff]  }
   0x5   :  { %v1124_v11 = vld [vmem:[%s1585_s0 + $0x8] sm:$0xff]   ;;  %v1126_v13 = vld [vmem:[%s1585_s0 + $0x10] sm:$0xff]   ;;  %v1128_v15 = vld [vmem:[%s1585_s0 + $0x18] sm:$0xff]  }
   0x6   :  { %v1129_v16 = vld [vmem:[%s1585_s0 + $0x80] sm:$0xff]   ;;  %v1131_v18 = vld [vmem:[%s1585_s0 + $0x88] sm:$0xff]   ;;  %v1133_v20 = vld [vmem:[%s1585_s0 + $0x90] sm:$0xff]  }
   0x7   :  { %983 = vmatpush3.bf16.msra.mxu0 %v1115_v2  ;;  %1105 = vmatpush3.bf16.msra.mxu1 %v1115_v2  ;;  %v1130_v17 = vld [vmem:[%s1585_s0 + $0x20] sm:$0xff]   ;;  %v1132_v19 = vld [vmem:[%s1585_s0 + $0x28] sm:$0xff]   ;;  %v1134_v21 = vld [vmem:[%s1585_s0 + $0x30] sm:$0xff]  }
   0x8   :  { %984 = vmatprep.subr.bf16.mxu0 %v1147_v0  ;;  %1098 = vmatprep.subr.bf16.mxu1 %v1147_v0  ;;  %v1135_v22 = vld [vmem:[%s1585_s0 + $0x98] sm:$0xff]   ;;  %v1137_v24 = vld [vmem:[%s1585_s0 + $0xa0] sm:$0xff]   ;;  %v1139_v26 = vld [vmem:[%s1585_s0 + $0xa8] sm:$0xff]  }
   0x9   :  { %v1136_v23 = vld [vmem:[%s1585_s0 + $0x38] sm:$0xff]   ;;  %v1138_v25 = vld [vmem:[%s1585_s0 + $0x40] sm:$0xff]   ;;  %v1140_v27 = vld [vmem:[%s1585_s0 + $0x48] sm:$0xff]  }
   0xa   :  { %v1141_v28 = vld [vmem:[%s1585_s0 + $0xb0] sm:$0xff]   ;;  %v1143_v30 = vld [vmem:[%s1585_s0 + $0xb8] sm:$0xff]   ;;  %v1145_v32 = vld [vmem:[%s1585_s0 + $0xc0] ss:$0 sps:$4 sm:$0xff]  }
   0xb   :  { %985 = vmatpush3.bf16.msra.mxu0 %v1116_v3  ;;  %1106 = vmatpush3.bf16.msra.mxu1 %v1116_v3  ;;  %v1142_v29 = vld [vmem:[%s1585_s0 + $0x50] sm:$0xff]   ;;  %v1144_v31 = vld [vmem:[%s1585_s0 + $0x58] sm:$0xff]   ;;  %v1146_v33 = vld [vmem:[%s1585_s0 + $0x60] sm:$0xff]  }
   0xc   :  { %986 = vmatprep.subr.bf16.mxu0 %v1147_v0  ;;  %1099 = vmatprep.subr.bf16.mxu1 %v1147_v0  ;;  %v1337_v34 = vld [vmem:[%s1586_s2] ss:$0 sm:$0xff] }
   0xf   :  { %987 = vmatpush3.bf16.msra.mxu0 %v1117_v4  ;;  %1107 = vmatpush3.bf16.msra.mxu1 %v1117_v4 }
  0x10   :  { %988 = vmatprep.subr.bf16.mxu0 %v1147_v0  ;;  %1100 = vmatprep.subr.bf16.mxu1 %v1147_v0 }
  0x13   :  { %989 = vmatpush3.bf16.msra.mxu0 %v1118_v5  ;;  %1108 = vmatpush3.bf16.msra.mxu1 %v1118_v5 }
  0x14   :  { %990 = vmatprep.subr.bf16.mxu0 %v1147_v0  ;;  %1101 = vmatprep.subr.bf16.mxu1 %v1147_v0 }
  0x17   :  { %991 = vmatpush3.bf16.msra.mxu0 %v1119_v6  ;;  %1109 = vmatpush3.bf16.msra.mxu1 %v1119_v6 }
  0x18   :  { %992 = vmatprep.subr.bf16.mxu0 %v1147_v0  ;;  %1102 = vmatprep.subr.bf16.mxu1 %v1147_v0 }
  0x1b   :  { %993 = vmatpush3.bf16.msra.mxu0 %v1120_v7  ;;  %1110 = vmatpush3.bf16.msra.mxu1 %v1120_v7 }
  0x1c   :  { %994 = vmatprep.subr.bf16.mxu0 %v1147_v0  ;;  %1103 = vmatprep.subr.bf16.mxu1 %v1147_v0 }
  0x1f   :  { %995 = vmatpush3.bf16.msra.mxu0 %v1121_v8  ;;  %1111 = vmatpush3.bf16.msra.mxu1 %v1121_v8 }
  0x22   :  { %997 = vmatmul.mubr.bf16.vlgmr.msra.gmra.mrb[0].mxu0 %v1122_v9  ;;  %1049 = vmatmul.mubr.bf16.vlgmr.msra.gmra.mrb[0].mxu1 %v1123_v10 }
  0x23   :  { %1000 = vmatprep.mubr.msk.bf16.mxu0 %vm1148_vm0, %v1147_v0  ;;  %1052 = vmatprep.mubr.msk.bf16.mxu1 %vm1148_vm0, %v1147_v0 }
  0x2a   :  { %1001 = vmatmul.mubr.bf16.gmra.mrb[4].mxu0 %v1124_v11  ;;  %1053 = vmatmul.mubr.bf16.gmra.mrb[4].mxu1 %v1125_v12 }
  0x2b   :  { %1004 = vmatprep.mubr.msk.bf16.mxu0 %vm1148_vm0, %v1147_v0  ;;  %1056 = vmatprep.mubr.msk.bf16.mxu1 %vm1148_vm0, %v1147_v0 }
  0x32   :  { %1005 = vmatmul.mubr.bf16.gmra.mrb[8].mxu0 %v1126_v13  ;;  %1057 = vmatmul.mubr.bf16.gmra.mrb[8].mxu1 %v1127_v14 }
  0x33   :  { %1008 = vmatprep.mubr.msk.bf16.mxu0 %vm1148_vm0, %v1147_v0  ;;  %1060 = vmatprep.mubr.msk.bf16.mxu1 %vm1148_vm0, %v1147_v0 }
  0x3a   :  { %1009 = vmatmul.mubr.bf16.gmra.mrb[12].mxu0 %v1128_v15  ;;  %1061 = vmatmul.mubr.bf16.gmra.mrb[12].mxu1 %v1129_v16 }
  0x3b   :  { %1012 = vmatprep.mubr.msk.bf16.mxu0 %vm1148_vm0, %v1147_v0  ;;  %1064 = vmatprep.mubr.msk.bf16.mxu1 %vm1148_vm0, %v1147_v0 }
  0x42   :  { %1013 = vmatmul.mubr.bf16.gmra.mrb[16].mxu0 %v1130_v17  ;;  %1065 = vmatmul.mubr.bf16.gmra.mrb[16].mxu1 %v1131_v18 }
  0x43   :  { %1016 = vmatprep.mubr.msk.bf16.mxu0 %vm1148_vm0, %v1147_v0  ;;  %1068 = vmatprep.mubr.msk.bf16.mxu1 %vm1148_vm0, %v1147_v0 }
  0x4a   :  { %1017 = vmatmul.mubr.bf16.gmra.mrb[20].mxu0 %v1132_v19  ;;  %1069 = vmatmul.mubr.bf16.gmra.mrb[20].mxu1 %v1133_v20 }
  0x4b   :  { %1020 = vmatprep.mubr.msk.bf16.mxu0 %vm1148_vm0, %v1147_v0  ;;  %1072 = vmatprep.mubr.msk.bf16.mxu1 %vm1148_vm0, %v1147_v0 }
  0x52   :  { %1021 = vmatmul.mubr.bf16.gmra.mrb[24].mxu0 %v1134_v21  ;;  %1073 = vmatmul.mubr.bf16.gmra.mrb[24].mxu1 %v1135_v22 }
  0x53   :  { %1024 = vmatprep.mubr.msk.bf16.mxu0 %vm1148_vm0, %v1147_v0  ;;  %1076 = vmatprep.mubr.msk.bf16.mxu1 %vm1148_vm0, %v1147_v0 }
  0x5a   :  { %1025 = vmatmul.mubr.bf16.gmra.mrb[28].mxu0 %v1136_v23  ;;  %1077 = vmatmul.mubr.bf16.gmra.mrb[28].mxu1 %v1137_v24 }
  0x5b   :  { %1028 = vmatprep.mubr.msk.bf16.mxu0 %vm1148_vm0, %v1147_v0  ;;  %1080 = vmatprep.mubr.msk.bf16.mxu1 %vm1148_vm0, %v1147_v0 }
  0x62   :  { %1029 = vmatmul.mubr.bf16.gmra.mrb[32].mxu0 %v1138_v25  ;;  %1081 = vmatmul.mubr.bf16.gmra.mrb[32].mxu1 %v1139_v26 }
  0x63   :  { %1032 = vmatprep.mubr.msk.bf16.mxu0 %vm1148_vm0, %v1147_v0  ;;  %1084 = vmatprep.mubr.msk.bf16.mxu1 %vm1148_vm0, %v1147_v0 }
  0x6a   :  { %1033 = vmatmul.mubr.bf16.gmra.mrb[36].mxu0 %v1140_v27  ;;  %1085 = vmatmul.mubr.bf16.gmra.mrb[36].mxu1 %v1141_v28 }
  0x6b   :  { %1036 = vmatprep.mubr.msk.bf16.mxu0 %vm1148_vm0, %v1147_v0  ;;  %1088 = vmatprep.mubr.msk.bf16.mxu1 %vm1148_vm0, %v1147_v0 }
  0x72   :  { %1037 = vmatmul.mubr.bf16.gmra.mrb[40].mxu0 %v1142_v29  ;;  %1089 = vmatmul.mubr.bf16.gmra.mrb[40].mxu1 %v1143_v30 }
  0x73   :  { %1040 = vmatprep.mubr.msk.bf16.mxu0 %vm1148_vm0, %v1147_v0  ;;  %1092 = vmatprep.mubr.msk.bf16.mxu1 %vm1148_vm0, %v1147_v0 }
  0x7a   :  { %1041 = vmatmul.mubr.bf16.gmra.mrb[44].mxu0 %v1144_v31  ;;  %1093 = vmatmul.mubr.bf16.gmra.mrb[44].mxu1 %v1145_v32 }
  0x7b   :  { %1044 = vmatprep.mubr.msk.bf16.mxu0 %vm1148_vm0, %v1147_v0 }
  0x82   :  { %1045 = vmatmul.mubr.bf16.gmra.mrb[48].mxu0 %v1146_v33 }
  0xf5   :  { %v317_v35 = vpop.f32.mrb[0].mxu0  ;;  %v421_v36 = vpop.f32.mrb[0].mxu1 }
  0xf6   :  { %v318_v37 = vadd.f32 %v1337_v34, %v317_v35  ;;  %v998_v38 = vpop.f32.mrb[1].mxu0  ;;  %v422_v39 = vadd.f32 %v1337_v34, %v421_v36  ;;  %v1050_v40 = vpop.f32.mrb[1].mxu1 }
  0xf7   :  { %v320_v41 = vpop.f32.mrb[2].mxu0  ;;  %v424_v42 = vpop.f32.mrb[2].mxu1 }
  0xf8   :  { %v515_v43 = vmax.f32 %v318_v37, 0.0  ;;  %v321_v44 = vadd.f32 %v1337_v34, %v320_v41  ;;  %v999_v45 = vpop.f32.mrb[3].mxu0  ;;  %v541_v46 = vmax.f32 %v422_v39, 0.0  ;;  %v425_v47 = vadd.f32 %v1337_v34, %v424_v42  ;;  %v1051_v48 = vpop.f32.mrb[3].mxu1 }
  0xfa   :  { %v898_v49 = vpack.c.bf16 %v515_v43, %v515_v43  ;;  %v516_v50 = vmax.f32 %v321_v44, 0.0  ;;  %v924_v51 = vpack.c.bf16 %v541_v46, %v541_v46  ;;  %v542_v52 = vmax.f32 %v425_v47, 0.0 }
  0xfc   :  { %762 = vst.msk [vmem:[%s1587_s3] sm:$0xf] %vm761_vm1, %v898_v49  ;;  %v899_v53 = vpack.c.bf16 %v516_v50, %v516_v50  ;;  %788 = vst.msk [vmem:[%s1587_s3 + $0x68] sm:$0xf] %vm761_vm1, %v924_v51  ;;  %v925_v54 = vpack.c.bf16 %v542_v52, %v542_v52 }
  0xfd   :  { %v325_v55 = vpop.f32.mrb[4].mxu0  ;;  %v429_v56 = vpop.f32.mrb[4].mxu1 }
  0xfe   :  { %763 = vst.msk [vmem:[%s1587_s3 + $0x4] sm:$0xf] %vm761_vm1, %v899_v53  ;;  %v326_v57 = vadd.f32 %v1337_v34, %v325_v55  ;;  %v1002_v58 = vpop.f32.mrb[5].mxu0  ;;  %789 = vst.msk [vmem:[%s1587_s3 + $0x6c] sm:$0xf] %vm761_vm1, %v925_v54  ;;  %v430_v59 = vadd.f32 %v1337_v34, %v429_v56  ;;  %v1054_v60 = vpop.f32.mrb[5].mxu1 }
  0xff   :  { %v328_v61 = vpop.f32.mrb[6].mxu0  ;;  %v432_v62 = vpop.f32.mrb[6].mxu1 }
 0x100   :  { %v517_v63 = vmax.f32 %v326_v57, 0.0  ;;  %v329_v0 = vadd.f32 %v1337_v34, %v328_v61  ;;  %v1003_v1 = vpop.f32.mrb[7].mxu0  ;;  %v543_v2 = vmax.f32 %v430_v59, 0.0  ;;  %v433_v3 = vadd.f32 %v1337_v34, %v432_v62  ;;  %v1055_v4 = vpop.f32.mrb[7].mxu1 }
 0x102   :  { %v900_v5 = vpack.c.bf16 %v517_v63, %v517_v63  ;;  %v518_v6 = vmax.f32 %v329_v0, 0.0  ;;  %v926_v7 = vpack.c.bf16 %v543_v2, %v543_v2  ;;  %v544_v8 = vmax.f32 %v433_v3, 0.0 }
 0x104   :  { %764 = vst.msk [vmem:[%s1587_s3 + $0x8] sm:$0xf] %vm761_vm1, %v900_v5  ;;  %v901_v9 = vpack.c.bf16 %v518_v6, %v518_v6  ;;  %790 = vst.msk [vmem:[%s1587_s3 + $0x70] sm:$0xf] %vm761_vm1, %v926_v7  ;;  %v927_v10 = vpack.c.bf16 %v544_v8, %v544_v8 }
 0x105   :  { %v333_v11 = vpop.f32.mrb[8].mxu0  ;;  %v437_v12 = vpop.f32.mrb[8].mxu1 }
 0x106   :  { %765 = vst.msk [vmem:[%s1587_s3 + $0xc] sm:$0xf] %vm761_vm1, %v901_v9  ;;  %v334_v13 = vadd.f32 %v1337_v34, %v333_v11  ;;  %v1006_v14 = vpop.f32.mrb[9].mxu0  ;;  %791 = vst.msk [vmem:[%s1587_s3 + $0x74] sm:$0xf] %vm761_vm1, %v927_v10  ;;  %v438_v15 = vadd.f32 %v1337_v34, %v437_v12  ;;  %v1058_v16 = vpop.f32.mrb[9].mxu1 }
 0x107   :  { %v336_v17 = vpop.f32.mrb[10].mxu0  ;;  %v440_v18 = vpop.f32.mrb[10].mxu1 }
 0x108   :  { %v519_v19 = vmax.f32 %v334_v13, 0.0  ;;  %v337_v20 = vadd.f32 %v1337_v34, %v336_v17  ;;  %v1007_v21 = vpop.f32.mrb[11].mxu0  ;;  %v545_v22 = vmax.f32 %v438_v15, 0.0  ;;  %v441_v23 = vadd.f32 %v1337_v34, %v440_v18  ;;  %v1059_v24 = vpop.f32.mrb[11].mxu1 }
 0x10a   :  { %v902_v25 = vpack.c.bf16 %v519_v19, %v519_v19  ;;  %v520_v26 = vmax.f32 %v337_v20, 0.0  ;;  %v928_v27 = vpack.c.bf16 %v545_v22, %v545_v22  ;;  %v546_v28 = vmax.f32 %v441_v23, 0.0 }
 0x10c   :  { %766 = vst.msk [vmem:[%s1587_s3 + $0x10] sm:$0xf] %vm761_vm1, %v902_v25  ;;  %v903_v29 = vpack.c.bf16 %v520_v26, %v520_v26  ;;  %792 = vst.msk [vmem:[%s1587_s3 + $0x78] sm:$0xf] %vm761_vm1, %v928_v27  ;;  %v929_v30 = vpack.c.bf16 %v546_v28, %v546_v28 }
 0x10d   :  { %v341_v31 = vpop.f32.mrb[12].mxu0  ;;  %v445_v32 = vpop.f32.mrb[12].mxu1 }
 0x10e   :  { %767 = vst.msk [vmem:[%s1587_s3 + $0x14] sm:$0xf] %vm761_vm1, %v903_v29  ;;  %v342_v33 = vadd.f32 %v1337_v34, %v341_v31  ;;  %v1010_v35 = vpop.f32.mrb[13].mxu0  ;;  %793 = vst.msk [vmem:[%s1587_s3 + $0x7c] sm:$0xf] %vm761_vm1, %v929_v30  ;;  %v446_v36 = vadd.f32 %v1337_v34, %v445_v32  ;;  %v1062_v37 = vpop.f32.mrb[13].mxu1 }
 0x10f   :  { %v344_v38 = vpop.f32.mrb[14].mxu0  ;;  %v448_v39 = vpop.f32.mrb[14].mxu1 }
 0x110   :  { %v521_v40 = vmax.f32 %v342_v33, 0.0  ;;  %v345_v41 = vadd.f32 %v1337_v34, %v344_v38  ;;  %v1011_v42 = vpop.f32.mrb[15].mxu0  ;;  %v547_v43 = vmax.f32 %v446_v36, 0.0  ;;  %v449_v44 = vadd.f32 %v1337_v34, %v448_v39  ;;  %v1063_v45 = vpop.f32.mrb[15].mxu1 }
 0x112   :  { %v904_v46 = vpack.c.bf16 %v521_v40, %v521_v40  ;;  %v522_v47 = vmax.f32 %v345_v41, 0.0  ;;  %v930_v48 = vpack.c.bf16 %v547_v43, %v547_v43  ;;  %v548_v49 = vmax.f32 %v449_v44, 0.0 }
 0x114   :  { %768 = vst.msk [vmem:[%s1587_s3 + $0x18] sm:$0xf] %vm761_vm1, %v904_v46  ;;  %v905_v50 = vpack.c.bf16 %v522_v47, %v522_v47  ;;  %794 = vst.msk [vmem:[%s1587_s3 + $0x80] sm:$0xf] %vm761_vm1, %v930_v48  ;;  %v931_v51 = vpack.c.bf16 %v548_v49, %v548_v49 }
 0x115   :  { %v349_v52 = vpop.f32.mrb[16].mxu0  ;;  %v453_v53 = vpop.f32.mrb[16].mxu1 }
 0x116   :  { %769 = vst.msk [vmem:[%s1587_s3 + $0x1c] sm:$0xf] %vm761_vm1, %v905_v50  ;;  %v350_v54 = vadd.f32 %v1337_v34, %v349_v52  ;;  %v1014_v55 = vpop.f32.mrb[17].mxu0  ;;  %795 = vst.msk [vmem:[%s1587_s3 + $0x84] sm:$0xf] %vm761_vm1, %v931_v51  ;;  %v454_v56 = vadd.f32 %v1337_v34, %v453_v53  ;;  %v1066_v57 = vpop.f32.mrb[17].mxu1 }
 0x117   :  { %v352_v58 = vpop.f32.mrb[18].mxu0  ;;  %v456_v59 = vpop.f32.mrb[18].mxu1 }
 0x118   :  { %v523_v60 = vmax.f32 %v350_v54, 0.0  ;;  %v353_v61 = vadd.f32 %v1337_v34, %v352_v58  ;;  %v1015_v62 = vpop.f32.mrb[19].mxu0  ;;  %v549_v63 = vmax.f32 %v454_v56, 0.0  ;;  %v457_v0 = vadd.f32 %v1337_v34, %v456_v59  ;;  %v1067_v1 = vpop.f32.mrb[19].mxu1 }
 0x11a   :  { %v906_v2 = vpack.c.bf16 %v523_v60, %v523_v60  ;;  %v524_v3 = vmax.f32 %v353_v61, 0.0  ;;  %v932_v4 = vpack.c.bf16 %v549_v63, %v549_v63  ;;  %v550_v5 = vmax.f32 %v457_v0, 0.0 }
 0x11c   :  { %770 = vst.msk [vmem:[%s1587_s3 + $0x20] sm:$0xf] %vm761_vm1, %v906_v2  ;;  %v907_v6 = vpack.c.bf16 %v524_v3, %v524_v3  ;;  %796 = vst.msk [vmem:[%s1587_s3 + $0x88] sm:$0xf] %vm761_vm1, %v932_v4  ;;  %v933_v7 = vpack.c.bf16 %v550_v5, %v550_v5 }
 0x11d   :  { %v357_v8 = vpop.f32.mrb[20].mxu0  ;;  %v461_v9 = vpop.f32.mrb[20].mxu1 }
 0x11e   :  { %771 = vst.msk [vmem:[%s1587_s3 + $0x24] sm:$0xf] %vm761_vm1, %v907_v6  ;;  %v358_v10 = vadd.f32 %v1337_v34, %v357_v8  ;;  %v1018_v11 = vpop.f32.mrb[21].mxu0  ;;  %797 = vst.msk [vmem:[%s1587_s3 + $0x8c] sm:$0xf] %vm761_vm1, %v933_v7  ;;  %v462_v12 = vadd.f32 %v1337_v34, %v461_v9  ;;  %v1070_v13 = vpop.f32.mrb[21].mxu1 }
 0x11f   :  { %v360_v14 = vpop.f32.mrb[22].mxu0  ;;  %v464_v15 = vpop.f32.mrb[22].mxu1 }
 0x120   :  { %v525_v16 = vmax.f32 %v358_v10, 0.0  ;;  %v361_v17 = vadd.f32 %v1337_v34, %v360_v14  ;;  %v1019_v18 = vpop.f32.mrb[23].mxu0  ;;  %v551_v19 = vmax.f32 %v462_v12, 0.0  ;;  %v465_v20 = vadd.f32 %v1337_v34, %v464_v15  ;;  %v1071_v21 = vpop.f32.mrb[23].mxu1 }
 0x122   :  { %v908_v22 = vpack.c.bf16 %v525_v16, %v525_v16  ;;  %v526_v23 = vmax.f32 %v361_v17, 0.0  ;;  %v934_v24 = vpack.c.bf16 %v551_v19, %v551_v19  ;;  %v552_v25 = vmax.f32 %v465_v20, 0.0 }
 0x124   :  { %772 = vst.msk [vmem:[%s1587_s3 + $0x28] sm:$0xf] %vm761_vm1, %v908_v22  ;;  %v909_v26 = vpack.c.bf16 %v526_v23, %v526_v23  ;;  %798 = vst.msk [vmem:[%s1587_s3 + $0x90] sm:$0xf] %vm761_vm1, %v934_v24  ;;  %v935_v27 = vpack.c.bf16 %v552_v25, %v552_v25 }
 0x125   :  { %v365_v28 = vpop.f32.mrb[24].mxu0  ;;  %v469_v29 = vpop.f32.mrb[24].mxu1 }
 0x126   :  { %773 = vst.msk [vmem:[%s1587_s3 + $0x2c] sm:$0xf] %vm761_vm1, %v909_v26  ;;  %v366_v30 = vadd.f32 %v1337_v34, %v365_v28  ;;  %v1022_v31 = vpop.f32.mrb[25].mxu0  ;;  %799 = vst.msk [vmem:[%s1587_s3 + $0x94] sm:$0xf] %vm761_vm1, %v935_v27  ;;  %v470_v32 = vadd.f32 %v1337_v34, %v469_v29  ;;  %v1074_v33 = vpop.f32.mrb[25].mxu1 }
 0x127   :  { %v368_v35 = vpop.f32.mrb[26].mxu0  ;;  %v472_v36 = vpop.f32.mrb[26].mxu1 }
 0x128   :  { %v527_v37 = vmax.f32 %v366_v30, 0.0  ;;  %v369_v38 = vadd.f32 %v1337_v34, %v368_v35  ;;  %v1023_v39 = vpop.f32.mrb[27].mxu0  ;;  %v553_v40 = vmax.f32 %v470_v32, 0.0  ;;  %v473_v41 = vadd.f32 %v1337_v34, %v472_v36  ;;  %v1075_v42 = vpop.f32.mrb[27].mxu1 }
 0x12a   :  { %v910_v43 = vpack.c.bf16 %v527_v37, %v527_v37  ;;  %v528_v44 = vmax.f32 %v369_v38, 0.0  ;;  %v936_v45 = vpack.c.bf16 %v553_v40, %v553_v40  ;;  %v554_v46 = vmax.f32 %v473_v41, 0.0 }
 0x12c   :  { %774 = vst.msk [vmem:[%s1587_s3 + $0x30] sm:$0xf] %vm761_vm1, %v910_v43  ;;  %v911_v47 = vpack.c.bf16 %v528_v44, %v528_v44  ;;  %800 = vst.msk [vmem:[%s1587_s3 + $0x98] sm:$0xf] %vm761_vm1, %v936_v45  ;;  %v937_v48 = vpack.c.bf16 %v554_v46, %v554_v46 }
 0x12d   :  { %v373_v49 = vpop.f32.mrb[28].mxu0  ;;  %v477_v50 = vpop.f32.mrb[28].mxu1 }
 0x12e   :  { %775 = vst.msk [vmem:[%s1587_s3 + $0x34] sm:$0xf] %vm761_vm1, %v911_v47  ;;  %v374_v51 = vadd.f32 %v1337_v34, %v373_v49  ;;  %v1026_v52 = vpop.f32.mrb[29].mxu0  ;;  %801 = vst.msk [vmem:[%s1587_s3 + $0x9c] sm:$0xf] %vm761_vm1, %v937_v48  ;;  %v478_v53 = vadd.f32 %v1337_v34, %v477_v50  ;;  %v1078_v54 = vpop.f32.mrb[29].mxu1 }
 0x12f   :  { %v376_v55 = vpop.f32.mrb[30].mxu0  ;;  %v480_v56 = vpop.f32.mrb[30].mxu1 }
 0x130   :  { %v529_v57 = vmax.f32 %v374_v51, 0.0  ;;  %v377_v58 = vadd.f32 %v1337_v34, %v376_v55  ;;  %v1027_v59 = vpop.f32.mrb[31].mxu0  ;;  %v555_v60 = vmax.f32 %v478_v53, 0.0  ;;  %v481_v61 = vadd.f32 %v1337_v34, %v480_v56  ;;  %v1079_v62 = vpop.f32.mrb[31].mxu1 }
 0x132   :  { %v912_v63 = vpack.c.bf16 %v529_v57, %v529_v57  ;;  %v530_v0 = vmax.f32 %v377_v58, 0.0  ;;  %v938_v1 = vpack.c.bf16 %v555_v60, %v555_v60  ;;  %v556_v2 = vmax.f32 %v481_v61, 0.0 }
 0x134   :  { %776 = vst.msk [vmem:[%s1587_s3 + $0x38] sm:$0xf] %vm761_vm1, %v912_v63  ;;  %v913_v3 = vpack.c.bf16 %v530_v0, %v530_v0  ;;  %802 = vst.msk [vmem:[%s1587_s3 + $0xa0] sm:$0xf] %vm761_vm1, %v938_v1  ;;  %v939_v4 = vpack.c.bf16 %v556_v2, %v556_v2 }
 0x135   :  { %v381_v5 = vpop.f32.mrb[32].mxu0  ;;  %v485_v6 = vpop.f32.mrb[32].mxu1 }
 0x136   :  { %777 = vst.msk [vmem:[%s1587_s3 + $0x3c] sm:$0xf] %vm761_vm1, %v913_v3  ;;  %v382_v7 = vadd.f32 %v1337_v34, %v381_v5  ;;  %v1030_v8 = vpop.f32.mrb[33].mxu0  ;;  %803 = vst.msk [vmem:[%s1587_s3 + $0xa4] sm:$0xf] %vm761_vm1, %v939_v4  ;;  %v486_v9 = vadd.f32 %v1337_v34, %v485_v6  ;;  %v1082_v10 = vpop.f32.mrb[33].mxu1 }
 0x137   :  { %v384_v11 = vpop.f32.mrb[34].mxu0  ;;  %v488_v12 = vpop.f32.mrb[34].mxu1 }
 0x138   :  { %v531_v13 = vmax.f32 %v382_v7, 0.0  ;;  %v385_v14 = vadd.f32 %v1337_v34, %v384_v11  ;;  %v1031_v15 = vpop.f32.mrb[35].mxu0  ;;  %v557_v16 = vmax.f32 %v486_v9, 0.0  ;;  %v489_v17 = vadd.f32 %v1337_v34, %v488_v12  ;;  %v1083_v18 = vpop.f32.mrb[35].mxu1 }
 0x13a   :  { %v914_v19 = vpack.c.bf16 %v531_v13, %v531_v13  ;;  %v532_v20 = vmax.f32 %v385_v14, 0.0  ;;  %v940_v21 = vpack.c.bf16 %v557_v16, %v557_v16  ;;  %v558_v22 = vmax.f32 %v489_v17, 0.0 }
 0x13c   :  { %778 = vst.msk [vmem:[%s1587_s3 + $0x40] sm:$0xf] %vm761_vm1, %v914_v19  ;;  %v915_v23 = vpack.c.bf16 %v532_v20, %v532_v20  ;;  %804 = vst.msk [vmem:[%s1587_s3 + $0xa8] sm:$0xf] %vm761_vm1, %v940_v21  ;;  %v941_v24 = vpack.c.bf16 %v558_v22, %v558_v22 }
 0x13d   :  { %v389_v25 = vpop.f32.mrb[36].mxu0  ;;  %v493_v26 = vpop.f32.mrb[36].mxu1 }
 0x13e   :  { %779 = vst.msk [vmem:[%s1587_s3 + $0x44] sm:$0xf] %vm761_vm1, %v915_v23  ;;  %v390_v27 = vadd.f32 %v1337_v34, %v389_v25  ;;  %v1034_v28 = vpop.f32.mrb[37].mxu0  ;;  %805 = vst.msk [vmem:[%s1587_s3 + $0xac] sm:$0xf] %vm761_vm1, %v941_v24  ;;  %v494_v29 = vadd.f32 %v1337_v34, %v493_v26  ;;  %v1086_v30 = vpop.f32.mrb[37].mxu1 }
 0x13f   :  { %v392_v31 = vpop.f32.mrb[38].mxu0  ;;  %v496_v32 = vpop.f32.mrb[38].mxu1 }
 0x140   :  { %v533_v33 = vmax.f32 %v390_v27, 0.0  ;;  %v393_v35 = vadd.f32 %v1337_v34, %v392_v31  ;;  %v1035_v36 = vpop.f32.mrb[39].mxu0  ;;  %v559_v37 = vmax.f32 %v494_v29, 0.0  ;;  %v497_v38 = vadd.f32 %v1337_v34, %v496_v32  ;;  %v1087_v39 = vpop.f32.mrb[39].mxu1 }
 0x142   :  { %v916_v40 = vpack.c.bf16 %v533_v33, %v533_v33  ;;  %v534_v41 = vmax.f32 %v393_v35, 0.0  ;;  %v942_v42 = vpack.c.bf16 %v559_v37, %v559_v37  ;;  %v560_v43 = vmax.f32 %v497_v38, 0.0 }
 0x144   :  { %780 = vst.msk [vmem:[%s1587_s3 + $0x48] sm:$0xf] %vm761_vm1, %v916_v40  ;;  %v917_v44 = vpack.c.bf16 %v534_v41, %v534_v41  ;;  %806 = vst.msk [vmem:[%s1587_s3 + $0xb0] sm:$0xf] %vm761_vm1, %v942_v42  ;;  %v943_v45 = vpack.c.bf16 %v560_v43, %v560_v43 }
 0x145   :  { %v397_v46 = vpop.f32.mrb[40].mxu0  ;;  %v501_v47 = vpop.f32.mrb[40].mxu1 }
 0x146   :  { %781 = vst.msk [vmem:[%s1587_s3 + $0x4c] sm:$0xf] %vm761_vm1, %v917_v44  ;;  %v398_v48 = vadd.f32 %v1337_v34, %v397_v46  ;;  %v1038_v49 = vpop.f32.mrb[41].mxu0  ;;  %807 = vst.msk [vmem:[%s1587_s3 + $0xb4] sm:$0xf] %vm761_vm1, %v943_v45  ;;  %v502_v50 = vadd.f32 %v1337_v34, %v501_v47  ;;  %v1090_v51 = vpop.f32.mrb[41].mxu1 }
 0x147   :  { %v400_v52 = vpop.f32.mrb[42].mxu0  ;;  %v504_v53 = vpop.f32.mrb[42].mxu1 }
 0x148   :  { %v535_v54 = vmax.f32 %v398_v48, 0.0  ;;  %v401_v55 = vadd.f32 %v1337_v34, %v400_v52  ;;  %v1039_v56 = vpop.f32.mrb[43].mxu0  ;;  %v561_v57 = vmax.f32 %v502_v50, 0.0  ;;  %v505_v58 = vadd.f32 %v1337_v34, %v504_v53  ;;  %v1091_v59 = vpop.f32.mrb[43].mxu1 }
 0x14a   :  { %v918_v60 = vpack.c.bf16 %v535_v54, %v535_v54  ;;  %v536_v61 = vmax.f32 %v401_v55, 0.0  ;;  %v944_v62 = vpack.c.bf16 %v561_v57, %v561_v57  ;;  %v562_v63 = vmax.f32 %v505_v58, 0.0 }
 0x14c   :  { %782 = vst.msk [vmem:[%s1587_s3 + $0x50] sm:$0xf] %vm761_vm1, %v918_v60  ;;  %v919_v0 = vpack.c.bf16 %v536_v61, %v536_v61  ;;  %808 = vst.msk [vmem:[%s1587_s3 + $0xb8] sm:$0xf] %vm761_vm1, %v944_v62  ;;  %v945_v1 = vpack.c.bf16 %v562_v63, %v562_v63 }
 0x14d   :  { %v405_v2 = vpop.f32.mrb[44].mxu0  ;;  %v509_v3 = vpop.f32.mrb[44].mxu1 }
 0x14e   :  { %783 = vst.msk [vmem:[%s1587_s3 + $0x54] sm:$0xf] %vm761_vm1, %v919_v0  ;;  %v406_v4 = vadd.f32 %v1337_v34, %v405_v2  ;;  %v1042_v5 = vpop.f32.mrb[45].mxu0  ;;  %809 = vst.msk [vmem:[%s1587_s3 + $0xbc] sm:$0xf] %vm761_vm1, %v945_v1  ;;  %v510_v6 = vadd.f32 %v1337_v34, %v509_v3  ;;  %v1094_v7 = vpop.f32.mrb[45].mxu1 }
 0x14f   :  { %v408_v8 = vpop.f32.mrb[46].mxu0  ;;  %v512_v9 = vpop.f32.mrb[46].mxu1 }
 0x150   :  { %v537_v10 = vmax.f32 %v406_v4, 0.0  ;;  %v409_v11 = vadd.f32 %v1337_v34, %v408_v8  ;;  %v1043_v12 = vpop.f32.mrb[47].mxu0  ;;  %v563_v13 = vmax.f32 %v510_v6, 0.0  ;;  %v1095_v14 = vpop.f32.mrb[47].mxu1 }
 0x152   :  { %v920_v15 = vpack.c.bf16 %v537_v10, %v537_v10  ;;  %v538_v16 = vmax.f32 %v409_v11, 0.0  ;;  %v946_v17 = vpack.c.bf16 %v563_v13, %v563_v13 }
 0x154   :  { %784 = vst.msk [vmem:[%s1587_s3 + $0x58] sm:$0xf] %vm761_vm1, %v920_v15  ;;  %v921_v18 = vpack.c.bf16 %v538_v16, %v538_v16  ;;  %810 = vst.msk [vmem:[%s1587_s3 + $0xc0] sm:$0xf] %vm761_vm1, %v946_v17 }
 0x155   :  { %v413_v19 = vpop.f32.mrb[48].mxu0 }
 0x156   :  { %785 = vst.msk [vmem:[%s1587_s3 + $0x5c] sm:$0xf] %vm761_vm1, %v921_v18  ;;  %v414_v20 = vadd.f32 %v1337_v34, %v413_v19  ;;  %v1046_v21 = vpop.f32.mrb[49].mxu0 }
 0x157   :  { %v416_v22 = vpop.f32.mrb[50].mxu0 }
 0x158   :  { %v539_v23 = vmax.f32 %v414_v20, 0.0  ;;  %v417_v24 = vadd.f32 %v1337_v34, %v416_v22  ;;  %v1047_v25 = vpop.f32.mrb[51].mxu0 }
 0x15a   :  { %v922_v26 = vpack.c.bf16 %v539_v23, %v539_v23  ;;  %v540_v27 = vmax.f32 %v417_v24, 0.0 }
 0x15c   :  { %786 = vst.msk [vmem:[%s1587_s3 + $0x60] sm:$0xf] %vm761_vm1, %v922_v26  ;;  %v923_v28 = vpack.c.bf16 %v540_v27, %v540_v27 }
 0x15e   :  { %787 = vst.msk [vmem:[%s1587_s3 + $0x64] sm:$0xf] %vm761_vm1, %v923_v28 }

// kernel: squeezenet_forward.24
= control target key start
LH: loop header
LB: loop body
LE: loop exit
PB: predicated region body
PF: predicated region fallthrough
CT: control target
= control target key end

     0   :  { %v2380_v1 = vmov 0   ;;  %vm711_vm0 = vcmask 261120   ;;  %s3309_s1 = inlined_call_operand.vmem [shape: bf16[288,256], index: 1, kind: input, shape index: {}]   ;;  %s3310_s0 = inlined_call_operand.vmem [shape: bf16[392,288], index: 0, kind: input, shape index: {}]   ;;  %s3311_s2 = inlined_call_operand.vmem [shape: f32[1,256], index: 2, kind: input, shape index: {}]   ;;  %s3312_s3 = inlined_call_operand.vmem [shape: bf16[392,256], index: 3, kind: output, shape index: {}]  }
   0x1   :  { %v2227_v0 = vld [vmem:[%s3309_s1 + $0x4] ss:$8 sps:$4 sm:$0xff]   ;;  %1100 = vmatprep.mubr.bf16.mxu0 %v2380_v1  ;;  %v2229_v2 = vld [vmem:[%s3309_s1] ss:$8 sps:$4 sm:$0xff]   ;;  %v2230_v3 = vld [vmem:[%s3309_s1 + $0x14] ss:$8 sps:$4 sm:$0xff]  }
   0x2   :  { %787 = vmatprep.subr.bf16.mxu1 %v2227_v0  ;;  %v2232_v4 = vld [vmem:[%s3309_s1 + $0x10] ss:$8 sps:$4 sm:$0xff]   ;;  %v2233_v5 = vld [vmem:[%s3309_s1 + $0x24] ss:$8 sps:$4 sm:$0xff]   ;;  %v2235_v6 = vld [vmem:[%s3309_s1 + $0x20] ss:$8 sps:$4 sm:$0xff]  }
   0x3   :  { %788 = vmatpush1.bf16.msra.mxu1 %v2229_v2  ;;  %v2236_v7 = vld [vmem:[%s3309_s1 + $0x34] ss:$8 sps:$4 sm:$0xff]   ;;  %v2238_v8 = vld [vmem:[%s3309_s1 + $0x30] ss:$8 sps:$4 sm:$0xff]   ;;  %v2239_v9 = vld [vmem:[%s3309_s1 + $0x44] ss:$8 sps:$4 sm:$0xff]  }
   0x4   :  { %789 = vmatprep.subr.bf16.mxu1 %v2230_v3  ;;  %v2241_v10 = vld [vmem:[%s3309_s1 + $0x40] ss:$8 sps:$4 sm:$0xff]   ;;  %v2242_v11 = vld [vmem:[%s3309_s1 + $0x54] ss:$8 sps:$4 sm:$0xff]   ;;  %v2244_v12 = vld [vmem:[%s3309_s1 + $0x50] ss:$8 sps:$4 sm:$0xff]  }
   0x5   :  { %v2269_v13 = vld [vmem:[%s3309_s1 + $0x104] ss:$8 sps:$4 sm:$0xff]   ;;  %v2273_v15 = vld [vmem:[%s3309_s1 + $0x100] ss:$8 sps:$4 sm:$0xff]   ;;  %v2275_v16 = vld [vmem:[%s3309_s1 + $0x114] ss:$8 sps:$4 sm:$0xff]  }
   0x6   :  { %v2245_v14 = vld [vmem:[%s3309_s1 + $0x64] ss:$8 sps:$4 sm:$0xff]   ;;  %1068 = vmatprep.subr.bf16.mxu0 %v2269_v13  ;;  %v2247_v17 = vld [vmem:[%s3309_s1 + $0x60] ss:$8 sps:$4 sm:$0xff]   ;;  %v2279_v18 = vld [vmem:[%s3309_s1 + $0x110] ss:$8 sps:$4 sm:$0xff]  }
   0x7   :  { %790 = vmatpush1.bf16.msra.mxu1 %v2232_v4  ;;  %1069 = vmatpush1.bf16.msra.mxu0 %v2273_v15  ;;  %v2248_v19 = vld [vmem:[%s3309_s1 + $0x74] ss:$8 sps:$4 sm:$0xff]   ;;  %v2283_v20 = vld [vmem:[%s3310_s0 + $0x4] ss:$12 sps:$4 sm:$0xff]   ;;  %v2253_v24 = vld [vmem:[%s3309_s1 + $0x80] ss:$8 sps:$4 sm:$0xff]  }
   0x8   :  { %791 = vmatprep.subr.bf16.mxu1 %v2233_v5  ;;  %1070 = vmatprep.subr.bf16.mxu0 %v2275_v16  ;;  %v2284_v21 = vld [vmem:[%s3310_s0 + $0x8] ss:$12 sps:$4 sm:$0xff]   ;;  %v2250_v22 = vld [vmem:[%s3309_s1 + $0x70] ss:$8 sps:$4 sm:$0xff]   ;;  %v2251_v23 = vld [vmem:[%s3309_s1 + $0x84] ss:$8 sps:$4 sm:$0xff]  }
   0x9   :  { %819 = vmatprep.mubr.bf16.mxu1 %v2283_v20  ;;  %v2254_v25 = vld [vmem:[%s3309_s1 + $0x94] ss:$8 sps:$4 sm:$0xff]   ;;  %v2287_v26 = vld [vmem:[%s3310_s0 + $0x20] ss:$12 sps:$4 sm:$0xff]   ;;  %v2256_v27 = vld [vmem:[%s3309_s1 + $0x90] ss:$8 sps:$4 sm:$0xff]  }
   0xa   :  { %v2257_v28 = vld [vmem:[%s3309_s1 + $0xa4] ss:$8 sps:$4 sm:$0xff]   ;;  %v2259_v29 = vld [vmem:[%s3309_s1 + $0xa0] ss:$8 sps:$4 sm:$0xff]   ;;  %v2260_v30 = vld [vmem:[%s3309_s1 + $0xb4] ss:$8 sps:$4 sm:$0xff]  }
   0xb   :  { %792 = vmatpush1.bf16.msra.mxu1 %v2235_v6  ;;  %1071 = vmatpush1.bf16.msra.mxu0 %v2279_v18  ;;  %v2291_v31 = vld [vmem:[%s3310_s0 + $0x38] ss:$12 sps:$4 sm:$0xff]   ;;  %v2265_v34 = vld [vmem:[%s3309_s1 + $0xc0] ss:$8 sps:$4 sm:$0xff]   ;;  %v2266_v35 = vld [vmem:[%s3309_s1 + $0xd4] ss:$8 sps:$4 sm:$0xff]  }
   0xc   :  { %793 = vmatprep.subr.bf16.mxu1 %v2236_v7  ;;  %v2262_v32 = vld [vmem:[%s3309_s1 + $0xb0] ss:$8 sps:$4 sm:$0xff]   ;;  %v2263_v33 = vld [vmem:[%s3309_s1 + $0xc4] ss:$8 sps:$4 sm:$0xff]   ;;  %v2274_v39 = vld [vmem:[%s3309_s1 + $0xe0] ss:$8 sps:$4 sm:$0xff]  }
   0xd   :  { %v2295_v36 = vld [vmem:[%s3310_s0 + $0x50] ss:$12 sps:$4 sm:$0xff]   ;;  %v2271_v38 = vld [vmem:[%s3309_s1 + $0xe4] ss:$8 sps:$4 sm:$0xff]   ;;  %v2299_v41 = vld [vmem:[%s3310_s0 + $0x68] ss:$12 sps:$4 sm:$0xff]  }
   0xe   :  { %1907 = vmatmul.mubr.msk.bf16.vlgmr.msra.gmra.mrb[0].mxu0 %vm711_vm0, %v2284_v21  ;;  %v2268_v37 = vld [vmem:[%s3309_s1 + $0xd0] ss:$8 sps:$4 sm:$0xff]   ;;  %v2277_v40 = vld [vmem:[%s3309_s1 + $0xf4] ss:$8 sps:$4 sm:$0xff]   ;;  %v2281_v43 = vld [vmem:[%s3310_s0] ss:$12 sps:$4 sm:$0xff]  }
   0xf   :  { %794 = vmatpush1.bf16.msra.mxu1 %v2238_v8  ;;  %1110 = vmatprep.mubr.bf16.mxu0 %v2380_v1  ;;  %v2280_v42 = vld [vmem:[%s3309_s1 + $0xf0] ss:$8 sps:$4 sm:$0xff]   ;;  %v2285_v44 = vld [vmem:[%s3310_s0 + $0x1c] ss:$12 sps:$4 sm:$0xff]   ;;  %v2303_v45 = vld [vmem:[%s3310_s0 + $0x80] ss:$12 sps:$4 sm:$0xff]  }
  0x10   :  { %795 = vmatprep.subr.bf16.mxu1 %v2239_v9  ;;  %v2288_v46 = vld [vmem:[%s3310_s0 + $0x18] ss:$12 sps:$4 sm:$0xff]   ;;  %v2289_v47 = vld [vmem:[%s3310_s0 + $0x34] ss:$12 sps:$4 sm:$0xff]   ;;  %v2292_v49 = vld [vmem:[%s3310_s0 + $0x30] ss:$12 sps:$4 sm:$0xff]  }
  0x11   :  { %v2307_v48 = vld [vmem:[%s3310_s0 + $0x98] ss:$12 sps:$4 sm:$0xff]   ;;  %v2311_v51 = vld [vmem:[%s3310_s0 + $0xb0] ss:$12 sps:$4 sm:$0xff]   ;;  %v2296_v52 = vld [vmem:[%s3310_s0 + $0x48] ss:$12 sps:$4 sm:$0xff]  }
  0x12   :  { %v2293_v50 = vld [vmem:[%s3310_s0 + $0x4c] ss:$12 sps:$4 sm:$0xff]   ;;  %v2297_v53 = vld [vmem:[%s3310_s0 + $0x64] ss:$12 sps:$4 sm:$0xff]   ;;  %v2315_v54 = vld [vmem:[%s3310_s0 + $0xc8] ss:$12 sps:$4 sm:$0xff]  }
  0x13   :  { %796 = vmatpush1.bf16.msra.mxu1 %v2241_v10  ;;  %v2300_v55 = vld [vmem:[%s3310_s0 + $0x60] ss:$12 sps:$4 sm:$0xff]   ;;  %v2301_v56 = vld [vmem:[%s3310_s0 + $0x7c] ss:$12 sps:$4 sm:$0xff]   ;;  %v2304_v58 = vld [vmem:[%s3310_s0 + $0x78] ss:$12 sps:$4 sm:$0xff]  }
  0x14   :  { %797 = vmatprep.subr.bf16.mxu1 %v2242_v11  ;;  %v2319_v57 = vld [vmem:[%s3310_s0 + $0xe0] ss:$12 sps:$4 sm:$0xff]   ;;  %v2323_v60 = vld [vmem:[%s3310_s0 + $0xf8] ss:$12 sps:$4 sm:$0xff]   ;;  %v2308_v61 = vld [vmem:[%s3310_s0 + $0x90] ss:$12 sps:$4 sm:$0xff]  }
  0x15   :  { %v2305_v59 = vld [vmem:[%s3310_s0 + $0x94] ss:$12 sps:$4 sm:$0xff]   ;;  %v2309_v62 = vld [vmem:[%s3310_s0 + $0xac] ss:$12 sps:$4 sm:$0xff]   ;;  %v2327_v63 = vld [vmem:[%s3310_s0 + $0x110] ss:$12 sps:$4 sm:$0xff]  }
  0x16   :  { %1908 = vmatmul.mubr.msk.bf16.gmra.mrb[4].mxu0 %vm711_vm0, %v2287_v26  ;;  %v2312_v0 = vld [vmem:[%s3310_s0 + $0xa8] ss:$12 sps:$4 sm:$0xff]   ;;  %v2313_v2 = vld [vmem:[%s3310_s0 + $0xc4] ss:$12 sps:$4 sm:$0xff]   ;;  %v2316_v4 = vld [vmem:[%s3310_s0 + $0xc0] ss:$12 sps:$4 sm:$0xff]  }
  0x17   :  { %798 = vmatpush1.bf16.msra.mxu1 %v2244_v12  ;;  %1120 = vmatprep.mubr.bf16.mxu0 %v2380_v1  ;;  %v2331_v3 = vld [vmem:[%s3310_s0 + $0x128] ss:$12 sps:$4 sm:$0xff]   ;;  %v2335_v6 = vld [vmem:[%s3310_s0 + $0x140] ss:$12 sps:$4 sm:$0xff]   ;;  %v2320_v7 = vld [vmem:[%s3310_s0 + $0xd8] ss:$12 sps:$4 sm:$0xff]  }
  0x18   :  { %799 = vmatprep.subr.bf16.mxu1 %v2245_v14  ;;  %v2317_v5 = vld [vmem:[%s3310_s0 + $0xdc] ss:$12 sps:$4 sm:$0xff]   ;;  %v2321_v8 = vld [vmem:[%s3310_s0 + $0xf4] ss:$12 sps:$4 sm:$0xff]   ;;  %v2339_v9 = vld [vmem:[%s3310_s0 + $0x158] ss:$12 sps:$4 sm:$0xff]  }
  0x19   :  { %v2324_v10 = vld [vmem:[%s3310_s0 + $0xf0] ss:$12 sps:$4 sm:$0xff]   ;;  %v2325_v11 = vld [vmem:[%s3310_s0 + $0x10c] ss:$12 sps:$4 sm:$0xff]   ;;  %v2328_v13 = vld [vmem:[%s3310_s0 + $0x108] ss:$12 sps:$4 sm:$0xff]  }
  0x1a   :  { %v2343_v12 = vld [vmem:[%s3310_s0 + $0x170] ss:$12 sps:$4 sm:$0xff]   ;;  %v2347_v15 = vld [vmem:[%s3310_s0 + $0x188] ss:$12 sps:$4 sm:$0xff]   ;;  %v2332_v16 = vld [vmem:[%s3310_s0 + $0x120] ss:$12 sps:$4 sm:$0xff]  }
  0x1b   :  { %800 = vmatpush1.bf16.msra.mxu1 %v2247_v17  ;;  %v2329_v14 = vld [vmem:[%s3310_s0 + $0x124] ss:$12 sps:$4 sm:$0xff]   ;;  %v2333_v17 = vld [vmem:[%s3310_s0 + $0x13c] ss:$12 sps:$4 sm:$0xff]   ;;  %v2351_v18 = vld [vmem:[%s3310_s0 + $0x1a0] ss:$12 sps:$4 sm:$0xff]  }
  0x1c   :  { %801 = vmatprep.subr.bf16.mxu1 %v2248_v19  ;;  %v2336_v19 = vld [vmem:[%s3310_s0 + $0x138] ss:$12 sps:$4 sm:$0xff]   ;;  %v2337_v20 = vld [vmem:[%s3310_s0 + $0x154] ss:$12 sps:$4 sm:$0xff]  }
  0x1d   :  { %v2355_v21 = vld [vmem:[%s3310_s0 + $0x1b8] ss:$12 sps:$4 sm:$0xff]  }
  0x1e   :  { %1909 = vmatmul.mubr.msk.bf16.gmra.mrb[8].mxu0 %vm711_vm0, %v2291_v31  ;;  %v2345_v26 = vld [vmem:[%s3310_s0 + $0x184] ss:$12 sps:$4 sm:$0xff]  }
  0x1f   :  { %802 = vmatpush1.bf16.msra.mxu1 %v2250_v22  ;;  %1130 = vmatprep.mubr.bf16.mxu0 %v2380_v1  ;;  %v2340_v22 = vld [vmem:[%s3310_s0 + $0x150] ss:$12 sps:$4 sm:$0xff]   ;;  %v2352_v31 = vld [vmem:[%s3310_s0 + $0x198] ss:$12 sps:$4 sm:$0xff]  }
  0x20   :  { %803 = vmatprep.subr.bf16.mxu1 %v2251_v23  ;;  %v2341_v23 = vld [vmem:[%s3310_s0 + $0x16c] ss:$12 sps:$4 sm:$0xff]  }
  0x23   :  { %804 = vmatpush1.bf16.msra.mxu1 %v2253_v24  ;;  %v2359_v24 = vld [vmem:[%s3310_s0 + $0x1d0] ss:$12 sps:$4 sm:$0xff]  }
  0x24   :  { %805 = vmatprep.subr.bf16.mxu1 %v2254_v25  ;;  %v2344_v25 = vld [vmem:[%s3310_s0 + $0x168] ss:$12 sps:$4 sm:$0xff]  }
  0x26   :  { %1910 = vmatmul.mubr.msk.bf16.gmra.mrb[12].mxu0 %vm711_vm0, %v2295_v36  ;;  %v2375_v36 = vld [vmem:[%s3310_s0 + $0x230] ss:$12 sps:$4 sm:$0xff]  }
  0x27   :  { %806 = vmatpush1.bf16.msra.mxu1 %v2256_v27  ;;  %1140 = vmatprep.mubr.bf16.mxu0 %v2380_v1  ;;  %v2363_v27 = vld [vmem:[%s3310_s0 + $0x1e8] ss:$12 sps:$4 sm:$0xff]  }
  0x28   :  { %807 = vmatprep.subr.bf16.mxu1 %v2257_v28  ;;  %v2348_v28 = vld [vmem:[%s3310_s0 + $0x180] ss:$12 sps:$4 sm:$0xff]  }
  0x2b   :  { %808 = vmatpush1.bf16.msra.mxu1 %v2259_v29  ;;  %v2349_v29 = vld [vmem:[%s3310_s0 + $0x19c] ss:$12 sps:$4 sm:$0xff]  }
  0x2c   :  { %809 = vmatprep.subr.bf16.mxu1 %v2260_v30  ;;  %v2367_v30 = vld [vmem:[%s3310_s0 + $0x200] ss:$12 sps:$4 sm:$0xff]  }
  0x2e   :  { %1911 = vmatmul.mubr.msk.bf16.gmra.mrb[16].mxu0 %vm711_vm0, %v2299_v41  ;;  %v2368_v41 = vld [vmem:[%s3310_s0 + $0x1f8] ss:$12 sps:$4 sm:$0xff]  }
  0x2f   :  { %810 = vmatpush1.bf16.msra.mxu1 %v2262_v32  ;;  %1150 = vmatprep.mubr.bf16.mxu0 %v2380_v1  ;;  %v2353_v32 = vld [vmem:[%s3310_s0 + $0x1b4] ss:$12 sps:$4 sm:$0xff]  }
  0x30   :  { %811 = vmatprep.subr.bf16.mxu1 %v2263_v33  ;;  %v2371_v33 = vld [vmem:[%s3310_s0 + $0x218] ss:$12 sps:$4 sm:$0xff]  }
  0x33   :  { %812 = vmatpush1.bf16.msra.mxu1 %v2265_v34  ;;  %v2356_v34 = vld [vmem:[%s3310_s0 + $0x1b0] ss:$12 sps:$4 sm:$0xff]  }
  0x34   :  { %813 = vmatprep.subr.bf16.mxu1 %v2266_v35  ;;  %v2357_v35 = vld [vmem:[%s3310_s0 + $0x1cc] ss:$12 sps:$4 sm:$0xff]  }
  0x36   :  { %1912 = vmatmul.mubr.msk.bf16.gmra.mrb[20].mxu0 %vm711_vm0, %v2303_v45 }
  0x37   :  { %814 = vmatpush1.bf16.msra.mxu1 %v2268_v37  ;;  %1160 = vmatprep.mubr.bf16.mxu0 %v2380_v1  ;;  %v2360_v37 = vld [vmem:[%s3310_s0 + $0x1c8] ss:$12 sps:$4 sm:$0xff]  }
  0x38   :  { %815 = vmatprep.subr.bf16.mxu1 %v2271_v38  ;;  %v2361_v38 = vld [vmem:[%s3310_s0 + $0x1e4] ss:$12 sps:$4 sm:$0xff]  }
  0x3b   :  { %816 = vmatpush1.bf16.msra.mxu1 %v2274_v39  ;;  %v2378_v39 = vld [vmem:[%s3310_s0 + $0x248] ss:$0 sps:$4 sm:$0xff]  }
  0x3c   :  { %817 = vmatprep.subr.bf16.mxu1 %v2277_v40  ;;  %v2364_v40 = vld [vmem:[%s3310_s0 + $0x1e0] ss:$12 sps:$4 sm:$0xff]  }
  0x3e   :  { %1913 = vmatmul.mubr.msk.bf16.gmra.mrb[24].mxu0 %vm711_vm0, %v2307_v48 }
  0x3f   :  { %818 = vmatpush1.bf16.msra.mxu1 %v2280_v42  ;;  %1170 = vmatprep.mubr.bf16.mxu0 %v2380_v1  ;;  %v2369_v42 = vld [vmem:[%s3310_s0 + $0x214] ss:$12 sps:$4 sm:$0xff]  }
  0x42   :  { %820 = vmatmul.mubr.bf16.vlgmr.msra.gmra.mrb[0].mxu1 %v2281_v43  ;;  %v2372_v43 = vld [vmem:[%s3310_s0 + $0x210] ss:$12 sps:$4 sm:$0xff]  }
  0x43   :  { %829 = vmatprep.mubr.bf16.mxu1 %v2285_v44  ;;  %v2373_v44 = vld [vmem:[%s3310_s0 + $0x22c] ss:$12 sps:$4 sm:$0xff]  }
  0x46   :  { %1914 = vmatmul.mubr.msk.bf16.gmra.mrb[28].mxu0 %vm711_vm0, %v2311_v51 }
  0x47   :  { %1180 = vmatprep.mubr.bf16.mxu0 %v2380_v1 }
  0x4a   :  { %830 = vmatmul.mubr.bf16.gmra.mrb[4].mxu1 %v2288_v46 }
  0x4b   :  { %839 = vmatprep.mubr.bf16.mxu1 %v2289_v47 }
  0x4e   :  { %1915 = vmatmul.mubr.msk.bf16.gmra.mrb[32].mxu0 %vm711_vm0, %v2315_v54 }
  0x4f   :  { %1190 = vmatprep.mubr.bf16.mxu0 %v2380_v1 }
  0x52   :  { %840 = vmatmul.mubr.bf16.gmra.mrb[8].mxu1 %v2292_v49  ;;  %v111_v49 = vld [vmem:[%s3310_s0 + $0x240] sm:$0xff] }
  0x53   :  { %849 = vmatprep.mubr.bf16.mxu1 %v2293_v50  ;;  %v2376_v50 = vld [vmem:[%s3310_s0 + $0x228] ss:$12 sps:$4 sm:$0xff]   ;;  %v1869_v51 = vcombine.high %v111_v49, %v111_v49 }
  0x56   :  { %1916 = vmatmul.mubr.msk.bf16.gmra.mrb[36].mxu0 %vm711_vm0, %v2319_v57 }
  0x57   :  { %1200 = vmatprep.mubr.bf16.mxu0 %v2380_v1 }
  0x5a   :  { %850 = vmatmul.mubr.bf16.gmra.mrb[12].mxu1 %v2296_v52 }
  0x5b   :  { %859 = vmatprep.mubr.bf16.mxu1 %v2297_v53 }
  0x5e   :  { %1917 = vmatmul.mubr.msk.bf16.gmra.mrb[40].mxu0 %vm711_vm0, %v2323_v60 }
  0x5f   :  { %1210 = vmatprep.mubr.bf16.mxu0 %v2380_v1 }
  0x62   :  { %860 = vmatmul.mubr.bf16.gmra.mrb[16].mxu1 %v2300_v55 }
  0x63   :  { %869 = vmatprep.mubr.bf16.mxu1 %v2301_v56  ;;  %v1868_v56 = vcombine.low %v111_v49, %v111_v49 }
  0x66   :  { %1918 = vmatmul.mubr.msk.bf16.gmra.mrb[44].mxu0 %vm711_vm0, %v2327_v63 }
  0x67   :  { %1220 = vmatprep.mubr.bf16.mxu0 %v2380_v1 }
  0x6a   :  { %870 = vmatmul.mubr.bf16.gmra.mrb[20].mxu1 %v2304_v58 }
  0x6b   :  { %879 = vmatprep.mubr.bf16.mxu1 %v2305_v59 }
  0x6e   :  { %1919 = vmatmul.mubr.msk.bf16.gmra.mrb[48].mxu0 %vm711_vm0, %v2331_v3 }
  0x6f   :  { %1230 = vmatprep.mubr.bf16.mxu0 %v2380_v1 }
  0x72   :  { %880 = vmatmul.mubr.bf16.gmra.mrb[24].mxu1 %v2308_v61  ;;  %v151_v61 = vlaneseq }
  0x73   :  { %889 = vmatprep.mubr.bf16.mxu1 %v2309_v62 }
  0x76   :  { %1920 = vmatmul.mubr.msk.bf16.gmra.mrb[52].mxu0 %vm711_vm0, %v2335_v6 }
  0x77   :  { %1240 = vmatprep.mubr.bf16.mxu0 %v2380_v1 }
  0x7a   :  { %890 = vmatmul.mubr.bf16.gmra.mrb[28].mxu1 %v2312_v0  ;;  %v152_v0 = vshrl.u32 %v151_v61, 7 }
  0x7b   :  { %899 = vmatprep.mubr.bf16.mxu1 %v2313_v2 }
  0x7c   :  { %v157_v6 = vsub.s32 1, %v152_v0 }
  0x7e   :  { %1921 = vmatmul.mubr.msk.bf16.gmra.mrb[56].mxu0 %vm711_vm0, %v2339_v9 }
  0x7f   :  { %1250 = vmatprep.mubr.bf16.mxu0 %v2380_v1 }
  0x82   :  { %900 = vmatmul.mubr.bf16.gmra.mrb[32].mxu1 %v2316_v4  ;;  %v153_v4 = vsub.s32 0, %v152_v0 }
  0x83   :  { %909 = vmatprep.mubr.bf16.mxu1 %v2317_v5  ;;  %v149_v5 = vld [vmem:[%s3311_s2] sm:$0x3] }
  0x84   :  { %v2808_v9 = vrot.slane %v149_v5, %v153_v4 }
  0x86   :  { %1922 = vmatmul.mubr.msk.bf16.gmra.mrb[60].mxu0 %vm711_vm0, %v2343_v12 }
  0x87   :  { %1260 = vmatprep.mubr.bf16.mxu0 %v2380_v1 }
  0x8a   :  { %910 = vmatmul.mubr.bf16.gmra.mrb[36].mxu1 %v2320_v7 }
  0x8b   :  { %919 = vmatprep.mubr.bf16.mxu1 %v2321_v8 }
  0x8e   :  { %1923 = vmatmul.mubr.msk.bf16.gmra.mrb[64].mxu0 %vm711_vm0, %v2347_v15 }
  0x8f   :  { %1270 = vmatprep.mubr.bf16.mxu0 %v2380_v1 }
  0x92   :  { %920 = vmatmul.mubr.bf16.gmra.mrb[40].mxu1 %v2324_v10 }
  0x93   :  { %929 = vmatprep.mubr.bf16.mxu1 %v2325_v11  ;;  %v2812_v11 = vrot.slane %v149_v5, %v157_v6 }
  0x96   :  { %1924 = vmatmul.mubr.msk.bf16.gmra.mrb[68].mxu0 %vm711_vm0, %v2351_v18 }
  0x97   :  { %1280 = vmatprep.mubr.bf16.mxu0 %v2380_v1 }
  0x9a   :  { %930 = vmatmul.mubr.bf16.gmra.mrb[44].mxu1 %v2328_v13 }
  0x9b   :  { %939 = vmatprep.mubr.bf16.mxu1 %v2329_v14 }
  0x9e   :  { %1925 = vmatmul.mubr.msk.bf16.gmra.mrb[72].mxu0 %vm711_vm0, %v2355_v21 }
  0x9f   :  { %1290 = vmatprep.mubr.bf16.mxu0 %v2380_v1 }
  0xa2   :  { %940 = vmatmul.mubr.bf16.gmra.mrb[48].mxu1 %v2332_v16 }
  0xa3   :  { %949 = vmatprep.mubr.bf16.mxu1 %v2333_v17 }
  0xa6   :  { %1926 = vmatmul.mubr.msk.bf16.gmra.mrb[76].mxu0 %vm711_vm0, %v2359_v24 }
  0xa7   :  { %1300 = vmatprep.mubr.bf16.mxu0 %v2380_v1 }
  0xaa   :  { %950 = vmatmul.mubr.bf16.gmra.mrb[52].mxu1 %v2336_v19 }
  0xab   :  { %959 = vmatprep.mubr.bf16.mxu1 %v2337_v20 }
  0xae   :  { %1927 = vmatmul.mubr.msk.bf16.gmra.mrb[80].mxu0 %vm711_vm0, %v2363_v27 }
  0xaf   :  { %1310 = vmatprep.mubr.bf16.mxu0 %v2380_v1 }
  0xb2   :  { %960 = vmatmul.mubr.bf16.gmra.mrb[56].mxu1 %v2340_v22 }
  0xb3   :  { %969 = vmatprep.mubr.bf16.mxu1 %v2341_v23 }
  0xb6   :  { %1928 = vmatmul.mubr.msk.bf16.gmra.mrb[84].mxu0 %vm711_vm0, %v2367_v30 }
  0xb7   :  { %1320 = vmatprep.mubr.bf16.mxu0 %v2380_v1 }
  0xba   :  { %970 = vmatmul.mubr.bf16.gmra.mrb[60].mxu1 %v2344_v25 }
  0xbb   :  { %979 = vmatprep.mubr.bf16.mxu1 %v2345_v26 }
  0xbe   :  { %1929 = vmatmul.mubr.msk.bf16.gmra.mrb[88].mxu0 %vm711_vm0, %v2371_v33 }
  0xbf   :  { %1330 = vmatprep.mubr.bf16.mxu0 %v2380_v1 }
  0xc2   :  { %980 = vmatmul.mubr.bf16.gmra.mrb[64].mxu1 %v2348_v28 }
  0xc3   :  { %989 = vmatprep.mubr.bf16.mxu1 %v2349_v29 }
  0xc6   :  { %1930 = vmatmul.mubr.msk.bf16.gmra.mrb[92].mxu0 %vm711_vm0, %v2375_v36 }
  0xc7   :  { %1340 = vmatprep.mubr.bf16.mxu0 %v2380_v1  ;;  %v2365_v1 = vld [vmem:[%s3310_s0 + $0x1fc] ss:$12 sps:$4 sm:$0xff]  }
  0xca   :  { %990 = vmatmul.mubr.bf16.gmra.mrb[68].mxu1 %v2352_v31 }
  0xcb   :  { %999 = vmatprep.mubr.bf16.mxu1 %v2353_v32 }
  0xce   :  { %1931 = vmatmul.mubr.msk.bf16.gmra.mrb[96].mxu0 %vm711_vm0, %v2378_v39 }
  0xd2   :  { %1000 = vmatmul.mubr.bf16.gmra.mrb[72].mxu1 %v2356_v34 }
  0xd3   :  { %1009 = vmatprep.mubr.bf16.mxu1 %v2357_v35 }
  0xda   :  { %1010 = vmatmul.mubr.bf16.gmra.mrb[76].mxu1 %v2360_v37 }
  0xdb   :  { %1019 = vmatprep.mubr.bf16.mxu1 %v2361_v38 }
  0xe1   :  { %v1102_v45 = vpop.f32.mrb[0].mxu0 }
  0xe2   :  { %1020 = vmatmul.mubr.bf16.gmra.mrb[80].mxu1 %v2364_v40  ;;  %v1104_v46 = vpop.f32.mrb[1].mxu0 }
  0xe3   :  { %1029 = vmatprep.mubr.bf16.mxu1 %v2365_v1  ;;  %v1106_v47 = vpop.f32.mrb[2].mxu0 }
  0xe4   :  { %v1108_v48 = vpop.f32.mrb[3].mxu0 }
  0xe9   :  { %v1112_v52 = vpop.f32.mrb[4].mxu0 }
  0xea   :  { %1030 = vmatmul.mubr.bf16.gmra.mrb[84].mxu1 %v2368_v41  ;;  %v1114_v53 = vpop.f32.mrb[5].mxu0 }
  0xeb   :  { %1039 = vmatprep.mubr.bf16.mxu1 %v2369_v42  ;;  %v2781_v54 = vpop.f32.mrb[6].mxu0 }
  0xec   :  { %v2783_v55 = vpop.f32.mrb[7].mxu0 }
  0xf1   :  { %v2785_v57 = vpop.f32.mrb[8].mxu0 }
  0xf2   :  { %1040 = vmatmul.mubr.bf16.gmra.mrb[88].mxu1 %v2372_v43  ;;  %v2787_v58 = vpop.f32.mrb[9].mxu0 }
  0xf3   :  { %1049 = vmatprep.mubr.bf16.mxu1 %v2373_v44  ;;  %v2789_v59 = vpop.f32.mrb[10].mxu0 }
  0xf4   :  { %v2791_v60 = vpop.f32.mrb[11].mxu0 }
  0xf9   :  { %v2793_v62 = vpop.f32.mrb[12].mxu0 }
  0xfa   :  { %1050 = vmatmul.mubr.bf16.gmra.mrb[92].mxu1 %v2376_v50  ;;  %v2795_v63 = vpop.f32.mrb[13].mxu0 }
  0xfb   :  { %1059 = vmatprep.mubr.bf16.mxu1 %v1869_v51  ;;  %v2797_v2 = vpop.f32.mrb[14].mxu0 }
  0xfc   :  { %v2799_v3 = vpop.f32.mrb[15].mxu0 }
 0x101   :  { %v2804_v7 = vpop.f32.mrb[16].mxu0 }
 0x102   :  { %1060 = vmatmul.mubr.bf16.gmra.mrb[96].mxu1 %v1868_v56  ;;  %v2806_v8 = vpop.f32.mrb[17].mxu0 }
 0x103   :  { %v2810_v10 = vpop.f32.mrb[18].mxu0 }
 0x104   :  { %v2814_v12 = vpop.f32.mrb[19].mxu0 }
 0x109   :  { %v2819_v21 = vpop.f32.mrb[20].mxu0 }
 0x10a   :  { %v2822_v24 = vpop.f32.mrb[21].mxu0 }
 0x10b   :  { %v2824_v27 = vpop.f32.mrb[22].mxu0 }
 0x10c   :  { %v2826_v30 = vpop.f32.mrb[23].mxu0 }
 0x111   :  { %v2834_v42 = vpop.f32.mrb[24].mxu0 }
 0x115   :  { %v821_v13 = vpop.f32.mrb[0].mxu1 }
 0x116   :  { %v822_v14 = vadd.f32 %v821_v13, %v2808_v9  ;;  %v823_v15 = vpop.f32.mrb[1].mxu1 }
 0x117   :  { %v824_v16 = vadd.f32 %v823_v15, %v2812_v11  ;;  %v825_v17 = vpop.f32.mrb[2].mxu1 }
 0x118   :  { %v1103_v18 = vadd.f32 %v1102_v45, %v822_v14  ;;  %v826_v19 = vadd.f32 %v825_v17, %v2808_v9  ;;  %v827_v20 = vpop.f32.mrb[3].mxu1  ;;  %v2840_v45 = vpop.f32.mrb[25].mxu0 }
 0x119   :  { %v1105_v22 = vadd.f32 %v1104_v46, %v824_v16  ;;  %v828_v23 = vadd.f32 %v827_v20, %v2812_v11 }
 0x11a   :  { %v1349_v25 = vmax.f32 %v1103_v18, 0.0  ;;  %v1107_v26 = vadd.f32 %v1106_v47, %v826_v19 }
 0x11b   :  { %v1350_v28 = vmax.f32 %v1105_v22, 0.0  ;;  %v1109_v29 = vadd.f32 %v1108_v48, %v828_v23  ;;  %v2843_v48 = vpop.f32.mrb[26].mxu0 }
 0x11c   :  { %v1351_v31 = vmax.f32 %v1107_v26, 0.0  ;;  %v2846_v51 = vpop.f32.mrb[27].mxu0 }
 0x11d   :  { %v1981_v32 = vpack.c.bf16 %v1350_v28, %v1349_v25  ;;  %v1352_v33 = vmax.f32 %v1109_v29, 0.0  ;;  %v831_v34 = vpop.f32.mrb[4].mxu1  ;;  %v2855_v15 = vpop.f32.mrb[28].mxu0 }
 0x11e   :  { %v832_v35 = vadd.f32 %v831_v34, %v2808_v9  ;;  %v833_v36 = vpop.f32.mrb[5].mxu1  ;;  %v2862_v18 = vpop.f32.mrb[29].mxu0 }
 0x11f   :  { %1743 = vst [vmem:[%s3312_s3] sm:$0xff] %v1981_v32  ;;  %v1982_v37 = vpack.c.bf16 %v1352_v33, %v1351_v31  ;;  %v834_v38 = vadd.f32 %v833_v36, %v2812_v11  ;;  %v835_v39 = vpop.f32.mrb[6].mxu1  ;;  %v2865_v22 = vpop.f32.mrb[30].mxu0 }
 0x120   :  { %v1113_v40 = vadd.f32 %v1112_v52, %v832_v35  ;;  %v836_v1 = vadd.f32 %v835_v39, %v2808_v9  ;;  %v837_v41 = vpop.f32.mrb[7].mxu1  ;;  %v2868_v25 = vpop.f32.mrb[31].mxu0 }
 0x121   :  { %1744 = vst [vmem:[%s3312_s3 + $0x8] sm:$0xff] %v1982_v37  ;;  %v1115_v43 = vadd.f32 %v1114_v53, %v834_v38  ;;  %v838_v44 = vadd.f32 %v837_v41, %v2812_v11  ;;  %v2877_v37 = vpop.f32.mrb[32].mxu0 }
 0x122   :  { %v1353_v46 = vmax.f32 %v1113_v40, 0.0  ;;  %v1117_v47 = vadd.f32 %v2781_v54, %v836_v1  ;;  %v2884_v40 = vpop.f32.mrb[33].mxu0 }
 0x123   :  { %v1354_v49 = vmax.f32 %v1115_v43, 0.0  ;;  %v1119_v50 = vadd.f32 %v2783_v55, %v838_v44  ;;  %v2887_v43 = vpop.f32.mrb[34].mxu0 }
 0x124   :  { %v1355_v52 = vmax.f32 %v1117_v47, 0.0 }
 0x125   :  { %v1983_v56 = vpack.c.bf16 %v1354_v49, %v1353_v46  ;;  %v1356_v61 = vmax.f32 %v1119_v50, 0.0  ;;  %v841_v0 = vpop.f32.mrb[8].mxu1  ;;  %v2890_v46 = vpop.f32.mrb[35].mxu0 }
 0x126   :  { %v842_v53 = vadd.f32 %v841_v0, %v2808_v9  ;;  %v843_v4 = vpop.f32.mrb[9].mxu1 }
 0x127   :  { %1745 = vst [vmem:[%s3312_s3 + $0x10] sm:$0xff] %v1983_v56  ;;  %v1984_v5 = vpack.c.bf16 %v1356_v61, %v1355_v52  ;;  %v844_v54 = vadd.f32 %v843_v4, %v2812_v11  ;;  %v845_v6 = vpop.f32.mrb[10].mxu1 }
 0x128   :  { %v1123_v13 = vadd.f32 %v2785_v57, %v842_v53  ;;  %v846_v55 = vadd.f32 %v845_v6, %v2808_v9  ;;  %v847_v14 = vpop.f32.mrb[11].mxu1 }
 0x129   :  { %1746 = vst [vmem:[%s3312_s3 + $0x18] sm:$0xff] %v1984_v5  ;;  %v1125_v16 = vadd.f32 %v2787_v58, %v844_v54  ;;  %v848_v17 = vadd.f32 %v847_v14, %v2812_v11  ;;  %v2899_v5 = vpop.f32.mrb[36].mxu0 }
 0x12a   :  { %v1357_v19 = vmax.f32 %v1123_v13, 0.0  ;;  %v1127_v20 = vadd.f32 %v2789_v59, %v846_v55  ;;  %v2906_v13 = vpop.f32.mrb[37].mxu0 }
 0x12b   :  { %v1358_v57 = vmax.f32 %v1125_v16, 0.0  ;;  %v1129_v23 = vadd.f32 %v2791_v60, %v848_v17  ;;  %v2909_v16 = vpop.f32.mrb[38].mxu0 }
 0x12c   :  { %v1359_v26 = vmax.f32 %v1127_v20, 0.0 }
 0x12d   :  { %v1985_v28 = vpack.c.bf16 %v1358_v57, %v1357_v19  ;;  %v1360_v29 = vmax.f32 %v1129_v23, 0.0  ;;  %v851_v31 = vpop.f32.mrb[12].mxu1  ;;  %v2912_v19 = vpop.f32.mrb[39].mxu0 }
 0x12e   :  { %v852_v58 = vadd.f32 %v851_v31, %v2808_v9  ;;  %v853_v32 = vpop.f32.mrb[13].mxu1 }
 0x12f   :  { %1747 = vst [vmem:[%s3312_s3 + $0x20] sm:$0xff] %v1985_v28  ;;  %v1986_v33 = vpack.c.bf16 %v1360_v29, %v1359_v26  ;;  %v854_v59 = vadd.f32 %v853_v32, %v2812_v11  ;;  %v855_v34 = vpop.f32.mrb[14].mxu1 }
 0x130   :  { %v1133_v35 = vadd.f32 %v2793_v62, %v852_v58  ;;  %v856_v60 = vadd.f32 %v855_v34, %v2808_v9  ;;  %v857_v36 = vpop.f32.mrb[15].mxu1 }
 0x131   :  { %1748 = vst [vmem:[%s3312_s3 + $0x28] sm:$0xff] %v1986_v33  ;;  %v1135_v38 = vadd.f32 %v2795_v63, %v854_v59  ;;  %v858_v39 = vadd.f32 %v857_v36, %v2812_v11  ;;  %v2921_v33 = vpop.f32.mrb[40].mxu0 }
 0x132   :  { %v1361_v1 = vmax.f32 %v1133_v35, 0.0  ;;  %v1137_v41 = vadd.f32 %v2797_v2, %v856_v60  ;;  %v2928_v35 = vpop.f32.mrb[41].mxu0 }
 0x133   :  { %v1362_v62 = vmax.f32 %v1135_v38, 0.0  ;;  %v1139_v44 = vadd.f32 %v2799_v3, %v858_v39  ;;  %v2931_v38 = vpop.f32.mrb[42].mxu0 }
 0x134   :  { %v1363_v47 = vmax.f32 %v1137_v41, 0.0 }
 0x135   :  { %v1987_v49 = vpack.c.bf16 %v1362_v62, %v1361_v1  ;;  %v1364_v50 = vmax.f32 %v1139_v44, 0.0  ;;  %v861_v52 = vpop.f32.mrb[16].mxu1  ;;  %v2934_v1 = vpop.f32.mrb[43].mxu0 }
 0x136   :  { %v862_v63 = vadd.f32 %v861_v52, %v2808_v9  ;;  %v863_v56 = vpop.f32.mrb[17].mxu1 }
 0x137   :  { %1749 = vst [vmem:[%s3312_s3 + $0x30] sm:$0xff] %v1987_v49  ;;  %v1988_v61 = vpack.c.bf16 %v1364_v50, %v1363_v47  ;;  %v864_v2 = vadd.f32 %v863_v56, %v2812_v11  ;;  %v865_v0 = vpop.f32.mrb[18].mxu1 }
 0x138   :  { %v1143_v53 = vadd.f32 %v2804_v7, %v862_v63  ;;  %v866_v3 = vadd.f32 %v865_v0, %v2808_v9  ;;  %v867_v4 = vpop.f32.mrb[19].mxu1 }
 0x139   :  { %1750 = vst [vmem:[%s3312_s3 + $0x38] sm:$0xff] %v1988_v61  ;;  %v1145_v54 = vadd.f32 %v2806_v8, %v864_v2  ;;  %v868_v6 = vadd.f32 %v867_v4, %v2812_v11  ;;  %v2943_v61 = vpop.f32.mrb[44].mxu0 }
 0x13a   :  { %v1365_v55 = vmax.f32 %v1143_v53, 0.0  ;;  %v1147_v14 = vadd.f32 %v2810_v10, %v866_v3  ;;  %v2950_v53 = vpop.f32.mrb[45].mxu0 }
 0x13b   :  { %v1366_v7 = vmax.f32 %v1145_v54, 0.0  ;;  %v1149_v17 = vadd.f32 %v2814_v12, %v868_v6  ;;  %v2953_v54 = vpop.f32.mrb[46].mxu0 }
 0x13c   :  { %v1367_v20 = vmax.f32 %v1147_v14, 0.0 }
 0x13d   :  { %v1989_v57 = vpack.c.bf16 %v1366_v7, %v1365_v55  ;;  %v1368_v23 = vmax.f32 %v1149_v17, 0.0  ;;  %v871_v26 = vpop.f32.mrb[20].mxu1  ;;  %v2956_v55 = vpop.f32.mrb[47].mxu0 }
 0x13e   :  { %v872_v8 = vadd.f32 %v871_v26, %v2808_v9  ;;  %v873_v28 = vpop.f32.mrb[21].mxu1 }
 0x13f   :  { %1751 = vst [vmem:[%s3312_s3 + $0x40] sm:$0xff] %v1989_v57  ;;  %v1990_v29 = vpack.c.bf16 %v1368_v23, %v1367_v20  ;;  %v874_v10 = vadd.f32 %v873_v28, %v2812_v11  ;;  %v875_v31 = vpop.f32.mrb[22].mxu1 }
 0x140   :  { %v1153_v58 = vadd.f32 %v2819_v21, %v872_v8  ;;  %v876_v12 = vadd.f32 %v875_v31, %v2808_v9  ;;  %v877_v32 = vpop.f32.mrb[23].mxu1 }
 0x141   :  { %1752 = vst [vmem:[%s3312_s3 + $0x48] sm:$0xff] %v1990_v29  ;;  %v1155_v59 = vadd.f32 %v2822_v24, %v874_v10  ;;  %v878_v34 = vadd.f32 %v877_v32, %v2812_v11  ;;  %v2965_v29 = vpop.f32.mrb[48].mxu0 }
 0x142   :  { %v1369_v60 = vmax.f32 %v1153_v58, 0.0  ;;  %v1157_v36 = vadd.f32 %v2824_v27, %v876_v12  ;;  %v2972_v58 = vpop.f32.mrb[49].mxu0 }
 0x143   :  { %v1370_v21 = vmax.f32 %v1155_v59, 0.0  ;;  %v1159_v39 = vadd.f32 %v2826_v30, %v878_v34  ;;  %v2975_v59 = vpop.f32.mrb[50].mxu0 }
 0x144   :  { %v1371_v41 = vmax.f32 %v1157_v36, 0.0 }
 0x145   :  { %v1991_v62 = vpack.c.bf16 %v1370_v21, %v1369_v60  ;;  %v1372_v44 = vmax.f32 %v1159_v39, 0.0  ;;  %v881_v47 = vpop.f32.mrb[24].mxu1  ;;  %v2978_v60 = vpop.f32.mrb[51].mxu0 }
 0x146   :  { %v882_v24 = vadd.f32 %v881_v47, %v2808_v9  ;;  %v883_v49 = vpop.f32.mrb[25].mxu1 }
 0x147   :  { %1753 = vst [vmem:[%s3312_s3 + $0x50] sm:$0xff] %v1991_v62  ;;  %v1992_v50 = vpack.c.bf16 %v1372_v44, %v1371_v41  ;;  %v884_v27 = vadd.f32 %v883_v49, %v2812_v11  ;;  %v885_v52 = vpop.f32.mrb[26].mxu1 }
 0x148   :  { %v1163_v63 = vadd.f32 %v2834_v42, %v882_v24  ;;  %v886_v30 = vadd.f32 %v885_v52, %v2808_v9  ;;  %v887_v56 = vpop.f32.mrb[27].mxu1 }
 0x149   :  { %1754 = vst [vmem:[%s3312_s3 + $0x58] sm:$0xff] %v1992_v50  ;;  %v1165_v2 = vadd.f32 %v2840_v45, %v884_v27  ;;  %v888_v0 = vadd.f32 %v887_v56, %v2812_v11  ;;  %v2987_v50 = vpop.f32.mrb[52].mxu0 }
 0x14a   :  { %v1373_v3 = vmax.f32 %v1163_v63, 0.0  ;;  %v1167_v4 = vadd.f32 %v2843_v48, %v886_v30  ;;  %v2994_v63 = vpop.f32.mrb[53].mxu0 }
 0x14b   :  { %v1374_v42 = vmax.f32 %v1165_v2, 0.0  ;;  %v1169_v6 = vadd.f32 %v2846_v51, %v888_v0  ;;  %v2997_v2 = vpop.f32.mrb[54].mxu0 }
 0x14c   :  { %v1375_v14 = vmax.f32 %v1167_v4, 0.0 }
 0x14d   :  { %v1993_v7 = vpack.c.bf16 %v1374_v42, %v1373_v3  ;;  %v1376_v17 = vmax.f32 %v1169_v6, 0.0  ;;  %v891_v20 = vpop.f32.mrb[28].mxu1  ;;  %v3000_v3 = vpop.f32.mrb[55].mxu0 }
 0x14e   :  { %v892_v45 = vadd.f32 %v891_v20, %v2808_v9  ;;  %v893_v57 = vpop.f32.mrb[29].mxu1 }
 0x14f   :  { %1755 = vst [vmem:[%s3312_s3 + $0x60] sm:$0xff] %v1993_v7  ;;  %v1994_v23 = vpack.c.bf16 %v1376_v17, %v1375_v14  ;;  %v894_v48 = vadd.f32 %v893_v57, %v2812_v11  ;;  %v895_v26 = vpop.f32.mrb[30].mxu1 }
 0x150   :  { %v1173_v8 = vadd.f32 %v2855_v15, %v892_v45  ;;  %v896_v51 = vadd.f32 %v895_v26, %v2808_v9  ;;  %v897_v28 = vpop.f32.mrb[31].mxu1 }
 0x151   :  { %1756 = vst [vmem:[%s3312_s3 + $0x68] sm:$0xff] %v1994_v23  ;;  %v1175_v10 = vadd.f32 %v2862_v18, %v894_v48  ;;  %v898_v31 = vadd.f32 %v897_v28, %v2812_v11  ;;  %v3009_v23 = vpop.f32.mrb[56].mxu0 }
 0x152   :  { %v1377_v12 = vmax.f32 %v1173_v8, 0.0  ;;  %v1177_v32 = vadd.f32 %v2865_v22, %v896_v51  ;;  %v3016_v8 = vpop.f32.mrb[57].mxu0 }
 0x153   :  { %v1378_v15 = vmax.f32 %v1175_v10, 0.0  ;;  %v1179_v34 = vadd.f32 %v2868_v25, %v898_v31  ;;  %v3019_v10 = vpop.f32.mrb[58].mxu0 }
 0x154   :  { %v1379_v36 = vmax.f32 %v1177_v32, 0.0 }
 0x155   :  { %v1995_v21 = vpack.c.bf16 %v1378_v15, %v1377_v12  ;;  %v1380_v39 = vmax.f32 %v1179_v34, 0.0  ;;  %v901_v41 = vpop.f32.mrb[32].mxu1  ;;  %v3022_v12 = vpop.f32.mrb[59].mxu0 }
 0x156   :  { %v902_v18 = vadd.f32 %v901_v41, %v2808_v9  ;;  %v903_v62 = vpop.f32.mrb[33].mxu1 }
 0x157   :  { %1757 = vst [vmem:[%s3312_s3 + $0x70] sm:$0xff] %v1995_v21  ;;  %v1996_v44 = vpack.c.bf16 %v1380_v39, %v1379_v36  ;;  %v904_v22 = vadd.f32 %v903_v62, %v2812_v11  ;;  %v905_v47 = vpop.f32.mrb[34].mxu1 }
 0x158   :  { %v1183_v24 = vadd.f32 %v2877_v37, %v902_v18  ;;  %v906_v25 = vadd.f32 %v905_v47, %v2808_v9  ;;  %v907_v49 = vpop.f32.mrb[35].mxu1 }
 0x159   :  { %1758 = vst [vmem:[%s3312_s3 + $0x78] sm:$0xff] %v1996_v44  ;;  %v1185_v27 = vadd.f32 %v2884_v40, %v904_v22  ;;  %v908_v52 = vadd.f32 %v907_v49, %v2812_v11  ;;  %v3031_v44 = vpop.f32.mrb[60].mxu0 }
 0x15a   :  { %v1381_v30 = vmax.f32 %v1183_v24, 0.0  ;;  %v1187_v56 = vadd.f32 %v2887_v43, %v906_v25  ;;  %v3038_v24 = vpop.f32.mrb[61].mxu0 }
 0x15b   :  { %v1382_v37 = vmax.f32 %v1185_v27, 0.0  ;;  %v1189_v0 = vadd.f32 %v2890_v46, %v908_v52  ;;  %v3041_v27 = vpop.f32.mrb[62].mxu0 }
 0x15c   :  { %v1383_v4 = vmax.f32 %v1187_v56, 0.0 }
 0x15d   :  { %v1997_v42 = vpack.c.bf16 %v1382_v37, %v1381_v30  ;;  %v1384_v6 = vmax.f32 %v1189_v0, 0.0  ;;  %v911_v14 = vpop.f32.mrb[36].mxu1  ;;  %v3044_v30 = vpop.f32.mrb[63].mxu0 }
 0x15e   :  { %v912_v40 = vadd.f32 %v911_v14, %v2808_v9  ;;  %v913_v7 = vpop.f32.mrb[37].mxu1 }
 0x15f   :  { %1759 = vst [vmem:[%s3312_s3 + $0x80] sm:$0xff] %v1997_v42  ;;  %v1998_v17 = vpack.c.bf16 %v1384_v6, %v1383_v4  ;;  %v914_v43 = vadd.f32 %v913_v7, %v2812_v11  ;;  %v915_v20 = vpop.f32.mrb[38].mxu1 }
 0x160   :  { %v1193_v45 = vadd.f32 %v2899_v5, %v912_v40  ;;  %v916_v46 = vadd.f32 %v915_v20, %v2808_v9  ;;  %v917_v57 = vpop.f32.mrb[39].mxu1 }
 0x161   :  { %1760 = vst [vmem:[%s3312_s3 + $0x88] sm:$0xff] %v1998_v17  ;;  %v1195_v48 = vadd.f32 %v2906_v13, %v914_v43  ;;  %v918_v26 = vadd.f32 %v917_v57, %v2812_v11  ;;  %v3053_v17 = vpop.f32.mrb[64].mxu0 }
 0x162   :  { %v1385_v51 = vmax.f32 %v1193_v45, 0.0  ;;  %v1197_v28 = vadd.f32 %v2909_v16, %v916_v46  ;;  %v3060_v45 = vpop.f32.mrb[65].mxu0 }
 0x163   :  { %v1386_v5 = vmax.f32 %v1195_v48, 0.0  ;;  %v1199_v31 = vadd.f32 %v2912_v19, %v918_v26  ;;  %v3063_v48 = vpop.f32.mrb[66].mxu0 }
 0x164   :  { %v1387_v32 = vmax.f32 %v1197_v28, 0.0 }
 0x165   :  { %v1999_v15 = vpack.c.bf16 %v1386_v5, %v1385_v51  ;;  %v1388_v34 = vmax.f32 %v1199_v31, 0.0  ;;  %v921_v36 = vpop.f32.mrb[40].mxu1  ;;  %v3066_v51 = vpop.f32.mrb[67].mxu0 }
 0x166   :  { %v922_v13 = vadd.f32 %v921_v36, %v2808_v9  ;;  %v923_v21 = vpop.f32.mrb[41].mxu1 }
 0x167   :  { %1761 = vst [vmem:[%s3312_s3 + $0x90] sm:$0xff] %v1999_v15  ;;  %v2000_v39 = vpack.c.bf16 %v1388_v34, %v1387_v32  ;;  %v924_v16 = vadd.f32 %v923_v21, %v2812_v11  ;;  %v925_v41 = vpop.f32.mrb[42].mxu1 }
 0x168   :  { %v1203_v18 = vadd.f32 %v2921_v33, %v922_v13  ;;  %v926_v19 = vadd.f32 %v925_v41, %v2808_v9  ;;  %v927_v62 = vpop.f32.mrb[43].mxu1 }
 0x169   :  { %1762 = vst [vmem:[%s3312_s3 + $0x98] sm:$0xff] %v2000_v39  ;;  %v1205_v22 = vadd.f32 %v2928_v35, %v924_v16  ;;  %v928_v47 = vadd.f32 %v927_v62, %v2812_v11  ;;  %v3075_v39 = vpop.f32.mrb[68].mxu0 }
 0x16a   :  { %v1389_v25 = vmax.f32 %v1203_v18, 0.0  ;;  %v1207_v49 = vadd.f32 %v2931_v38, %v926_v19  ;;  %v3082_v18 = vpop.f32.mrb[69].mxu0 }
 0x16b   :  { %v1390_v33 = vmax.f32 %v1205_v22, 0.0  ;;  %v1209_v52 = vadd.f32 %v2934_v1, %v928_v47  ;;  %v3085_v22 = vpop.f32.mrb[70].mxu0 }
 0x16c   :  { %v1391_v56 = vmax.f32 %v1207_v49, 0.0 }
 0x16d   :  { %v2001_v37 = vpack.c.bf16 %v1390_v33, %v1389_v25  ;;  %v1392_v0 = vmax.f32 %v1209_v52, 0.0  ;;  %v931_v4 = vpop.f32.mrb[44].mxu1  ;;  %v3088_v25 = vpop.f32.mrb[71].mxu0 }
 0x16e   :  { %v932_v35 = vadd.f32 %v931_v4, %v2808_v9  ;;  %v933_v42 = vpop.f32.mrb[45].mxu1 }
 0x16f   :  { %1763 = vst [vmem:[%s3312_s3 + $0xa0] sm:$0xff] %v2001_v37  ;;  %v2002_v6 = vpack.c.bf16 %v1392_v0, %v1391_v56  ;;  %v934_v38 = vadd.f32 %v933_v42, %v2812_v11  ;;  %v935_v14 = vpop.f32.mrb[46].mxu1 }
 0x170   :  { %v1213_v40 = vadd.f32 %v2943_v61, %v932_v35  ;;  %v936_v1 = vadd.f32 %v935_v14, %v2808_v9  ;;  %v937_v7 = vpop.f32.mrb[47].mxu1 }
 0x171   :  { %1764 = vst [vmem:[%s3312_s3 + $0xa8] sm:$0xff] %v2002_v6  ;;  %v1215_v43 = vadd.f32 %v2950_v53, %v934_v38  ;;  %v938_v20 = vadd.f32 %v937_v7, %v2812_v11  ;;  %v3097_v6 = vpop.f32.mrb[72].mxu0 }
 0x172   :  { %v1393_v46 = vmax.f32 %v1213_v40, 0.0  ;;  %v1217_v57 = vadd.f32 %v2953_v54, %v936_v1  ;;  %v3104_v40 = vpop.f32.mrb[73].mxu0 }
 0x173   :  { %v1394_v61 = vmax.f32 %v1215_v43, 0.0  ;;  %v1219_v26 = vadd.f32 %v2956_v55, %v938_v20  ;;  %v3107_v43 = vpop.f32.mrb[74].mxu0 }
 0x174   :  { %v1395_v28 = vmax.f32 %v1217_v57, 0.0 }
 0x175   :  { %v2003_v5 = vpack.c.bf16 %v1394_v61, %v1393_v46  ;;  %v1396_v31 = vmax.f32 %v1219_v26, 0.0  ;;  %v941_v32 = vpop.f32.mrb[48].mxu1  ;;  %v3110_v46 = vpop.f32.mrb[75].mxu0 }
 0x176   :  { %v942_v53 = vadd.f32 %v941_v32, %v2808_v9  ;;  %v943_v15 = vpop.f32.mrb[49].mxu1 }
 0x177   :  { %1765 = vst [vmem:[%s3312_s3 + $0xb0] sm:$0xff] %v2003_v5  ;;  %v2004_v34 = vpack.c.bf16 %v1396_v31, %v1395_v28  ;;  %v944_v54 = vadd.f32 %v943_v15, %v2812_v11  ;;  %v945_v36 = vpop.f32.mrb[50].mxu1 }
 0x178   :  { %v1223_v13 = vadd.f32 %v2965_v29, %v942_v53  ;;  %v946_v55 = vadd.f32 %v945_v36, %v2808_v9  ;;  %v947_v21 = vpop.f32.mrb[51].mxu1 }
 0x179   :  { %1766 = vst [vmem:[%s3312_s3 + $0xb8] sm:$0xff] %v2004_v34  ;;  %v1225_v16 = vadd.f32 %v2972_v58, %v944_v54  ;;  %v948_v41 = vadd.f32 %v947_v21, %v2812_v11  ;;  %v3119_v34 = vpop.f32.mrb[76].mxu0 }
 0x17a   :  { %v1397_v19 = vmax.f32 %v1223_v13, 0.0  ;;  %v1227_v62 = vadd.f32 %v2975_v59, %v946_v55  ;;  %v3126_v13 = vpop.f32.mrb[77].mxu0 }
 0x17b   :  { %v1398_v29 = vmax.f32 %v1225_v16, 0.0  ;;  %v1229_v47 = vadd.f32 %v2978_v60, %v948_v41  ;;  %v3129_v16 = vpop.f32.mrb[78].mxu0 }
 0x17c   :  { %v1399_v49 = vmax.f32 %v1227_v62, 0.0 }
 0x17d   :  { %v2005_v33 = vpack.c.bf16 %v1398_v29, %v1397_v19  ;;  %v1400_v52 = vmax.f32 %v1229_v47, 0.0  ;;  %v951_v56 = vpop.f32.mrb[52].mxu1  ;;  %v3132_v19 = vpop.f32.mrb[79].mxu0 }
 0x17e   :  { %v952_v58 = vadd.f32 %v951_v56, %v2808_v9  ;;  %v953_v37 = vpop.f32.mrb[53].mxu1 }
 0x17f   :  { %1767 = vst [vmem:[%s3312_s3 + $0xc0] sm:$0xff] %v2005_v33  ;;  %v2006_v0 = vpack.c.bf16 %v1400_v52, %v1399_v49  ;;  %v954_v59 = vadd.f32 %v953_v37, %v2812_v11  ;;  %v955_v4 = vpop.f32.mrb[54].mxu1 }
 0x180   :  { %v1233_v35 = vadd.f32 %v2987_v50, %v952_v58  ;;  %v956_v60 = vadd.f32 %v955_v4, %v2808_v9  ;;  %v957_v42 = vpop.f32.mrb[55].mxu1 }
 0x181   :  { %1768 = vst [vmem:[%s3312_s3 + $0xc8] sm:$0xff] %v2006_v0  ;;  %v1235_v38 = vadd.f32 %v2994_v63, %v954_v59  ;;  %v958_v14 = vadd.f32 %v957_v42, %v2812_v11  ;;  %v3141_v0 = vpop.f32.mrb[80].mxu0 }
 0x182   :  { %v1401_v1 = vmax.f32 %v1233_v35, 0.0  ;;  %v1237_v7 = vadd.f32 %v2997_v2, %v956_v60  ;;  %v3148_v35 = vpop.f32.mrb[81].mxu0 }
 0x183   :  { %v1402_v50 = vmax.f32 %v1235_v38, 0.0  ;;  %v1239_v20 = vadd.f32 %v3000_v3, %v958_v14  ;;  %v3151_v38 = vpop.f32.mrb[82].mxu0 }
 0x184   :  { %v1403_v57 = vmax.f32 %v1237_v7, 0.0 }
 0x185   :  { %v2007_v61 = vpack.c.bf16 %v1402_v50, %v1401_v1  ;;  %v1404_v26 = vmax.f32 %v1239_v20, 0.0  ;;  %v961_v28 = vpop.f32.mrb[56].mxu1  ;;  %v3154_v1 = vpop.f32.mrb[83].mxu0 }
 0x186   :  { %v962_v63 = vadd.f32 %v961_v28, %v2808_v9  ;;  %v963_v5 = vpop.f32.mrb[57].mxu1 }
 0x187   :  { %1769 = vst [vmem:[%s3312_s3 + $0xd0] sm:$0xff] %v2007_v61  ;;  %v2008_v31 = vpack.c.bf16 %v1404_v26, %v1403_v57  ;;  %v964_v2 = vadd.f32 %v963_v5, %v2812_v11  ;;  %v965_v32 = vpop.f32.mrb[58].mxu1 }
 0x188   :  { %v1243_v53 = vadd.f32 %v3009_v23, %v962_v63  ;;  %v966_v3 = vadd.f32 %v965_v32, %v2808_v9  ;;  %v967_v15 = vpop.f32.mrb[59].mxu1 }
 0x189   :  { %1770 = vst [vmem:[%s3312_s3 + $0xd8] sm:$0xff] %v2008_v31  ;;  %v1245_v54 = vadd.f32 %v3016_v8, %v964_v2  ;;  %v968_v36 = vadd.f32 %v967_v15, %v2812_v11  ;;  %v3163_v31 = vpop.f32.mrb[84].mxu0 }
 0x18a   :  { %v1405_v55 = vmax.f32 %v1243_v53, 0.0  ;;  %v1247_v21 = vadd.f32 %v3019_v10, %v966_v3  ;;  %v3170_v53 = vpop.f32.mrb[85].mxu0 }
 0x18b   :  { %v1406_v23 = vmax.f32 %v1245_v54, 0.0  ;;  %v1249_v41 = vadd.f32 %v3022_v12, %v968_v36  ;;  %v3173_v54 = vpop.f32.mrb[86].mxu0 }
 0x18c   :  { %v1407_v62 = vmax.f32 %v1247_v21, 0.0 }
 0x18d   :  { %v2009_v29 = vpack.c.bf16 %v1406_v23, %v1405_v55  ;;  %v1408_v47 = vmax.f32 %v1249_v41, 0.0  ;;  %v971_v49 = vpop.f32.mrb[60].mxu1  ;;  %v3176_v55 = vpop.f32.mrb[87].mxu0 }
 0x18e   :  { %v972_v8 = vadd.f32 %v971_v49, %v2808_v9  ;;  %v973_v33 = vpop.f32.mrb[61].mxu1 }
 0x18f   :  { %1771 = vst [vmem:[%s3312_s3 + $0xe0] sm:$0xff] %v2009_v29  ;;  %v2010_v52 = vpack.c.bf16 %v1408_v47, %v1407_v62  ;;  %v974_v10 = vadd.f32 %v973_v33, %v2812_v11  ;;  %v975_v56 = vpop.f32.mrb[62].mxu1 }
 0x190   :  { %v1253_v58 = vadd.f32 %v3031_v44, %v972_v8  ;;  %v976_v12 = vadd.f32 %v975_v56, %v2808_v9  ;;  %v977_v37 = vpop.f32.mrb[63].mxu1 }
 0x191   :  { %1772 = vst [vmem:[%s3312_s3 + $0xe8] sm:$0xff] %v2010_v52  ;;  %v1255_v59 = vadd.f32 %v3038_v24, %v974_v10  ;;  %v978_v4 = vadd.f32 %v977_v37, %v2812_v11  ;;  %v3185_v52 = vpop.f32.mrb[88].mxu0 }
 0x192   :  { %v1409_v60 = vmax.f32 %v1253_v58, 0.0  ;;  %v1257_v42 = vadd.f32 %v3041_v27, %v976_v12  ;;  %v3192_v58 = vpop.f32.mrb[89].mxu0 }
 0x193   :  { %v1410_v44 = vmax.f32 %v1255_v59, 0.0  ;;  %v1259_v14 = vadd.f32 %v3044_v30, %v978_v4  ;;  %v3195_v59 = vpop.f32.mrb[90].mxu0 }
 0x194   :  { %v1411_v7 = vmax.f32 %v1257_v42, 0.0 }
 0x195   :  { %v2011_v50 = vpack.c.bf16 %v1410_v44, %v1409_v60  ;;  %v1412_v20 = vmax.f32 %v1259_v14, 0.0  ;;  %v981_v57 = vpop.f32.mrb[64].mxu1  ;;  %v3198_v60 = vpop.f32.mrb[91].mxu0 }
 0x196   :  { %v982_v24 = vadd.f32 %v981_v57, %v2808_v9  ;;  %v983_v61 = vpop.f32.mrb[65].mxu1 }
 0x197   :  { %1773 = vst [vmem:[%s3312_s3 + $0xf0] sm:$0xff] %v2011_v50  ;;  %v2012_v26 = vpack.c.bf16 %v1412_v20, %v1411_v7  ;;  %v984_v27 = vadd.f32 %v983_v61, %v2812_v11  ;;  %v985_v28 = vpop.f32.mrb[66].mxu1 }
 0x198   :  { %v1263_v63 = vadd.f32 %v3053_v17, %v982_v24  ;;  %v986_v30 = vadd.f32 %v985_v28, %v2808_v9  ;;  %v987_v5 = vpop.f32.mrb[67].mxu1 }
 0x199   :  { %1774 = vst [vmem:[%s3312_s3 + $0xf8] sm:$0xff] %v2012_v26  ;;  %v1265_v2 = vadd.f32 %v3060_v45, %v984_v27  ;;  %v988_v32 = vadd.f32 %v987_v5, %v2812_v11  ;;  %v3207_v26 = vpop.f32.mrb[92].mxu0 }
 0x19a   :  { %v1413_v3 = vmax.f32 %v1263_v63, 0.0  ;;  %v1267_v15 = vadd.f32 %v3063_v48, %v986_v30  ;;  %v3214_v63 = vpop.f32.mrb[93].mxu0 }
 0x19b   :  { %v1414_v17 = vmax.f32 %v1265_v2, 0.0  ;;  %v1269_v36 = vadd.f32 %v3066_v51, %v988_v32  ;;  %v3217_v2 = vpop.f32.mrb[94].mxu0 }
 0x19c   :  { %v1415_v21 = vmax.f32 %v1267_v15, 0.0 }
 0x19d   :  { %v2013_v23 = vpack.c.bf16 %v1414_v17, %v1413_v3  ;;  %v1416_v41 = vmax.f32 %v1269_v36, 0.0  ;;  %v991_v62 = vpop.f32.mrb[68].mxu1  ;;  %v3220_v3 = vpop.f32.mrb[95].mxu0 }
 0x19e   :  { %v992_v45 = vadd.f32 %v991_v62, %v2808_v9  ;;  %v993_v29 = vpop.f32.mrb[69].mxu1 }
 0x19f   :  { %1775 = vst [vmem:[%s3312_s3 + $0x100] sm:$0xff] %v2013_v23  ;;  %v2014_v47 = vpack.c.bf16 %v1416_v41, %v1415_v21  ;;  %v994_v48 = vadd.f32 %v993_v29, %v2812_v11  ;;  %v995_v49 = vpop.f32.mrb[70].mxu1 }
 0x1a0   :  { %v1273_v8 = vadd.f32 %v3075_v39, %v992_v45  ;;  %v996_v51 = vadd.f32 %v995_v49, %v2808_v9  ;;  %v997_v33 = vpop.f32.mrb[71].mxu1 }
 0x1a1   :  { %1776 = vst [vmem:[%s3312_s3 + $0x108] sm:$0xff] %v2014_v47  ;;  %v1275_v10 = vadd.f32 %v3082_v18, %v994_v48  ;;  %v998_v56 = vadd.f32 %v997_v33, %v2812_v11  ;;  %v3229_v47 = vpop.f32.mrb[96].mxu0 }
 0x1a2   :  { %v1417_v12 = vmax.f32 %v1273_v8, 0.0  ;;  %v1277_v37 = vadd.f32 %v3085_v22, %v996_v51  ;;  %v3236_v8 = vpop.f32.mrb[97].mxu0 }
 0x1a3   :  { %v1418_v39 = vmax.f32 %v1275_v10, 0.0  ;;  %v1279_v4 = vadd.f32 %v3088_v25, %v998_v56  ;;  %v1346_v10 = vpop.f32.mrb[98].mxu0 }
 0x1a4   :  { %v1419_v42 = vmax.f32 %v1277_v37, 0.0 }
 0x1a5   :  { %v2015_v44 = vpack.c.bf16 %v1418_v39, %v1417_v12  ;;  %v1420_v14 = vmax.f32 %v1279_v4, 0.0  ;;  %v1001_v7 = vpop.f32.mrb[72].mxu1  ;;  %v1347_v12 = vpop.f32.mrb[99].mxu0 }
 0x1a6   :  { %v1002_v18 = vadd.f32 %v1001_v7, %v2808_v9  ;;  %v1003_v50 = vpop.f32.mrb[73].mxu1 }
 0x1a7   :  { %1777 = vst [vmem:[%s3312_s3 + $0x110] sm:$0xff] %v2015_v44  ;;  %v2016_v20 = vpack.c.bf16 %v1420_v14, %v1419_v42  ;;  %v1004_v22 = vadd.f32 %v1003_v50, %v2812_v11  ;;  %v1005_v57 = vpop.f32.mrb[74].mxu1 }
 0x1a8   :  { %v1283_v24 = vadd.f32 %v3097_v6, %v1002_v18  ;;  %v1006_v25 = vadd.f32 %v1005_v57, %v2808_v9  ;;  %v1007_v61 = vpop.f32.mrb[75].mxu1 }
 0x1a9   :  { %1778 = vst [vmem:[%s3312_s3 + $0x118] sm:$0xff] %v2016_v20  ;;  %v1285_v27 = vadd.f32 %v3104_v40, %v1004_v22  ;;  %v1008_v28 = vadd.f32 %v1007_v61, %v2812_v11 }
 0x1aa   :  { %v1421_v30 = vmax.f32 %v1283_v24, 0.0  ;;  %v1287_v5 = vadd.f32 %v3107_v43, %v1006_v25 }
 0x1ab   :  { %v1422_v6 = vmax.f32 %v1285_v27, 0.0  ;;  %v1289_v32 = vadd.f32 %v3110_v46, %v1008_v28 }
 0x1ac   :  { %v1423_v15 = vmax.f32 %v1287_v5, 0.0 }
 0x1ad   :  { %v2017_v17 = vpack.c.bf16 %v1422_v6, %v1421_v30  ;;  %v1424_v36 = vmax.f32 %v1289_v32, 0.0  ;;  %v1011_v21 = vpop.f32.mrb[76].mxu1 }
 0x1ae   :  { %v1012_v40 = vadd.f32 %v1011_v21, %v2808_v9  ;;  %v1013_v23 = vpop.f32.mrb[77].mxu1 }
 0x1af   :  { %1779 = vst [vmem:[%s3312_s3 + $0x120] sm:$0xff] %v2017_v17  ;;  %v2018_v41 = vpack.c.bf16 %v1424_v36, %v1423_v15  ;;  %v1014_v43 = vadd.f32 %v1013_v23, %v2812_v11  ;;  %v1015_v62 = vpop.f32.mrb[78].mxu1 }
 0x1b0   :  { %v1293_v45 = vadd.f32 %v3119_v34, %v1012_v40  ;;  %v1016_v46 = vadd.f32 %v1015_v62, %v2808_v9  ;;  %v1017_v29 = vpop.f32.mrb[79].mxu1 }
 0x1b1   :  { %1780 = vst [vmem:[%s3312_s3 + $0x128] sm:$0xff] %v2018_v41  ;;  %v1295_v48 = vadd.f32 %v3126_v13, %v1014_v43  ;;  %v1018_v49 = vadd.f32 %v1017_v29, %v2812_v11 }
 0x1b2   :  { %v1425_v51 = vmax.f32 %v1293_v45, 0.0  ;;  %v1297_v33 = vadd.f32 %v3129_v16, %v1016_v46 }
 0x1b3   :  { %v1426_v34 = vmax.f32 %v1295_v48, 0.0  ;;  %v1299_v56 = vadd.f32 %v3132_v19, %v1018_v49 }
 0x1b4   :  { %v1427_v37 = vmax.f32 %v1297_v33, 0.0 }
 0x1b5   :  { %v2019_v39 = vpack.c.bf16 %v1426_v34, %v1425_v51  ;;  %v1428_v4 = vmax.f32 %v1299_v56, 0.0  ;;  %v1021_v42 = vpop.f32.mrb[80].mxu1 }
 0x1b6   :  { %v1022_v44 = vadd.f32 %v1021_v42, %v2808_v9  ;;  %v1023_v14 = vpop.f32.mrb[81].mxu1 }
 0x1b7   :  { %1781 = vst [vmem:[%s3312_s3 + $0x130] sm:$0xff] %v2019_v39  ;;  %v2020_v13 = vpack.c.bf16 %v1428_v4, %v1427_v37  ;;  %v1024_v7 = vadd.f32 %v1023_v14, %v2812_v11  ;;  %v1025_v16 = vpop.f32.mrb[82].mxu1 }
 0x1b8   :  { %v1303_v18 = vadd.f32 %v3141_v0, %v1022_v44  ;;  %v1026_v19 = vadd.f32 %v1025_v16, %v2808_v9  ;;  %v1027_v50 = vpop.f32.mrb[83].mxu1 }
 0x1b9   :  { %1782 = vst [vmem:[%s3312_s3 + $0x138] sm:$0xff] %v2020_v13  ;;  %v1305_v20 = vadd.f32 %v3148_v35, %v1024_v7  ;;  %v1028_v22 = vadd.f32 %v1027_v50, %v2812_v11 }
 0x1ba   :  { %v1429_v57 = vmax.f32 %v1303_v18, 0.0  ;;  %v1307_v24 = vadd.f32 %v3151_v38, %v1026_v19 }
 0x1bb   :  { %v1430_v25 = vmax.f32 %v1305_v20, 0.0  ;;  %v1309_v61 = vadd.f32 %v3154_v1, %v1028_v22 }
 0x1bc   :  { %v1431_v27 = vmax.f32 %v1307_v24, 0.0 }
 0x1bd   :  { %v2021_v28 = vpack.c.bf16 %v1430_v25, %v1429_v57  ;;  %v1432_v0 = vmax.f32 %v1309_v61, 0.0  ;;  %v1031_v30 = vpop.f32.mrb[84].mxu1 }
 0x1be   :  { %v1032_v5 = vadd.f32 %v1031_v30, %v2808_v9  ;;  %v1033_v6 = vpop.f32.mrb[85].mxu1 }
 0x1bf   :  { %1783 = vst [vmem:[%s3312_s3 + $0x140] sm:$0xff] %v2021_v28  ;;  %v2022_v35 = vpack.c.bf16 %v1432_v0, %v1431_v27  ;;  %v1034_v32 = vadd.f32 %v1033_v6, %v2812_v11  ;;  %v1035_v15 = vpop.f32.mrb[86].mxu1 }
 0x1c0   :  { %v1313_v38 = vadd.f32 %v3163_v31, %v1032_v5  ;;  %v1036_v17 = vadd.f32 %v1035_v15, %v2808_v9  ;;  %v1037_v1 = vpop.f32.mrb[87].mxu1 }
 0x1c1   :  { %1784 = vst [vmem:[%s3312_s3 + $0x148] sm:$0xff] %v2022_v35  ;;  %v1315_v36 = vadd.f32 %v3170_v53, %v1034_v32  ;;  %v1038_v21 = vadd.f32 %v1037_v1, %v2812_v11 }
 0x1c2   :  { %v1433_v40 = vmax.f32 %v1313_v38, 0.0  ;;  %v1317_v23 = vadd.f32 %v3173_v54, %v1036_v17 }
 0x1c3   :  { %v1434_v41 = vmax.f32 %v1315_v36, 0.0  ;;  %v1319_v43 = vadd.f32 %v3176_v55, %v1038_v21 }
 0x1c4   :  { %v1435_v62 = vmax.f32 %v1317_v23, 0.0 }
 0x1c5   :  { %v2023_v45 = vpack.c.bf16 %v1434_v41, %v1433_v40  ;;  %v1436_v31 = vmax.f32 %v1319_v43, 0.0  ;;  %v1041_v46 = vpop.f32.mrb[88].mxu1 }
 0x1c6   :  { %v1042_v29 = vadd.f32 %v1041_v46, %v2808_v9  ;;  %v1043_v48 = vpop.f32.mrb[89].mxu1 }
 0x1c7   :  { %1785 = vst [vmem:[%s3312_s3 + $0x150] sm:$0xff] %v2023_v45  ;;  %v2024_v53 = vpack.c.bf16 %v1436_v31, %v1435_v62  ;;  %v1044_v49 = vadd.f32 %v1043_v48, %v2812_v11  ;;  %v1045_v51 = vpop.f32.mrb[90].mxu1 }
 0x1c8   :  { %v1323_v54 = vadd.f32 %v3185_v52, %v1042_v29  ;;  %v1046_v33 = vadd.f32 %v1045_v51, %v2808_v9  ;;  %v1047_v55 = vpop.f32.mrb[91].mxu1 }
 0x1c9   :  { %1786 = vst [vmem:[%s3312_s3 + $0x158] sm:$0xff] %v2024_v53  ;;  %v1325_v10 = vadd.f32 %v3192_v58, %v1044_v49  ;;  %v1048_v34 = vadd.f32 %v1047_v55, %v2812_v11 }
 0x1ca   :  { %v1437_v56 = vmax.f32 %v1323_v54, 0.0  ;;  %v1327_v12 = vadd.f32 %v3195_v59, %v1046_v33 }
 0x1cb   :  { %v1438_v37 = vmax.f32 %v1325_v10, 0.0  ;;  %v1329_v39 = vadd.f32 %v3198_v60, %v1048_v34 }
 0x1cc   :  { %v1439_v4 = vmax.f32 %v1327_v12, 0.0 }
 0x1cd   :  { %v2025_v42 = vpack.c.bf16 %v1438_v37, %v1437_v56  ;;  %v1440_v52 = vmax.f32 %v1329_v39, 0.0  ;;  %v1051_v44 = vpop.f32.mrb[92].mxu1 }
 0x1ce   :  { %v1052_v14 = vadd.f32 %v1051_v44, %v2808_v9  ;;  %v1053_v13 = vpop.f32.mrb[93].mxu1 }
 0x1cf   :  { %1787 = vst [vmem:[%s3312_s3 + $0x160] sm:$0xff] %v2025_v42  ;;  %v2026_v58 = vpack.c.bf16 %v1440_v52, %v1439_v4  ;;  %v1054_v7 = vadd.f32 %v1053_v13, %v2812_v11  ;;  %v1055_v16 = vpop.f32.mrb[94].mxu1 }
 0x1d0   :  { %v1333_v59 = vadd.f32 %v3207_v26, %v1052_v14  ;;  %v1056_v18 = vadd.f32 %v1055_v16, %v2808_v9  ;;  %v1057_v60 = vpop.f32.mrb[95].mxu1 }
 0x1d1   :  { %1788 = vst [vmem:[%s3312_s3 + $0x168] sm:$0xff] %v2026_v58  ;;  %v1335_v19 = vadd.f32 %v3214_v63, %v1054_v7  ;;  %v1058_v50 = vadd.f32 %v1057_v60, %v2812_v11 }
 0x1d2   :  { %v1441_v20 = vmax.f32 %v1333_v59, 0.0  ;;  %v1337_v22 = vadd.f32 %v3217_v2, %v1056_v18 }
 0x1d3   :  { %v1442_v57 = vmax.f32 %v1335_v19, 0.0  ;;  %v1339_v24 = vadd.f32 %v3220_v3, %v1058_v50 }
 0x1d4   :  { %v1443_v25 = vmax.f32 %v1337_v22, 0.0 }
 0x1d5   :  { %v2027_v61 = vpack.c.bf16 %v1442_v57, %v1441_v20  ;;  %v1444_v26 = vmax.f32 %v1339_v24, 0.0  ;;  %v1061_v27 = vpop.f32.mrb[96].mxu1 }
 0x1d6   :  { %v1062_v28 = vadd.f32 %v1061_v27, %v2808_v9  ;;  %v1063_v0 = vpop.f32.mrb[97].mxu1 }
 0x1d7   :  { %1789 = vst [vmem:[%s3312_s3 + $0x170] sm:$0xff] %v2027_v61  ;;  %v2028_v63 = vpack.c.bf16 %v1444_v26, %v1443_v25  ;;  %v1064_v30 = vadd.f32 %v1063_v0, %v2812_v11  ;;  %v1065_v5 = vpop.f32.mrb[98].mxu1 }
 0x1d8   :  { %v1343_v2 = vadd.f32 %v3229_v47, %v1062_v28  ;;  %v1066_v6 = vpop.f32.mrb[99].mxu1 }
 0x1d9   :  { %1790 = vst [vmem:[%s3312_s3 + $0x178] sm:$0xff] %v2028_v63  ;;  %v1345_v3 = vadd.f32 %v3236_v8, %v1064_v30 }
 0x1da   :  { %v1445_v35 = vmax.f32 %v1343_v2, 0.0 }
 0x1db   :  { %v1446_v9 = vmax.f32 %v1345_v3, 0.0 }
 0x1dd   :  { %v2029_v32 = vpack.c.bf16 %v1446_v9, %v1445_v35 }
 0x1df   :  { %1791 = vst [vmem:[%s3312_s3 + $0x180] sm:$0xff] %v2029_v32 }

// kernel: squeezenet_forward.25
= control target key start
LH: loop header
LB: loop body
LE: loop exit
PB: predicated region body
PF: predicated region fallthrough
CT: control target
= control target key end

     0   :  { %vm384_vm0 = vcmask 257024   ;;  %s746_s1 = inlined_call_operand.vmem [shape: bf16[256,32], index: 1, kind: input, shape index: {}]   ;;  %s747_s0 = inlined_call_operand.vmem [shape: bf16[98,256], index: 0, kind: input, shape index: {}]   ;;  %s748_s2 = inlined_call_operand.vmem [shape: f32[1,32], index: 2, kind: input, shape index: {}]   ;;  %s749_s3 = inlined_call_operand.vmem [shape: bf16[98,32], index: 3, kind: output, shape index: {}]  }
   0x1   :  { %v533_v0 = vld [vmem:[%s746_s1 + $0x40] sm:$0xff]   ;;  %v535_v2 = vld [vmem:[%s746_s1 + $0x48] sm:$0xff]   ;;  %v537_v4 = vld [vmem:[%s746_s1 + $0x50] sm:$0xff]  }
   0x2   :  { %v534_v1 = vld [vmem:[%s746_s1] sm:$0xff]   ;;  %459 = vmatprep.subr.bf16.mxu0 %v533_v0  ;;  %517 = vmatprep.subr.bf16.mxu1 %v533_v0  ;;  %v536_v3 = vld [vmem:[%s746_s1 + $0x8] sm:$0xff]   ;;  %v538_v5 = vld [vmem:[%s746_s1 + $0x10] sm:$0xff]  }
   0x3   :  { %460 = vmatpush3.bf16.msra.mxu0 %v534_v1  ;;  %525 = vmatpush3.bf16.msra.mxu1 %v534_v1  ;;  %v539_v6 = vld [vmem:[%s746_s1 + $0x58] sm:$0xff]   ;;  %v541_v8 = vld [vmem:[%s746_s1 + $0x60] sm:$0xff]   ;;  %v543_v10 = vld [vmem:[%s746_s1 + $0x68] sm:$0xff]  }
   0x4   :  { %461 = vmatprep.subr.bf16.mxu0 %v535_v2  ;;  %518 = vmatprep.subr.bf16.mxu1 %v535_v2  ;;  %v540_v7 = vld [vmem:[%s746_s1 + $0x18] sm:$0xff]   ;;  %v542_v9 = vld [vmem:[%s746_s1 + $0x20] sm:$0xff]   ;;  %v544_v13 = vld [vmem:[%s746_s1 + $0x28] sm:$0xff]  }
   0x5   :  { %v551_v11 = vld [vmem:[%s747_s0 + $0x4] ss:$8 sps:$4 sm:$0xff]   ;;  %v545_v14 = vld [vmem:[%s746_s1 + $0x70] sm:$0xff]   ;;  %v547_v16 = vld [vmem:[%s746_s1 + $0x78] sm:$0xff]  }
   0x6   :  { %v554_v12 = vld [vmem:[%s747_s0 + $0x44] ss:$8 sps:$4 sm:$0xff]   ;;  %262 = vmatprep.mubr.bf16.mxu0 %v551_v11  ;;  %v546_v15 = vld [vmem:[%s746_s1 + $0x30] sm:$0xff]   ;;  %v548_v17 = vld [vmem:[%s746_s1 + $0x38] sm:$0xff]  }
   0x7   :  { %462 = vmatpush3.bf16.msra.mxu0 %v536_v3  ;;  %526 = vmatpush3.bf16.msra.mxu1 %v536_v3  ;;  %v549_v18 = vld [vmem:[%s747_s0] ss:$8 sps:$4 sm:$0xff]   ;;  %v555_v20 = vld [vmem:[%s747_s0 + $0x14] ss:$8 sps:$4 sm:$0xff]   ;;  %v557_v23 = vld [vmem:[%s747_s0 + $0x10] ss:$8 sps:$4 sm:$0xff]  }
   0x8   :  { %463 = vmatprep.subr.bf16.mxu0 %v537_v4  ;;  %519 = vmatprep.subr.bf16.mxu1 %v537_v4  ;;  %v552_v19 = vld [vmem:[%s747_s0 + $0x40] ss:$8 sps:$4 sm:$0xff]   ;;  %v558_v21 = vld [vmem:[%s747_s0 + $0x54] ss:$8 sps:$4 sm:$0xff]   ;;  %v562_v24 = vld [vmem:[%s747_s0 + $0x50] ss:$8 sps:$4 sm:$0xff]  }
   0x9   :  { %294 = vmatprep.mubr.bf16.mxu1 %v554_v12  ;;  %v27_v22 = vld [vmem:[%s747_s0 + $0x60] sm:$0xff]  ;;  %v565_v29 = vld [vmem:[%s747_s0 + $0x34] ss:$8 sps:$4 sm:$0xff]   ;;  %v568_v30 = vld [vmem:[%s747_s0 + $0x30] ss:$8 sps:$4 sm:$0xff]  }
   0xa   :  { %v560_v25 = vld [vmem:[%s747_s0 + $0x24] ss:$8 sps:$4 sm:$0xff]   ;;  %v416_v26 = vcombine.high %v27_v22, %v27_v22  ;;  %v563_v27 = vld [vmem:[%s747_s0 + $0x20] ss:$8 sps:$4 sm:$0xff]   ;;  %v415_v28 = vcombine.low %v27_v22, %v27_v22 }
   0xb   :  { %464 = vmatpush3.bf16.msra.mxu0 %v538_v5  ;;  %527 = vmatpush3.bf16.msra.mxu1 %v538_v5  ;;  %v679_v33 = vld [vmem:[%s748_s2] ss:$0 sm:$0xff] }
   0xc   :  { %465 = vmatprep.subr.bf16.mxu0 %v539_v6  ;;  %520 = vmatprep.subr.bf16.mxu1 %v539_v6 }
   0xf   :  { %466 = vmatpush3.bf16.msra.mxu0 %v540_v7  ;;  %528 = vmatpush3.bf16.msra.mxu1 %v540_v7 }
  0x10   :  { %467 = vmatprep.subr.bf16.mxu0 %v541_v8  ;;  %521 = vmatprep.subr.bf16.mxu1 %v541_v8 }
  0x13   :  { %468 = vmatpush3.bf16.msra.mxu0 %v542_v9  ;;  %529 = vmatpush3.bf16.msra.mxu1 %v542_v9 }
  0x14   :  { %469 = vmatprep.subr.bf16.mxu0 %v543_v10  ;;  %522 = vmatprep.subr.bf16.mxu1 %v543_v10 }
  0x17   :  { %470 = vmatpush3.bf16.msra.mxu0 %v544_v13  ;;  %530 = vmatpush3.bf16.msra.mxu1 %v544_v13 }
  0x18   :  { %471 = vmatprep.subr.bf16.mxu0 %v545_v14  ;;  %523 = vmatprep.subr.bf16.mxu1 %v545_v14 }
  0x1b   :  { %472 = vmatpush3.bf16.msra.mxu0 %v546_v15  ;;  %531 = vmatpush3.bf16.msra.mxu1 %v546_v15 }
  0x1c   :  { %473 = vmatprep.subr.bf16.mxu0 %v547_v16  ;;  %524 = vmatprep.subr.bf16.mxu1 %v547_v16 }
  0x1f   :  { %474 = vmatpush3.bf16.msra.mxu0 %v548_v17  ;;  %532 = vmatpush3.bf16.msra.mxu1 %v548_v17 }
  0x22   :  { %263 = vmatmul.mubr.bf16.vlgmr.msra.gmra.mrb[0].mxu0 %v549_v18  ;;  %295 = vmatmul.mubr.bf16.vlgmr.msra.gmra.mrb[0].mxu1 %v552_v19 }
  0x23   :  { %270 = vmatprep.mubr.bf16.mxu0 %v555_v20  ;;  %302 = vmatprep.mubr.bf16.mxu1 %v558_v21 }
  0x2a   :  { %271 = vmatmul.mubr.bf16.gmra.mrb[4].mxu0 %v557_v23  ;;  %303 = vmatmul.mubr.bf16.gmra.mrb[4].mxu1 %v562_v24 }
  0x2b   :  { %278 = vmatprep.mubr.bf16.mxu0 %v560_v25  ;;  %310 = vmatprep.mubr.bf16.mxu1 %v416_v26 }
  0x32   :  { %279 = vmatmul.mubr.bf16.gmra.mrb[8].mxu0 %v563_v27  ;;  %311 = vmatmul.mubr.bf16.gmra.mrb[8].mxu1 %v415_v28 }
  0x33   :  { %286 = vmatprep.mubr.bf16.mxu0 %v565_v29 }
  0x3a   :  { %287 = vmatmul.mubr.bf16.gmra.mrb[12].mxu0 %v568_v30 }
  0xf5   :  { %v475_v31 = vpop.f32.mrb[0].mxu0  ;;  %v499_v32 = vpop.f32.mrb[0].mxu1 }
  0xf6   :  { %v476_v34 = vpop.f32.mrb[1].mxu0  ;;  %v500_v35 = vpop.f32.mrb[1].mxu1 }
  0xf7   :  { %v477_v36 = vadd.f32 %v476_v34, %v475_v31  ;;  %v478_v37 = vpop.f32.mrb[2].mxu0  ;;  %v501_v38 = vadd.f32 %v500_v35, %v499_v32  ;;  %v502_v39 = vpop.f32.mrb[2].mxu1 }
  0xf8   :  { %v479_v40 = vpop.f32.mrb[3].mxu0  ;;  %v503_v41 = vpop.f32.mrb[3].mxu1 }
  0xf9   :  { %v265_v42 = vadd.f32 %v477_v36, %v679_v33  ;;  %v480_v43 = vadd.f32 %v479_v40, %v478_v37  ;;  %v297_v44 = vadd.f32 %v501_v38, %v679_v33  ;;  %v504_v45 = vadd.f32 %v503_v41, %v502_v39 }
  0xfb   :  { %v318_v46 = vmax.f32 %v265_v42, 0.0  ;;  %v268_v47 = vadd.f32 %v480_v43, %v679_v33  ;;  %v326_v48 = vmax.f32 %v297_v44, 0.0  ;;  %v300_v49 = vadd.f32 %v504_v45, %v679_v33 }
  0xfd   :  { %v446_v50 = vpack.c.bf16 %v318_v46, %v318_v46  ;;  %v319_v51 = vmax.f32 %v268_v47, 0.0  ;;  %v481_v52 = vpop.f32.mrb[4].mxu0  ;;  %v454_v53 = vpack.c.bf16 %v326_v48, %v326_v48  ;;  %v327_v54 = vmax.f32 %v300_v49, 0.0  ;;  %v505_v55 = vpop.f32.mrb[4].mxu1 }
  0xfe   :  { %v482_v56 = vpop.f32.mrb[5].mxu0  ;;  %v506_v57 = vpop.f32.mrb[5].mxu1 }
  0xff   :  { %385 = vst.msk [vmem:[%s749_s3] sm:$0xf] %vm384_vm0, %v446_v50  ;;  %v447_v58 = vpack.c.bf16 %v319_v51, %v319_v51  ;;  %393 = vst.msk [vmem:[%s749_s3 + $0x20] sm:$0xf] %vm384_vm0, %v454_v53  ;;  %v483_v59 = vadd.f32 %v482_v56, %v481_v52  ;;  %v484_v60 = vpop.f32.mrb[6].mxu0  ;;  %v455_v61 = vpack.c.bf16 %v327_v54, %v327_v54  ;;  %v508_v63 = vpop.f32.mrb[6].mxu1 }
 0x100   :  { %v507_v62 = vadd.f32 %v506_v57, %v505_v55  ;;  %v485_v0 = vpop.f32.mrb[7].mxu0  ;;  %v509_v1 = vpop.f32.mrb[7].mxu1 }
 0x101   :  { %386 = vst.msk [vmem:[%s749_s3 + $0x4] sm:$0xf] %vm384_vm0, %v447_v58  ;;  %v273_v2 = vadd.f32 %v483_v59, %v679_v33  ;;  %394 = vst.msk [vmem:[%s749_s3 + $0x24] sm:$0xf] %vm384_vm0, %v455_v61  ;;  %v486_v3 = vadd.f32 %v485_v0, %v484_v60  ;;  %v510_v5 = vadd.f32 %v509_v1, %v508_v63 }
 0x102   :  { %v305_v4 = vadd.f32 %v507_v62, %v679_v33 }
 0x103   :  { %v320_v6 = vmax.f32 %v273_v2, 0.0  ;;  %v276_v7 = vadd.f32 %v486_v3, %v679_v33  ;;  %v308_v9 = vadd.f32 %v510_v5, %v679_v33 }
 0x104   :  { %v328_v8 = vmax.f32 %v305_v4, 0.0 }
 0x105   :  { %v448_v10 = vpack.c.bf16 %v320_v6, %v320_v6  ;;  %v321_v11 = vmax.f32 %v276_v7, 0.0  ;;  %v487_v12 = vpop.f32.mrb[8].mxu0  ;;  %v329_v14 = vmax.f32 %v308_v9, 0.0  ;;  %v511_v15 = vpop.f32.mrb[8].mxu1 }
 0x106   :  { %v456_v13 = vpack.c.bf16 %v328_v8, %v328_v8  ;;  %v488_v16 = vpop.f32.mrb[9].mxu0  ;;  %v512_v17 = vpop.f32.mrb[9].mxu1 }
 0x107   :  { %387 = vst.msk [vmem:[%s749_s3 + $0x8] sm:$0xf] %vm384_vm0, %v448_v10  ;;  %v449_v18 = vpack.c.bf16 %v321_v11, %v321_v11  ;;  %v489_v19 = vadd.f32 %v488_v16, %v487_v12  ;;  %v490_v20 = vpop.f32.mrb[10].mxu0  ;;  %v457_v21 = vpack.c.bf16 %v329_v14, %v329_v14  ;;  %v513_v22 = vadd.f32 %v512_v17, %v511_v15  ;;  %v514_v23 = vpop.f32.mrb[10].mxu1 }
 0x108   :  { %395 = vst.msk [vmem:[%s749_s3 + $0x28] sm:$0xf] %vm384_vm0, %v456_v13  ;;  %v491_v24 = vpop.f32.mrb[11].mxu0  ;;  %v515_v25 = vpop.f32.mrb[11].mxu1 }
 0x109   :  { %388 = vst.msk [vmem:[%s749_s3 + $0xc] sm:$0xf] %vm384_vm0, %v449_v18  ;;  %v281_v26 = vadd.f32 %v489_v19, %v679_v33  ;;  %396 = vst.msk [vmem:[%s749_s3 + $0x2c] sm:$0xf] %vm384_vm0, %v457_v21  ;;  %v492_v27 = vadd.f32 %v491_v24, %v490_v20  ;;  %v313_v28 = vadd.f32 %v513_v22, %v679_v33 }
 0x10b   :  { %v322_v29 = vmax.f32 %v281_v26, 0.0  ;;  %v284_v30 = vadd.f32 %v492_v27, %v679_v33  ;;  %v330_v31 = vmax.f32 %v313_v28, 0.0 }
 0x10d   :  { %v450_v32 = vpack.c.bf16 %v322_v29, %v322_v29  ;;  %v323_v34 = vmax.f32 %v284_v30, 0.0  ;;  %v493_v35 = vpop.f32.mrb[12].mxu0  ;;  %v458_v36 = vpack.c.bf16 %v330_v31, %v330_v31 }
 0x10e   :  { %v494_v37 = vpop.f32.mrb[13].mxu0 }
 0x10f   :  { %389 = vst.msk [vmem:[%s749_s3 + $0x10] sm:$0xf] %vm384_vm0, %v450_v32  ;;  %v451_v38 = vpack.c.bf16 %v323_v34, %v323_v34  ;;  %397 = vst.msk [vmem:[%s749_s3 + $0x30] sm:$0xf] %vm384_vm0, %v458_v36  ;;  %v495_v39 = vadd.f32 %v494_v37, %v493_v35  ;;  %v496_v40 = vpop.f32.mrb[14].mxu0 }
 0x110   :  { %v497_v41 = vpop.f32.mrb[15].mxu0 }
 0x111   :  { %390 = vst.msk [vmem:[%s749_s3 + $0x14] sm:$0xf] %vm384_vm0, %v451_v38  ;;  %v289_v42 = vadd.f32 %v495_v39, %v679_v33  ;;  %v498_v43 = vadd.f32 %v497_v41, %v496_v40 }
 0x113   :  { %v324_v44 = vmax.f32 %v289_v42, 0.0  ;;  %v292_v45 = vadd.f32 %v498_v43, %v679_v33 }
 0x115   :  { %v452_v46 = vpack.c.bf16 %v324_v44, %v324_v44  ;;  %v325_v47 = vmax.f32 %v292_v45, 0.0 }
 0x117   :  { %391 = vst.msk [vmem:[%s749_s3 + $0x18] sm:$0xf] %vm384_vm0, %v452_v46  ;;  %v453_v48 = vpack.c.bf16 %v325_v47, %v325_v47 }
 0x119   :  { %392 = vst.msk [vmem:[%s749_s3 + $0x1c] sm:$0xf] %vm384_vm0, %v453_v48 }

// kernel: squeezenet_forward.26
= control target key start
LH: loop header
LB: loop body
LE: loop exit
PB: predicated region body
PF: predicated region fallthrough
CT: control target
= control target key end

     0   :  { %v940_v1 = vmov 0   ;;  %vm369_vm0 = vcmask 261120   ;;  %s1269_s1 = inlined_call_operand.vmem [shape: bf16[288,256], index: 1, kind: input, shape index: {}]   ;;  %s1270_s0 = inlined_call_operand.vmem [shape: bf16[98,288], index: 0, kind: input, shape index: {}]   ;;  %s1271_s2 = inlined_call_operand.vmem [shape: f32[1,256], index: 2, kind: input, shape index: {}]   ;;  %s1272_s3 = inlined_call_operand.vmem [shape: bf16[98,256], index: 3, kind: output, shape index: {}]  }
   0x1   :  { %v859_v0 = vld [vmem:[%s1269_s1 + $0x4] ss:$8 sps:$4 sm:$0xff]   ;;  %524 = vmatprep.mubr.bf16.mxu0 %v940_v1  ;;  %v861_v2 = vld [vmem:[%s1269_s1] ss:$8 sps:$4 sm:$0xff]   ;;  %v862_v3 = vld [vmem:[%s1269_s1 + $0x14] ss:$8 sps:$4 sm:$0xff]  }
   0x2   :  { %391 = vmatprep.subr.bf16.mxu1 %v859_v0  ;;  %v864_v4 = vld [vmem:[%s1269_s1 + $0x10] ss:$8 sps:$4 sm:$0xff]   ;;  %v865_v5 = vld [vmem:[%s1269_s1 + $0x24] ss:$8 sps:$4 sm:$0xff]   ;;  %v867_v6 = vld [vmem:[%s1269_s1 + $0x20] ss:$8 sps:$4 sm:$0xff]  }
   0x3   :  { %392 = vmatpush1.bf16.msra.mxu1 %v861_v2  ;;  %v868_v7 = vld [vmem:[%s1269_s1 + $0x34] ss:$8 sps:$4 sm:$0xff]   ;;  %v870_v8 = vld [vmem:[%s1269_s1 + $0x30] ss:$8 sps:$4 sm:$0xff]   ;;  %v871_v9 = vld [vmem:[%s1269_s1 + $0x44] ss:$8 sps:$4 sm:$0xff]  }
   0x4   :  { %393 = vmatprep.subr.bf16.mxu1 %v862_v3  ;;  %v873_v10 = vld [vmem:[%s1269_s1 + $0x40] ss:$8 sps:$4 sm:$0xff]   ;;  %v874_v11 = vld [vmem:[%s1269_s1 + $0x54] ss:$8 sps:$4 sm:$0xff]   ;;  %v876_v12 = vld [vmem:[%s1269_s1 + $0x50] ss:$8 sps:$4 sm:$0xff]  }
   0x5   :  { %v901_v13 = vld [vmem:[%s1269_s1 + $0x104] ss:$8 sps:$4 sm:$0xff]   ;;  %v905_v15 = vld [vmem:[%s1269_s1 + $0x100] ss:$8 sps:$4 sm:$0xff]   ;;  %v907_v16 = vld [vmem:[%s1269_s1 + $0x114] ss:$8 sps:$4 sm:$0xff]  }
   0x6   :  { %v877_v14 = vld [vmem:[%s1269_s1 + $0x64] ss:$8 sps:$4 sm:$0xff]   ;;  %492 = vmatprep.subr.bf16.mxu0 %v901_v13  ;;  %v879_v17 = vld [vmem:[%s1269_s1 + $0x60] ss:$8 sps:$4 sm:$0xff]   ;;  %v911_v18 = vld [vmem:[%s1269_s1 + $0x110] ss:$8 sps:$4 sm:$0xff]  }
   0x7   :  { %394 = vmatpush1.bf16.msra.mxu1 %v864_v4  ;;  %493 = vmatpush1.bf16.msra.mxu0 %v905_v15  ;;  %v880_v19 = vld [vmem:[%s1269_s1 + $0x74] ss:$8 sps:$4 sm:$0xff]   ;;  %v915_v20 = vld [vmem:[%s1270_s0 + $0x4] ss:$12 sps:$4 sm:$0xff]   ;;  %v885_v24 = vld [vmem:[%s1269_s1 + $0x80] ss:$8 sps:$4 sm:$0xff]  }
   0x8   :  { %395 = vmatprep.subr.bf16.mxu1 %v865_v5  ;;  %494 = vmatprep.subr.bf16.mxu0 %v907_v16  ;;  %v916_v21 = vld [vmem:[%s1270_s0 + $0x8] ss:$12 sps:$4 sm:$0xff]   ;;  %v882_v22 = vld [vmem:[%s1269_s1 + $0x70] ss:$8 sps:$4 sm:$0xff]   ;;  %v883_v23 = vld [vmem:[%s1269_s1 + $0x84] ss:$8 sps:$4 sm:$0xff]  }
   0x9   :  { %423 = vmatprep.mubr.bf16.mxu1 %v915_v20  ;;  %v886_v25 = vld [vmem:[%s1269_s1 + $0x94] ss:$8 sps:$4 sm:$0xff]   ;;  %v919_v26 = vld [vmem:[%s1270_s0 + $0x20] ss:$12 sps:$4 sm:$0xff]   ;;  %v888_v27 = vld [vmem:[%s1269_s1 + $0x90] ss:$8 sps:$4 sm:$0xff]  }
   0xa   :  { %v889_v28 = vld [vmem:[%s1269_s1 + $0xa4] ss:$8 sps:$4 sm:$0xff]   ;;  %v891_v29 = vld [vmem:[%s1269_s1 + $0xa0] ss:$8 sps:$4 sm:$0xff]   ;;  %v892_v30 = vld [vmem:[%s1269_s1 + $0xb4] ss:$8 sps:$4 sm:$0xff]  }
   0xb   :  { %396 = vmatpush1.bf16.msra.mxu1 %v867_v6  ;;  %495 = vmatpush1.bf16.msra.mxu0 %v911_v18  ;;  %v923_v31 = vld [vmem:[%s1270_s0 + $0x38] ss:$12 sps:$4 sm:$0xff]   ;;  %v897_v34 = vld [vmem:[%s1269_s1 + $0xc0] ss:$8 sps:$4 sm:$0xff]   ;;  %v898_v35 = vld [vmem:[%s1269_s1 + $0xd4] ss:$8 sps:$4 sm:$0xff]  }
   0xc   :  { %397 = vmatprep.subr.bf16.mxu1 %v868_v7  ;;  %v894_v32 = vld [vmem:[%s1269_s1 + $0xb0] ss:$8 sps:$4 sm:$0xff]   ;;  %v895_v33 = vld [vmem:[%s1269_s1 + $0xc4] ss:$8 sps:$4 sm:$0xff]   ;;  %v906_v39 = vld [vmem:[%s1269_s1 + $0xe0] ss:$8 sps:$4 sm:$0xff]   ;;  %v79_v7 = vlaneseq }
   0xd   :  { %v927_v36 = vld [vmem:[%s1270_s0 + $0x50] ss:$12 sps:$4 sm:$0xff]   ;;  %v903_v38 = vld [vmem:[%s1269_s1 + $0xe4] ss:$8 sps:$4 sm:$0xff]   ;;  %v931_v41 = vld [vmem:[%s1270_s0 + $0x68] ss:$12 sps:$4 sm:$0xff]  }
   0xe   :  { %773 = vmatmul.mubr.msk.bf16.vlgmr.msra.gmra.mrb[0].mxu0 %vm369_vm0, %v916_v21  ;;  %v900_v37 = vld [vmem:[%s1269_s1 + $0xd0] ss:$8 sps:$4 sm:$0xff]   ;;  %v909_v40 = vld [vmem:[%s1269_s1 + $0xf4] ss:$8 sps:$4 sm:$0xff]   ;;  %v913_v43 = vld [vmem:[%s1270_s0] ss:$12 sps:$4 sm:$0xff]  }
   0xf   :  { %398 = vmatpush1.bf16.msra.mxu1 %v870_v8  ;;  %534 = vmatprep.mubr.bf16.mxu0 %v940_v1  ;;  %v912_v42 = vld [vmem:[%s1269_s1 + $0xf0] ss:$8 sps:$4 sm:$0xff]   ;;  %v917_v44 = vld [vmem:[%s1270_s0 + $0x1c] ss:$12 sps:$4 sm:$0xff]   ;;  %v935_v45 = vld [vmem:[%s1270_s0 + $0x80] ss:$12 sps:$4 sm:$0xff]  }
  0x10   :  { %399 = vmatprep.subr.bf16.mxu1 %v871_v9  ;;  %v920_v46 = vld [vmem:[%s1270_s0 + $0x18] ss:$12 sps:$4 sm:$0xff]   ;;  %v921_v47 = vld [vmem:[%s1270_s0 + $0x34] ss:$12 sps:$4 sm:$0xff]   ;;  %v924_v49 = vld [vmem:[%s1270_s0 + $0x30] ss:$12 sps:$4 sm:$0xff]  }
  0x11   :  { %v938_v48 = vld [vmem:[%s1270_s0 + $0x98] ss:$0 sps:$4 sm:$0xff]   ;;  %v928_v51 = vld [vmem:[%s1270_s0 + $0x48] ss:$12 sps:$4 sm:$0xff]   ;;  %v929_v52 = vld [vmem:[%s1270_s0 + $0x64] ss:$12 sps:$4 sm:$0xff]  }
  0x12   :  { %v925_v50 = vld [vmem:[%s1270_s0 + $0x4c] ss:$12 sps:$4 sm:$0xff]   ;;  %v933_v54 = vld [vmem:[%s1270_s0 + $0x7c] ss:$12 sps:$4 sm:$0xff]   ;;  %v39_v55 = vld [vmem:[%s1270_s0 + $0x90] sm:$0xff] }
  0x13   :  { %400 = vmatpush1.bf16.msra.mxu1 %v873_v10  ;;  %v932_v53 = vld [vmem:[%s1270_s0 + $0x60] ss:$12 sps:$4 sm:$0xff]   ;;  %v936_v56 = vld [vmem:[%s1270_s0 + $0x78] ss:$12 sps:$4 sm:$0xff]   ;;  %v735_v57 = vcombine.high %v39_v55, %v39_v55  ;;  %v734_v58 = vcombine.low %v39_v55, %v39_v55  ;;  %v80_v10 = vshrl.u32 %v79_v7, 7 }
  0x14   :  { %401 = vmatprep.subr.bf16.mxu1 %v874_v11 }
  0x15   :  { %v81_v13 = vsub.s32 0, %v80_v10  ;;  %v85_v15 = vsub.s32 1, %v80_v10 }
  0x16   :  { %774 = vmatmul.mubr.msk.bf16.gmra.mrb[4].mxu0 %vm369_vm0, %v919_v26 }
  0x17   :  { %402 = vmatpush1.bf16.msra.mxu1 %v876_v12  ;;  %544 = vmatprep.mubr.bf16.mxu0 %v940_v1 }
  0x18   :  { %403 = vmatprep.subr.bf16.mxu1 %v877_v14  ;;  %v77_v14 = vld [vmem:[%s1271_s2] sm:$0x3] }
  0x19   :  { %v1166_v18 = vrot.slane %v77_v14, %v81_v13  ;;  %v1170_v20 = vrot.slane %v77_v14, %v85_v15 }
  0x1b   :  { %404 = vmatpush1.bf16.msra.mxu1 %v879_v17 }
  0x1c   :  { %405 = vmatprep.subr.bf16.mxu1 %v880_v19 }
  0x1e   :  { %775 = vmatmul.mubr.msk.bf16.gmra.mrb[8].mxu0 %vm369_vm0, %v923_v31 }
  0x1f   :  { %406 = vmatpush1.bf16.msra.mxu1 %v882_v22  ;;  %554 = vmatprep.mubr.bf16.mxu0 %v940_v1 }
  0x20   :  { %407 = vmatprep.subr.bf16.mxu1 %v883_v23 }
  0x23   :  { %408 = vmatpush1.bf16.msra.mxu1 %v885_v24 }
  0x24   :  { %409 = vmatprep.subr.bf16.mxu1 %v886_v25 }
  0x26   :  { %776 = vmatmul.mubr.msk.bf16.gmra.mrb[12].mxu0 %vm369_vm0, %v927_v36 }
  0x27   :  { %410 = vmatpush1.bf16.msra.mxu1 %v888_v27  ;;  %564 = vmatprep.mubr.bf16.mxu0 %v940_v1 }
  0x28   :  { %411 = vmatprep.subr.bf16.mxu1 %v889_v28 }
  0x2b   :  { %412 = vmatpush1.bf16.msra.mxu1 %v891_v29 }
  0x2c   :  { %413 = vmatprep.subr.bf16.mxu1 %v892_v30 }
  0x2e   :  { %777 = vmatmul.mubr.msk.bf16.gmra.mrb[16].mxu0 %vm369_vm0, %v931_v41 }
  0x2f   :  { %414 = vmatpush1.bf16.msra.mxu1 %v894_v32  ;;  %574 = vmatprep.mubr.bf16.mxu0 %v940_v1 }
  0x30   :  { %415 = vmatprep.subr.bf16.mxu1 %v895_v33 }
  0x33   :  { %416 = vmatpush1.bf16.msra.mxu1 %v897_v34 }
  0x34   :  { %417 = vmatprep.subr.bf16.mxu1 %v898_v35 }
  0x36   :  { %778 = vmatmul.mubr.msk.bf16.gmra.mrb[20].mxu0 %vm369_vm0, %v935_v45 }
  0x37   :  { %418 = vmatpush1.bf16.msra.mxu1 %v900_v37  ;;  %584 = vmatprep.mubr.bf16.mxu0 %v940_v1 }
  0x38   :  { %419 = vmatprep.subr.bf16.mxu1 %v903_v38 }
  0x3b   :  { %420 = vmatpush1.bf16.msra.mxu1 %v906_v39 }
  0x3c   :  { %421 = vmatprep.subr.bf16.mxu1 %v909_v40 }
  0x3e   :  { %779 = vmatmul.mubr.msk.bf16.gmra.mrb[24].mxu0 %vm369_vm0, %v938_v48 }
  0x3f   :  { %422 = vmatpush1.bf16.msra.mxu1 %v912_v42 }
  0x42   :  { %424 = vmatmul.mubr.bf16.vlgmr.msra.gmra.mrb[0].mxu1 %v913_v43 }
  0x43   :  { %433 = vmatprep.mubr.bf16.mxu1 %v917_v44 }
  0x4a   :  { %434 = vmatmul.mubr.bf16.gmra.mrb[4].mxu1 %v920_v46 }
  0x4b   :  { %443 = vmatprep.mubr.bf16.mxu1 %v921_v47 }
  0x52   :  { %444 = vmatmul.mubr.bf16.gmra.mrb[8].mxu1 %v924_v49 }
  0x53   :  { %453 = vmatprep.mubr.bf16.mxu1 %v925_v50 }
  0x5a   :  { %454 = vmatmul.mubr.bf16.gmra.mrb[12].mxu1 %v928_v51 }
  0x5b   :  { %463 = vmatprep.mubr.bf16.mxu1 %v929_v52 }
  0x62   :  { %464 = vmatmul.mubr.bf16.gmra.mrb[16].mxu1 %v932_v53 }
  0x63   :  { %473 = vmatprep.mubr.bf16.mxu1 %v933_v54 }
  0x6a   :  { %474 = vmatmul.mubr.bf16.gmra.mrb[20].mxu1 %v936_v56 }
  0x6b   :  { %483 = vmatprep.mubr.bf16.mxu1 %v735_v57 }
  0x72   :  { %484 = vmatmul.mubr.bf16.gmra.mrb[24].mxu1 %v734_v58 }
  0xe1   :  { %v526_v59 = vpop.f32.mrb[0].mxu0 }
  0xe2   :  { %v528_v60 = vpop.f32.mrb[1].mxu0 }
  0xe3   :  { %v530_v61 = vpop.f32.mrb[2].mxu0 }
  0xe4   :  { %v532_v62 = vpop.f32.mrb[3].mxu0 }
  0xe9   :  { %v536_v63 = vpop.f32.mrb[4].mxu0 }
  0xea   :  { %v538_v0 = vpop.f32.mrb[5].mxu0 }
  0xeb   :  { %v540_v1 = vpop.f32.mrb[6].mxu0 }
  0xec   :  { %v542_v2 = vpop.f32.mrb[7].mxu0 }
  0xf1   :  { %v1143_v3 = vpop.f32.mrb[8].mxu0 }
  0xf2   :  { %v1145_v4 = vpop.f32.mrb[9].mxu0 }
  0xf3   :  { %v1147_v5 = vpop.f32.mrb[10].mxu0 }
  0xf4   :  { %v1149_v6 = vpop.f32.mrb[11].mxu0 }
  0xf9   :  { %v1151_v8 = vpop.f32.mrb[12].mxu0 }
  0xfa   :  { %v1153_v9 = vpop.f32.mrb[13].mxu0 }
  0xfb   :  { %v1155_v11 = vpop.f32.mrb[14].mxu0 }
  0xfc   :  { %v1157_v12 = vpop.f32.mrb[15].mxu0 }
 0x101   :  { %v1162_v16 = vpop.f32.mrb[16].mxu0 }
 0x102   :  { %v1164_v17 = vpop.f32.mrb[17].mxu0 }
 0x103   :  { %v1168_v19 = vpop.f32.mrb[18].mxu0 }
 0x104   :  { %v1172_v21 = vpop.f32.mrb[19].mxu0 }
 0x109   :  { %v1177_v30 = vpop.f32.mrb[20].mxu0 }
 0x10a   :  { %v1180_v33 = vpop.f32.mrb[21].mxu0 }
 0x10b   :  { %v1182_v36 = vpop.f32.mrb[22].mxu0 }
 0x10c   :  { %v1184_v39 = vpop.f32.mrb[23].mxu0 }
 0x111   :  { %v1192_v52 = vpop.f32.mrb[24].mxu0 }
 0x112   :  { %v1198_v55 = vpop.f32.mrb[25].mxu0 }
 0x113   :  { %v590_v58 = vpop.f32.mrb[26].mxu0 }
 0x115   :  { %v425_v22 = vpop.f32.mrb[0].mxu1 }
 0x116   :  { %v426_v23 = vadd.f32 %v425_v22, %v1166_v18  ;;  %v427_v24 = vpop.f32.mrb[1].mxu1 }
 0x117   :  { %v428_v25 = vadd.f32 %v427_v24, %v1170_v20  ;;  %v429_v26 = vpop.f32.mrb[2].mxu1 }
 0x118   :  { %v527_v27 = vadd.f32 %v526_v59, %v426_v23  ;;  %v430_v28 = vadd.f32 %v429_v26, %v1166_v18  ;;  %v431_v29 = vpop.f32.mrb[3].mxu1 }
 0x119   :  { %v529_v31 = vadd.f32 %v528_v60, %v428_v25  ;;  %v432_v32 = vadd.f32 %v431_v29, %v1170_v20 }
 0x11a   :  { %v593_v34 = vmax.f32 %v527_v27, 0.0  ;;  %v531_v35 = vadd.f32 %v530_v61, %v430_v28  ;;  %v591_v61 = vpop.f32.mrb[27].mxu0 }
 0x11b   :  { %v594_v37 = vmax.f32 %v529_v31, 0.0  ;;  %v533_v38 = vadd.f32 %v532_v62, %v432_v32 }
 0x11c   :  { %v595_v40 = vmax.f32 %v531_v35, 0.0 }
 0x11d   :  { %v793_v41 = vpack.c.bf16 %v594_v37, %v593_v34  ;;  %v596_v42 = vmax.f32 %v533_v38, 0.0  ;;  %v435_v43 = vpop.f32.mrb[4].mxu1 }
 0x11e   :  { %v436_v44 = vadd.f32 %v435_v43, %v1166_v18  ;;  %v437_v45 = vpop.f32.mrb[5].mxu1 }
 0x11f   :  { %699 = vst [vmem:[%s1272_s3] sm:$0xff] %v793_v41  ;;  %v794_v46 = vpack.c.bf16 %v596_v42, %v595_v40  ;;  %v438_v47 = vadd.f32 %v437_v45, %v1170_v20  ;;  %v439_v48 = vpop.f32.mrb[6].mxu1 }
 0x120   :  { %v537_v49 = vadd.f32 %v536_v63, %v436_v44  ;;  %v440_v50 = vadd.f32 %v439_v48, %v1166_v18  ;;  %v441_v51 = vpop.f32.mrb[7].mxu1 }
 0x121   :  { %700 = vst [vmem:[%s1272_s3 + $0x8] sm:$0xff] %v794_v46  ;;  %v539_v53 = vadd.f32 %v538_v0, %v438_v47  ;;  %v442_v54 = vadd.f32 %v441_v51, %v1170_v20 }
 0x122   :  { %v597_v56 = vmax.f32 %v537_v49, 0.0  ;;  %v541_v57 = vadd.f32 %v540_v1, %v440_v50 }
 0x123   :  { %v598_v59 = vmax.f32 %v539_v53, 0.0  ;;  %v543_v60 = vadd.f32 %v542_v2, %v442_v54 }
 0x124   :  { %v599_v62 = vmax.f32 %v541_v57, 0.0 }
 0x125   :  { %v795_v63 = vpack.c.bf16 %v598_v59, %v597_v56  ;;  %v600_v7 = vmax.f32 %v543_v60, 0.0  ;;  %v445_v10 = vpop.f32.mrb[8].mxu1 }
 0x126   :  { %v446_v13 = vadd.f32 %v445_v10, %v1166_v18  ;;  %v447_v14 = vpop.f32.mrb[9].mxu1 }
 0x127   :  { %701 = vst [vmem:[%s1272_s3 + $0x10] sm:$0xff] %v795_v63  ;;  %v796_v0 = vpack.c.bf16 %v600_v7, %v599_v62  ;;  %v448_v15 = vadd.f32 %v447_v14, %v1170_v20  ;;  %v449_v22 = vpop.f32.mrb[10].mxu1 }
 0x128   :  { %v547_v1 = vadd.f32 %v1143_v3, %v446_v13  ;;  %v450_v2 = vadd.f32 %v449_v22, %v1166_v18  ;;  %v451_v23 = vpop.f32.mrb[11].mxu1 }
 0x129   :  { %702 = vst [vmem:[%s1272_s3 + $0x18] sm:$0xff] %v796_v0  ;;  %v549_v24 = vadd.f32 %v1145_v4, %v448_v15  ;;  %v452_v25 = vadd.f32 %v451_v23, %v1170_v20 }
 0x12a   :  { %v601_v26 = vmax.f32 %v547_v1, 0.0  ;;  %v551_v27 = vadd.f32 %v1147_v5, %v450_v2 }
 0x12b   :  { %v602_v28 = vmax.f32 %v549_v24, 0.0  ;;  %v553_v29 = vadd.f32 %v1149_v6, %v452_v25 }
 0x12c   :  { %v603_v31 = vmax.f32 %v551_v27, 0.0 }
 0x12d   :  { %v797_v32 = vpack.c.bf16 %v602_v28, %v601_v26  ;;  %v604_v3 = vmax.f32 %v553_v29, 0.0  ;;  %v455_v34 = vpop.f32.mrb[12].mxu1 }
 0x12e   :  { %v456_v35 = vadd.f32 %v455_v34, %v1166_v18  ;;  %v457_v37 = vpop.f32.mrb[13].mxu1 }
 0x12f   :  { %703 = vst [vmem:[%s1272_s3 + $0x20] sm:$0xff] %v797_v32  ;;  %v798_v4 = vpack.c.bf16 %v604_v3, %v603_v31  ;;  %v458_v38 = vadd.f32 %v457_v37, %v1170_v20  ;;  %v459_v40 = vpop.f32.mrb[14].mxu1 }
 0x130   :  { %v557_v5 = vadd.f32 %v1151_v8, %v456_v35  ;;  %v460_v41 = vadd.f32 %v459_v40, %v1166_v18  ;;  %v461_v6 = vpop.f32.mrb[15].mxu1 }
 0x131   :  { %704 = vst [vmem:[%s1272_s3 + $0x28] sm:$0xff] %v798_v4  ;;  %v559_v42 = vadd.f32 %v1153_v9, %v458_v38  ;;  %v462_v43 = vadd.f32 %v461_v6, %v1170_v20 }
 0x132   :  { %v605_v44 = vmax.f32 %v557_v5, 0.0  ;;  %v561_v45 = vadd.f32 %v1155_v11, %v460_v41 }
 0x133   :  { %v606_v46 = vmax.f32 %v559_v42, 0.0  ;;  %v563_v47 = vadd.f32 %v1157_v12, %v462_v43 }
 0x134   :  { %v607_v48 = vmax.f32 %v561_v45, 0.0 }
 0x135   :  { %v799_v49 = vpack.c.bf16 %v606_v46, %v605_v44  ;;  %v608_v8 = vmax.f32 %v563_v47, 0.0  ;;  %v465_v50 = vpop.f32.mrb[16].mxu1 }
 0x136   :  { %v466_v51 = vadd.f32 %v465_v50, %v1166_v18  ;;  %v467_v53 = vpop.f32.mrb[17].mxu1 }
 0x137   :  { %705 = vst [vmem:[%s1272_s3 + $0x30] sm:$0xff] %v799_v49  ;;  %v800_v9 = vpack.c.bf16 %v608_v8, %v607_v48  ;;  %v468_v54 = vadd.f32 %v467_v53, %v1170_v20  ;;  %v469_v56 = vpop.f32.mrb[18].mxu1 }
 0x138   :  { %v567_v11 = vadd.f32 %v1162_v16, %v466_v51  ;;  %v470_v57 = vadd.f32 %v469_v56, %v1166_v18  ;;  %v471_v12 = vpop.f32.mrb[19].mxu1 }
 0x139   :  { %706 = vst [vmem:[%s1272_s3 + $0x38] sm:$0xff] %v800_v9  ;;  %v569_v58 = vadd.f32 %v1164_v17, %v468_v54  ;;  %v472_v59 = vadd.f32 %v471_v12, %v1170_v20 }
 0x13a   :  { %v609_v60 = vmax.f32 %v567_v11, 0.0  ;;  %v571_v61 = vadd.f32 %v1168_v19, %v470_v57 }
 0x13b   :  { %v610_v62 = vmax.f32 %v569_v58, 0.0  ;;  %v573_v63 = vadd.f32 %v1172_v21, %v472_v59 }
 0x13c   :  { %v611_v7 = vmax.f32 %v571_v61, 0.0 }
 0x13d   :  { %v801_v10 = vpack.c.bf16 %v610_v62, %v609_v60  ;;  %v612_v16 = vmax.f32 %v573_v63, 0.0  ;;  %v475_v13 = vpop.f32.mrb[20].mxu1 }
 0x13e   :  { %v476_v14 = vadd.f32 %v475_v13, %v1166_v18  ;;  %v477_v0 = vpop.f32.mrb[21].mxu1 }
 0x13f   :  { %707 = vst [vmem:[%s1272_s3 + $0x40] sm:$0xff] %v801_v10  ;;  %v802_v17 = vpack.c.bf16 %v612_v16, %v611_v7  ;;  %v478_v15 = vadd.f32 %v477_v0, %v1170_v20  ;;  %v479_v22 = vpop.f32.mrb[22].mxu1 }
 0x140   :  { %v577_v19 = vadd.f32 %v1177_v30, %v476_v14  ;;  %v480_v1 = vadd.f32 %v479_v22, %v1166_v18  ;;  %v481_v21 = vpop.f32.mrb[23].mxu1 }
 0x141   :  { %708 = vst [vmem:[%s1272_s3 + $0x48] sm:$0xff] %v802_v17  ;;  %v579_v2 = vadd.f32 %v1180_v33, %v478_v15  ;;  %v482_v23 = vadd.f32 %v481_v21, %v1170_v20 }
 0x142   :  { %v613_v24 = vmax.f32 %v577_v19, 0.0  ;;  %v581_v25 = vadd.f32 %v1182_v36, %v480_v1 }
 0x143   :  { %v614_v26 = vmax.f32 %v579_v2, 0.0  ;;  %v583_v27 = vadd.f32 %v1184_v39, %v482_v23 }
 0x144   :  { %v615_v28 = vmax.f32 %v581_v25, 0.0 }
 0x145   :  { %v803_v29 = vpack.c.bf16 %v614_v26, %v613_v24  ;;  %v616_v30 = vmax.f32 %v583_v27, 0.0  ;;  %v485_v31 = vpop.f32.mrb[24].mxu1 }
 0x146   :  { %v486_v32 = vadd.f32 %v485_v31, %v1166_v18  ;;  %v487_v3 = vpop.f32.mrb[25].mxu1 }
 0x147   :  { %709 = vst [vmem:[%s1272_s3 + $0x50] sm:$0xff] %v803_v29  ;;  %v804_v33 = vpack.c.bf16 %v616_v30, %v615_v28  ;;  %v488_v34 = vadd.f32 %v487_v3, %v1170_v20  ;;  %v489_v35 = vpop.f32.mrb[26].mxu1 }
 0x148   :  { %v587_v36 = vadd.f32 %v1192_v52, %v486_v32  ;;  %v490_v37 = vpop.f32.mrb[27].mxu1 }
 0x149   :  { %710 = vst [vmem:[%s1272_s3 + $0x58] sm:$0xff] %v804_v33  ;;  %v589_v39 = vadd.f32 %v1198_v55, %v488_v34 }
 0x14a   :  { %v617_v4 = vmax.f32 %v587_v36, 0.0 }
 0x14b   :  { %v618_v18 = vmax.f32 %v589_v39, 0.0 }
 0x14d   :  { %v805_v38 = vpack.c.bf16 %v618_v18, %v617_v4 }
 0x14f   :  { %711 = vst [vmem:[%s1272_s3 + $0x60] sm:$0xff] %v805_v38 }

// kernel: squeezenet_forward.27
= control target key start
LH: loop header
LB: loop body
LE: loop exit
PB: predicated region body
PF: predicated region fallthrough
CT: control target
= control target key end

     0   :  { %vm384_vm0 = vcmask 388096   ;;  %s746_s1 = inlined_call_operand.vmem [shape: bf16[256,48], index: 1, kind: input, shape index: {}]   ;;  %s747_s0 = inlined_call_operand.vmem [shape: bf16[98,256], index: 0, kind: input, shape index: {}]   ;;  %s748_s2 = inlined_call_operand.vmem [shape: f32[1,48], index: 2, kind: input, shape index: {}]   ;;  %s749_s3 = inlined_call_operand.vmem [shape: bf16[98,48], index: 3, kind: output, shape index: {}]  }
   0x1   :  { %v533_v0 = vld [vmem:[%s746_s1 + $0x40] sm:$0xff]   ;;  %v535_v2 = vld [vmem:[%s746_s1 + $0x48] sm:$0xff]   ;;  %v537_v4 = vld [vmem:[%s746_s1 + $0x50] sm:$0xff]  }
   0x2   :  { %v534_v1 = vld [vmem:[%s746_s1] sm:$0xff]   ;;  %459 = vmatprep.subr.bf16.mxu0 %v533_v0  ;;  %517 = vmatprep.subr.bf16.mxu1 %v533_v0  ;;  %v536_v3 = vld [vmem:[%s746_s1 + $0x8] sm:$0xff]   ;;  %v538_v5 = vld [vmem:[%s746_s1 + $0x10] sm:$0xff]  }
   0x3   :  { %460 = vmatpush3.bf16.msra.mxu0 %v534_v1  ;;  %525 = vmatpush3.bf16.msra.mxu1 %v534_v1  ;;  %v539_v6 = vld [vmem:[%s746_s1 + $0x58] sm:$0xff]   ;;  %v541_v8 = vld [vmem:[%s746_s1 + $0x60] sm:$0xff]   ;;  %v543_v10 = vld [vmem:[%s746_s1 + $0x68] sm:$0xff]  }
   0x4   :  { %461 = vmatprep.subr.bf16.mxu0 %v535_v2  ;;  %518 = vmatprep.subr.bf16.mxu1 %v535_v2  ;;  %v540_v7 = vld [vmem:[%s746_s1 + $0x18] sm:$0xff]   ;;  %v542_v9 = vld [vmem:[%s746_s1 + $0x20] sm:$0xff]   ;;  %v544_v13 = vld [vmem:[%s746_s1 + $0x28] sm:$0xff]  }
   0x5   :  { %v551_v11 = vld [vmem:[%s747_s0 + $0x4] ss:$8 sps:$4 sm:$0xff]   ;;  %v545_v14 = vld [vmem:[%s746_s1 + $0x70] sm:$0xff]   ;;  %v547_v16 = vld [vmem:[%s746_s1 + $0x78] sm:$0xff]  }
   0x6   :  { %v554_v12 = vld [vmem:[%s747_s0 + $0x44] ss:$8 sps:$4 sm:$0xff]   ;;  %262 = vmatprep.mubr.bf16.mxu0 %v551_v11  ;;  %v546_v15 = vld [vmem:[%s746_s1 + $0x30] sm:$0xff]   ;;  %v548_v17 = vld [vmem:[%s746_s1 + $0x38] sm:$0xff]  }
   0x7   :  { %462 = vmatpush3.bf16.msra.mxu0 %v536_v3  ;;  %526 = vmatpush3.bf16.msra.mxu1 %v536_v3  ;;  %v549_v18 = vld [vmem:[%s747_s0] ss:$8 sps:$4 sm:$0xff]   ;;  %v555_v20 = vld [vmem:[%s747_s0 + $0x14] ss:$8 sps:$4 sm:$0xff]   ;;  %v557_v23 = vld [vmem:[%s747_s0 + $0x10] ss:$8 sps:$4 sm:$0xff]  }
   0x8   :  { %463 = vmatprep.subr.bf16.mxu0 %v537_v4  ;;  %519 = vmatprep.subr.bf16.mxu1 %v537_v4  ;;  %v552_v19 = vld [vmem:[%s747_s0 + $0x40] ss:$8 sps:$4 sm:$0xff]   ;;  %v558_v21 = vld [vmem:[%s747_s0 + $0x54] ss:$8 sps:$4 sm:$0xff]   ;;  %v562_v24 = vld [vmem:[%s747_s0 + $0x50] ss:$8 sps:$4 sm:$0xff]  }
   0x9   :  { %294 = vmatprep.mubr.bf16.mxu1 %v554_v12  ;;  %v27_v22 = vld [vmem:[%s747_s0 + $0x60] sm:$0xff]  ;;  %v565_v29 = vld [vmem:[%s747_s0 + $0x34] ss:$8 sps:$4 sm:$0xff]   ;;  %v568_v30 = vld [vmem:[%s747_s0 + $0x30] ss:$8 sps:$4 sm:$0xff]  }
   0xa   :  { %v560_v25 = vld [vmem:[%s747_s0 + $0x24] ss:$8 sps:$4 sm:$0xff]   ;;  %v416_v26 = vcombine.high %v27_v22, %v27_v22  ;;  %v563_v27 = vld [vmem:[%s747_s0 + $0x20] ss:$8 sps:$4 sm:$0xff]   ;;  %v415_v28 = vcombine.low %v27_v22, %v27_v22 }
   0xb   :  { %464 = vmatpush3.bf16.msra.mxu0 %v538_v5  ;;  %527 = vmatpush3.bf16.msra.mxu1 %v538_v5  ;;  %v679_v33 = vld [vmem:[%s748_s2] ss:$0 sm:$0xff] }
   0xc   :  { %465 = vmatprep.subr.bf16.mxu0 %v539_v6  ;;  %520 = vmatprep.subr.bf16.mxu1 %v539_v6 }
   0xf   :  { %466 = vmatpush3.bf16.msra.mxu0 %v540_v7  ;;  %528 = vmatpush3.bf16.msra.mxu1 %v540_v7 }
  0x10   :  { %467 = vmatprep.subr.bf16.mxu0 %v541_v8  ;;  %521 = vmatprep.subr.bf16.mxu1 %v541_v8 }
  0x13   :  { %468 = vmatpush3.bf16.msra.mxu0 %v542_v9  ;;  %529 = vmatpush3.bf16.msra.mxu1 %v542_v9 }
  0x14   :  { %469 = vmatprep.subr.bf16.mxu0 %v543_v10  ;;  %522 = vmatprep.subr.bf16.mxu1 %v543_v10 }
  0x17   :  { %470 = vmatpush3.bf16.msra.mxu0 %v544_v13  ;;  %530 = vmatpush3.bf16.msra.mxu1 %v544_v13 }
  0x18   :  { %471 = vmatprep.subr.bf16.mxu0 %v545_v14  ;;  %523 = vmatprep.subr.bf16.mxu1 %v545_v14 }
  0x1b   :  { %472 = vmatpush3.bf16.msra.mxu0 %v546_v15  ;;  %531 = vmatpush3.bf16.msra.mxu1 %v546_v15 }
  0x1c   :  { %473 = vmatprep.subr.bf16.mxu0 %v547_v16  ;;  %524 = vmatprep.subr.bf16.mxu1 %v547_v16 }
  0x1f   :  { %474 = vmatpush3.bf16.msra.mxu0 %v548_v17  ;;  %532 = vmatpush3.bf16.msra.mxu1 %v548_v17 }
  0x22   :  { %263 = vmatmul.mubr.bf16.vlgmr.msra.gmra.mrb[0].mxu0 %v549_v18  ;;  %295 = vmatmul.mubr.bf16.vlgmr.msra.gmra.mrb[0].mxu1 %v552_v19 }
  0x23   :  { %270 = vmatprep.mubr.bf16.mxu0 %v555_v20  ;;  %302 = vmatprep.mubr.bf16.mxu1 %v558_v21 }
  0x2a   :  { %271 = vmatmul.mubr.bf16.gmra.mrb[4].mxu0 %v557_v23  ;;  %303 = vmatmul.mubr.bf16.gmra.mrb[4].mxu1 %v562_v24 }
  0x2b   :  { %278 = vmatprep.mubr.bf16.mxu0 %v560_v25  ;;  %310 = vmatprep.mubr.bf16.mxu1 %v416_v26 }
  0x32   :  { %279 = vmatmul.mubr.bf16.gmra.mrb[8].mxu0 %v563_v27  ;;  %311 = vmatmul.mubr.bf16.gmra.mrb[8].mxu1 %v415_v28 }
  0x33   :  { %286 = vmatprep.mubr.bf16.mxu0 %v565_v29 }
  0x3a   :  { %287 = vmatmul.mubr.bf16.gmra.mrb[12].mxu0 %v568_v30 }
  0xf5   :  { %v475_v31 = vpop.f32.mrb[0].mxu0  ;;  %v499_v32 = vpop.f32.mrb[0].mxu1 }
  0xf6   :  { %v476_v34 = vpop.f32.mrb[1].mxu0  ;;  %v500_v35 = vpop.f32.mrb[1].mxu1 }
  0xf7   :  { %v477_v36 = vadd.f32 %v476_v34, %v475_v31  ;;  %v478_v37 = vpop.f32.mrb[2].mxu0  ;;  %v501_v38 = vadd.f32 %v500_v35, %v499_v32  ;;  %v502_v39 = vpop.f32.mrb[2].mxu1 }
  0xf8   :  { %v479_v40 = vpop.f32.mrb[3].mxu0  ;;  %v503_v41 = vpop.f32.mrb[3].mxu1 }
  0xf9   :  { %v265_v42 = vadd.f32 %v477_v36, %v679_v33  ;;  %v480_v43 = vadd.f32 %v479_v40, %v478_v37  ;;  %v297_v44 = vadd.f32 %v501_v38, %v679_v33  ;;  %v504_v45 = vadd.f32 %v503_v41, %v502_v39 }
  0xfb   :  { %v318_v46 = vmax.f32 %v265_v42, 0.0  ;;  %v268_v47 = vadd.f32 %v480_v43, %v679_v33  ;;  %v326_v48 = vmax.f32 %v297_v44, 0.0  ;;  %v300_v49 = vadd.f32 %v504_v45, %v679_v33 }
  0xfd   :  { %v446_v50 = vpack.c.bf16 %v318_v46, %v318_v46  ;;  %v319_v51 = vmax.f32 %v268_v47, 0.0  ;;  %v481_v52 = vpop.f32.mrb[4].mxu0  ;;  %v454_v53 = vpack.c.bf16 %v326_v48, %v326_v48  ;;  %v327_v54 = vmax.f32 %v300_v49, 0.0  ;;  %v505_v55 = vpop.f32.mrb[4].mxu1 }
  0xfe   :  { %v482_v56 = vpop.f32.mrb[5].mxu0  ;;  %v506_v57 = vpop.f32.mrb[5].mxu1 }
  0xff   :  { %385 = vst.msk [vmem:[%s749_s3] sm:$0xf] %vm384_vm0, %v446_v50  ;;  %v447_v58 = vpack.c.bf16 %v319_v51, %v319_v51  ;;  %393 = vst.msk [vmem:[%s749_s3 + $0x20] sm:$0xf] %vm384_vm0, %v454_v53  ;;  %v483_v59 = vadd.f32 %v482_v56, %v481_v52  ;;  %v484_v60 = vpop.f32.mrb[6].mxu0  ;;  %v455_v61 = vpack.c.bf16 %v327_v54, %v327_v54  ;;  %v508_v63 = vpop.f32.mrb[6].mxu1 }
 0x100   :  { %v507_v62 = vadd.f32 %v506_v57, %v505_v55  ;;  %v485_v0 = vpop.f32.mrb[7].mxu0  ;;  %v509_v1 = vpop.f32.mrb[7].mxu1 }
 0x101   :  { %386 = vst.msk [vmem:[%s749_s3 + $0x4] sm:$0xf] %vm384_vm0, %v447_v58  ;;  %v273_v2 = vadd.f32 %v483_v59, %v679_v33  ;;  %394 = vst.msk [vmem:[%s749_s3 + $0x24] sm:$0xf] %vm384_vm0, %v455_v61  ;;  %v486_v3 = vadd.f32 %v485_v0, %v484_v60  ;;  %v510_v5 = vadd.f32 %v509_v1, %v508_v63 }
 0x102   :  { %v305_v4 = vadd.f32 %v507_v62, %v679_v33 }
 0x103   :  { %v320_v6 = vmax.f32 %v273_v2, 0.0  ;;  %v276_v7 = vadd.f32 %v486_v3, %v679_v33  ;;  %v308_v9 = vadd.f32 %v510_v5, %v679_v33 }
 0x104   :  { %v328_v8 = vmax.f32 %v305_v4, 0.0 }
 0x105   :  { %v448_v10 = vpack.c.bf16 %v320_v6, %v320_v6  ;;  %v321_v11 = vmax.f32 %v276_v7, 0.0  ;;  %v487_v12 = vpop.f32.mrb[8].mxu0  ;;  %v329_v14 = vmax.f32 %v308_v9, 0.0  ;;  %v511_v15 = vpop.f32.mrb[8].mxu1 }
 0x106   :  { %v456_v13 = vpack.c.bf16 %v328_v8, %v328_v8  ;;  %v488_v16 = vpop.f32.mrb[9].mxu0  ;;  %v512_v17 = vpop.f32.mrb[9].mxu1 }
 0x107   :  { %387 = vst.msk [vmem:[%s749_s3 + $0x8] sm:$0xf] %vm384_vm0, %v448_v10  ;;  %v449_v18 = vpack.c.bf16 %v321_v11, %v321_v11  ;;  %v489_v19 = vadd.f32 %v488_v16, %v487_v12  ;;  %v490_v20 = vpop.f32.mrb[10].mxu0  ;;  %v457_v21 = vpack.c.bf16 %v329_v14, %v329_v14  ;;  %v513_v22 = vadd.f32 %v512_v17, %v511_v15  ;;  %v514_v23 = vpop.f32.mrb[10].mxu1 }
 0x108   :  { %395 = vst.msk [vmem:[%s749_s3 + $0x28] sm:$0xf] %vm384_vm0, %v456_v13  ;;  %v491_v24 = vpop.f32.mrb[11].mxu0  ;;  %v515_v25 = vpop.f32.mrb[11].mxu1 }
 0x109   :  { %388 = vst.msk [vmem:[%s749_s3 + $0xc] sm:$0xf] %vm384_vm0, %v449_v18  ;;  %v281_v26 = vadd.f32 %v489_v19, %v679_v33  ;;  %396 = vst.msk [vmem:[%s749_s3 + $0x2c] sm:$0xf] %vm384_vm0, %v457_v21  ;;  %v492_v27 = vadd.f32 %v491_v24, %v490_v20  ;;  %v313_v28 = vadd.f32 %v513_v22, %v679_v33 }
 0x10b   :  { %v322_v29 = vmax.f32 %v281_v26, 0.0  ;;  %v284_v30 = vadd.f32 %v492_v27, %v679_v33  ;;  %v330_v31 = vmax.f32 %v313_v28, 0.0 }
 0x10d   :  { %v450_v32 = vpack.c.bf16 %v322_v29, %v322_v29  ;;  %v323_v34 = vmax.f32 %v284_v30, 0.0  ;;  %v493_v35 = vpop.f32.mrb[12].mxu0  ;;  %v458_v36 = vpack.c.bf16 %v330_v31, %v330_v31 }
 0x10e   :  { %v494_v37 = vpop.f32.mrb[13].mxu0 }
 0x10f   :  { %389 = vst.msk [vmem:[%s749_s3 + $0x10] sm:$0xf] %vm384_vm0, %v450_v32  ;;  %v451_v38 = vpack.c.bf16 %v323_v34, %v323_v34  ;;  %397 = vst.msk [vmem:[%s749_s3 + $0x30] sm:$0xf] %vm384_vm0, %v458_v36  ;;  %v495_v39 = vadd.f32 %v494_v37, %v493_v35  ;;  %v496_v40 = vpop.f32.mrb[14].mxu0 }
 0x110   :  { %v497_v41 = vpop.f32.mrb[15].mxu0 }
 0x111   :  { %390 = vst.msk [vmem:[%s749_s3 + $0x14] sm:$0xf] %vm384_vm0, %v451_v38  ;;  %v289_v42 = vadd.f32 %v495_v39, %v679_v33  ;;  %v498_v43 = vadd.f32 %v497_v41, %v496_v40 }
 0x113   :  { %v324_v44 = vmax.f32 %v289_v42, 0.0  ;;  %v292_v45 = vadd.f32 %v498_v43, %v679_v33 }
 0x115   :  { %v452_v46 = vpack.c.bf16 %v324_v44, %v324_v44  ;;  %v325_v47 = vmax.f32 %v292_v45, 0.0 }
 0x117   :  { %391 = vst.msk [vmem:[%s749_s3 + $0x18] sm:$0xf] %vm384_vm0, %v452_v46  ;;  %v453_v48 = vpack.c.bf16 %v325_v47, %v325_v47 }
 0x119   :  { %392 = vst.msk [vmem:[%s749_s3 + $0x1c] sm:$0xf] %vm384_vm0, %v453_v48 }

// kernel: squeezenet_forward.28
= control target key start
LH: loop header
LB: loop body
LE: loop exit
PB: predicated region body
PF: predicated region fallthrough
CT: control target
= control target key end

     0   :  { %v1763_v38 = vmov 0   ;;  %vm725_vm0 = vcmask 392192   ;;  %s2338_s1 = inlined_call_operand.vmem [shape: bf16[432,384], index: 1, kind: input, shape index: {}]   ;;  %s2339_s0 = inlined_call_operand.vmem [shape: bf16[98,432], index: 0, kind: input, shape index: {}]   ;;  %s2340_s2 = inlined_call_operand.vmem [shape: f32[1,384], index: 2, kind: input, shape index: {}]   ;;  %s2341_s3 = inlined_call_operand.vmem [shape: bf16[98,384], index: 3, kind: output, shape index: {}]  }
   0x1   :  { %v1615_v0 = vld [vmem:[%s2338_s1 + $0x4] ss:$12 sps:$4 sm:$0xff]   ;;  %v1617_v1 = vld [vmem:[%s2338_s1 + $0xc8] ss:$12 sps:$4 sm:$0xff]   ;;  %v1618_v2 = vld [vmem:[%s2338_s1] ss:$12 sps:$4 sm:$0xff]  }
   0x2   :  { %747 = vmatprep.subr.bf16.mxu0 %v1615_v0  ;;  %1502 = vmatprep.subr.bf16.mxu1 %v1617_v1  ;;  %v1619_v3 = vld [vmem:[%s2338_s1 + $0x8] ss:$12 sps:$4 sm:$0xff]   ;;  %v1622_v5 = vld [vmem:[%s2338_s1 + $0xe0] ss:$12 sps:$4 sm:$0xff]   ;;  %v1623_v6 = vld [vmem:[%s2338_s1 + $0x18] ss:$12 sps:$4 sm:$0xff]  }
   0x3   :  { %748 = vmatpush1.bf16.msra.mxu0 %v1618_v2  ;;  %v1620_v4 = vld [vmem:[%s2338_s1 + $0x1c] ss:$12 sps:$4 sm:$0xff]   ;;  %1503 = vmatpush3.bf16.msra.mxu1 %v1619_v3  ;;  %v1624_v7 = vld [vmem:[%s2338_s1 + $0x20] ss:$12 sps:$4 sm:$0xff]   ;;  %v1627_v9 = vld [vmem:[%s2338_s1 + $0xf8] ss:$12 sps:$4 sm:$0xff]  }
   0x4   :  { %749 = vmatprep.subr.bf16.mxu0 %v1620_v4  ;;  %1504 = vmatprep.subr.bf16.mxu1 %v1622_v5  ;;  %v1625_v8 = vld [vmem:[%s2338_s1 + $0x34] ss:$12 sps:$4 sm:$0xff]   ;;  %v1628_v10 = vld [vmem:[%s2338_s1 + $0x30] ss:$12 sps:$4 sm:$0xff]   ;;  %v1629_v11 = vld [vmem:[%s2338_s1 + $0x38] ss:$12 sps:$4 sm:$0xff]  }
   0x5   :  { %v1630_v12 = vld [vmem:[%s2338_s1 + $0x4c] ss:$12 sps:$4 sm:$0xff]   ;;  %v1632_v13 = vld [vmem:[%s2338_s1 + $0x110] ss:$12 sps:$4 sm:$0xff]   ;;  %v1633_v14 = vld [vmem:[%s2338_s1 + $0x48] ss:$12 sps:$4 sm:$0xff]  }
   0x6   :  { %v1634_v15 = vld [vmem:[%s2338_s1 + $0x50] ss:$12 sps:$4 sm:$0xff]   ;;  %v1637_v17 = vld [vmem:[%s2338_s1 + $0x128] ss:$12 sps:$4 sm:$0xff]   ;;  %v1638_v18 = vld [vmem:[%s2338_s1 + $0x60] ss:$12 sps:$4 sm:$0xff]  }
   0x7   :  { %750 = vmatpush1.bf16.msra.mxu0 %v1623_v6  ;;  %1505 = vmatpush3.bf16.msra.mxu1 %v1624_v7  ;;  %v1635_v16 = vld [vmem:[%s2338_s1 + $0x64] ss:$12 sps:$4 sm:$0xff]   ;;  %v1639_v19 = vld [vmem:[%s2338_s1 + $0x68] ss:$12 sps:$4 sm:$0xff]   ;;  %v1642_v21 = vld [vmem:[%s2338_s1 + $0x140] ss:$12 sps:$4 sm:$0xff]  }
   0x8   :  { %751 = vmatprep.subr.bf16.mxu0 %v1625_v8  ;;  %1506 = vmatprep.subr.bf16.mxu1 %v1627_v9  ;;  %v1640_v20 = vld [vmem:[%s2338_s1 + $0x7c] ss:$12 sps:$4 sm:$0xff]   ;;  %v1643_v22 = vld [vmem:[%s2338_s1 + $0x78] ss:$12 sps:$4 sm:$0xff]   ;;  %v1644_v23 = vld [vmem:[%s2338_s1 + $0x80] ss:$12 sps:$4 sm:$0xff]  }
   0x9   :  { %v1645_v24 = vld [vmem:[%s2338_s1 + $0x94] ss:$12 sps:$4 sm:$0xff]   ;;  %v1647_v25 = vld [vmem:[%s2338_s1 + $0x158] ss:$12 sps:$4 sm:$0xff]   ;;  %v1648_v26 = vld [vmem:[%s2338_s1 + $0x90] ss:$12 sps:$4 sm:$0xff]  }
   0xa   :  { %v1649_v27 = vld [vmem:[%s2338_s1 + $0x98] ss:$12 sps:$4 sm:$0xff]   ;;  %v1652_v29 = vld [vmem:[%s2338_s1 + $0x170] ss:$12 sps:$4 sm:$0xff]   ;;  %v1653_v30 = vld [vmem:[%s2338_s1 + $0xa8] ss:$12 sps:$4 sm:$0xff]  }
   0xb   :  { %752 = vmatpush1.bf16.msra.mxu0 %v1628_v10  ;;  %1507 = vmatpush3.bf16.msra.mxu1 %v1629_v11  ;;  %v1650_v28 = vld [vmem:[%s2338_s1 + $0xac] ss:$12 sps:$4 sm:$0xff]   ;;  %v1657_v31 = vld [vmem:[%s2339_s0 + $0x4] ss:$16 sps:$4 sm:$0xff]   ;;  %v1654_v32 = vld [vmem:[%s2338_s1 + $0xb0] ss:$12 sps:$4 sm:$0xff]  }
   0xc   :  { %753 = vmatprep.subr.bf16.mxu0 %v1630_v12  ;;  %1508 = vmatprep.subr.bf16.mxu1 %v1632_v13  ;;  %v1658_v33 = vld [vmem:[%s2338_s1 + $0xc4] ss:$12 sps:$4 sm:$0xff]   ;;  %v1660_v35 = vld [vmem:[%s2338_s1 + $0xc0] ss:$12 sps:$4 sm:$0xff]   ;;  %v1661_v36 = vld [vmem:[%s2338_s1 + $0xdc] ss:$12 sps:$4 sm:$0xff]  }
   0xd   :  { %981 = vmatprep.mubr.bf16.mxu1 %v1657_v31  ;;  %v1889_v34 = vld [vmem:[%s2339_s0] ss:$16 sps:$4 sm:$0xff]   ;;  %779 = vmatprep.mubr.bf16.mxu0 %v1657_v31  ;;  %v1900_v37 = vld [vmem:[%s2339_s0 + $0x24] ss:$16 sps:$4 sm:$0xff]   ;;  %v1670_v45 = vld [vmem:[%s2338_s1 + $0x10c] ss:$12 sps:$4 sm:$0xff]  }
   0xe   :  { %v1673_v39 = vld [vmem:[%s2338_s1 + $0x188] ss:$12 sps:$4 sm:$0xff]   ;;  %v1663_v40 = vld [vmem:[%s2338_s1 + $0xd8] ss:$12 sps:$4 sm:$0xff]   ;;  %v1917_v42 = vld [vmem:[%s2339_s0 + $0x20] ss:$16 sps:$4 sm:$0xff]  }
   0xf   :  { %754 = vmatpush1.bf16.msra.mxu0 %v1633_v14  ;;  %1509 = vmatpush3.bf16.msra.mxu1 %v1634_v15  ;;  %v1666_v41 = vld [vmem:[%s2338_s1 + $0xf4] ss:$12 sps:$4 sm:$0xff]   ;;  %v1669_v44 = vld [vmem:[%s2338_s1 + $0xf0] ss:$12 sps:$4 sm:$0xff]   ;;  %v1684_v47 = vld [vmem:[%s2338_s1 + $0x1b8] ss:$12 sps:$4 sm:$0xff]  }
  0x10   :  { %755 = vmatprep.subr.bf16.mxu0 %v1635_v16  ;;  %1510 = vmatprep.subr.bf16.mxu1 %v1637_v17  ;;  %v1680_v43 = vld [vmem:[%s2338_s1 + $0x1a0] ss:$12 sps:$4 sm:$0xff]   ;;  %v1932_v46 = vld [vmem:[%s2339_s0 + $0x44] ss:$16 sps:$4 sm:$0xff]   ;;  %v1691_v50 = vld [vmem:[%s2338_s1 + $0x1d0] ss:$12 sps:$4 sm:$0xff]  }
  0x11   :  { %v1672_v48 = vld [vmem:[%s2338_s1 + $0x108] ss:$12 sps:$4 sm:$0xff]   ;;  %v1676_v49 = vld [vmem:[%s2338_s1 + $0x124] ss:$12 sps:$4 sm:$0xff]   ;;  %v1679_v52 = vld [vmem:[%s2338_s1 + $0x120] ss:$12 sps:$4 sm:$0xff]  }
  0x12   :  { %v1952_v51 = vld [vmem:[%s2339_s0 + $0x40] ss:$16 sps:$4 sm:$0xff]   ;;  %v1681_v53 = vld [vmem:[%s2338_s1 + $0x13c] ss:$12 sps:$4 sm:$0xff]   ;;  %v1964_v54 = vld [vmem:[%s2339_s0 + $0x64] ss:$16 sps:$4 sm:$0xff]  }
  0x13   :  { %756 = vmatpush1.bf16.msra.mxu0 %v1638_v18  ;;  %1511 = vmatpush3.bf16.msra.mxu1 %v1639_v19  ;;  %v1695_v55 = vld [vmem:[%s2338_s1 + $0x1e8] ss:$12 sps:$4 sm:$0xff]   ;;  %v1683_v56 = vld [vmem:[%s2338_s1 + $0x138] ss:$12 sps:$4 sm:$0xff]   ;;  %v1981_v58 = vld [vmem:[%s2339_s0 + $0x60] ss:$16 sps:$4 sm:$0xff]  }
  0x14   :  { %757 = vmatprep.subr.bf16.mxu0 %v1640_v20  ;;  %1512 = vmatprep.subr.bf16.mxu1 %v1642_v21  ;;  %v1687_v57 = vld [vmem:[%s2338_s1 + $0x154] ss:$12 sps:$4 sm:$0xff]   ;;  %v1690_v60 = vld [vmem:[%s2338_s1 + $0x150] ss:$12 sps:$4 sm:$0xff]   ;;  %v1692_v61 = vld [vmem:[%s2338_s1 + $0x16c] ss:$12 sps:$4 sm:$0xff]  }
  0x15   :  { %v1702_v59 = vld [vmem:[%s2338_s1 + $0x200] ss:$12 sps:$4 sm:$0xff]   ;;  %v1996_v62 = vld [vmem:[%s2339_s0 + $0x84] ss:$16 sps:$4 sm:$0xff]   ;;  %v1710_v2 = vld [vmem:[%s2338_s1 + $0x230] ss:$12 sps:$4 sm:$0xff]  }
  0x16   :  { %v1703_v63 = vld [vmem:[%s2338_s1 + $0x218] ss:$12 sps:$4 sm:$0xff]   ;;  %v1694_v0 = vld [vmem:[%s2338_s1 + $0x168] ss:$12 sps:$4 sm:$0xff]   ;;  %v1698_v3 = vld [vmem:[%s2338_s1 + $0x180] ss:$12 sps:$4 sm:$0xff]  }
  0x17   :  { %758 = vmatpush1.bf16.msra.mxu0 %v1643_v22  ;;  %1513 = vmatpush3.bf16.msra.mxu1 %v1644_v23  ;;  %v1700_v1 = vld [vmem:[%s2338_s1 + $0x184] ss:$12 sps:$4 sm:$0xff]   ;;  %v1706_v5 = vld [vmem:[%s2338_s1 + $0x19c] ss:$12 sps:$4 sm:$0xff]   ;;  %v1713_v9 = vld [vmem:[%s2338_s1 + $0x1b4] ss:$12 sps:$4 sm:$0xff]  }
  0x18   :  { %759 = vmatprep.subr.bf16.mxu0 %v1645_v24  ;;  %1514 = vmatprep.subr.bf16.mxu1 %v1647_v25  ;;  %v2020_v4 = vld [vmem:[%s2339_s0 + $0x80] ss:$16 sps:$4 sm:$0xff]   ;;  %v2028_v6 = vld [vmem:[%s2339_s0 + $0xa4] ss:$16 sps:$4 sm:$0xff]   ;;  %v1718_v15 = vld [vmem:[%s2338_s1 + $0x1cc] ss:$12 sps:$4 sm:$0xff]  }
  0x19   :  { %v1714_v7 = vld [vmem:[%s2338_s1 + $0x248] ss:$12 sps:$4 sm:$0xff]   ;;  %v1704_v8 = vld [vmem:[%s2338_s1 + $0x198] ss:$12 sps:$4 sm:$0xff]   ;;  %v1720_v11 = vld [vmem:[%s2338_s1 + $0x260] ss:$12 sps:$4 sm:$0xff]  }
  0x1a   :  { %v39_v10 = vld [vmem:[%s2339_s0 + $0xc0] sm:$0xff]  ;;  %v1711_v13 = vld [vmem:[%s2338_s1 + $0x1b0] ss:$12 sps:$4 sm:$0xff]   ;;  %v1716_v17 = vld [vmem:[%s2338_s1 + $0x1c8] ss:$12 sps:$4 sm:$0xff]  }
  0x1b   :  { %760 = vmatpush1.bf16.msra.mxu0 %v1648_v26  ;;  %1515 = vmatpush3.bf16.msra.mxu1 %v1649_v27  ;;  %v2054_v12 = vld [vmem:[%s2339_s0 + $0xa0] ss:$16 sps:$4 sm:$0xff]   ;;  %v2059_v14 = vcombine.high %v39_v10, %v39_v10  ;;  %v1724_v16 = vld [vmem:[%s2338_s1 + $0x278] ss:$12 sps:$4 sm:$0xff]   ;;  %v1351_v19 = vcombine.low %v39_v10, %v39_v10  ;;  %v1727_v21 = vld [vmem:[%s2339_s0 + $0xc] ss:$16 sps:$4 sm:$0xff]  }
  0x1c   :  { %761 = vmatprep.subr.bf16.mxu0 %v1650_v28  ;;  %1516 = vmatprep.subr.bf16.mxu1 %v1652_v29  ;;  %v1723_v18 = vld [vmem:[%s2338_s1 + $0x1e4] ss:$12 sps:$4 sm:$0xff]   ;;  %v1721_v20 = vld [vmem:[%s2338_s1 + $0x1e0] ss:$12 sps:$4 sm:$0xff]   ;;  %v1730_v22 = vld [vmem:[%s2338_s1 + $0x1fc] ss:$12 sps:$4 sm:$0xff]  }
  0x1d   :  { %v1728_v23 = vld [vmem:[%s2338_s1 + $0x1f8] ss:$12 sps:$4 sm:$0xff]   ;;  %v1733_v24 = vld [vmem:[%s2338_s1 + $0x214] ss:$12 sps:$4 sm:$0xff]   ;;  %v1731_v26 = vld [vmem:[%s2338_s1 + $0x210] ss:$12 sps:$4 sm:$0xff]  }
  0x1e   :  { %v1725_v25 = vld [vmem:[%s2339_s0 + $0x8] ss:$16 sps:$4 sm:$0xff]   ;;  %v1734_v27 = vld [vmem:[%s2339_s0 + $0x2c] ss:$16 sps:$4 sm:$0xff]  }
  0x1f   :  { %762 = vmatpush1.bf16.msra.mxu0 %v1653_v30  ;;  %1517 = vmatpush3.bf16.msra.mxu1 %v1654_v32  ;;  %v1739_v28 = vld [vmem:[%s2338_s1 + $0x22c] ss:$12 sps:$4 sm:$0xff]   ;;  %v1737_v29 = vld [vmem:[%s2338_s1 + $0x228] ss:$12 sps:$4 sm:$0xff]   ;;  %v1745_v30 = vld [vmem:[%s2338_s1 + $0x244] ss:$12 sps:$4 sm:$0xff]  }
  0x20   :  { %763 = vmatprep.subr.bf16.mxu0 %v1658_v33  ;;  %1037 = vmatprep.subr.bf16.mxu1 %v1763_v38  ;;  %v1736_v31 = vld [vmem:[%s2339_s0 + $0x28] ss:$16 sps:$4 sm:$0xff]   ;;  %v1740_v32 = vld [vmem:[%s2339_s0 + $0x4c] ss:$16 sps:$4 sm:$0xff]  }
  0x21   :  { %v1743_v33 = vld [vmem:[%s2338_s1 + $0x240] ss:$12 sps:$4 sm:$0xff]  }
  0x22   :  { %982 = vmatmul.mubr.bf16.vlgmr.msra.gmra.mrb[0].mxu1 %v1889_v34 }
  0x23   :  { %764 = vmatpush1.bf16.msra.mxu0 %v1660_v35  ;;  %989 = vmatprep.mubr.bf16.mxu1 %v1900_v37  ;;  %v1746_v35 = vld [vmem:[%s2338_s1 + $0x258] ss:$12 sps:$4 sm:$0xff]  }
  0x24   :  { %765 = vmatprep.subr.bf16.mxu0 %v1661_v36  ;;  %1038 = vmatpush1.bf16.msra.mxu1 %v1673_v39  ;;  %v1754_v36 = vld [vmem:[%s2338_s1 + $0x274] ss:$12 sps:$4 sm:$0xff]   ;;  %v1752_v39 = vld [vmem:[%s2338_s1 + $0x270] ss:$12 sps:$4 sm:$0xff]  }
  0x25   :  { %1039 = vmatprep.subr.bf16.mxu1 %v1763_v38 }
  0x27   :  { %766 = vmatpush1.bf16.msra.mxu0 %v1663_v40  ;;  %v1751_v40 = vld [vmem:[%s2339_s0 + $0x68] ss:$16 sps:$4 sm:$0xff]  }
  0x28   :  { %767 = vmatprep.subr.bf16.mxu0 %v1666_v41  ;;  %1040 = vmatpush1.bf16.msra.mxu1 %v1680_v43  ;;  %v1755_v41 = vld [vmem:[%s2339_s0 + $0x8c] ss:$16 sps:$4 sm:$0xff]  }
  0x29   :  { %1041 = vmatprep.subr.bf16.mxu1 %v1763_v38  ;;  %v1758_v43 = vld [vmem:[%s2339_s0 + $0xac] ss:$16 sps:$4 sm:$0xff]  }
  0x2a   :  { %990 = vmatmul.mubr.bf16.gmra.mrb[4].mxu1 %v1917_v42 }
  0x2b   :  { %768 = vmatpush1.bf16.msra.mxu0 %v1669_v44  ;;  %997 = vmatprep.mubr.bf16.mxu1 %v1932_v46  ;;  %v40_v44 = vld [vmem:[%s2339_s0 + $0xc8] sm:$0xff] }
  0x2c   :  { %769 = vmatprep.subr.bf16.mxu0 %v1670_v45  ;;  %1042 = vmatpush1.bf16.msra.mxu1 %v1684_v47  ;;  %v1760_v45 = vld [vmem:[%s2339_s0 + $0xa8] ss:$16 sps:$4 sm:$0xff]   ;;  %v1353_v47 = vcombine.low %v40_v44, %v40_v44 }
  0x2d   :  { %1043 = vmatprep.subr.bf16.mxu1 %v1763_v38 }
  0x2f   :  { %770 = vmatpush1.bf16.msra.mxu0 %v1672_v48 }
  0x30   :  { %771 = vmatprep.subr.bf16.mxu0 %v1676_v49  ;;  %1044 = vmatpush1.bf16.msra.mxu1 %v1691_v50 }
  0x31   :  { %1045 = vmatprep.subr.bf16.mxu1 %v1763_v38 }
  0x32   :  { %998 = vmatmul.mubr.bf16.gmra.mrb[8].mxu1 %v1952_v51 }
  0x33   :  { %772 = vmatpush1.bf16.msra.mxu0 %v1679_v52  ;;  %1005 = vmatprep.mubr.bf16.mxu1 %v1964_v54 }
  0x34   :  { %773 = vmatprep.subr.bf16.mxu0 %v1681_v53  ;;  %1046 = vmatpush1.bf16.msra.mxu1 %v1695_v55 }
  0x35   :  { %1047 = vmatprep.subr.bf16.mxu1 %v1763_v38 }
  0x37   :  { %774 = vmatpush1.bf16.msra.mxu0 %v1683_v56 }
  0x38   :  { %775 = vmatprep.subr.bf16.mxu0 %v1687_v57  ;;  %1048 = vmatpush1.bf16.msra.mxu1 %v1702_v59 }
  0x39   :  { %1049 = vmatprep.subr.bf16.mxu1 %v1763_v38 }
  0x3a   :  { %1006 = vmatmul.mubr.bf16.gmra.mrb[12].mxu1 %v1981_v58 }
  0x3b   :  { %776 = vmatpush1.bf16.msra.mxu0 %v1690_v60  ;;  %1013 = vmatprep.mubr.bf16.mxu1 %v1996_v62 }
  0x3c   :  { %777 = vmatprep.subr.bf16.mxu0 %v1692_v61  ;;  %1050 = vmatpush1.bf16.msra.mxu1 %v1703_v63 }
  0x3d   :  { %1051 = vmatprep.subr.bf16.mxu1 %v1763_v38 }
  0x3f   :  { %778 = vmatpush1.bf16.msra.mxu0 %v1694_v0 }
  0x40   :  { %848 = vmatprep.subr.bf16.mxu0 %v1700_v1  ;;  %1052 = vmatpush1.bf16.msra.mxu1 %v1710_v2 }
  0x41   :  { %1053 = vmatprep.subr.bf16.mxu1 %v1763_v38 }
  0x42   :  { %780 = vmatmul.mubr.bf16.vlgmr.msra.gmra.mrb[0].mxu0 %v1889_v34  ;;  %1014 = vmatmul.mubr.bf16.gmra.mrb[16].mxu1 %v2020_v4  ;;  %v1748_v34 = vld [vmem:[%s2338_s1 + $0x25c] ss:$12 sps:$4 sm:$0xff]  }
  0x43   :  { %849 = vmatpush1.bf16.msra.mxu0 %v1698_v3  ;;  %789 = vmatprep.mubr.bf16.mxu0 %v1900_v37  ;;  %v1742_v37 = vld [vmem:[%s2339_s0 + $0x48] ss:$16 sps:$4 sm:$0xff]  }
  0x44   :  { %850 = vmatprep.subr.bf16.mxu0 %v1706_v5  ;;  %1021 = vmatprep.mubr.bf16.mxu1 %v2028_v6 }
  0x45   :  { %1054 = vmatpush1.bf16.msra.mxu1 %v1714_v7 }
  0x46   :  { %1055 = vmatprep.subr.bf16.mxu1 %v1763_v38 }
  0x47   :  { %851 = vmatpush1.bf16.msra.mxu0 %v1704_v8 }
  0x48   :  { %852 = vmatprep.subr.bf16.mxu0 %v1713_v9 }
  0x49   :  { %1056 = vmatpush1.bf16.msra.mxu1 %v1720_v11 }
  0x4a   :  { %790 = vmatmul.mubr.bf16.gmra.mrb[4].mxu0 %v1917_v42  ;;  %1057 = vmatprep.subr.bf16.mxu1 %v1763_v38  ;;  %v1749_v38 = vld [vmem:[%s2339_s0 + $0x6c] ss:$16 sps:$4 sm:$0xff]   ;;  %v1757_v42 = vld [vmem:[%s2339_s0 + $0x88] ss:$16 sps:$4 sm:$0xff]  }
  0x4b   :  { %1022 = vmatmul.mubr.bf16.gmra.mrb[20].mxu1 %v2054_v12  ;;  %853 = vmatpush1.bf16.msra.mxu0 %v1711_v13 }
  0x4c   :  { %799 = vmatprep.mubr.bf16.mxu0 %v1932_v46  ;;  %1029 = vmatprep.mubr.bf16.mxu1 %v2059_v14  ;;  %v1354_v46 = vcombine.high %v40_v44, %v40_v44 }
  0x4d   :  { %854 = vmatprep.subr.bf16.mxu0 %v1718_v15  ;;  %1058 = vmatpush1.bf16.msra.mxu1 %v1724_v16 }
  0x4f   :  { %855 = vmatpush1.bf16.msra.mxu0 %v1716_v17 }
  0x50   :  { %856 = vmatprep.subr.bf16.mxu0 %v1723_v18 }
  0x52   :  { %800 = vmatmul.mubr.bf16.gmra.mrb[8].mxu0 %v1952_v51 }
  0x53   :  { %1030 = vmatmul.mubr.bf16.gmra.mrb[24].mxu1 %v1351_v19  ;;  %857 = vmatpush1.bf16.msra.mxu0 %v1721_v20 }
  0x54   :  { %809 = vmatprep.mubr.bf16.mxu0 %v1964_v54  ;;  %1443 = vmatprep.mubr.msk.bf16.mxu1 %vm725_vm0, %v1727_v21 }
  0x55   :  { %858 = vmatprep.subr.bf16.mxu0 %v1730_v22 }
  0x57   :  { %859 = vmatpush1.bf16.msra.mxu0 %v1728_v23 }
  0x58   :  { %860 = vmatprep.subr.bf16.mxu0 %v1733_v24  ;;  %v2198_v24 = vld [vmem:[%s2340_s2] sm:$0x7] }
  0x5a   :  { %810 = vmatmul.mubr.bf16.gmra.mrb[12].mxu0 %v1981_v58 }
  0x5b   :  { %1070 = vmatmul.mubr.bf16.vlgmr.msra.gmra.mrb[28].mxu1 %v1725_v25  ;;  %819 = vmatprep.mubr.bf16.mxu0 %v1996_v62 }
  0x5c   :  { %1444 = vmatprep.mubr.msk.bf16.mxu1 %vm725_vm0, %v1734_v27  ;;  %861 = vmatpush1.bf16.msra.mxu0 %v1731_v26 }
  0x5d   :  { %862 = vmatprep.subr.bf16.mxu0 %v1739_v28 }
  0x60   :  { %863 = vmatpush1.bf16.msra.mxu0 %v1737_v29 }
  0x61   :  { %864 = vmatprep.subr.bf16.mxu0 %v1745_v30 }
  0x62   :  { %820 = vmatmul.mubr.bf16.gmra.mrb[16].mxu0 %v2020_v4 }
  0x63   :  { %1078 = vmatmul.mubr.bf16.gmra.mrb[32].mxu1 %v1736_v31  ;;  %829 = vmatprep.mubr.bf16.mxu0 %v2028_v6 }
  0x64   :  { %1445 = vmatprep.mubr.msk.bf16.mxu1 %vm725_vm0, %v1740_v32  ;;  %865 = vmatpush1.bf16.msra.mxu0 %v1743_v33 }
  0x65   :  { %866 = vmatprep.subr.bf16.mxu0 %v1748_v34 }
  0x68   :  { %867 = vmatpush1.bf16.msra.mxu0 %v1746_v35 }
  0x69   :  { %868 = vmatprep.subr.bf16.mxu0 %v1754_v36 }
  0x6a   :  { %830 = vmatmul.mubr.bf16.gmra.mrb[20].mxu0 %v2054_v12 }
  0x6b   :  { %1086 = vmatmul.mubr.bf16.gmra.mrb[36].mxu1 %v1742_v37  ;;  %839 = vmatprep.mubr.bf16.mxu0 %v2059_v14  ;;  %v151_v14 = vlaneseq }
  0x6c   :  { %1446 = vmatprep.mubr.msk.bf16.mxu1 %vm725_vm0, %v1749_v38  ;;  %869 = vmatpush1.bf16.msra.mxu0 %v1752_v39 }
  0x6d   :  { %v2190_v20 = vshrl.u32 %v151_v14, 7 }
  0x6f   :  { %v161_v22 = vsub.s32 2, %v2190_v20 }
  0x71   :  { %v2203_v29 = vrot.slane %v2198_v24, %v161_v22 }
  0x72   :  { %840 = vmatmul.mubr.bf16.gmra.mrb[24].mxu0 %v1351_v19 }
  0x73   :  { %1094 = vmatmul.mubr.bf16.gmra.mrb[40].mxu1 %v1751_v40  ;;  %1436 = vmatprep.mubr.msk.bf16.mxu0 %vm725_vm0, %v1727_v21 }
  0x74   :  { %1447 = vmatprep.mubr.msk.bf16.mxu1 %vm725_vm0, %v1755_v41 }
  0x7a   :  { %881 = vmatmul.mubr.bf16.vlgmr.msra.gmra.mrb[0].mxu0 %v1725_v25 }
  0x7b   :  { %1102 = vmatmul.mubr.bf16.gmra.mrb[44].mxu1 %v1757_v42  ;;  %1437 = vmatprep.mubr.msk.bf16.mxu0 %vm725_vm0, %v1734_v27 }
  0x7c   :  { %1448 = vmatprep.mubr.msk.bf16.mxu1 %vm725_vm0, %v1758_v43 }
  0x82   :  { %891 = vmatmul.mubr.bf16.gmra.mrb[4].mxu0 %v1736_v31 }
  0x83   :  { %1110 = vmatmul.mubr.bf16.gmra.mrb[48].mxu1 %v1760_v45  ;;  %1438 = vmatprep.mubr.msk.bf16.mxu0 %vm725_vm0, %v1740_v32 }
  0x84   :  { %1449 = vmatprep.mubr.msk.bf16.mxu1 %vm725_vm0, %v1354_v46 }
  0x8a   :  { %901 = vmatmul.mubr.bf16.gmra.mrb[8].mxu0 %v1742_v37 }
  0x8b   :  { %1118 = vmatmul.mubr.bf16.gmra.mrb[52].mxu1 %v1353_v47  ;;  %1439 = vmatprep.mubr.msk.bf16.mxu0 %vm725_vm0, %v1749_v38 }
  0x92   :  { %911 = vmatmul.mubr.bf16.gmra.mrb[12].mxu0 %v1751_v40 }
  0x93   :  { %1440 = vmatprep.mubr.msk.bf16.mxu0 %vm725_vm0, %v1755_v41 }
  0x9a   :  { %921 = vmatmul.mubr.bf16.gmra.mrb[16].mxu0 %v1757_v42 }
  0x9b   :  { %1441 = vmatprep.mubr.msk.bf16.mxu0 %vm725_vm0, %v1758_v43 }
  0xa2   :  { %931 = vmatmul.mubr.bf16.gmra.mrb[20].mxu0 %v1760_v45 }
  0xa3   :  { %1442 = vmatprep.mubr.msk.bf16.mxu0 %vm725_vm0, %v1354_v46 }
  0xaa   :  { %941 = vmatmul.mubr.bf16.gmra.mrb[24].mxu0 %v1353_v47 }
  0xf5   :  { %v1518_v48 = vpop.f32.mrb[0].mxu1 }
  0xf6   :  { %v1519_v49 = vpop.f32.mrb[1].mxu1 }
  0xf7   :  { %v1520_v50 = vadd.f32 %v1519_v49, %v1518_v48  ;;  %v1521_v51 = vpop.f32.mrb[2].mxu1 }
  0xf8   :  { %v1522_v52 = vpop.f32.mrb[3].mxu1 }
  0xf9   :  { %v1523_v53 = vadd.f32 %v1522_v52, %v1521_v51  ;;  %v984_v30 = vadd.f32 %v1520_v50, %v2203_v29 }
  0xfb   :  { %v987_v34 = vadd.f32 %v1523_v53, %v2203_v29 }
  0xfd   :  { %v1524_v54 = vpop.f32.mrb[4].mxu1 }
  0xfe   :  { %v1525_v55 = vpop.f32.mrb[5].mxu1 }
  0xff   :  { %v1526_v56 = vadd.f32 %v1525_v55, %v1524_v54  ;;  %v1527_v57 = vpop.f32.mrb[6].mxu1 }
 0x100   :  { %v1528_v58 = vpop.f32.mrb[7].mxu1 }
 0x101   :  { %v1529_v59 = vadd.f32 %v1528_v58, %v1527_v57  ;;  %v992_v42 = vadd.f32 %v1526_v56, %v2203_v29 }
 0x103   :  { %v995_v46 = vadd.f32 %v1529_v59, %v2203_v29 }
 0x105   :  { %v1530_v60 = vpop.f32.mrb[8].mxu1 }
 0x106   :  { %v1531_v61 = vpop.f32.mrb[9].mxu1 }
 0x107   :  { %v1532_v62 = vadd.f32 %v1531_v61, %v1530_v60  ;;  %v1533_v63 = vpop.f32.mrb[10].mxu1 }
 0x108   :  { %v1534_v0 = vpop.f32.mrb[11].mxu1 }
 0x109   :  { %v2178_v1 = vadd.f32 %v1534_v0, %v1533_v63  ;;  %v1000_v54 = vadd.f32 %v1532_v62, %v2203_v29 }
 0x10b   :  { %v1003_v58 = vadd.f32 %v2178_v1, %v2203_v29 }
 0x10d   :  { %v1536_v2 = vpop.f32.mrb[12].mxu1 }
 0x10e   :  { %v1537_v3 = vpop.f32.mrb[13].mxu1 }
 0x10f   :  { %v2180_v4 = vadd.f32 %v1537_v3, %v1536_v2  ;;  %v1539_v5 = vpop.f32.mrb[14].mxu1 }
 0x110   :  { %v1540_v6 = vpop.f32.mrb[15].mxu1 }
 0x111   :  { %v2182_v7 = vadd.f32 %v1540_v6, %v1539_v5  ;;  %v1008_v3 = vadd.f32 %v2180_v4, %v2203_v29  ;;  %v153_v6 = vsub.s32 0, %v2190_v20 }
 0x113   :  { %v2237_v4 = vrot.slane %v2198_v24, %v153_v6 }
 0x115   :  { %v1542_v8 = vpop.f32.mrb[16].mxu1 }
 0x116   :  { %v1543_v9 = vpop.f32.mrb[17].mxu1 }
 0x117   :  { %v2184_v10 = vadd.f32 %v1543_v9, %v1542_v8  ;;  %v1545_v11 = vpop.f32.mrb[18].mxu1  ;;  %v1011_v9 = vadd.f32 %v2182_v7, %v2203_v29 }
 0x118   :  { %v1546_v12 = vpop.f32.mrb[19].mxu1 }
 0x119   :  { %v2186_v13 = vadd.f32 %v1546_v12, %v1545_v11  ;;  %v157_v11 = vsub.s32 1, %v2190_v20  ;;  %v1016_v20 = vadd.f32 %v2184_v10, %v2203_v29 }
 0x11b   :  { %v2240_v22 = vrot.slane %v2198_v24, %v157_v11 }
 0x11e   :  { %v1548_v15 = vpop.f32.mrb[20].mxu1 }
 0x11f   :  { %v1549_v16 = vpop.f32.mrb[21].mxu1 }
 0x120   :  { %v2188_v17 = vadd.f32 %v1549_v16, %v1548_v15  ;;  %v1551_v18 = vpop.f32.mrb[22].mxu1 }
 0x121   :  { %v1552_v19 = vpop.f32.mrb[23].mxu1 }
 0x122   :  { %v2192_v21 = vadd.f32 %v1552_v19, %v1551_v18 }
 0x126   :  { %v1554_v23 = vpop.f32.mrb[24].mxu1 }
 0x127   :  { %v1555_v25 = vpop.f32.mrb[25].mxu1 }
 0x128   :  { %v2200_v26 = vadd.f32 %v1555_v25, %v1554_v23  ;;  %v1557_v27 = vpop.f32.mrb[26].mxu1 }
 0x129   :  { %v1558_v28 = vpop.f32.mrb[27].mxu1 }
 0x12e   :  { %v1071_v31 = vpop.f32.mrb[28].mxu1 }
 0x12f   :  { %v1072_v32 = vadd.f32 %v1071_v31, %v984_v30  ;;  %v1073_v33 = vpop.f32.mrb[29].mxu1 }
 0x130   :  { %v1074_v35 = vpop.f32.mrb[30].mxu1  ;;  %v1019_v33 = vadd.f32 %v2186_v13, %v2203_v29 }
 0x131   :  { %v1127_v36 = vmax.f32 %v1072_v32, 0.0  ;;  %v1075_v37 = vadd.f32 %v1074_v35, %v987_v34  ;;  %v1076_v38 = vpop.f32.mrb[31].mxu1 }
 0x133   :  { %v1477_v39 = vpack.c.bf16 %v1127_v36, %v1127_v36  ;;  %v1130_v40 = vmax.f32 %v1075_v37, 0.0 }
 0x135   :  { %1298 = vst [vmem:[%s2341_s3 + $0x8] sm:$0xf] %v1477_v39  ;;  %v1479_v41 = vpack.c.bf16 %v1130_v40, %v1130_v40 }
 0x136   :  { %v1079_v43 = vpop.f32.mrb[32].mxu1 }
 0x137   :  { %1300 = vst [vmem:[%s2341_s3 + $0x14] sm:$0xf] %v1479_v41  ;;  %v1080_v44 = vadd.f32 %v1079_v43, %v992_v42  ;;  %v1081_v45 = vpop.f32.mrb[33].mxu1 }
 0x138   :  { %v1082_v47 = vpop.f32.mrb[34].mxu1 }
 0x139   :  { %v1133_v48 = vmax.f32 %v1080_v44, 0.0  ;;  %v1083_v49 = vadd.f32 %v1082_v47, %v995_v46  ;;  %v1084_v50 = vpop.f32.mrb[35].mxu1 }
 0x13b   :  { %v1481_v51 = vpack.c.bf16 %v1133_v48, %v1133_v48  ;;  %v1136_v52 = vmax.f32 %v1083_v49, 0.0  ;;  %v1024_v49 = vadd.f32 %v2188_v17, %v2203_v29  ;;  %v1027_v17 = vadd.f32 %v2192_v21, %v2203_v29 }
 0x13d   :  { %1302 = vst [vmem:[%s2341_s3 + $0x20] sm:$0xf] %v1481_v51  ;;  %v1483_v53 = vpack.c.bf16 %v1136_v52, %v1136_v52 }
 0x13e   :  { %v1087_v55 = vpop.f32.mrb[36].mxu1 }
 0x13f   :  { %1304 = vst [vmem:[%s2341_s3 + $0x2c] sm:$0xf] %v1483_v53  ;;  %v1088_v56 = vadd.f32 %v1087_v55, %v1000_v54  ;;  %v1089_v57 = vpop.f32.mrb[37].mxu1 }
 0x140   :  { %v1090_v59 = vpop.f32.mrb[38].mxu1 }
 0x141   :  { %v1139_v60 = vmax.f32 %v1088_v56, 0.0  ;;  %v1091_v61 = vadd.f32 %v1090_v59, %v1003_v58  ;;  %v1092_v63 = vpop.f32.mrb[39].mxu1 }
 0x143   :  { %v1485_v0 = vpack.c.bf16 %v1139_v60, %v1139_v60  ;;  %v1142_v2 = vmax.f32 %v1091_v61, 0.0 }
 0x145   :  { %1306 = vst [vmem:[%s2341_s3 + $0x38] sm:$0xf] %v1485_v0  ;;  %v1487_v62 = vpack.c.bf16 %v1142_v2, %v1142_v2 }
 0x146   :  { %v1095_v5 = vpop.f32.mrb[40].mxu1 }
 0x147   :  { %1308 = vst [vmem:[%s2341_s3 + $0x44] sm:$0xf] %v1487_v62  ;;  %v1096_v1 = vadd.f32 %v1095_v5, %v1008_v3  ;;  %v1097_v8 = vpop.f32.mrb[41].mxu1 }
 0x148   :  { %v1098_v12 = vpop.f32.mrb[42].mxu1 }
 0x149   :  { %v1145_v14 = vmax.f32 %v1096_v1, 0.0  ;;  %v1099_v15 = vadd.f32 %v1098_v12, %v1011_v9  ;;  %v1100_v16 = vpop.f32.mrb[43].mxu1  ;;  %v1032_v12 = vadd.f32 %v2200_v26, %v2203_v29 }
 0x14b   :  { %v1489_v18 = vpack.c.bf16 %v1145_v14, %v1145_v14  ;;  %v1148_v19 = vmax.f32 %v1099_v15, 0.0 }
 0x14d   :  { %1310 = vst [vmem:[%s2341_s3 + $0x50] sm:$0xf] %v1489_v18  ;;  %v1491_v23 = vpack.c.bf16 %v1148_v19, %v1148_v19  ;;  %v882_v7 = vpop.f32.mrb[0].mxu0 }
 0x14e   :  { %v1560_v25 = vadd.f32 %v882_v7, %v2237_v4  ;;  %v1103_v27 = vpop.f32.mrb[44].mxu1  ;;  %v884_v28 = vpop.f32.mrb[1].mxu0 }
 0x14f   :  { %1312 = vst [vmem:[%s2341_s3 + $0x5c] sm:$0xf] %v1491_v23  ;;  %v1104_v30 = vadd.f32 %v1103_v27, %v1016_v20  ;;  %v1561_v24 = vadd.f32 %v884_v28, %v2240_v22  ;;  %v1105_v31 = vpop.f32.mrb[45].mxu1  ;;  %v886_v32 = vpop.f32.mrb[2].mxu0 }
 0x150   :  { %v1125_v34 = vmax.f32 %v1560_v25, 0.0  ;;  %v1562_v35 = vadd.f32 %v886_v32, %v2237_v4  ;;  %v1106_v10 = vpop.f32.mrb[46].mxu1  ;;  %v888_v36 = vpop.f32.mrb[3].mxu0 }
 0x151   :  { %v1151_v37 = vmax.f32 %v1104_v30, 0.0  ;;  %v1126_v38 = vmax.f32 %v1561_v24, 0.0  ;;  %v1107_v39 = vadd.f32 %v1106_v10, %v1019_v33  ;;  %v1563_v40 = vadd.f32 %v888_v36, %v2240_v22  ;;  %v1108_v41 = vpop.f32.mrb[47].mxu1 }
 0x152   :  { %v1128_v42 = vmax.f32 %v1562_v35, 0.0 }
 0x153   :  { %v1493_v43 = vpack.c.bf16 %v1151_v37, %v1151_v37  ;;  %v1476_v44 = vpack.c.bf16 %v1126_v38, %v1125_v34  ;;  %v1154_v45 = vmax.f32 %v1107_v39, 0.0  ;;  %v1129_v46 = vmax.f32 %v1563_v40, 0.0 }
 0x155   :  { %1314 = vst [vmem:[%s2341_s3 + $0x68] sm:$0xf] %v1493_v43  ;;  %1297 = vst [vmem:[%s2341_s3] sm:$0xff] %v1476_v44  ;;  %v1495_v13 = vpack.c.bf16 %v1154_v45, %v1154_v45  ;;  %v1478_v47 = vpack.c.bf16 %v1129_v46, %v1128_v42  ;;  %v892_v48 = vpop.f32.mrb[4].mxu0 }
 0x156   :  { %v1564_v50 = vadd.f32 %v892_v48, %v2237_v4  ;;  %v1111_v51 = vpop.f32.mrb[48].mxu1  ;;  %v894_v52 = vpop.f32.mrb[5].mxu0 }
 0x157   :  { %1316 = vst [vmem:[%s2341_s3 + $0x74] sm:$0xf] %v1495_v13  ;;  %1299 = vst [vmem:[%s2341_s3 + $0xc] sm:$0xff] %v1478_v47  ;;  %v1112_v53 = vadd.f32 %v1111_v51, %v1024_v49  ;;  %v1565_v54 = vadd.f32 %v894_v52, %v2240_v22  ;;  %v1113_v55 = vpop.f32.mrb[49].mxu1  ;;  %v896_v56 = vpop.f32.mrb[6].mxu0 }
 0x158   :  { %v1131_v57 = vmax.f32 %v1564_v50, 0.0  ;;  %v1566_v58 = vadd.f32 %v896_v56, %v2237_v4  ;;  %v1114_v59 = vpop.f32.mrb[50].mxu1  ;;  %v898_v60 = vpop.f32.mrb[7].mxu0 }
 0x159   :  { %v1157_v61 = vmax.f32 %v1112_v53, 0.0  ;;  %v1132_v63 = vmax.f32 %v1565_v54, 0.0  ;;  %v1115_v0 = vadd.f32 %v1114_v59, %v1027_v17  ;;  %v1567_v2 = vadd.f32 %v898_v60, %v2240_v22  ;;  %v1116_v62 = vpop.f32.mrb[51].mxu1 }
 0x15a   :  { %v1134_v3 = vmax.f32 %v1566_v58, 0.0 }
 0x15b   :  { %v1497_v5 = vpack.c.bf16 %v1157_v61, %v1157_v61  ;;  %v1480_v6 = vpack.c.bf16 %v1132_v63, %v1131_v57  ;;  %v1160_v1 = vmax.f32 %v1115_v0, 0.0  ;;  %v1135_v8 = vmax.f32 %v1567_v2, 0.0 }
 0x15d   :  { %1318 = vst [vmem:[%s2341_s3 + $0x80] sm:$0xf] %v1497_v5  ;;  %1301 = vst [vmem:[%s2341_s3 + $0x18] sm:$0xff] %v1480_v6  ;;  %v1499_v21 = vpack.c.bf16 %v1160_v1, %v1160_v1  ;;  %v1482_v9 = vpack.c.bf16 %v1135_v8, %v1134_v3  ;;  %v902_v11 = vpop.f32.mrb[8].mxu0 }
 0x15e   :  { %v1568_v14 = vadd.f32 %v902_v11, %v2237_v4  ;;  %v1119_v15 = vpop.f32.mrb[52].mxu1  ;;  %v904_v16 = vpop.f32.mrb[9].mxu0 }
 0x15f   :  { %1320 = vst [vmem:[%s2341_s3 + $0x8c] sm:$0xf] %v1499_v21  ;;  %1303 = vst [vmem:[%s2341_s3 + $0x24] sm:$0xff] %v1482_v9  ;;  %v1120_v18 = vadd.f32 %v1119_v15, %v1032_v12  ;;  %v1569_v19 = vadd.f32 %v904_v16, %v2240_v22  ;;  %v906_v23 = vpop.f32.mrb[10].mxu0  ;;  %v1121_v7 = vpop.f32.mrb[53].mxu1 }
 0x160   :  { %v1137_v20 = vmax.f32 %v1568_v14, 0.0  ;;  %v1570_v26 = vadd.f32 %v906_v23, %v2237_v4  ;;  %v908_v29 = vpop.f32.mrb[11].mxu0  ;;  %v1122_v25 = vpop.f32.mrb[54].mxu1 }
 0x161   :  { %v1163_v27 = vmax.f32 %v1120_v18, 0.0  ;;  %v1138_v28 = vmax.f32 %v1569_v19, 0.0  ;;  %v1571_v30 = vadd.f32 %v908_v29, %v2240_v22  ;;  %v1123_v24 = vpop.f32.mrb[55].mxu1 }
 0x162   :  { %v1140_v31 = vmax.f32 %v1570_v26, 0.0 }
 0x163   :  { %v1501_v32 = vpack.c.bf16 %v1163_v27, %v1163_v27  ;;  %v1484_v33 = vpack.c.bf16 %v1138_v28, %v1137_v20  ;;  %v1141_v34 = vmax.f32 %v1571_v30, 0.0 }
 0x165   :  { %1322 = vst [vmem:[%s2341_s3 + $0x98] sm:$0xf] %v1501_v32  ;;  %1305 = vst [vmem:[%s2341_s3 + $0x30] sm:$0xff] %v1484_v33  ;;  %v1486_v35 = vpack.c.bf16 %v1141_v34, %v1140_v31  ;;  %v912_v10 = vpop.f32.mrb[12].mxu0 }
 0x166   :  { %v1572_v36 = vadd.f32 %v912_v10, %v2237_v4  ;;  %v914_v37 = vpop.f32.mrb[13].mxu0 }
 0x167   :  { %1307 = vst [vmem:[%s2341_s3 + $0x3c] sm:$0xff] %v1486_v35  ;;  %v1573_v38 = vadd.f32 %v914_v37, %v2240_v22  ;;  %v916_v39 = vpop.f32.mrb[14].mxu0 }
 0x168   :  { %v1143_v40 = vmax.f32 %v1572_v36, 0.0  ;;  %v1574_v41 = vadd.f32 %v916_v39, %v2237_v4  ;;  %v918_v42 = vpop.f32.mrb[15].mxu0 }
 0x169   :  { %v1144_v43 = vmax.f32 %v1573_v38, 0.0  ;;  %v1575_v44 = vadd.f32 %v918_v42, %v2240_v22 }
 0x16a   :  { %v1146_v45 = vmax.f32 %v1574_v41, 0.0 }
 0x16b   :  { %v1488_v46 = vpack.c.bf16 %v1144_v43, %v1143_v40  ;;  %v1147_v13 = vmax.f32 %v1575_v44, 0.0 }
 0x16d   :  { %1309 = vst [vmem:[%s2341_s3 + $0x48] sm:$0xff] %v1488_v46  ;;  %v1490_v47 = vpack.c.bf16 %v1147_v13, %v1146_v45  ;;  %v922_v48 = vpop.f32.mrb[16].mxu0 }
 0x16e   :  { %v1576_v49 = vadd.f32 %v922_v48, %v2237_v4  ;;  %v924_v50 = vpop.f32.mrb[17].mxu0 }
 0x16f   :  { %1311 = vst [vmem:[%s2341_s3 + $0x54] sm:$0xff] %v1490_v47  ;;  %v1577_v51 = vadd.f32 %v924_v50, %v2240_v22  ;;  %v926_v52 = vpop.f32.mrb[18].mxu0 }
 0x170   :  { %v1149_v53 = vmax.f32 %v1576_v49, 0.0  ;;  %v1578_v54 = vadd.f32 %v926_v52, %v2237_v4  ;;  %v928_v55 = vpop.f32.mrb[19].mxu0 }
 0x171   :  { %v1150_v56 = vmax.f32 %v1577_v51, 0.0  ;;  %v1579_v17 = vadd.f32 %v928_v55, %v2240_v22 }
 0x172   :  { %v1152_v57 = vmax.f32 %v1578_v54, 0.0 }
 0x173   :  { %v1492_v58 = vpack.c.bf16 %v1150_v56, %v1149_v53  ;;  %v1153_v59 = vmax.f32 %v1579_v17, 0.0 }
 0x175   :  { %1313 = vst [vmem:[%s2341_s3 + $0x60] sm:$0xff] %v1492_v58  ;;  %v1494_v60 = vpack.c.bf16 %v1153_v59, %v1152_v57  ;;  %v932_v61 = vpop.f32.mrb[20].mxu0 }
 0x176   :  { %v1580_v63 = vadd.f32 %v932_v61, %v2237_v4  ;;  %v934_v0 = vpop.f32.mrb[21].mxu0 }
 0x177   :  { %1315 = vst [vmem:[%s2341_s3 + $0x6c] sm:$0xff] %v1494_v60  ;;  %v1581_v2 = vadd.f32 %v934_v0, %v2240_v22  ;;  %v936_v62 = vpop.f32.mrb[22].mxu0 }
 0x178   :  { %v1155_v3 = vmax.f32 %v1580_v63, 0.0  ;;  %v1582_v5 = vadd.f32 %v936_v62, %v2237_v4  ;;  %v938_v6 = vpop.f32.mrb[23].mxu0 }
 0x179   :  { %v1156_v1 = vmax.f32 %v1581_v2, 0.0  ;;  %v1583_v8 = vadd.f32 %v938_v6, %v2240_v22 }
 0x17a   :  { %v1158_v21 = vmax.f32 %v1582_v5, 0.0 }
 0x17b   :  { %v1496_v9 = vpack.c.bf16 %v1156_v1, %v1155_v3  ;;  %v1159_v11 = vmax.f32 %v1583_v8, 0.0 }
 0x17d   :  { %1317 = vst [vmem:[%s2341_s3 + $0x78] sm:$0xff] %v1496_v9  ;;  %v1498_v12 = vpack.c.bf16 %v1159_v11, %v1158_v21  ;;  %v942_v14 = vpop.f32.mrb[24].mxu0 }
 0x17e   :  { %v1584_v15 = vadd.f32 %v942_v14, %v2237_v4  ;;  %v944_v16 = vpop.f32.mrb[25].mxu0 }
 0x17f   :  { %1319 = vst [vmem:[%s2341_s3 + $0x84] sm:$0xff] %v1498_v12  ;;  %v1585_v18 = vadd.f32 %v944_v16, %v2240_v22  ;;  %v946_v19 = vpop.f32.mrb[26].mxu0 }
 0x180   :  { %v1161_v23 = vmax.f32 %v1584_v15, 0.0  ;;  %v947_v7 = vpop.f32.mrb[27].mxu0 }
 0x181   :  { %v1162_v20 = vmax.f32 %v1585_v18, 0.0 }
 0x183   :  { %v1500_v26 = vpack.c.bf16 %v1162_v20, %v1161_v23 }
 0x185   :  { %1321 = vst [vmem:[%s2341_s3 + $0x90] sm:$0xff] %v1500_v26 }

// kernel: squeezenet_forward.29
= control target key start
LH: loop header
LB: loop body
LE: loop exit
PB: predicated region body
PF: predicated region fallthrough
CT: control target
= control target key end

     0   :  { %v849_v1 = vmov 0.0   ;;  %vm850_vm0 = vmmov 0   ;;  %vm589_vm1 = vcmask 388096   ;;  %s1095_s1 = inlined_call_operand.vmem [shape: bf16[384,48], index: 1, kind: input, shape index: {}]   ;;  %s1096_s0 = inlined_call_operand.vmem [shape: bf16[98,384], index: 0, kind: input, shape index: {}]   ;;  %s1097_s2 = inlined_call_operand.vmem [shape: f32[1,48], index: 2, kind: input, shape index: {}]   ;;  %s1098_s3 = inlined_call_operand.vmem [shape: bf16[98,48], index: 3, kind: output, shape index: {}]  }
   0x1   :  { %v798_v0 = vld [vmem:[%s1095_s1 + $0x40] sm:$0xff]   ;;  %752 = vmatprep.subr.bf16.mxu1 %v849_v1  ;;  %768 = vmatprep.mubr.msk.bf16.mxu1 %vm850_vm0, %v849_v1  ;;  %v801_v4 = vld [vmem:[%s1095_s1 + $0x48] sm:$0xff]   ;;  %v804_v7 = vld [vmem:[%s1095_s1 + $0x50] sm:$0xff]  }
   0x2   :  { %v799_v2 = vld [vmem:[%s1095_s1] sm:$0xff]   ;;  %679 = vmatprep.subr.bf16.mxu0 %v798_v0  ;;  %v802_v5 = vld [vmem:[%s1095_s1 + $0x8] sm:$0xff]   ;;  %v805_v8 = vld [vmem:[%s1095_s1 + $0x10] sm:$0xff]  }
   0x3   :  { %v800_v3 = vld [vmem:[%s1095_s1 + $0x80] sm:$0xff]   ;;  %680 = vmatpush3.bf16.msra.mxu0 %v799_v2  ;;  %v803_v6 = vld [vmem:[%s1095_s1 + $0x88] sm:$0xff]   ;;  %v806_v9 = vld [vmem:[%s1095_s1 + $0x90] sm:$0xff]  }
   0x4   :  { %753 = vmatpush3.bf16.msra.mxu1 %v800_v3  ;;  %681 = vmatprep.subr.bf16.mxu0 %v801_v4  ;;  %v807_v10 = vld [vmem:[%s1095_s1 + $0x58] sm:$0xff]   ;;  %v810_v13 = vld [vmem:[%s1095_s1 + $0x60] sm:$0xff]   ;;  %v813_v16 = vld [vmem:[%s1095_s1 + $0x68] sm:$0xff]  }
   0x5   :  { %754 = vmatprep.subr.bf16.mxu1 %v849_v1  ;;  %v808_v11 = vld [vmem:[%s1095_s1 + $0x18] sm:$0xff]   ;;  %v811_v14 = vld [vmem:[%s1095_s1 + $0x20] sm:$0xff]   ;;  %v814_v17 = vld [vmem:[%s1095_s1 + $0x28] sm:$0xff]  }
   0x6   :  { %v809_v12 = vld [vmem:[%s1095_s1 + $0x98] sm:$0xff]   ;;  %v812_v15 = vld [vmem:[%s1095_s1 + $0xa0] sm:$0xff]   ;;  %v815_v18 = vld [vmem:[%s1095_s1 + $0xa8] sm:$0xff]  }
   0x7   :  { %682 = vmatpush3.bf16.msra.mxu0 %v802_v5  ;;  %v816_v19 = vld [vmem:[%s1095_s1 + $0x70] sm:$0xff]   ;;  %v819_v22 = vld [vmem:[%s1095_s1 + $0x78] sm:$0xff]   ;;  %v821_v26 = vld [vmem:[%s1096_s0] ss:$12 sps:$4 sm:$0xff]  }
   0x8   :  { %755 = vmatpush3.bf16.msra.mxu1 %v803_v6  ;;  %683 = vmatprep.subr.bf16.mxu0 %v804_v7  ;;  %v817_v20 = vld [vmem:[%s1095_s1 + $0x30] sm:$0xff]   ;;  %v820_v24 = vld [vmem:[%s1095_s1 + $0x38] sm:$0xff]   ;;  %v829_v30 = vld [vmem:[%s1096_s0 + $0x20] ss:$12 sps:$4 sm:$0xff]  }
   0x9   :  { %756 = vmatprep.subr.bf16.mxu1 %v849_v1  ;;  %v818_v21 = vld [vmem:[%s1095_s1 + $0xb0] sm:$0xff]   ;;  %v824_v25 = vld [vmem:[%s1095_s1 + $0xb8] sm:$0xff]   ;;  %v840_v38 = vld [vmem:[%s1096_s0 + $0x60] ss:$12 sps:$4 sm:$0xff]  }
   0xa   :  { %v823_v23 = vld [vmem:[%s1096_s0 + $0x4] ss:$12 sps:$4 sm:$0xff]   ;;  %v825_v27 = vld [vmem:[%s1096_s0 + $0x8] ss:$12 sps:$4 sm:$0xff]   ;;  %v834_v34 = vld [vmem:[%s1096_s0 + $0x4c] ss:$12 sps:$4 sm:$0xff]  }
   0xb   :  { %684 = vmatpush3.bf16.msra.mxu0 %v805_v8  ;;  %379 = vmatprep.mubr.bf16.mxu0 %v823_v23  ;;  %v826_v28 = vld [vmem:[%s1096_s0 + $0x1c] ss:$12 sps:$4 sm:$0xff]   ;;  %v828_v29 = vld [vmem:[%s1096_s0 + $0x18] ss:$12 sps:$4 sm:$0xff]   ;;  %v830_v31 = vld [vmem:[%s1096_s0 + $0x34] ss:$12 sps:$4 sm:$0xff]  }
   0xc   :  { %757 = vmatpush3.bf16.msra.mxu1 %v806_v9  ;;  %685 = vmatprep.subr.bf16.mxu0 %v807_v10  ;;  %v832_v32 = vld [vmem:[%s1096_s0 + $0x30] ss:$12 sps:$4 sm:$0xff]   ;;  %v833_v33 = vld [vmem:[%s1096_s0 + $0x38] ss:$12 sps:$4 sm:$0xff]   ;;  %v836_v35 = vld [vmem:[%s1096_s0 + $0x48] ss:$12 sps:$4 sm:$0xff]  }
   0xd   :  { %758 = vmatprep.subr.bf16.mxu1 %v849_v1  ;;  %v837_v36 = vld [vmem:[%s1096_s0 + $0x50] ss:$12 sps:$4 sm:$0xff]   ;;  %v841_v39 = vld [vmem:[%s1096_s0 + $0x68] ss:$12 sps:$4 sm:$0xff]   ;;  %v844_v42 = vld [vmem:[%s1096_s0 + $0x78] ss:$12 sps:$4 sm:$0xff]  }
   0xe   :  { %v838_v37 = vld [vmem:[%s1096_s0 + $0x64] ss:$12 sps:$4 sm:$0xff]   ;;  %v842_v40 = vld [vmem:[%s1096_s0 + $0x7c] ss:$12 sps:$4 sm:$0xff]   ;;  %v845_v43 = vld [vmem:[%s1096_s0 + $0x80] ss:$12 sps:$4 sm:$0xff]  }
   0xf   :  { %686 = vmatpush3.bf16.msra.mxu0 %v808_v11  ;;  %v39_v41 = vld [vmem:[%s1096_s0 + $0x90] sm:$0xff]  ;;  %v848_v46 = vld [vmem:[%s1096_s0 + $0x98] ss:$0 sps:$4 sm:$0xff]   ;;  %v1028_v49 = vld [vmem:[%s1097_s2] ss:$0 sm:$0xff] }
  0x10   :  { %759 = vmatpush3.bf16.msra.mxu1 %v809_v12  ;;  %687 = vmatprep.subr.bf16.mxu0 %v810_v13  ;;  %v627_v44 = vcombine.high %v39_v41, %v39_v41  ;;  %v626_v45 = vcombine.low %v39_v41, %v39_v41 }
  0x11   :  { %760 = vmatprep.subr.bf16.mxu1 %v849_v1 }
  0x13   :  { %688 = vmatpush3.bf16.msra.mxu0 %v811_v14 }
  0x14   :  { %761 = vmatpush3.bf16.msra.mxu1 %v812_v15  ;;  %689 = vmatprep.subr.bf16.mxu0 %v813_v16 }
  0x15   :  { %762 = vmatprep.subr.bf16.mxu1 %v849_v1 }
  0x17   :  { %690 = vmatpush3.bf16.msra.mxu0 %v814_v17 }
  0x18   :  { %763 = vmatpush3.bf16.msra.mxu1 %v815_v18  ;;  %691 = vmatprep.subr.bf16.mxu0 %v816_v19 }
  0x19   :  { %764 = vmatprep.subr.bf16.mxu1 %v849_v1 }
  0x1b   :  { %692 = vmatpush3.bf16.msra.mxu0 %v817_v20 }
  0x1c   :  { %765 = vmatpush3.bf16.msra.mxu1 %v818_v21  ;;  %693 = vmatprep.subr.bf16.mxu0 %v819_v22 }
  0x1d   :  { %766 = vmatprep.subr.bf16.mxu1 %v849_v1 }
  0x1f   :  { %694 = vmatpush3.bf16.msra.mxu0 %v820_v24 }
  0x20   :  { %767 = vmatpush3.bf16.msra.mxu1 %v824_v25 }
  0x22   :  { %380 = vmatmul.mubr.bf16.vlgmr.msra.gmra.mrb[0].mxu0 %v821_v26 }
  0x23   :  { %769 = vmatmul.mubr.bf16.vlgmr.msra.gmra.mrb[0].mxu1 %v825_v27  ;;  %387 = vmatprep.mubr.bf16.mxu0 %v826_v28 }
  0x24   :  { %772 = vmatprep.mubr.msk.bf16.mxu1 %vm850_vm0, %v849_v1 }
  0x2a   :  { %388 = vmatmul.mubr.bf16.gmra.mrb[4].mxu0 %v828_v29 }
  0x2b   :  { %773 = vmatmul.mubr.bf16.gmra.mrb[4].mxu1 %v829_v30  ;;  %395 = vmatprep.mubr.bf16.mxu0 %v830_v31 }
  0x2c   :  { %776 = vmatprep.mubr.msk.bf16.mxu1 %vm850_vm0, %v849_v1 }
  0x32   :  { %396 = vmatmul.mubr.bf16.gmra.mrb[8].mxu0 %v832_v32 }
  0x33   :  { %777 = vmatmul.mubr.bf16.gmra.mrb[8].mxu1 %v833_v33  ;;  %403 = vmatprep.mubr.bf16.mxu0 %v834_v34 }
  0x34   :  { %780 = vmatprep.mubr.msk.bf16.mxu1 %vm850_vm0, %v849_v1 }
  0x3a   :  { %404 = vmatmul.mubr.bf16.gmra.mrb[12].mxu0 %v836_v35 }
  0x3b   :  { %781 = vmatmul.mubr.bf16.gmra.mrb[12].mxu1 %v837_v36  ;;  %411 = vmatprep.mubr.bf16.mxu0 %v838_v37 }
  0x3c   :  { %784 = vmatprep.mubr.msk.bf16.mxu1 %vm850_vm0, %v849_v1 }
  0x42   :  { %412 = vmatmul.mubr.bf16.gmra.mrb[16].mxu0 %v840_v38 }
  0x43   :  { %785 = vmatmul.mubr.bf16.gmra.mrb[16].mxu1 %v841_v39  ;;  %419 = vmatprep.mubr.bf16.mxu0 %v842_v40 }
  0x44   :  { %788 = vmatprep.mubr.msk.bf16.mxu1 %vm850_vm0, %v849_v1 }
  0x4a   :  { %420 = vmatmul.mubr.bf16.gmra.mrb[20].mxu0 %v844_v42 }
  0x4b   :  { %789 = vmatmul.mubr.bf16.gmra.mrb[20].mxu1 %v845_v43  ;;  %427 = vmatprep.mubr.bf16.mxu0 %v627_v44 }
  0x4c   :  { %792 = vmatprep.mubr.msk.bf16.mxu1 %vm850_vm0, %v849_v1 }
  0x52   :  { %428 = vmatmul.mubr.bf16.gmra.mrb[24].mxu0 %v626_v45 }
  0x53   :  { %793 = vmatmul.mubr.bf16.gmra.mrb[24].mxu1 %v848_v46 }
  0xf5   :  { %v695_v47 = vpop.f32.mrb[0].mxu0 }
  0xf6   :  { %v696_v48 = vpop.f32.mrb[1].mxu0  ;;  %v469_v50 = vpop.f32.mrb[0].mxu1 }
  0xf7   :  { %v697_v51 = vadd.f32 %v696_v48, %v695_v47  ;;  %v698_v52 = vpop.f32.mrb[2].mxu0  ;;  %v770_v53 = vpop.f32.mrb[1].mxu1 }
  0xf8   :  { %v699_v54 = vpop.f32.mrb[3].mxu0  ;;  %v472_v55 = vpop.f32.mrb[2].mxu1 }
  0xf9   :  { %v382_v56 = vadd.f32 %v697_v51, %v1028_v49  ;;  %v700_v57 = vadd.f32 %v699_v54, %v698_v52  ;;  %v771_v58 = vpop.f32.mrb[3].mxu1 }
  0xfb   :  { %v470_v59 = vadd.f32 %v469_v50, %v382_v56  ;;  %v385_v60 = vadd.f32 %v700_v57, %v1028_v49 }
  0xfd   :  { %v523_v61 = vmax.f32 %v470_v59, 0.0  ;;  %v473_v62 = vadd.f32 %v472_v55, %v385_v60  ;;  %v701_v63 = vpop.f32.mrb[4].mxu0 }
  0xfe   :  { %v702_v0 = vpop.f32.mrb[5].mxu0  ;;  %v477_v1 = vpop.f32.mrb[4].mxu1 }
  0xff   :  { %v666_v2 = vpack.c.bf16 %v523_v61, %v523_v61  ;;  %v524_v3 = vmax.f32 %v473_v62, 0.0  ;;  %v703_v4 = vadd.f32 %v702_v0, %v701_v63  ;;  %v704_v5 = vpop.f32.mrb[6].mxu0  ;;  %v774_v6 = vpop.f32.mrb[5].mxu1 }
 0x100   :  { %v705_v7 = vpop.f32.mrb[7].mxu0  ;;  %v480_v8 = vpop.f32.mrb[6].mxu1 }
 0x101   :  { %590 = vst.msk [vmem:[%s1098_s3] sm:$0xf] %vm589_vm1, %v666_v2  ;;  %v667_v9 = vpack.c.bf16 %v524_v3, %v524_v3  ;;  %v390_v10 = vadd.f32 %v703_v4, %v1028_v49  ;;  %v706_v11 = vadd.f32 %v705_v7, %v704_v5  ;;  %v775_v12 = vpop.f32.mrb[7].mxu1 }
 0x103   :  { %591 = vst.msk [vmem:[%s1098_s3 + $0x4] sm:$0xf] %vm589_vm1, %v667_v9  ;;  %v478_v13 = vadd.f32 %v477_v1, %v390_v10  ;;  %v393_v14 = vadd.f32 %v706_v11, %v1028_v49 }
 0x105   :  { %v525_v15 = vmax.f32 %v478_v13, 0.0  ;;  %v481_v16 = vadd.f32 %v480_v8, %v393_v14  ;;  %v707_v17 = vpop.f32.mrb[8].mxu0 }
 0x106   :  { %v708_v18 = vpop.f32.mrb[9].mxu0  ;;  %v485_v19 = vpop.f32.mrb[8].mxu1 }
 0x107   :  { %v668_v20 = vpack.c.bf16 %v525_v15, %v525_v15  ;;  %v526_v21 = vmax.f32 %v481_v16, 0.0  ;;  %v709_v22 = vadd.f32 %v708_v18, %v707_v17  ;;  %v710_v23 = vpop.f32.mrb[10].mxu0  ;;  %v778_v24 = vpop.f32.mrb[9].mxu1 }
 0x108   :  { %v711_v25 = vpop.f32.mrb[11].mxu0  ;;  %v488_v26 = vpop.f32.mrb[10].mxu1 }
 0x109   :  { %592 = vst.msk [vmem:[%s1098_s3 + $0x8] sm:$0xf] %vm589_vm1, %v668_v20  ;;  %v669_v27 = vpack.c.bf16 %v526_v21, %v526_v21  ;;  %v398_v28 = vadd.f32 %v709_v22, %v1028_v49  ;;  %v712_v29 = vadd.f32 %v711_v25, %v710_v23  ;;  %v779_v30 = vpop.f32.mrb[11].mxu1 }
 0x10b   :  { %593 = vst.msk [vmem:[%s1098_s3 + $0xc] sm:$0xf] %vm589_vm1, %v669_v27  ;;  %v486_v31 = vadd.f32 %v485_v19, %v398_v28  ;;  %v401_v32 = vadd.f32 %v712_v29, %v1028_v49 }
 0x10d   :  { %v527_v33 = vmax.f32 %v486_v31, 0.0  ;;  %v489_v34 = vadd.f32 %v488_v26, %v401_v32  ;;  %v713_v35 = vpop.f32.mrb[12].mxu0 }
 0x10e   :  { %v714_v36 = vpop.f32.mrb[13].mxu0  ;;  %v493_v37 = vpop.f32.mrb[12].mxu1 }
 0x10f   :  { %v670_v38 = vpack.c.bf16 %v527_v33, %v527_v33  ;;  %v528_v39 = vmax.f32 %v489_v34, 0.0  ;;  %v715_v40 = vadd.f32 %v714_v36, %v713_v35  ;;  %v716_v41 = vpop.f32.mrb[14].mxu0  ;;  %v782_v42 = vpop.f32.mrb[13].mxu1 }
 0x110   :  { %v717_v43 = vpop.f32.mrb[15].mxu0  ;;  %v496_v44 = vpop.f32.mrb[14].mxu1 }
 0x111   :  { %594 = vst.msk [vmem:[%s1098_s3 + $0x10] sm:$0xf] %vm589_vm1, %v670_v38  ;;  %v671_v45 = vpack.c.bf16 %v528_v39, %v528_v39  ;;  %v406_v46 = vadd.f32 %v715_v40, %v1028_v49  ;;  %v718_v47 = vadd.f32 %v717_v43, %v716_v41  ;;  %v783_v48 = vpop.f32.mrb[15].mxu1 }
 0x113   :  { %595 = vst.msk [vmem:[%s1098_s3 + $0x14] sm:$0xf] %vm589_vm1, %v671_v45  ;;  %v494_v50 = vadd.f32 %v493_v37, %v406_v46  ;;  %v409_v51 = vadd.f32 %v718_v47, %v1028_v49 }
 0x115   :  { %v529_v52 = vmax.f32 %v494_v50, 0.0  ;;  %v497_v53 = vadd.f32 %v496_v44, %v409_v51  ;;  %v719_v54 = vpop.f32.mrb[16].mxu0 }
 0x116   :  { %v720_v55 = vpop.f32.mrb[17].mxu0  ;;  %v501_v56 = vpop.f32.mrb[16].mxu1 }
 0x117   :  { %v672_v57 = vpack.c.bf16 %v529_v52, %v529_v52  ;;  %v530_v58 = vmax.f32 %v497_v53, 0.0  ;;  %v721_v59 = vadd.f32 %v720_v55, %v719_v54  ;;  %v722_v60 = vpop.f32.mrb[18].mxu0  ;;  %v786_v61 = vpop.f32.mrb[17].mxu1 }
 0x118   :  { %v723_v62 = vpop.f32.mrb[19].mxu0  ;;  %v504_v63 = vpop.f32.mrb[18].mxu1 }
 0x119   :  { %596 = vst.msk [vmem:[%s1098_s3 + $0x18] sm:$0xf] %vm589_vm1, %v672_v57  ;;  %v673_v0 = vpack.c.bf16 %v530_v58, %v530_v58  ;;  %v414_v1 = vadd.f32 %v721_v59, %v1028_v49  ;;  %v724_v2 = vadd.f32 %v723_v62, %v722_v60  ;;  %v787_v3 = vpop.f32.mrb[19].mxu1 }
 0x11b   :  { %597 = vst.msk [vmem:[%s1098_s3 + $0x1c] sm:$0xf] %vm589_vm1, %v673_v0  ;;  %v502_v4 = vadd.f32 %v501_v56, %v414_v1  ;;  %v417_v5 = vadd.f32 %v724_v2, %v1028_v49 }
 0x11d   :  { %v531_v6 = vmax.f32 %v502_v4, 0.0  ;;  %v505_v7 = vadd.f32 %v504_v63, %v417_v5  ;;  %v725_v8 = vpop.f32.mrb[20].mxu0 }
 0x11e   :  { %v726_v9 = vpop.f32.mrb[21].mxu0  ;;  %v509_v10 = vpop.f32.mrb[20].mxu1 }
 0x11f   :  { %v674_v11 = vpack.c.bf16 %v531_v6, %v531_v6  ;;  %v532_v12 = vmax.f32 %v505_v7, 0.0  ;;  %v727_v13 = vadd.f32 %v726_v9, %v725_v8  ;;  %v728_v14 = vpop.f32.mrb[22].mxu0  ;;  %v790_v15 = vpop.f32.mrb[21].mxu1 }
 0x120   :  { %v729_v16 = vpop.f32.mrb[23].mxu0  ;;  %v512_v17 = vpop.f32.mrb[22].mxu1 }
 0x121   :  { %598 = vst.msk [vmem:[%s1098_s3 + $0x20] sm:$0xf] %vm589_vm1, %v674_v11  ;;  %v675_v18 = vpack.c.bf16 %v532_v12, %v532_v12  ;;  %v422_v19 = vadd.f32 %v727_v13, %v1028_v49  ;;  %v730_v20 = vadd.f32 %v729_v16, %v728_v14  ;;  %v791_v21 = vpop.f32.mrb[23].mxu1 }
 0x123   :  { %599 = vst.msk [vmem:[%s1098_s3 + $0x24] sm:$0xf] %vm589_vm1, %v675_v18  ;;  %v510_v22 = vadd.f32 %v509_v10, %v422_v19  ;;  %v425_v23 = vadd.f32 %v730_v20, %v1028_v49 }
 0x125   :  { %v533_v24 = vmax.f32 %v510_v22, 0.0  ;;  %v513_v25 = vadd.f32 %v512_v17, %v425_v23  ;;  %v731_v26 = vpop.f32.mrb[24].mxu0 }
 0x126   :  { %v732_v27 = vpop.f32.mrb[25].mxu0  ;;  %v517_v28 = vpop.f32.mrb[24].mxu1 }
 0x127   :  { %v676_v29 = vpack.c.bf16 %v533_v24, %v533_v24  ;;  %v534_v30 = vmax.f32 %v513_v25, 0.0  ;;  %v733_v31 = vadd.f32 %v732_v27, %v731_v26  ;;  %v734_v32 = vpop.f32.mrb[26].mxu0  ;;  %v794_v33 = vpop.f32.mrb[25].mxu1 }
 0x128   :  { %v735_v34 = vpop.f32.mrb[27].mxu0  ;;  %v520_v35 = vpop.f32.mrb[26].mxu1 }
 0x129   :  { %600 = vst.msk [vmem:[%s1098_s3 + $0x28] sm:$0xf] %vm589_vm1, %v676_v29  ;;  %v677_v36 = vpack.c.bf16 %v534_v30, %v534_v30  ;;  %v430_v37 = vadd.f32 %v733_v31, %v1028_v49  ;;  %v795_v38 = vpop.f32.mrb[27].mxu1 }
 0x12b   :  { %601 = vst.msk [vmem:[%s1098_s3 + $0x2c] sm:$0xf] %vm589_vm1, %v677_v36  ;;  %v518_v39 = vadd.f32 %v517_v28, %v430_v37 }
 0x12d   :  { %v535_v40 = vmax.f32 %v518_v39, 0.0 }
 0x12f   :  { %v678_v41 = vpack.c.bf16 %v535_v40, %v535_v40 }
 0x131   :  { %602 = vst.msk [vmem:[%s1098_s3 + $0x30] sm:$0xf] %vm589_vm1, %v678_v41 }

// kernel: squeezenet_forward.31
= control target key start
LH: loop header
LB: loop body
LE: loop exit
PB: predicated region body
PF: predicated region fallthrough
CT: control target
= control target key end

     0   :  { %v849_v1 = vmov 0.0   ;;  %vm850_vm0 = vmmov 0   ;;  %vm589_vm1 = vcmask 519168   ;;  %s1095_s1 = inlined_call_operand.vmem [shape: bf16[384,64], index: 1, kind: input, shape index: {}]   ;;  %s1096_s0 = inlined_call_operand.vmem [shape: bf16[98,384], index: 0, kind: input, shape index: {}]   ;;  %s1097_s2 = inlined_call_operand.vmem [shape: f32[1,64], index: 2, kind: input, shape index: {}]   ;;  %s1098_s3 = inlined_call_operand.vmem [shape: bf16[98,64], index: 3, kind: output, shape index: {}]  }
   0x1   :  { %v798_v0 = vld [vmem:[%s1095_s1 + $0x40] sm:$0xff]   ;;  %752 = vmatprep.subr.bf16.mxu1 %v849_v1  ;;  %768 = vmatprep.mubr.msk.bf16.mxu1 %vm850_vm0, %v849_v1  ;;  %v801_v4 = vld [vmem:[%s1095_s1 + $0x48] sm:$0xff]   ;;  %v804_v7 = vld [vmem:[%s1095_s1 + $0x50] sm:$0xff]  }
   0x2   :  { %v799_v2 = vld [vmem:[%s1095_s1] sm:$0xff]   ;;  %679 = vmatprep.subr.bf16.mxu0 %v798_v0  ;;  %v802_v5 = vld [vmem:[%s1095_s1 + $0x8] sm:$0xff]   ;;  %v805_v8 = vld [vmem:[%s1095_s1 + $0x10] sm:$0xff]  }
   0x3   :  { %v800_v3 = vld [vmem:[%s1095_s1 + $0x80] sm:$0xff]   ;;  %680 = vmatpush3.bf16.msra.mxu0 %v799_v2  ;;  %v803_v6 = vld [vmem:[%s1095_s1 + $0x88] sm:$0xff]   ;;  %v806_v9 = vld [vmem:[%s1095_s1 + $0x90] sm:$0xff]  }
   0x4   :  { %753 = vmatpush3.bf16.msra.mxu1 %v800_v3  ;;  %681 = vmatprep.subr.bf16.mxu0 %v801_v4  ;;  %v807_v10 = vld [vmem:[%s1095_s1 + $0x58] sm:$0xff]   ;;  %v810_v13 = vld [vmem:[%s1095_s1 + $0x60] sm:$0xff]   ;;  %v813_v16 = vld [vmem:[%s1095_s1 + $0x68] sm:$0xff]  }
   0x5   :  { %754 = vmatprep.subr.bf16.mxu1 %v849_v1  ;;  %v808_v11 = vld [vmem:[%s1095_s1 + $0x18] sm:$0xff]   ;;  %v811_v14 = vld [vmem:[%s1095_s1 + $0x20] sm:$0xff]   ;;  %v814_v17 = vld [vmem:[%s1095_s1 + $0x28] sm:$0xff]  }
   0x6   :  { %v809_v12 = vld [vmem:[%s1095_s1 + $0x98] sm:$0xff]   ;;  %v812_v15 = vld [vmem:[%s1095_s1 + $0xa0] sm:$0xff]   ;;  %v815_v18 = vld [vmem:[%s1095_s1 + $0xa8] sm:$0xff]  }
   0x7   :  { %682 = vmatpush3.bf16.msra.mxu0 %v802_v5  ;;  %v816_v19 = vld [vmem:[%s1095_s1 + $0x70] sm:$0xff]   ;;  %v819_v22 = vld [vmem:[%s1095_s1 + $0x78] sm:$0xff]   ;;  %v821_v26 = vld [vmem:[%s1096_s0] ss:$12 sps:$4 sm:$0xff]  }
   0x8   :  { %755 = vmatpush3.bf16.msra.mxu1 %v803_v6  ;;  %683 = vmatprep.subr.bf16.mxu0 %v804_v7  ;;  %v817_v20 = vld [vmem:[%s1095_s1 + $0x30] sm:$0xff]   ;;  %v820_v24 = vld [vmem:[%s1095_s1 + $0x38] sm:$0xff]   ;;  %v829_v30 = vld [vmem:[%s1096_s0 + $0x20] ss:$12 sps:$4 sm:$0xff]  }
   0x9   :  { %756 = vmatprep.subr.bf16.mxu1 %v849_v1  ;;  %v818_v21 = vld [vmem:[%s1095_s1 + $0xb0] sm:$0xff]   ;;  %v824_v25 = vld [vmem:[%s1095_s1 + $0xb8] sm:$0xff]   ;;  %v840_v38 = vld [vmem:[%s1096_s0 + $0x60] ss:$12 sps:$4 sm:$0xff]  }
   0xa   :  { %v823_v23 = vld [vmem:[%s1096_s0 + $0x4] ss:$12 sps:$4 sm:$0xff]   ;;  %v825_v27 = vld [vmem:[%s1096_s0 + $0x8] ss:$12 sps:$4 sm:$0xff]   ;;  %v834_v34 = vld [vmem:[%s1096_s0 + $0x4c] ss:$12 sps:$4 sm:$0xff]  }
   0xb   :  { %684 = vmatpush3.bf16.msra.mxu0 %v805_v8  ;;  %379 = vmatprep.mubr.bf16.mxu0 %v823_v23  ;;  %v826_v28 = vld [vmem:[%s1096_s0 + $0x1c] ss:$12 sps:$4 sm:$0xff]   ;;  %v828_v29 = vld [vmem:[%s1096_s0 + $0x18] ss:$12 sps:$4 sm:$0xff]   ;;  %v830_v31 = vld [vmem:[%s1096_s0 + $0x34] ss:$12 sps:$4 sm:$0xff]  }
   0xc   :  { %757 = vmatpush3.bf16.msra.mxu1 %v806_v9  ;;  %685 = vmatprep.subr.bf16.mxu0 %v807_v10  ;;  %v832_v32 = vld [vmem:[%s1096_s0 + $0x30] ss:$12 sps:$4 sm:$0xff]   ;;  %v833_v33 = vld [vmem:[%s1096_s0 + $0x38] ss:$12 sps:$4 sm:$0xff]   ;;  %v836_v35 = vld [vmem:[%s1096_s0 + $0x48] ss:$12 sps:$4 sm:$0xff]  }
   0xd   :  { %758 = vmatprep.subr.bf16.mxu1 %v849_v1  ;;  %v837_v36 = vld [vmem:[%s1096_s0 + $0x50] ss:$12 sps:$4 sm:$0xff]   ;;  %v841_v39 = vld [vmem:[%s1096_s0 + $0x68] ss:$12 sps:$4 sm:$0xff]   ;;  %v844_v42 = vld [vmem:[%s1096_s0 + $0x78] ss:$12 sps:$4 sm:$0xff]  }
   0xe   :  { %v838_v37 = vld [vmem:[%s1096_s0 + $0x64] ss:$12 sps:$4 sm:$0xff]   ;;  %v842_v40 = vld [vmem:[%s1096_s0 + $0x7c] ss:$12 sps:$4 sm:$0xff]   ;;  %v845_v43 = vld [vmem:[%s1096_s0 + $0x80] ss:$12 sps:$4 sm:$0xff]  }
   0xf   :  { %686 = vmatpush3.bf16.msra.mxu0 %v808_v11  ;;  %v39_v41 = vld [vmem:[%s1096_s0 + $0x90] sm:$0xff]  ;;  %v848_v46 = vld [vmem:[%s1096_s0 + $0x98] ss:$0 sps:$4 sm:$0xff]   ;;  %v1028_v49 = vld [vmem:[%s1097_s2] ss:$0 sm:$0xff] }
  0x10   :  { %759 = vmatpush3.bf16.msra.mxu1 %v809_v12  ;;  %687 = vmatprep.subr.bf16.mxu0 %v810_v13  ;;  %v627_v44 = vcombine.high %v39_v41, %v39_v41  ;;  %v626_v45 = vcombine.low %v39_v41, %v39_v41 }
  0x11   :  { %760 = vmatprep.subr.bf16.mxu1 %v849_v1 }
  0x13   :  { %688 = vmatpush3.bf16.msra.mxu0 %v811_v14 }
  0x14   :  { %761 = vmatpush3.bf16.msra.mxu1 %v812_v15  ;;  %689 = vmatprep.subr.bf16.mxu0 %v813_v16 }
  0x15   :  { %762 = vmatprep.subr.bf16.mxu1 %v849_v1 }
  0x17   :  { %690 = vmatpush3.bf16.msra.mxu0 %v814_v17 }
  0x18   :  { %763 = vmatpush3.bf16.msra.mxu1 %v815_v18  ;;  %691 = vmatprep.subr.bf16.mxu0 %v816_v19 }
  0x19   :  { %764 = vmatprep.subr.bf16.mxu1 %v849_v1 }
  0x1b   :  { %692 = vmatpush3.bf16.msra.mxu0 %v817_v20 }
  0x1c   :  { %765 = vmatpush3.bf16.msra.mxu1 %v818_v21  ;;  %693 = vmatprep.subr.bf16.mxu0 %v819_v22 }
  0x1d   :  { %766 = vmatprep.subr.bf16.mxu1 %v849_v1 }
  0x1f   :  { %694 = vmatpush3.bf16.msra.mxu0 %v820_v24 }
  0x20   :  { %767 = vmatpush3.bf16.msra.mxu1 %v824_v25 }
  0x22   :  { %380 = vmatmul.mubr.bf16.vlgmr.msra.gmra.mrb[0].mxu0 %v821_v26 }
  0x23   :  { %769 = vmatmul.mubr.bf16.vlgmr.msra.gmra.mrb[0].mxu1 %v825_v27  ;;  %387 = vmatprep.mubr.bf16.mxu0 %v826_v28 }
  0x24   :  { %772 = vmatprep.mubr.msk.bf16.mxu1 %vm850_vm0, %v849_v1 }
  0x2a   :  { %388 = vmatmul.mubr.bf16.gmra.mrb[4].mxu0 %v828_v29 }
  0x2b   :  { %773 = vmatmul.mubr.bf16.gmra.mrb[4].mxu1 %v829_v30  ;;  %395 = vmatprep.mubr.bf16.mxu0 %v830_v31 }
  0x2c   :  { %776 = vmatprep.mubr.msk.bf16.mxu1 %vm850_vm0, %v849_v1 }
  0x32   :  { %396 = vmatmul.mubr.bf16.gmra.mrb[8].mxu0 %v832_v32 }
  0x33   :  { %777 = vmatmul.mubr.bf16.gmra.mrb[8].mxu1 %v833_v33  ;;  %403 = vmatprep.mubr.bf16.mxu0 %v834_v34 }
  0x34   :  { %780 = vmatprep.mubr.msk.bf16.mxu1 %vm850_vm0, %v849_v1 }
  0x3a   :  { %404 = vmatmul.mubr.bf16.gmra.mrb[12].mxu0 %v836_v35 }
  0x3b   :  { %781 = vmatmul.mubr.bf16.gmra.mrb[12].mxu1 %v837_v36  ;;  %411 = vmatprep.mubr.bf16.mxu0 %v838_v37 }
  0x3c   :  { %784 = vmatprep.mubr.msk.bf16.mxu1 %vm850_vm0, %v849_v1 }
  0x42   :  { %412 = vmatmul.mubr.bf16.gmra.mrb[16].mxu0 %v840_v38 }
  0x43   :  { %785 = vmatmul.mubr.bf16.gmra.mrb[16].mxu1 %v841_v39  ;;  %419 = vmatprep.mubr.bf16.mxu0 %v842_v40 }
  0x44   :  { %788 = vmatprep.mubr.msk.bf16.mxu1 %vm850_vm0, %v849_v1 }
  0x4a   :  { %420 = vmatmul.mubr.bf16.gmra.mrb[20].mxu0 %v844_v42 }
  0x4b   :  { %789 = vmatmul.mubr.bf16.gmra.mrb[20].mxu1 %v845_v43  ;;  %427 = vmatprep.mubr.bf16.mxu0 %v627_v44 }
  0x4c   :  { %792 = vmatprep.mubr.msk.bf16.mxu1 %vm850_vm0, %v849_v1 }
  0x52   :  { %428 = vmatmul.mubr.bf16.gmra.mrb[24].mxu0 %v626_v45 }
  0x53   :  { %793 = vmatmul.mubr.bf16.gmra.mrb[24].mxu1 %v848_v46 }
  0xf5   :  { %v695_v47 = vpop.f32.mrb[0].mxu0 }
  0xf6   :  { %v696_v48 = vpop.f32.mrb[1].mxu0  ;;  %v469_v50 = vpop.f32.mrb[0].mxu1 }
  0xf7   :  { %v697_v51 = vadd.f32 %v696_v48, %v695_v47  ;;  %v698_v52 = vpop.f32.mrb[2].mxu0  ;;  %v770_v53 = vpop.f32.mrb[1].mxu1 }
  0xf8   :  { %v699_v54 = vpop.f32.mrb[3].mxu0  ;;  %v472_v55 = vpop.f32.mrb[2].mxu1 }
  0xf9   :  { %v382_v56 = vadd.f32 %v697_v51, %v1028_v49  ;;  %v700_v57 = vadd.f32 %v699_v54, %v698_v52  ;;  %v771_v58 = vpop.f32.mrb[3].mxu1 }
  0xfb   :  { %v470_v59 = vadd.f32 %v469_v50, %v382_v56  ;;  %v385_v60 = vadd.f32 %v700_v57, %v1028_v49 }
  0xfd   :  { %v523_v61 = vmax.f32 %v470_v59, 0.0  ;;  %v473_v62 = vadd.f32 %v472_v55, %v385_v60  ;;  %v701_v63 = vpop.f32.mrb[4].mxu0 }
  0xfe   :  { %v702_v0 = vpop.f32.mrb[5].mxu0  ;;  %v477_v1 = vpop.f32.mrb[4].mxu1 }
  0xff   :  { %v666_v2 = vpack.c.bf16 %v523_v61, %v523_v61  ;;  %v524_v3 = vmax.f32 %v473_v62, 0.0  ;;  %v703_v4 = vadd.f32 %v702_v0, %v701_v63  ;;  %v704_v5 = vpop.f32.mrb[6].mxu0  ;;  %v774_v6 = vpop.f32.mrb[5].mxu1 }
 0x100   :  { %v705_v7 = vpop.f32.mrb[7].mxu0  ;;  %v480_v8 = vpop.f32.mrb[6].mxu1 }
 0x101   :  { %590 = vst.msk [vmem:[%s1098_s3] sm:$0xf] %vm589_vm1, %v666_v2  ;;  %v667_v9 = vpack.c.bf16 %v524_v3, %v524_v3  ;;  %v390_v10 = vadd.f32 %v703_v4, %v1028_v49  ;;  %v706_v11 = vadd.f32 %v705_v7, %v704_v5  ;;  %v775_v12 = vpop.f32.mrb[7].mxu1 }
 0x103   :  { %591 = vst.msk [vmem:[%s1098_s3 + $0x4] sm:$0xf] %vm589_vm1, %v667_v9  ;;  %v478_v13 = vadd.f32 %v477_v1, %v390_v10  ;;  %v393_v14 = vadd.f32 %v706_v11, %v1028_v49 }
 0x105   :  { %v525_v15 = vmax.f32 %v478_v13, 0.0  ;;  %v481_v16 = vadd.f32 %v480_v8, %v393_v14  ;;  %v707_v17 = vpop.f32.mrb[8].mxu0 }
 0x106   :  { %v708_v18 = vpop.f32.mrb[9].mxu0  ;;  %v485_v19 = vpop.f32.mrb[8].mxu1 }
 0x107   :  { %v668_v20 = vpack.c.bf16 %v525_v15, %v525_v15  ;;  %v526_v21 = vmax.f32 %v481_v16, 0.0  ;;  %v709_v22 = vadd.f32 %v708_v18, %v707_v17  ;;  %v710_v23 = vpop.f32.mrb[10].mxu0  ;;  %v778_v24 = vpop.f32.mrb[9].mxu1 }
 0x108   :  { %v711_v25 = vpop.f32.mrb[11].mxu0  ;;  %v488_v26 = vpop.f32.mrb[10].mxu1 }
 0x109   :  { %592 = vst.msk [vmem:[%s1098_s3 + $0x8] sm:$0xf] %vm589_vm1, %v668_v20  ;;  %v669_v27 = vpack.c.bf16 %v526_v21, %v526_v21  ;;  %v398_v28 = vadd.f32 %v709_v22, %v1028_v49  ;;  %v712_v29 = vadd.f32 %v711_v25, %v710_v23  ;;  %v779_v30 = vpop.f32.mrb[11].mxu1 }
 0x10b   :  { %593 = vst.msk [vmem:[%s1098_s3 + $0xc] sm:$0xf] %vm589_vm1, %v669_v27  ;;  %v486_v31 = vadd.f32 %v485_v19, %v398_v28  ;;  %v401_v32 = vadd.f32 %v712_v29, %v1028_v49 }
 0x10d   :  { %v527_v33 = vmax.f32 %v486_v31, 0.0  ;;  %v489_v34 = vadd.f32 %v488_v26, %v401_v32  ;;  %v713_v35 = vpop.f32.mrb[12].mxu0 }
 0x10e   :  { %v714_v36 = vpop.f32.mrb[13].mxu0  ;;  %v493_v37 = vpop.f32.mrb[12].mxu1 }
 0x10f   :  { %v670_v38 = vpack.c.bf16 %v527_v33, %v527_v33  ;;  %v528_v39 = vmax.f32 %v489_v34, 0.0  ;;  %v715_v40 = vadd.f32 %v714_v36, %v713_v35  ;;  %v716_v41 = vpop.f32.mrb[14].mxu0  ;;  %v782_v42 = vpop.f32.mrb[13].mxu1 }
 0x110   :  { %v717_v43 = vpop.f32.mrb[15].mxu0  ;;  %v496_v44 = vpop.f32.mrb[14].mxu1 }
 0x111   :  { %594 = vst.msk [vmem:[%s1098_s3 + $0x10] sm:$0xf] %vm589_vm1, %v670_v38  ;;  %v671_v45 = vpack.c.bf16 %v528_v39, %v528_v39  ;;  %v406_v46 = vadd.f32 %v715_v40, %v1028_v49  ;;  %v718_v47 = vadd.f32 %v717_v43, %v716_v41  ;;  %v783_v48 = vpop.f32.mrb[15].mxu1 }
 0x113   :  { %595 = vst.msk [vmem:[%s1098_s3 + $0x14] sm:$0xf] %vm589_vm1, %v671_v45  ;;  %v494_v50 = vadd.f32 %v493_v37, %v406_v46  ;;  %v409_v51 = vadd.f32 %v718_v47, %v1028_v49 }
 0x115   :  { %v529_v52 = vmax.f32 %v494_v50, 0.0  ;;  %v497_v53 = vadd.f32 %v496_v44, %v409_v51  ;;  %v719_v54 = vpop.f32.mrb[16].mxu0 }
 0x116   :  { %v720_v55 = vpop.f32.mrb[17].mxu0  ;;  %v501_v56 = vpop.f32.mrb[16].mxu1 }
 0x117   :  { %v672_v57 = vpack.c.bf16 %v529_v52, %v529_v52  ;;  %v530_v58 = vmax.f32 %v497_v53, 0.0  ;;  %v721_v59 = vadd.f32 %v720_v55, %v719_v54  ;;  %v722_v60 = vpop.f32.mrb[18].mxu0  ;;  %v786_v61 = vpop.f32.mrb[17].mxu1 }
 0x118   :  { %v723_v62 = vpop.f32.mrb[19].mxu0  ;;  %v504_v63 = vpop.f32.mrb[18].mxu1 }
 0x119   :  { %596 = vst.msk [vmem:[%s1098_s3 + $0x18] sm:$0xf] %vm589_vm1, %v672_v57  ;;  %v673_v0 = vpack.c.bf16 %v530_v58, %v530_v58  ;;  %v414_v1 = vadd.f32 %v721_v59, %v1028_v49  ;;  %v724_v2 = vadd.f32 %v723_v62, %v722_v60  ;;  %v787_v3 = vpop.f32.mrb[19].mxu1 }
 0x11b   :  { %597 = vst.msk [vmem:[%s1098_s3 + $0x1c] sm:$0xf] %vm589_vm1, %v673_v0  ;;  %v502_v4 = vadd.f32 %v501_v56, %v414_v1  ;;  %v417_v5 = vadd.f32 %v724_v2, %v1028_v49 }
 0x11d   :  { %v531_v6 = vmax.f32 %v502_v4, 0.0  ;;  %v505_v7 = vadd.f32 %v504_v63, %v417_v5  ;;  %v725_v8 = vpop.f32.mrb[20].mxu0 }
 0x11e   :  { %v726_v9 = vpop.f32.mrb[21].mxu0  ;;  %v509_v10 = vpop.f32.mrb[20].mxu1 }
 0x11f   :  { %v674_v11 = vpack.c.bf16 %v531_v6, %v531_v6  ;;  %v532_v12 = vmax.f32 %v505_v7, 0.0  ;;  %v727_v13 = vadd.f32 %v726_v9, %v725_v8  ;;  %v728_v14 = vpop.f32.mrb[22].mxu0  ;;  %v790_v15 = vpop.f32.mrb[21].mxu1 }
 0x120   :  { %v729_v16 = vpop.f32.mrb[23].mxu0  ;;  %v512_v17 = vpop.f32.mrb[22].mxu1 }
 0x121   :  { %598 = vst.msk [vmem:[%s1098_s3 + $0x20] sm:$0xf] %vm589_vm1, %v674_v11  ;;  %v675_v18 = vpack.c.bf16 %v532_v12, %v532_v12  ;;  %v422_v19 = vadd.f32 %v727_v13, %v1028_v49  ;;  %v730_v20 = vadd.f32 %v729_v16, %v728_v14  ;;  %v791_v21 = vpop.f32.mrb[23].mxu1 }
 0x123   :  { %599 = vst.msk [vmem:[%s1098_s3 + $0x24] sm:$0xf] %vm589_vm1, %v675_v18  ;;  %v510_v22 = vadd.f32 %v509_v10, %v422_v19  ;;  %v425_v23 = vadd.f32 %v730_v20, %v1028_v49 }
 0x125   :  { %v533_v24 = vmax.f32 %v510_v22, 0.0  ;;  %v513_v25 = vadd.f32 %v512_v17, %v425_v23  ;;  %v731_v26 = vpop.f32.mrb[24].mxu0 }
 0x126   :  { %v732_v27 = vpop.f32.mrb[25].mxu0  ;;  %v517_v28 = vpop.f32.mrb[24].mxu1 }
 0x127   :  { %v676_v29 = vpack.c.bf16 %v533_v24, %v533_v24  ;;  %v534_v30 = vmax.f32 %v513_v25, 0.0  ;;  %v733_v31 = vadd.f32 %v732_v27, %v731_v26  ;;  %v734_v32 = vpop.f32.mrb[26].mxu0  ;;  %v794_v33 = vpop.f32.mrb[25].mxu1 }
 0x128   :  { %v735_v34 = vpop.f32.mrb[27].mxu0  ;;  %v520_v35 = vpop.f32.mrb[26].mxu1 }
 0x129   :  { %600 = vst.msk [vmem:[%s1098_s3 + $0x28] sm:$0xf] %vm589_vm1, %v676_v29  ;;  %v677_v36 = vpack.c.bf16 %v534_v30, %v534_v30  ;;  %v430_v37 = vadd.f32 %v733_v31, %v1028_v49  ;;  %v795_v38 = vpop.f32.mrb[27].mxu1 }
 0x12b   :  { %601 = vst.msk [vmem:[%s1098_s3 + $0x2c] sm:$0xf] %vm589_vm1, %v677_v36  ;;  %v518_v39 = vadd.f32 %v517_v28, %v430_v37 }
 0x12d   :  { %v535_v40 = vmax.f32 %v518_v39, 0.0 }
 0x12f   :  { %v678_v41 = vpack.c.bf16 %v535_v40, %v535_v40 }
 0x131   :  { %602 = vst.msk [vmem:[%s1098_s3 + $0x30] sm:$0xf] %vm589_vm1, %v678_v41 }

// kernel: squeezenet_forward.32
= control target key start
LH: loop header
LB: loop body
LE: loop exit
PB: predicated region body
PF: predicated region fallthrough
CT: control target
= control target key end

     0   :  { %vm1107_vm0 = vcmask 523264   ;;  %s3357_s1 = inlined_call_operand.vmem [shape: bf16[576,512], index: 1, kind: input, shape index: {}]   ;;  %s3358_s0 = inlined_call_operand.vmem [shape: bf16[98,576], index: 0, kind: input, shape index: {}]   ;;  %s3359_s2 = inlined_call_operand.vmem [shape: f32[1,512], index: 2, kind: input, shape index: {}]   ;;  %s3360_s3 = inlined_call_operand.vmem [shape: bf16[98,512], index: 3, kind: output, shape index: {}]  }
   0x1   :  { %v2387_v0 = vld [vmem:[%s3357_s1 + $0x4] ss:$16 sps:$4 sm:$0xff]   ;;  %v2389_v1 = vld [vmem:[%s3357_s1 + $0xc] ss:$16 sps:$4 sm:$0xff]   ;;  %v2391_v2 = vld [vmem:[%s3357_s1] ss:$16 sps:$4 sm:$0xff]  }
   0x2   :  { %1129 = vmatprep.subr.bf16.mxu0 %v2387_v0  ;;  %v2392_v3 = vld [vmem:[%s3357_s1 + $0x8] ss:$16 sps:$4 sm:$0xff]   ;;  %1432 = vmatprep.subr.bf16.mxu1 %v2389_v1  ;;  %v2393_v4 = vld [vmem:[%s3357_s1 + $0x24] ss:$16 sps:$4 sm:$0xff]   ;;  %v2395_v5 = vld [vmem:[%s3357_s1 + $0x2c] ss:$16 sps:$4 sm:$0xff]  }
   0x3   :  { %1130 = vmatpush1.bf16.msra.mxu0 %v2391_v2  ;;  %1433 = vmatpush1.bf16.msra.mxu1 %v2392_v3  ;;  %v2397_v6 = vld [vmem:[%s3357_s1 + $0x20] ss:$16 sps:$4 sm:$0xff]   ;;  %v2398_v7 = vld [vmem:[%s3357_s1 + $0x28] ss:$16 sps:$4 sm:$0xff]   ;;  %v2399_v8 = vld [vmem:[%s3357_s1 + $0x44] ss:$16 sps:$4 sm:$0xff]  }
   0x4   :  { %1131 = vmatprep.subr.bf16.mxu0 %v2393_v4  ;;  %1434 = vmatprep.subr.bf16.mxu1 %v2395_v5  ;;  %v2401_v9 = vld [vmem:[%s3357_s1 + $0x4c] ss:$16 sps:$4 sm:$0xff]   ;;  %v2403_v10 = vld [vmem:[%s3357_s1 + $0x40] ss:$16 sps:$4 sm:$0xff]   ;;  %v2404_v11 = vld [vmem:[%s3357_s1 + $0x48] ss:$16 sps:$4 sm:$0xff]  }
   0x5   :  { %v2405_v12 = vld [vmem:[%s3357_s1 + $0x64] ss:$16 sps:$4 sm:$0xff]   ;;  %v2407_v13 = vld [vmem:[%s3357_s1 + $0x6c] ss:$16 sps:$4 sm:$0xff]   ;;  %v2409_v14 = vld [vmem:[%s3357_s1 + $0x60] ss:$16 sps:$4 sm:$0xff]  }
   0x6   :  { %v2410_v15 = vld [vmem:[%s3357_s1 + $0x68] ss:$16 sps:$4 sm:$0xff]   ;;  %v2411_v16 = vld [vmem:[%s3357_s1 + $0x84] ss:$16 sps:$4 sm:$0xff]   ;;  %v2413_v17 = vld [vmem:[%s3357_s1 + $0x8c] ss:$16 sps:$4 sm:$0xff]  }
   0x7   :  { %1132 = vmatpush1.bf16.msra.mxu0 %v2397_v6  ;;  %1435 = vmatpush1.bf16.msra.mxu1 %v2398_v7  ;;  %v2415_v18 = vld [vmem:[%s3357_s1 + $0x80] ss:$16 sps:$4 sm:$0xff]   ;;  %v2416_v19 = vld [vmem:[%s3357_s1 + $0x88] ss:$16 sps:$4 sm:$0xff]   ;;  %v2417_v20 = vld [vmem:[%s3357_s1 + $0xa4] ss:$16 sps:$4 sm:$0xff]  }
   0x8   :  { %1133 = vmatprep.subr.bf16.mxu0 %v2399_v8  ;;  %1436 = vmatprep.subr.bf16.mxu1 %v2401_v9  ;;  %v2419_v21 = vld [vmem:[%s3357_s1 + $0xac] ss:$16 sps:$4 sm:$0xff]   ;;  %v2421_v22 = vld [vmem:[%s3357_s1 + $0xa0] ss:$16 sps:$4 sm:$0xff]   ;;  %v2422_v23 = vld [vmem:[%s3357_s1 + $0xa8] ss:$16 sps:$4 sm:$0xff]  }
   0x9   :  { %v2423_v24 = vld [vmem:[%s3357_s1 + $0xc4] ss:$16 sps:$4 sm:$0xff]   ;;  %v2425_v25 = vld [vmem:[%s3357_s1 + $0xcc] ss:$16 sps:$4 sm:$0xff]   ;;  %v2427_v26 = vld [vmem:[%s3357_s1 + $0xc0] ss:$16 sps:$4 sm:$0xff]  }
   0xa   :  { %v2428_v27 = vld [vmem:[%s3357_s1 + $0xc8] ss:$16 sps:$4 sm:$0xff]   ;;  %v2429_v28 = vld [vmem:[%s3357_s1 + $0xe4] ss:$16 sps:$4 sm:$0xff]   ;;  %v2431_v29 = vld [vmem:[%s3357_s1 + $0xec] ss:$16 sps:$4 sm:$0xff]  }
   0xb   :  { %1134 = vmatpush1.bf16.msra.mxu0 %v2403_v10  ;;  %1437 = vmatpush1.bf16.msra.mxu1 %v2404_v11  ;;  %v2433_v30 = vld [vmem:[%s3357_s1 + $0xe0] ss:$16 sps:$4 sm:$0xff]   ;;  %v2434_v31 = vld [vmem:[%s3357_s1 + $0xe8] ss:$16 sps:$4 sm:$0xff]   ;;  %v2435_v32 = vld [vmem:[%s3357_s1 + $0x104] ss:$16 sps:$4 sm:$0xff]  }
   0xc   :  { %1135 = vmatprep.subr.bf16.mxu0 %v2405_v12  ;;  %1438 = vmatprep.subr.bf16.mxu1 %v2407_v13  ;;  %v2437_v33 = vld [vmem:[%s3357_s1 + $0x10c] ss:$16 sps:$4 sm:$0xff]   ;;  %v2439_v34 = vld [vmem:[%s3357_s1 + $0x100] ss:$16 sps:$4 sm:$0xff]   ;;  %v2440_v35 = vld [vmem:[%s3357_s1 + $0x108] ss:$16 sps:$4 sm:$0xff]  }
   0xd   :  { %v2441_v36 = vld [vmem:[%s3357_s1 + $0x124] ss:$16 sps:$4 sm:$0xff]   ;;  %v2443_v37 = vld [vmem:[%s3357_s1 + $0x12c] ss:$16 sps:$4 sm:$0xff]   ;;  %v2445_v38 = vld [vmem:[%s3357_s1 + $0x120] ss:$16 sps:$4 sm:$0xff]  }
   0xe   :  { %v2446_v39 = vld [vmem:[%s3357_s1 + $0x128] ss:$16 sps:$4 sm:$0xff]   ;;  %v2447_v40 = vld [vmem:[%s3357_s1 + $0x144] ss:$16 sps:$4 sm:$0xff]   ;;  %v2449_v41 = vld [vmem:[%s3357_s1 + $0x14c] ss:$16 sps:$4 sm:$0xff]  }
   0xf   :  { %1136 = vmatpush1.bf16.msra.mxu0 %v2409_v14  ;;  %1439 = vmatpush1.bf16.msra.mxu1 %v2410_v15  ;;  %v2451_v42 = vld [vmem:[%s3357_s1 + $0x140] ss:$16 sps:$4 sm:$0xff]   ;;  %v2452_v43 = vld [vmem:[%s3357_s1 + $0x148] ss:$16 sps:$4 sm:$0xff]   ;;  %v2453_v44 = vld [vmem:[%s3357_s1 + $0x164] ss:$16 sps:$4 sm:$0xff]  }
  0x10   :  { %1137 = vmatprep.subr.bf16.mxu0 %v2411_v16  ;;  %1440 = vmatprep.subr.bf16.mxu1 %v2413_v17  ;;  %v2455_v45 = vld [vmem:[%s3357_s1 + $0x16c] ss:$16 sps:$4 sm:$0xff]   ;;  %v2457_v46 = vld [vmem:[%s3357_s1 + $0x160] ss:$16 sps:$4 sm:$0xff]   ;;  %v2458_v47 = vld [vmem:[%s3357_s1 + $0x168] ss:$16 sps:$4 sm:$0xff]  }
  0x11   :  { %v2485_v48 = vld [vmem:[%s3358_s0 + $0x4] ss:$20 sps:$4 sm:$0xff]   ;;  %v2461_v50 = vld [vmem:[%s3357_s1 + $0x18c] ss:$16 sps:$4 sm:$0xff]   ;;  %v2463_v51 = vld [vmem:[%s3357_s1 + $0x180] ss:$16 sps:$4 sm:$0xff]  }
  0x12   :  { %v2459_v49 = vld [vmem:[%s3357_s1 + $0x184] ss:$16 sps:$4 sm:$0xff]   ;;  %1161 = vmatprep.mubr.bf16.mxu0 %v2485_v48  ;;  %1464 = vmatprep.mubr.bf16.mxu1 %v2485_v48  ;;  %v2464_v52 = vld [vmem:[%s3357_s1 + $0x188] ss:$16 sps:$4 sm:$0xff]   ;;  %v2467_v54 = vld [vmem:[%s3357_s1 + $0x1ac] ss:$16 sps:$4 sm:$0xff]  }
  0x13   :  { %1138 = vmatpush1.bf16.msra.mxu0 %v2415_v18  ;;  %1441 = vmatpush1.bf16.msra.mxu1 %v2416_v19  ;;  %v2465_v53 = vld [vmem:[%s3357_s1 + $0x1a4] ss:$16 sps:$4 sm:$0xff]   ;;  %v2469_v55 = vld [vmem:[%s3357_s1 + $0x1a0] ss:$16 sps:$4 sm:$0xff]   ;;  %v2470_v56 = vld [vmem:[%s3357_s1 + $0x1a8] ss:$16 sps:$4 sm:$0xff]  }
  0x14   :  { %1139 = vmatprep.subr.bf16.mxu0 %v2417_v20  ;;  %1442 = vmatprep.subr.bf16.mxu1 %v2419_v21  ;;  %v2471_v57 = vld [vmem:[%s3357_s1 + $0x1c4] ss:$16 sps:$4 sm:$0xff]   ;;  %v2473_v58 = vld [vmem:[%s3357_s1 + $0x1cc] ss:$16 sps:$4 sm:$0xff]   ;;  %v2475_v59 = vld [vmem:[%s3357_s1 + $0x1c0] ss:$16 sps:$4 sm:$0xff]  }
  0x15   :  { %v2476_v60 = vld [vmem:[%s3357_s1 + $0x1c8] ss:$16 sps:$4 sm:$0xff]   ;;  %v2477_v61 = vld [vmem:[%s3357_s1 + $0x1e4] ss:$16 sps:$4 sm:$0xff]   ;;  %v2479_v62 = vld [vmem:[%s3357_s1 + $0x1ec] ss:$16 sps:$4 sm:$0xff]  }
  0x16   :  { %v2481_v63 = vld [vmem:[%s3357_s1 + $0x1e0] ss:$16 sps:$4 sm:$0xff]   ;;  %v2482_v0 = vld [vmem:[%s3357_s1 + $0x1e8] ss:$16 sps:$4 sm:$0xff]   ;;  %v2488_v1 = vld [vmem:[%s3357_s1 + $0x204] ss:$16 sps:$4 sm:$0xff]  }
  0x17   :  { %1140 = vmatpush1.bf16.msra.mxu0 %v2421_v22  ;;  %1443 = vmatpush1.bf16.msra.mxu1 %v2422_v23  ;;  %v2491_v2 = vld [vmem:[%s3357_s1 + $0x20c] ss:$16 sps:$4 sm:$0xff]   ;;  %v2483_v3 = vld [vmem:[%s3358_s0] ss:$20 sps:$4 sm:$0xff]   ;;  %v2489_v5 = vld [vmem:[%s3357_s1 + $0x208] ss:$16 sps:$4 sm:$0xff]  }
  0x18   :  { %1141 = vmatprep.subr.bf16.mxu0 %v2423_v24  ;;  %1444 = vmatprep.subr.bf16.mxu1 %v2425_v25  ;;  %v2486_v4 = vld [vmem:[%s3357_s1 + $0x200] ss:$16 sps:$4 sm:$0xff]   ;;  %v2494_v6 = vld [vmem:[%s3357_s1 + $0x224] ss:$16 sps:$4 sm:$0xff]   ;;  %v2497_v7 = vld [vmem:[%s3357_s1 + $0x22c] ss:$16 sps:$4 sm:$0xff]  }
  0x19   :  { %v2510_v8 = vld [vmem:[%s3358_s0 + $0x2c] ss:$20 sps:$4 sm:$0xff]   ;;  %v2495_v10 = vld [vmem:[%s3357_s1 + $0x228] ss:$16 sps:$4 sm:$0xff]   ;;  %v2500_v11 = vld [vmem:[%s3357_s1 + $0x244] ss:$16 sps:$4 sm:$0xff]  }
  0x1a   :  { %v2492_v9 = vld [vmem:[%s3357_s1 + $0x220] ss:$16 sps:$4 sm:$0xff]   ;;  %v2503_v12 = vld [vmem:[%s3357_s1 + $0x24c] ss:$16 sps:$4 sm:$0xff]   ;;  %v2501_v14 = vld [vmem:[%s3357_s1 + $0x248] ss:$16 sps:$4 sm:$0xff]  }
  0x1b   :  { %1142 = vmatpush1.bf16.msra.mxu0 %v2427_v26  ;;  %1445 = vmatpush1.bf16.msra.mxu1 %v2428_v27  ;;  %v2498_v13 = vld [vmem:[%s3357_s1 + $0x240] ss:$16 sps:$4 sm:$0xff]   ;;  %v2512_v15 = vld [vmem:[%s3358_s0 + $0x28] ss:$20 sps:$4 sm:$0xff]   ;;  %v2506_v16 = vld [vmem:[%s3357_s1 + $0x264] ss:$16 sps:$4 sm:$0xff]  }
  0x1c   :  { %1143 = vmatprep.subr.bf16.mxu0 %v2429_v28  ;;  %1446 = vmatprep.subr.bf16.mxu1 %v2431_v29  ;;  %v2509_v17 = vld [vmem:[%s3357_s1 + $0x26c] ss:$16 sps:$4 sm:$0xff]   ;;  %v2525_v18 = vld [vmem:[%s3358_s0 + $0x54] ss:$20 sps:$4 sm:$0xff]   ;;  %v2504_v19 = vld [vmem:[%s3357_s1 + $0x260] ss:$16 sps:$4 sm:$0xff]  }
  0x1d   :  { %v2507_v20 = vld [vmem:[%s3357_s1 + $0x268] ss:$16 sps:$4 sm:$0xff]   ;;  %v2515_v21 = vld [vmem:[%s3357_s1 + $0x284] ss:$16 sps:$4 sm:$0xff]   ;;  %v2518_v22 = vld [vmem:[%s3357_s1 + $0x28c] ss:$16 sps:$4 sm:$0xff]  }
  0x1e   :  { %v2513_v23 = vld [vmem:[%s3357_s1 + $0x280] ss:$16 sps:$4 sm:$0xff]   ;;  %v2516_v24 = vld [vmem:[%s3357_s1 + $0x288] ss:$16 sps:$4 sm:$0xff]   ;;  %v2521_v26 = vld [vmem:[%s3357_s1 + $0x2a4] ss:$16 sps:$4 sm:$0xff]  }
  0x1f   :  { %1144 = vmatpush1.bf16.msra.mxu0 %v2433_v30  ;;  %1447 = vmatpush1.bf16.msra.mxu1 %v2434_v31  ;;  %v2527_v25 = vld [vmem:[%s3358_s0 + $0x50] ss:$20 sps:$4 sm:$0xff]   ;;  %v2524_v27 = vld [vmem:[%s3357_s1 + $0x2ac] ss:$16 sps:$4 sm:$0xff]   ;;  %v2522_v30 = vld [vmem:[%s3357_s1 + $0x2a8] ss:$16 sps:$4 sm:$0xff]  }
  0x20   :  { %1145 = vmatprep.subr.bf16.mxu0 %v2435_v32  ;;  %1448 = vmatprep.subr.bf16.mxu1 %v2437_v33  ;;  %v2540_v28 = vld [vmem:[%s3358_s0 + $0x7c] ss:$20 sps:$4 sm:$0xff]   ;;  %v2530_v31 = vld [vmem:[%s3357_s1 + $0x2c4] ss:$16 sps:$4 sm:$0xff]   ;;  %v2570_v48 = vld [vmem:[%s3358_s0 + $0xcc] ss:$20 sps:$4 sm:$0xff]  }
  0x21   :  { %v2519_v29 = vld [vmem:[%s3357_s1 + $0x2a0] ss:$16 sps:$4 sm:$0xff]   ;;  %v2533_v32 = vld [vmem:[%s3357_s1 + $0x2cc] ss:$16 sps:$4 sm:$0xff]  }
  0x22   :  { %v2528_v33 = vld [vmem:[%s3357_s1 + $0x2c0] ss:$16 sps:$4 sm:$0xff]  }
  0x23   :  { %1146 = vmatpush1.bf16.msra.mxu0 %v2439_v34  ;;  %1449 = vmatpush1.bf16.msra.mxu1 %v2440_v35  ;;  %v2542_v34 = vld [vmem:[%s3358_s0 + $0x78] ss:$20 sps:$4 sm:$0xff]  }
  0x24   :  { %1147 = vmatprep.subr.bf16.mxu0 %v2441_v36  ;;  %1450 = vmatprep.subr.bf16.mxu1 %v2443_v37  ;;  %v2531_v35 = vld [vmem:[%s3357_s1 + $0x2c8] ss:$16 sps:$4 sm:$0xff]   ;;  %v2536_v36 = vld [vmem:[%s3357_s1 + $0x2e4] ss:$16 sps:$4 sm:$0xff]   ;;  %v2539_v37 = vld [vmem:[%s3357_s1 + $0x2ec] ss:$16 sps:$4 sm:$0xff]  }
  0x27   :  { %1148 = vmatpush1.bf16.msra.mxu0 %v2445_v38  ;;  %1451 = vmatpush1.bf16.msra.mxu1 %v2446_v39  ;;  %v2555_v38 = vld [vmem:[%s3358_s0 + $0xa4] ss:$20 sps:$4 sm:$0xff]   ;;  %v2534_v39 = vld [vmem:[%s3357_s1 + $0x2e0] ss:$16 sps:$4 sm:$0xff]  }
  0x28   :  { %1149 = vmatprep.subr.bf16.mxu0 %v2447_v40  ;;  %1452 = vmatprep.subr.bf16.mxu1 %v2449_v41  ;;  %v2537_v40 = vld [vmem:[%s3357_s1 + $0x2e8] ss:$16 sps:$4 sm:$0xff]   ;;  %v2545_v41 = vld [vmem:[%s3357_s1 + $0x304] ss:$16 sps:$4 sm:$0xff]  }
  0x2b   :  { %1150 = vmatpush1.bf16.msra.mxu0 %v2451_v42  ;;  %1453 = vmatpush1.bf16.msra.mxu1 %v2452_v43  ;;  %v2548_v42 = vld [vmem:[%s3357_s1 + $0x30c] ss:$16 sps:$4 sm:$0xff]   ;;  %v2543_v43 = vld [vmem:[%s3357_s1 + $0x300] ss:$16 sps:$4 sm:$0xff]  }
  0x2c   :  { %1151 = vmatprep.subr.bf16.mxu0 %v2453_v44  ;;  %1454 = vmatprep.subr.bf16.mxu1 %v2455_v45  ;;  %v2557_v44 = vld [vmem:[%s3358_s0 + $0xa0] ss:$20 sps:$4 sm:$0xff]   ;;  %v2546_v45 = vld [vmem:[%s3357_s1 + $0x308] ss:$16 sps:$4 sm:$0xff]  }
  0x2f   :  { %1152 = vmatpush1.bf16.msra.mxu0 %v2457_v46  ;;  %1455 = vmatpush1.bf16.msra.mxu1 %v2458_v47  ;;  %v2551_v46 = vld [vmem:[%s3357_s1 + $0x324] ss:$16 sps:$4 sm:$0xff]   ;;  %v2554_v47 = vld [vmem:[%s3357_s1 + $0x32c] ss:$16 sps:$4 sm:$0xff]  }
  0x30   :  { %1153 = vmatprep.subr.bf16.mxu0 %v2459_v49  ;;  %1456 = vmatprep.subr.bf16.mxu1 %v2461_v50  ;;  %v2549_v49 = vld [vmem:[%s3357_s1 + $0x320] ss:$16 sps:$4 sm:$0xff]   ;;  %v2552_v50 = vld [vmem:[%s3357_s1 + $0x328] ss:$16 sps:$4 sm:$0xff]  }
  0x33   :  { %1154 = vmatpush1.bf16.msra.mxu0 %v2463_v51  ;;  %1457 = vmatpush1.bf16.msra.mxu1 %v2464_v52  ;;  %v2560_v51 = vld [vmem:[%s3357_s1 + $0x344] ss:$16 sps:$4 sm:$0xff]   ;;  %v2563_v52 = vld [vmem:[%s3357_s1 + $0x34c] ss:$16 sps:$4 sm:$0xff]  }
  0x34   :  { %1155 = vmatprep.subr.bf16.mxu0 %v2465_v53  ;;  %1458 = vmatprep.subr.bf16.mxu1 %v2467_v54  ;;  %v2558_v53 = vld [vmem:[%s3357_s1 + $0x340] ss:$16 sps:$4 sm:$0xff]   ;;  %v2572_v54 = vld [vmem:[%s3358_s0 + $0xc8] ss:$20 sps:$4 sm:$0xff]  }
  0x37   :  { %1156 = vmatpush1.bf16.msra.mxu0 %v2469_v55  ;;  %1459 = vmatpush1.bf16.msra.mxu1 %v2470_v56  ;;  %v51_v55 = vld [vmem:[%s3358_s0 + $0xf0] sm:$0xff]  ;;  %v2561_v56 = vld [vmem:[%s3357_s1 + $0x348] ss:$16 sps:$4 sm:$0xff]  }
  0x38   :  { %1157 = vmatprep.subr.bf16.mxu0 %v2471_v57  ;;  %1460 = vmatprep.subr.bf16.mxu1 %v2473_v58  ;;  %v2566_v57 = vld [vmem:[%s3357_s1 + $0x364] ss:$16 sps:$4 sm:$0xff]   ;;  %v2569_v58 = vld [vmem:[%s3357_s1 + $0x36c] ss:$16 sps:$4 sm:$0xff]  }
  0x3b   :  { %1158 = vmatpush1.bf16.msra.mxu0 %v2475_v59  ;;  %1461 = vmatpush1.bf16.msra.mxu1 %v2476_v60  ;;  %v2008_v59 = vcombine.high %v51_v55, %v51_v55  ;;  %v2564_v60 = vld [vmem:[%s3357_s1 + $0x360] ss:$16 sps:$4 sm:$0xff]  }
  0x3c   :  { %1159 = vmatprep.subr.bf16.mxu0 %v2477_v61  ;;  %1462 = vmatprep.subr.bf16.mxu1 %v2479_v62  ;;  %v2567_v61 = vld [vmem:[%s3357_s1 + $0x368] ss:$16 sps:$4 sm:$0xff]   ;;  %v2575_v62 = vld [vmem:[%s3357_s1 + $0x384] ss:$16 sps:$4 sm:$0xff]  }
  0x3f   :  { %1160 = vmatpush1.bf16.msra.mxu0 %v2481_v63  ;;  %1463 = vmatpush1.bf16.msra.mxu1 %v2482_v0  ;;  %v2578_v63 = vld [vmem:[%s3357_s1 + $0x38c] ss:$16 sps:$4 sm:$0xff]   ;;  %v2573_v0 = vld [vmem:[%s3357_s1 + $0x380] ss:$16 sps:$4 sm:$0xff]  }
  0x40   :  { %1230 = vmatprep.subr.bf16.mxu0 %v2488_v1  ;;  %1533 = vmatprep.subr.bf16.mxu1 %v2491_v2  ;;  %v2007_v1 = vcombine.low %v51_v55, %v51_v55  ;;  %v2576_v2 = vld [vmem:[%s3357_s1 + $0x388] ss:$16 sps:$4 sm:$0xff]  }
  0x42   :  { %1162 = vmatmul.mubr.bf16.vlgmr.msra.gmra.mrb[0].mxu0 %v2483_v3  ;;  %1465 = vmatmul.mubr.bf16.vlgmr.msra.gmra.mrb[0].mxu1 %v2483_v3  ;;  %v2581_v3 = vld [vmem:[%s3357_s1 + $0x3a4] ss:$16 sps:$4 sm:$0xff]  }
  0x43   :  { %1231 = vmatpush1.bf16.msra.mxu0 %v2486_v4  ;;  %1534 = vmatpush1.bf16.msra.mxu1 %v2489_v5  ;;  %v2584_v4 = vld [vmem:[%s3357_s1 + $0x3ac] ss:$16 sps:$4 sm:$0xff]   ;;  %v2579_v5 = vld [vmem:[%s3357_s1 + $0x3a0] ss:$16 sps:$4 sm:$0xff]  }
  0x44   :  { %1232 = vmatprep.subr.bf16.mxu0 %v2494_v6  ;;  %1535 = vmatprep.subr.bf16.mxu1 %v2497_v7  ;;  %v2601_v6 = vld [vmem:[%s3358_s0 + $0xc] ss:$20 sps:$4 sm:$0xff]   ;;  %v2582_v7 = vld [vmem:[%s3357_s1 + $0x3a8] ss:$16 sps:$4 sm:$0xff]  }
  0x45   :  { %1171 = vmatprep.mubr.bf16.mxu0 %v2510_v8  ;;  %1474 = vmatprep.mubr.bf16.mxu1 %v2510_v8  ;;  %v2589_v8 = vld [vmem:[%s3357_s1 + $0x3c4] ss:$16 sps:$4 sm:$0xff]  }
  0x47   :  { %1233 = vmatpush1.bf16.msra.mxu0 %v2492_v9  ;;  %1536 = vmatpush1.bf16.msra.mxu1 %v2495_v10  ;;  %v2592_v9 = vld [vmem:[%s3357_s1 + $0x3cc] ss:$16 sps:$4 sm:$0xff]   ;;  %v2587_v10 = vld [vmem:[%s3357_s1 + $0x3c0] ss:$16 sps:$4 sm:$0xff]  }
  0x48   :  { %1234 = vmatprep.subr.bf16.mxu0 %v2500_v11  ;;  %1537 = vmatprep.subr.bf16.mxu1 %v2503_v12  ;;  %v2590_v11 = vld [vmem:[%s3357_s1 + $0x3c8] ss:$16 sps:$4 sm:$0xff]   ;;  %v2595_v12 = vld [vmem:[%s3357_s1 + $0x3e4] ss:$16 sps:$4 sm:$0xff]  }
  0x4a   :  { %1172 = vmatmul.mubr.bf16.gmra.mrb[4].mxu0 %v2512_v15  ;;  %1475 = vmatmul.mubr.bf16.gmra.mrb[4].mxu1 %v2512_v15  ;;  %v2596_v15 = vld [vmem:[%s3357_s1 + $0x3e8] ss:$16 sps:$4 sm:$0xff]  }
  0x4b   :  { %1235 = vmatpush1.bf16.msra.mxu0 %v2498_v13  ;;  %1538 = vmatpush1.bf16.msra.mxu1 %v2501_v14  ;;  %v2598_v13 = vld [vmem:[%s3357_s1 + $0x3ec] ss:$16 sps:$4 sm:$0xff]   ;;  %v2593_v14 = vld [vmem:[%s3357_s1 + $0x3e0] ss:$16 sps:$4 sm:$0xff]  }
  0x4c   :  { %1236 = vmatprep.subr.bf16.mxu0 %v2506_v16  ;;  %1539 = vmatprep.subr.bf16.mxu1 %v2509_v17  ;;  %v2604_v16 = vld [vmem:[%s3357_s1 + $0x404] ss:$16 sps:$4 sm:$0xff]   ;;  %v2607_v17 = vld [vmem:[%s3357_s1 + $0x40c] ss:$16 sps:$4 sm:$0xff]  }
  0x4d   :  { %1181 = vmatprep.mubr.bf16.mxu0 %v2525_v18  ;;  %1484 = vmatprep.mubr.bf16.mxu1 %v2525_v18  ;;  %v2599_v18 = vld [vmem:[%s3358_s0 + $0x8] ss:$20 sps:$4 sm:$0xff]  }
  0x4f   :  { %1237 = vmatpush1.bf16.msra.mxu0 %v2504_v19  ;;  %1540 = vmatpush1.bf16.msra.mxu1 %v2507_v20  ;;  %v2602_v19 = vld [vmem:[%s3357_s1 + $0x400] ss:$16 sps:$4 sm:$0xff]   ;;  %v2605_v20 = vld [vmem:[%s3357_s1 + $0x408] ss:$16 sps:$4 sm:$0xff]  }
  0x50   :  { %1238 = vmatprep.subr.bf16.mxu0 %v2515_v21  ;;  %1541 = vmatprep.subr.bf16.mxu1 %v2518_v22  ;;  %v2608_v21 = vld [vmem:[%s3358_s0 + $0x34] ss:$20 sps:$4 sm:$0xff]  }
  0x51   :  { %v2613_v22 = vld [vmem:[%s3357_s1 + $0x424] ss:$16 sps:$4 sm:$0xff]  }
  0x52   :  { %1182 = vmatmul.mubr.bf16.gmra.mrb[8].mxu0 %v2527_v25  ;;  %1485 = vmatmul.mubr.bf16.gmra.mrb[8].mxu1 %v2527_v25  ;;  %v2614_v25 = vld [vmem:[%s3357_s1 + $0x428] ss:$16 sps:$4 sm:$0xff]  }
  0x53   :  { %1239 = vmatpush1.bf16.msra.mxu0 %v2513_v23  ;;  %1542 = vmatpush1.bf16.msra.mxu1 %v2516_v24  ;;  %v2616_v23 = vld [vmem:[%s3357_s1 + $0x42c] ss:$16 sps:$4 sm:$0xff]   ;;  %v2611_v24 = vld [vmem:[%s3357_s1 + $0x420] ss:$16 sps:$4 sm:$0xff]  }
  0x54   :  { %1240 = vmatprep.subr.bf16.mxu0 %v2521_v26  ;;  %1543 = vmatprep.subr.bf16.mxu1 %v2524_v27  ;;  %v2625_v26 = vld [vmem:[%s3357_s1 + $0x444] ss:$16 sps:$4 sm:$0xff]   ;;  %v2628_v27 = vld [vmem:[%s3357_s1 + $0x44c] ss:$16 sps:$4 sm:$0xff]  }
  0x55   :  { %1191 = vmatprep.mubr.bf16.mxu0 %v2540_v28  ;;  %1494 = vmatprep.mubr.bf16.mxu1 %v2540_v28  ;;  %v2610_v28 = vld [vmem:[%s3358_s0 + $0x30] ss:$20 sps:$4 sm:$0xff]  }
  0x57   :  { %1241 = vmatpush1.bf16.msra.mxu0 %v2519_v29  ;;  %1544 = vmatpush1.bf16.msra.mxu1 %v2522_v30  ;;  %v2617_v29 = vld [vmem:[%s3358_s0 + $0x5c] ss:$20 sps:$4 sm:$0xff]  }
  0x58   :  { %1242 = vmatprep.subr.bf16.mxu0 %v2530_v31  ;;  %1545 = vmatprep.subr.bf16.mxu1 %v2533_v32  ;;  %v2623_v30 = vld [vmem:[%s3357_s1 + $0x440] ss:$16 sps:$4 sm:$0xff]   ;;  %v2626_v31 = vld [vmem:[%s3357_s1 + $0x448] ss:$16 sps:$4 sm:$0xff]   ;;  %v2637_v32 = vld [vmem:[%s3357_s1 + $0x464] ss:$16 sps:$4 sm:$0xff]  }
  0x5a   :  { %1192 = vmatmul.mubr.bf16.gmra.mrb[12].mxu0 %v2542_v34  ;;  %1495 = vmatmul.mubr.bf16.gmra.mrb[12].mxu1 %v2542_v34  ;;  %v2635_v34 = vld [vmem:[%s3357_s1 + $0x460] ss:$16 sps:$4 sm:$0xff]  }
  0x5b   :  { %1243 = vmatpush1.bf16.msra.mxu0 %v2528_v33  ;;  %1546 = vmatpush1.bf16.msra.mxu1 %v2531_v35  ;;  %v2640_v33 = vld [vmem:[%s3357_s1 + $0x46c] ss:$16 sps:$4 sm:$0xff]   ;;  %v2638_v35 = vld [vmem:[%s3357_s1 + $0x468] ss:$16 sps:$4 sm:$0xff]  }
  0x5c   :  { %1244 = vmatprep.subr.bf16.mxu0 %v2536_v36  ;;  %1547 = vmatprep.subr.bf16.mxu1 %v2539_v37  ;;  %v2619_v36 = vld [vmem:[%s3358_s0 + $0x58] ss:$20 sps:$4 sm:$0xff]  }
  0x5d   :  { %1201 = vmatprep.mubr.bf16.mxu0 %v2555_v38  ;;  %1504 = vmatprep.mubr.bf16.mxu1 %v2555_v38  ;;  %v2620_v37 = vld [vmem:[%s3358_s0 + $0x84] ss:$20 sps:$4 sm:$0xff]   ;;  %v2622_v38 = vld [vmem:[%s3358_s0 + $0x80] ss:$20 sps:$4 sm:$0xff]  }
  0x5f   :  { %1245 = vmatpush1.bf16.msra.mxu0 %v2534_v39  ;;  %1548 = vmatpush1.bf16.msra.mxu1 %v2537_v40  ;;  %v2629_v39 = vld [vmem:[%s3358_s0 + $0xac] ss:$20 sps:$4 sm:$0xff]   ;;  %v2631_v40 = vld [vmem:[%s3358_s0 + $0xa8] ss:$20 sps:$4 sm:$0xff]  }
  0x60   :  { %1246 = vmatprep.subr.bf16.mxu0 %v2545_v41  ;;  %1549 = vmatprep.subr.bf16.mxu1 %v2548_v42  ;;  %v2632_v41 = vld [vmem:[%s3358_s0 + $0xd4] ss:$20 sps:$4 sm:$0xff]   ;;  %v52_v42 = vld [vmem:[%s3358_s0 + $0xf8] sm:$0xff] }
  0x62   :  { %1202 = vmatmul.mubr.bf16.gmra.mrb[16].mxu0 %v2557_v44  ;;  %1505 = vmatmul.mubr.bf16.gmra.mrb[16].mxu1 %v2557_v44  ;;  %v2010_v44 = vcombine.high %v52_v42, %v52_v42 }
  0x63   :  { %1247 = vmatpush1.bf16.msra.mxu0 %v2543_v43  ;;  %1550 = vmatpush1.bf16.msra.mxu1 %v2546_v45  ;;  %v2634_v43 = vld [vmem:[%s3358_s0 + $0xd0] ss:$20 sps:$4 sm:$0xff]   ;;  %v2009_v45 = vcombine.low %v52_v42, %v52_v42 }
  0x64   :  { %1248 = vmatprep.subr.bf16.mxu0 %v2551_v46  ;;  %1551 = vmatprep.subr.bf16.mxu1 %v2554_v47  ;;  %v2650_v46 = vmov 0   ;;  %v2643_v47 = vld [vmem:[%s3358_s0 + $0x10] ss:$20 sps:$4 sm:$0xff]  }
  0x65   :  { %1211 = vmatprep.mubr.bf16.mxu0 %v2570_v48  ;;  %1514 = vmatprep.mubr.bf16.mxu1 %v2570_v48  ;;  %v2644_v48 = vld [vmem:[%s3358_s0 + $0x38] ss:$20 sps:$4 sm:$0xff]  }
  0x67   :  { %1249 = vmatpush1.bf16.msra.mxu0 %v2549_v49  ;;  %1552 = vmatpush1.bf16.msra.mxu1 %v2552_v50  ;;  %v2645_v49 = vld [vmem:[%s3358_s0 + $0x60] ss:$20 sps:$4 sm:$0xff]   ;;  %v2646_v50 = vld [vmem:[%s3358_s0 + $0x88] ss:$20 sps:$4 sm:$0xff]  }
  0x68   :  { %1250 = vmatprep.subr.bf16.mxu0 %v2560_v51  ;;  %1553 = vmatprep.subr.bf16.mxu1 %v2563_v52  ;;  %v2647_v51 = vld [vmem:[%s3358_s0 + $0xb0] ss:$20 sps:$4 sm:$0xff]   ;;  %v2648_v52 = vld [vmem:[%s3358_s0 + $0xd8] ss:$20 sps:$4 sm:$0xff]  }
  0x6a   :  { %1212 = vmatmul.mubr.bf16.gmra.mrb[20].mxu0 %v2572_v54  ;;  %1515 = vmatmul.mubr.bf16.gmra.mrb[20].mxu1 %v2572_v54  ;;  %v200_v54 = vlaneseq }
  0x6b   :  { %1251 = vmatpush1.bf16.msra.mxu0 %v2558_v53  ;;  %1554 = vmatpush1.bf16.msra.mxu1 %v2561_v56  ;;  %v2649_v53 = vld [vmem:[%s3358_s0 + $0x100] ss:$0 sps:$4 sm:$0xff]  }
  0x6c   :  { %1252 = vmatprep.subr.bf16.mxu0 %v2566_v57  ;;  %1555 = vmatprep.subr.bf16.mxu1 %v2569_v58  ;;  %v201_v55 = vshrl.u32 %v200_v54, 7  ;;  %v198_v58 = vld [vmem:[%s3359_s2] sm:$0xf] }
  0x6d   :  { %1221 = vmatprep.mubr.bf16.mxu0 %v2008_v59  ;;  %1524 = vmatprep.mubr.bf16.mxu1 %v2008_v59 }
  0x6e   :  { %v202_v56 = vsub.s32 0, %v201_v55  ;;  %v210_v57 = vsub.s32 2, %v201_v55  ;;  %v206_v59 = vsub.s32 1, %v201_v55 }
  0x6f   :  { %1253 = vmatpush1.bf16.msra.mxu0 %v2564_v60  ;;  %1556 = vmatpush1.bf16.msra.mxu1 %v2567_v61  ;;  %v214_v60 = vsub.s32 3, %v201_v55 }
  0x70   :  { %1254 = vmatprep.subr.bf16.mxu0 %v2575_v62  ;;  %1557 = vmatprep.subr.bf16.mxu1 %v2578_v63  ;;  %v3219_v61 = vrot.slane %v198_v58, %v202_v56  ;;  %v3221_v62 = vrot.slane %v198_v58, %v210_v57  ;;  %v3223_v63 = vrot.slane %v198_v58, %v206_v59 }
  0x72   :  { %1222 = vmatmul.mubr.bf16.gmra.mrb[24].mxu0 %v2007_v1  ;;  %1525 = vmatmul.mubr.bf16.gmra.mrb[24].mxu1 %v2007_v1 }
  0x73   :  { %1255 = vmatpush1.bf16.msra.mxu0 %v2573_v0  ;;  %1558 = vmatpush1.bf16.msra.mxu1 %v2576_v2  ;;  %v3225_v0 = vrot.slane %v198_v58, %v214_v60 }
  0x74   :  { %1256 = vmatprep.subr.bf16.mxu0 %v2581_v3  ;;  %1559 = vmatprep.subr.bf16.mxu1 %v2584_v4 }
  0x75   :  { %1262 = vmatprep.mubr.bf16.mxu0 %v2601_v6  ;;  %1565 = vmatprep.mubr.bf16.mxu1 %v2601_v6 }
  0x77   :  { %1257 = vmatpush1.bf16.msra.mxu0 %v2579_v5  ;;  %1560 = vmatpush1.bf16.msra.mxu1 %v2582_v7 }
  0x78   :  { %1258 = vmatprep.subr.bf16.mxu0 %v2589_v8  ;;  %1561 = vmatprep.subr.bf16.mxu1 %v2592_v9 }
  0x7b   :  { %1259 = vmatpush1.bf16.msra.mxu0 %v2587_v10  ;;  %1562 = vmatpush1.bf16.msra.mxu1 %v2590_v11 }
  0x7c   :  { %1260 = vmatprep.subr.bf16.mxu0 %v2595_v12  ;;  %1563 = vmatprep.subr.bf16.mxu1 %v2598_v13 }
  0x7f   :  { %1261 = vmatpush1.bf16.msra.mxu0 %v2593_v14  ;;  %1564 = vmatpush1.bf16.msra.mxu1 %v2596_v15 }
  0x80   :  { %1331 = vmatprep.subr.bf16.mxu0 %v2604_v16  ;;  %1634 = vmatprep.subr.bf16.mxu1 %v2607_v17 }
  0x82   :  { %1263 = vmatmul.mubr.bf16.vlgmr.msra.gmra.mrb[0].mxu0 %v2599_v18  ;;  %1566 = vmatmul.mubr.bf16.vlgmr.msra.gmra.mrb[0].mxu1 %v2599_v18 }
  0x83   :  { %1332 = vmatpush1.bf16.msra.mxu0 %v2602_v19  ;;  %1635 = vmatpush1.bf16.msra.mxu1 %v2605_v20 }
  0x84   :  { %1272 = vmatprep.mubr.bf16.mxu0 %v2608_v21  ;;  %1575 = vmatprep.mubr.bf16.mxu1 %v2608_v21 }
  0x85   :  { %1333 = vmatprep.subr.bf16.mxu0 %v2613_v22  ;;  %1636 = vmatprep.subr.bf16.mxu1 %v2616_v23 }
  0x87   :  { %1334 = vmatpush1.bf16.msra.mxu0 %v2611_v24  ;;  %1637 = vmatpush1.bf16.msra.mxu1 %v2614_v25 }
  0x88   :  { %1335 = vmatprep.subr.bf16.mxu0 %v2625_v26  ;;  %1638 = vmatprep.subr.bf16.mxu1 %v2628_v27 }
  0x8a   :  { %1273 = vmatmul.mubr.bf16.gmra.mrb[4].mxu0 %v2610_v28  ;;  %1576 = vmatmul.mubr.bf16.gmra.mrb[4].mxu1 %v2610_v28 }
  0x8b   :  { %1282 = vmatprep.mubr.bf16.mxu0 %v2617_v29  ;;  %1585 = vmatprep.mubr.bf16.mxu1 %v2617_v29 }
  0x8c   :  { %1336 = vmatpush1.bf16.msra.mxu0 %v2623_v30  ;;  %1639 = vmatpush1.bf16.msra.mxu1 %v2626_v31 }
  0x8d   :  { %1337 = vmatprep.subr.bf16.mxu0 %v2637_v32  ;;  %1640 = vmatprep.subr.bf16.mxu1 %v2640_v33 }
  0x90   :  { %1338 = vmatpush1.bf16.msra.mxu0 %v2635_v34  ;;  %1641 = vmatpush1.bf16.msra.mxu1 %v2638_v35 }
  0x92   :  { %1283 = vmatmul.mubr.bf16.gmra.mrb[8].mxu0 %v2619_v36  ;;  %1586 = vmatmul.mubr.bf16.gmra.mrb[8].mxu1 %v2619_v36 }
  0x93   :  { %1292 = vmatprep.mubr.bf16.mxu0 %v2620_v37  ;;  %1595 = vmatprep.mubr.bf16.mxu1 %v2620_v37 }
  0x9a   :  { %1293 = vmatmul.mubr.bf16.gmra.mrb[12].mxu0 %v2622_v38  ;;  %1596 = vmatmul.mubr.bf16.gmra.mrb[12].mxu1 %v2622_v38 }
  0x9b   :  { %1302 = vmatprep.mubr.bf16.mxu0 %v2629_v39  ;;  %1605 = vmatprep.mubr.bf16.mxu1 %v2629_v39 }
  0xa2   :  { %1303 = vmatmul.mubr.bf16.gmra.mrb[16].mxu0 %v2631_v40  ;;  %1606 = vmatmul.mubr.bf16.gmra.mrb[16].mxu1 %v2631_v40 }
  0xa3   :  { %1312 = vmatprep.mubr.bf16.mxu0 %v2632_v41  ;;  %1615 = vmatprep.mubr.bf16.mxu1 %v2632_v41 }
  0xaa   :  { %1313 = vmatmul.mubr.bf16.gmra.mrb[20].mxu0 %v2634_v43  ;;  %1616 = vmatmul.mubr.bf16.gmra.mrb[20].mxu1 %v2634_v43 }
  0xab   :  { %1322 = vmatprep.mubr.bf16.mxu0 %v2010_v44  ;;  %1625 = vmatprep.mubr.bf16.mxu1 %v2010_v44 }
  0xb2   :  { %1323 = vmatmul.mubr.bf16.gmra.mrb[24].mxu0 %v2009_v45  ;;  %1626 = vmatmul.mubr.bf16.gmra.mrb[24].mxu1 %v2009_v45 }
  0xb3   :  { %1363 = vmatprep.mubr.bf16.mxu0 %v2650_v46  ;;  %1666 = vmatprep.mubr.bf16.mxu1 %v2650_v46 }
  0xba   :  { %2156 = vmatmul.mubr.msk.bf16.vlgmr.msra.gmra.mrb[0].mxu0 %vm1107_vm0, %v2643_v47  ;;  %2163 = vmatmul.mubr.msk.bf16.vlgmr.msra.gmra.mrb[0].mxu1 %vm1107_vm0, %v2643_v47 }
  0xbb   :  { %1373 = vmatprep.mubr.bf16.mxu0 %v2650_v46  ;;  %1676 = vmatprep.mubr.bf16.mxu1 %v2650_v46 }
  0xc2   :  { %2157 = vmatmul.mubr.msk.bf16.gmra.mrb[4].mxu0 %vm1107_vm0, %v2644_v48  ;;  %2164 = vmatmul.mubr.msk.bf16.gmra.mrb[4].mxu1 %vm1107_vm0, %v2644_v48 }
  0xc3   :  { %1383 = vmatprep.mubr.bf16.mxu0 %v2650_v46  ;;  %1686 = vmatprep.mubr.bf16.mxu1 %v2650_v46 }
  0xca   :  { %2158 = vmatmul.mubr.msk.bf16.gmra.mrb[8].mxu0 %vm1107_vm0, %v2645_v49  ;;  %2165 = vmatmul.mubr.msk.bf16.gmra.mrb[8].mxu1 %vm1107_vm0, %v2645_v49 }
  0xcb   :  { %1393 = vmatprep.mubr.bf16.mxu0 %v2650_v46  ;;  %1696 = vmatprep.mubr.bf16.mxu1 %v2650_v46 }
  0xd2   :  { %2159 = vmatmul.mubr.msk.bf16.gmra.mrb[12].mxu0 %vm1107_vm0, %v2646_v50  ;;  %2166 = vmatmul.mubr.msk.bf16.gmra.mrb[12].mxu1 %vm1107_vm0, %v2646_v50 }
  0xd3   :  { %1403 = vmatprep.mubr.bf16.mxu0 %v2650_v46  ;;  %1706 = vmatprep.mubr.bf16.mxu1 %v2650_v46 }
  0xda   :  { %2160 = vmatmul.mubr.msk.bf16.gmra.mrb[16].mxu0 %vm1107_vm0, %v2647_v51  ;;  %2167 = vmatmul.mubr.msk.bf16.gmra.mrb[16].mxu1 %vm1107_vm0, %v2647_v51 }
  0xdb   :  { %1413 = vmatprep.mubr.bf16.mxu0 %v2650_v46  ;;  %1716 = vmatprep.mubr.bf16.mxu1 %v2650_v46 }
  0xe2   :  { %2161 = vmatmul.mubr.msk.bf16.gmra.mrb[20].mxu0 %vm1107_vm0, %v2648_v52  ;;  %2168 = vmatmul.mubr.msk.bf16.gmra.mrb[20].mxu1 %vm1107_vm0, %v2648_v52 }
  0xe3   :  { %1423 = vmatprep.mubr.bf16.mxu0 %v2650_v46  ;;  %1726 = vmatprep.mubr.bf16.mxu1 %v2650_v46 }
  0xea   :  { %2162 = vmatmul.mubr.msk.bf16.gmra.mrb[24].mxu0 %vm1107_vm0, %v2649_v53  ;;  %2169 = vmatmul.mubr.msk.bf16.gmra.mrb[24].mxu1 %vm1107_vm0, %v2649_v53 }
 0x18d   :  { %v1365_v1 = vpop.f32.mrb[0].mxu0  ;;  %v1668_v2 = vpop.f32.mrb[0].mxu1 }
 0x18e   :  { %v2222_v3 = vadd.f32 %v1365_v1, %v3219_v61  ;;  %v2248_v4 = vadd.f32 %v1668_v2, %v3221_v62  ;;  %v1367_v5 = vpop.f32.mrb[1].mxu0  ;;  %v1670_v6 = vpop.f32.mrb[1].mxu1 }
 0x18f   :  { %v2223_v7 = vadd.f32 %v1367_v5, %v3223_v63  ;;  %v2249_v8 = vadd.f32 %v1670_v6, %v3225_v0  ;;  %v1369_v9 = vpop.f32.mrb[2].mxu0  ;;  %v1672_v10 = vpop.f32.mrb[2].mxu1 }
 0x190   :  { %v1735_v11 = vmax.f32 %v2222_v3, 0.0  ;;  %v1737_v12 = vmax.f32 %v2248_v4, 0.0  ;;  %v2224_v13 = vadd.f32 %v1369_v9, %v3219_v61  ;;  %v2250_v14 = vadd.f32 %v1672_v10, %v3221_v62  ;;  %v1371_v15 = vpop.f32.mrb[3].mxu0  ;;  %v1674_v16 = vpop.f32.mrb[3].mxu1 }
 0x191   :  { %v1736_v17 = vmax.f32 %v2223_v7, 0.0  ;;  %v1738_v18 = vmax.f32 %v2249_v8, 0.0  ;;  %v2225_v19 = vadd.f32 %v1371_v15, %v3223_v63  ;;  %v2251_v20 = vadd.f32 %v1674_v16, %v3225_v0 }
 0x192   :  { %v1739_v21 = vmax.f32 %v2224_v13, 0.0  ;;  %v1741_v22 = vmax.f32 %v2250_v14, 0.0 }
 0x193   :  { %v2196_v23 = vpack.c.bf16 %v1736_v17, %v1735_v11  ;;  %v2197_v24 = vpack.c.bf16 %v1738_v18, %v1737_v12  ;;  %v1740_v25 = vmax.f32 %v2225_v19, 0.0  ;;  %v1742_v26 = vmax.f32 %v2251_v20, 0.0 }
 0x195   :  { %1947 = vst [vmem:[%s3360_s3] sm:$0xff] %v2196_v23  ;;  %1948 = vst [vmem:[%s3360_s3 + $0x8] sm:$0xff] %v2197_v24  ;;  %v2198_v27 = vpack.c.bf16 %v1740_v25, %v1739_v21  ;;  %v2199_v28 = vpack.c.bf16 %v1742_v26, %v1741_v22  ;;  %v1375_v29 = vpop.f32.mrb[4].mxu0  ;;  %v1678_v30 = vpop.f32.mrb[4].mxu1 }
 0x196   :  { %v2226_v31 = vadd.f32 %v1375_v29, %v3219_v61  ;;  %v2252_v32 = vadd.f32 %v1678_v30, %v3221_v62  ;;  %v1377_v33 = vpop.f32.mrb[5].mxu0  ;;  %v1680_v34 = vpop.f32.mrb[5].mxu1 }
 0x197   :  { %1949 = vst [vmem:[%s3360_s3 + $0x10] sm:$0xff] %v2198_v27  ;;  %1950 = vst [vmem:[%s3360_s3 + $0x18] sm:$0xff] %v2199_v28  ;;  %v2227_v35 = vadd.f32 %v1377_v33, %v3223_v63  ;;  %v2253_v36 = vadd.f32 %v1680_v34, %v3225_v0  ;;  %v1379_v37 = vpop.f32.mrb[6].mxu0  ;;  %v1682_v38 = vpop.f32.mrb[6].mxu1 }
 0x198   :  { %v1743_v39 = vmax.f32 %v2226_v31, 0.0  ;;  %v1745_v40 = vmax.f32 %v2252_v32, 0.0  ;;  %v2228_v41 = vadd.f32 %v1379_v37, %v3219_v61  ;;  %v2254_v42 = vadd.f32 %v1682_v38, %v3221_v62  ;;  %v1381_v43 = vpop.f32.mrb[7].mxu0  ;;  %v1684_v44 = vpop.f32.mrb[7].mxu1 }
 0x199   :  { %v1744_v45 = vmax.f32 %v2227_v35, 0.0  ;;  %v1746_v46 = vmax.f32 %v2253_v36, 0.0  ;;  %v2229_v47 = vadd.f32 %v1381_v43, %v3223_v63  ;;  %v2255_v48 = vadd.f32 %v1684_v44, %v3225_v0 }
 0x19a   :  { %v1747_v49 = vmax.f32 %v2228_v41, 0.0  ;;  %v1749_v50 = vmax.f32 %v2254_v42, 0.0 }
 0x19b   :  { %v2200_v51 = vpack.c.bf16 %v1744_v45, %v1743_v39  ;;  %v2201_v52 = vpack.c.bf16 %v1746_v46, %v1745_v40  ;;  %v1748_v53 = vmax.f32 %v2229_v47, 0.0  ;;  %v1750_v54 = vmax.f32 %v2255_v48, 0.0 }
 0x19d   :  { %1951 = vst [vmem:[%s3360_s3 + $0x20] sm:$0xff] %v2200_v51  ;;  %1952 = vst [vmem:[%s3360_s3 + $0x28] sm:$0xff] %v2201_v52  ;;  %v2202_v55 = vpack.c.bf16 %v1748_v53, %v1747_v49  ;;  %v2203_v56 = vpack.c.bf16 %v1750_v54, %v1749_v50  ;;  %v1385_v57 = vpop.f32.mrb[8].mxu0  ;;  %v1688_v58 = vpop.f32.mrb[8].mxu1 }
 0x19e   :  { %v2230_v59 = vadd.f32 %v1385_v57, %v3219_v61  ;;  %v2256_v60 = vadd.f32 %v1688_v58, %v3221_v62  ;;  %v1387_v1 = vpop.f32.mrb[9].mxu0  ;;  %v1690_v2 = vpop.f32.mrb[9].mxu1 }
 0x19f   :  { %1953 = vst [vmem:[%s3360_s3 + $0x30] sm:$0xff] %v2202_v55  ;;  %1954 = vst [vmem:[%s3360_s3 + $0x38] sm:$0xff] %v2203_v56  ;;  %v2231_v3 = vadd.f32 %v1387_v1, %v3223_v63  ;;  %v2257_v4 = vadd.f32 %v1690_v2, %v3225_v0  ;;  %v1389_v5 = vpop.f32.mrb[10].mxu0  ;;  %v1692_v6 = vpop.f32.mrb[10].mxu1 }
 0x1a0   :  { %v1751_v7 = vmax.f32 %v2230_v59, 0.0  ;;  %v1753_v8 = vmax.f32 %v2256_v60, 0.0  ;;  %v2232_v9 = vadd.f32 %v1389_v5, %v3219_v61  ;;  %v2258_v10 = vadd.f32 %v1692_v6, %v3221_v62  ;;  %v1391_v11 = vpop.f32.mrb[11].mxu0  ;;  %v1694_v12 = vpop.f32.mrb[11].mxu1 }
 0x1a1   :  { %v1752_v13 = vmax.f32 %v2231_v3, 0.0  ;;  %v1754_v14 = vmax.f32 %v2257_v4, 0.0  ;;  %v2233_v15 = vadd.f32 %v1391_v11, %v3223_v63  ;;  %v2259_v16 = vadd.f32 %v1694_v12, %v3225_v0 }
 0x1a2   :  { %v1755_v17 = vmax.f32 %v2232_v9, 0.0  ;;  %v1757_v18 = vmax.f32 %v2258_v10, 0.0 }
 0x1a3   :  { %v2204_v19 = vpack.c.bf16 %v1752_v13, %v1751_v7  ;;  %v2205_v20 = vpack.c.bf16 %v1754_v14, %v1753_v8  ;;  %v1756_v21 = vmax.f32 %v2233_v15, 0.0  ;;  %v1758_v22 = vmax.f32 %v2259_v16, 0.0 }
 0x1a5   :  { %1955 = vst [vmem:[%s3360_s3 + $0x40] sm:$0xff] %v2204_v19  ;;  %1956 = vst [vmem:[%s3360_s3 + $0x48] sm:$0xff] %v2205_v20  ;;  %v2206_v23 = vpack.c.bf16 %v1756_v21, %v1755_v17  ;;  %v2207_v24 = vpack.c.bf16 %v1758_v22, %v1757_v18  ;;  %v1395_v25 = vpop.f32.mrb[12].mxu0  ;;  %v1698_v26 = vpop.f32.mrb[12].mxu1 }
 0x1a6   :  { %v2234_v27 = vadd.f32 %v1395_v25, %v3219_v61  ;;  %v2260_v28 = vadd.f32 %v1698_v26, %v3221_v62  ;;  %v1397_v29 = vpop.f32.mrb[13].mxu0  ;;  %v1700_v30 = vpop.f32.mrb[13].mxu1 }
 0x1a7   :  { %1957 = vst [vmem:[%s3360_s3 + $0x50] sm:$0xff] %v2206_v23  ;;  %1958 = vst [vmem:[%s3360_s3 + $0x58] sm:$0xff] %v2207_v24  ;;  %v2235_v31 = vadd.f32 %v1397_v29, %v3223_v63  ;;  %v2261_v32 = vadd.f32 %v1700_v30, %v3225_v0  ;;  %v1399_v33 = vpop.f32.mrb[14].mxu0  ;;  %v1702_v34 = vpop.f32.mrb[14].mxu1 }
 0x1a8   :  { %v1759_v35 = vmax.f32 %v2234_v27, 0.0  ;;  %v1761_v36 = vmax.f32 %v2260_v28, 0.0  ;;  %v2236_v37 = vadd.f32 %v1399_v33, %v3219_v61  ;;  %v2262_v38 = vadd.f32 %v1702_v34, %v3221_v62  ;;  %v1401_v39 = vpop.f32.mrb[15].mxu0  ;;  %v1704_v40 = vpop.f32.mrb[15].mxu1 }
 0x1a9   :  { %v1760_v41 = vmax.f32 %v2235_v31, 0.0  ;;  %v1762_v42 = vmax.f32 %v2261_v32, 0.0  ;;  %v2237_v43 = vadd.f32 %v1401_v39, %v3223_v63  ;;  %v2263_v44 = vadd.f32 %v1704_v40, %v3225_v0 }
 0x1aa   :  { %v1763_v45 = vmax.f32 %v2236_v37, 0.0  ;;  %v1765_v46 = vmax.f32 %v2262_v38, 0.0 }
 0x1ab   :  { %v2208_v47 = vpack.c.bf16 %v1760_v41, %v1759_v35  ;;  %v2209_v48 = vpack.c.bf16 %v1762_v42, %v1761_v36  ;;  %v1764_v49 = vmax.f32 %v2237_v43, 0.0  ;;  %v1766_v50 = vmax.f32 %v2263_v44, 0.0 }
 0x1ad   :  { %1959 = vst [vmem:[%s3360_s3 + $0x60] sm:$0xff] %v2208_v47  ;;  %1960 = vst [vmem:[%s3360_s3 + $0x68] sm:$0xff] %v2209_v48  ;;  %v2210_v51 = vpack.c.bf16 %v1764_v49, %v1763_v45  ;;  %v2211_v52 = vpack.c.bf16 %v1766_v50, %v1765_v46  ;;  %v1405_v53 = vpop.f32.mrb[16].mxu0  ;;  %v1708_v54 = vpop.f32.mrb[16].mxu1 }
 0x1ae   :  { %v2238_v55 = vadd.f32 %v1405_v53, %v3219_v61  ;;  %v2264_v56 = vadd.f32 %v1708_v54, %v3221_v62  ;;  %v1407_v57 = vpop.f32.mrb[17].mxu0  ;;  %v1710_v58 = vpop.f32.mrb[17].mxu1 }
 0x1af   :  { %1961 = vst [vmem:[%s3360_s3 + $0x70] sm:$0xff] %v2210_v51  ;;  %1962 = vst [vmem:[%s3360_s3 + $0x78] sm:$0xff] %v2211_v52  ;;  %v2239_v59 = vadd.f32 %v1407_v57, %v3223_v63  ;;  %v2265_v60 = vadd.f32 %v1710_v58, %v3225_v0  ;;  %v1409_v1 = vpop.f32.mrb[18].mxu0  ;;  %v1712_v2 = vpop.f32.mrb[18].mxu1 }
 0x1b0   :  { %v1767_v3 = vmax.f32 %v2238_v55, 0.0  ;;  %v1769_v4 = vmax.f32 %v2264_v56, 0.0  ;;  %v2240_v5 = vadd.f32 %v1409_v1, %v3219_v61  ;;  %v2266_v6 = vadd.f32 %v1712_v2, %v3221_v62  ;;  %v1411_v7 = vpop.f32.mrb[19].mxu0  ;;  %v1714_v8 = vpop.f32.mrb[19].mxu1 }
 0x1b1   :  { %v1768_v9 = vmax.f32 %v2239_v59, 0.0  ;;  %v1770_v10 = vmax.f32 %v2265_v60, 0.0  ;;  %v2241_v11 = vadd.f32 %v1411_v7, %v3223_v63  ;;  %v2267_v12 = vadd.f32 %v1714_v8, %v3225_v0 }
 0x1b2   :  { %v1771_v13 = vmax.f32 %v2240_v5, 0.0  ;;  %v1773_v14 = vmax.f32 %v2266_v6, 0.0 }
 0x1b3   :  { %v2212_v15 = vpack.c.bf16 %v1768_v9, %v1767_v3  ;;  %v2213_v16 = vpack.c.bf16 %v1770_v10, %v1769_v4  ;;  %v1772_v17 = vmax.f32 %v2241_v11, 0.0  ;;  %v1774_v18 = vmax.f32 %v2267_v12, 0.0 }
 0x1b5   :  { %1963 = vst [vmem:[%s3360_s3 + $0x80] sm:$0xff] %v2212_v15  ;;  %1964 = vst [vmem:[%s3360_s3 + $0x88] sm:$0xff] %v2213_v16  ;;  %v2214_v19 = vpack.c.bf16 %v1772_v17, %v1771_v13  ;;  %v2215_v20 = vpack.c.bf16 %v1774_v18, %v1773_v14  ;;  %v1415_v21 = vpop.f32.mrb[20].mxu0  ;;  %v1718_v22 = vpop.f32.mrb[20].mxu1 }
 0x1b6   :  { %v2242_v23 = vadd.f32 %v1415_v21, %v3219_v61  ;;  %v2268_v24 = vadd.f32 %v1718_v22, %v3221_v62  ;;  %v1417_v25 = vpop.f32.mrb[21].mxu0  ;;  %v1720_v26 = vpop.f32.mrb[21].mxu1 }
 0x1b7   :  { %1965 = vst [vmem:[%s3360_s3 + $0x90] sm:$0xff] %v2214_v19  ;;  %1966 = vst [vmem:[%s3360_s3 + $0x98] sm:$0xff] %v2215_v20  ;;  %v2243_v27 = vadd.f32 %v1417_v25, %v3223_v63  ;;  %v2269_v28 = vadd.f32 %v1720_v26, %v3225_v0  ;;  %v1419_v29 = vpop.f32.mrb[22].mxu0  ;;  %v1722_v30 = vpop.f32.mrb[22].mxu1 }
 0x1b8   :  { %v1775_v31 = vmax.f32 %v2242_v23, 0.0  ;;  %v1777_v32 = vmax.f32 %v2268_v24, 0.0  ;;  %v2244_v33 = vadd.f32 %v1419_v29, %v3219_v61  ;;  %v2270_v34 = vadd.f32 %v1722_v30, %v3221_v62  ;;  %v1421_v35 = vpop.f32.mrb[23].mxu0  ;;  %v1724_v36 = vpop.f32.mrb[23].mxu1 }
 0x1b9   :  { %v1776_v37 = vmax.f32 %v2243_v27, 0.0  ;;  %v1778_v38 = vmax.f32 %v2269_v28, 0.0  ;;  %v2245_v39 = vadd.f32 %v1421_v35, %v3223_v63  ;;  %v2271_v40 = vadd.f32 %v1724_v36, %v3225_v0 }
 0x1ba   :  { %v1779_v41 = vmax.f32 %v2244_v33, 0.0  ;;  %v1781_v42 = vmax.f32 %v2270_v34, 0.0 }
 0x1bb   :  { %v2216_v43 = vpack.c.bf16 %v1776_v37, %v1775_v31  ;;  %v2217_v44 = vpack.c.bf16 %v1778_v38, %v1777_v32  ;;  %v1780_v45 = vmax.f32 %v2245_v39, 0.0  ;;  %v1782_v46 = vmax.f32 %v2271_v40, 0.0 }
 0x1bd   :  { %1967 = vst [vmem:[%s3360_s3 + $0xa0] sm:$0xff] %v2216_v43  ;;  %1968 = vst [vmem:[%s3360_s3 + $0xa8] sm:$0xff] %v2217_v44  ;;  %v2218_v47 = vpack.c.bf16 %v1780_v45, %v1779_v41  ;;  %v2219_v48 = vpack.c.bf16 %v1782_v46, %v1781_v42  ;;  %v1425_v49 = vpop.f32.mrb[24].mxu0  ;;  %v1728_v50 = vpop.f32.mrb[24].mxu1 }
 0x1be   :  { %v2246_v51 = vadd.f32 %v1425_v49, %v3219_v61  ;;  %v2272_v52 = vadd.f32 %v1728_v50, %v3221_v62  ;;  %v1427_v53 = vpop.f32.mrb[25].mxu0  ;;  %v1730_v54 = vpop.f32.mrb[25].mxu1 }
 0x1bf   :  { %1969 = vst [vmem:[%s3360_s3 + $0xb0] sm:$0xff] %v2218_v47  ;;  %1970 = vst [vmem:[%s3360_s3 + $0xb8] sm:$0xff] %v2219_v48  ;;  %v2247_v55 = vadd.f32 %v1427_v53, %v3223_v63  ;;  %v2273_v56 = vadd.f32 %v1730_v54, %v3225_v0  ;;  %v1429_v57 = vpop.f32.mrb[26].mxu0  ;;  %v1732_v58 = vpop.f32.mrb[26].mxu1 }
 0x1c0   :  { %v1783_v59 = vmax.f32 %v2246_v51, 0.0  ;;  %v1785_v61 = vmax.f32 %v2272_v52, 0.0  ;;  %v1430_v60 = vpop.f32.mrb[27].mxu0  ;;  %v1733_v62 = vpop.f32.mrb[27].mxu1 }
 0x1c1   :  { %v1784_v1 = vmax.f32 %v2247_v55, 0.0  ;;  %v1786_v2 = vmax.f32 %v2273_v56, 0.0 }
 0x1c3   :  { %v2220_v3 = vpack.c.bf16 %v1784_v1, %v1783_v59  ;;  %v2221_v4 = vpack.c.bf16 %v1786_v2, %v1785_v61 }
 0x1c5   :  { %1971 = vst [vmem:[%s3360_s3 + $0xc0] sm:$0xff] %v2220_v3  ;;  %1972 = vst [vmem:[%s3360_s3 + $0xc8] sm:$0xff] %v2221_v4 }

// kernel: squeezenet_forward.33
= control target key start
LH: loop header
LB: loop body
LE: loop exit
PB: predicated region body
PF: predicated region fallthrough
CT: control target
= control target key end

     0   :  { %vm430_vm0 = vcmask 519168   ;;  %s732_s1 = inlined_call_operand.vmem [shape: bf16[512,64], index: 1, kind: input, shape index: {}]   ;;  %s733_s0 = inlined_call_operand.vmem [shape: bf16[18,512], index: 0, kind: input, shape index: {}]   ;;  %s734_s2 = inlined_call_operand.vmem [shape: f32[1,64], index: 2, kind: input, shape index: {}]   ;;  %s735_s3 = inlined_call_operand.vmem [shape: bf16[18,64], index: 3, kind: output, shape index: {}]  }
   0x1   :  { %v541_v0 = vld [vmem:[%s732_s1 + $0x40] sm:$0xff]   ;;  %v545_v4 = vld [vmem:[%s732_s1 + $0x48] sm:$0xff]   ;;  %v549_v8 = vld [vmem:[%s732_s1 + $0x50] sm:$0xff]  }
   0x2   :  { %v542_v1 = vld [vmem:[%s732_s1 + $0xc0] sm:$0xff]   ;;  %485 = vmatprep.subr.bf16.mxu0 %v541_v0  ;;  %v546_v5 = vld [vmem:[%s732_s1 + $0xc8] sm:$0xff]   ;;  %v550_v9 = vld [vmem:[%s732_s1 + $0xd0] sm:$0xff]  }
   0x3   :  { %v543_v2 = vld [vmem:[%s732_s1] sm:$0xff]   ;;  %513 = vmatprep.subr.bf16.mxu1 %v542_v1  ;;  %v547_v6 = vld [vmem:[%s732_s1 + $0x8] sm:$0xff]   ;;  %v551_v10 = vld [vmem:[%s732_s1 + $0x10] sm:$0xff]  }
   0x4   :  { %v544_v3 = vld [vmem:[%s732_s1 + $0x80] sm:$0xff]   ;;  %486 = vmatpush3.bf16.msra.mxu0 %v543_v2  ;;  %v548_v7 = vld [vmem:[%s732_s1 + $0x88] sm:$0xff]   ;;  %v552_v11 = vld [vmem:[%s732_s1 + $0x90] sm:$0xff]  }
   0x5   :  { %514 = vmatpush3.bf16.msra.mxu1 %v544_v3  ;;  %487 = vmatprep.subr.bf16.mxu0 %v545_v4  ;;  %v553_v12 = vld [vmem:[%s732_s1 + $0x58] sm:$0xff]   ;;  %v557_v16 = vld [vmem:[%s732_s1 + $0x60] sm:$0xff]   ;;  %v561_v20 = vld [vmem:[%s732_s1 + $0x68] sm:$0xff]  }
   0x6   :  { %515 = vmatprep.subr.bf16.mxu1 %v546_v5  ;;  %v554_v13 = vld [vmem:[%s732_s1 + $0xd8] sm:$0xff]   ;;  %v558_v17 = vld [vmem:[%s732_s1 + $0xe0] sm:$0xff]   ;;  %v562_v21 = vld [vmem:[%s732_s1 + $0xe8] sm:$0xff]  }
   0x7   :  { %v555_v14 = vld [vmem:[%s732_s1 + $0x18] sm:$0xff]   ;;  %v559_v18 = vld [vmem:[%s732_s1 + $0x20] sm:$0xff]   ;;  %v563_v22 = vld [vmem:[%s732_s1 + $0x28] sm:$0xff]  }
   0x8   :  { %488 = vmatpush3.bf16.msra.mxu0 %v547_v6  ;;  %v556_v15 = vld [vmem:[%s732_s1 + $0x98] sm:$0xff]   ;;  %v560_v19 = vld [vmem:[%s732_s1 + $0xa0] sm:$0xff]   ;;  %v564_v23 = vld [vmem:[%s732_s1 + $0xa8] sm:$0xff]  }
   0x9   :  { %516 = vmatpush3.bf16.msra.mxu1 %v548_v7  ;;  %489 = vmatprep.subr.bf16.mxu0 %v549_v8  ;;  %v565_v24 = vld [vmem:[%s732_s1 + $0x70] sm:$0xff]   ;;  %v569_v28 = vld [vmem:[%s732_s1 + $0x78] sm:$0xff]   ;;  %v19_v36 = vld [vmem:[%s733_s0 + $0x20] sm:$0xff] }
   0xa   :  { %517 = vmatprep.subr.bf16.mxu1 %v550_v9  ;;  %v566_v25 = vld [vmem:[%s732_s1 + $0xf0] sm:$0xff]   ;;  %v570_v29 = vld [vmem:[%s732_s1 + $0xf8] sm:$0xff]   ;;  %v444_v37 = vcombine.high %v19_v36, %v19_v36  ;;  %v20_v38 = vld [vmem:[%s733_s0 + $0x28] sm:$0xff]  ;;  %v443_v40 = vcombine.low %v19_v36, %v19_v36 }
   0xb   :  { %v567_v26 = vld [vmem:[%s732_s1 + $0x30] sm:$0xff]   ;;  %v571_v30 = vld [vmem:[%s732_s1 + $0x38] sm:$0xff]   ;;  %v446_v39 = vcombine.high %v20_v38, %v20_v38  ;;  %v445_v41 = vcombine.low %v20_v38, %v20_v38  ;;  %v438_v44 = vld [vmem:[%s734_s2] ss:$0 sm:$0xff] }
   0xc   :  { %490 = vmatpush3.bf16.msra.mxu0 %v551_v10  ;;  %v568_v27 = vld [vmem:[%s732_s1 + $0xb0] sm:$0xff]   ;;  %v572_v31 = vld [vmem:[%s732_s1 + $0xb8] sm:$0xff]  }
   0xd   :  { %518 = vmatpush3.bf16.msra.mxu1 %v552_v11  ;;  %491 = vmatprep.subr.bf16.mxu0 %v553_v12  ;;  %v573_v32 = vld [vmem:[%s733_s0] ss:$16 sps:$4 sm:$0xff]   ;;  %v575_v33 = vld [vmem:[%s733_s0 + $0x4] ss:$16 sps:$4 sm:$0xff]   ;;  %v576_v34 = vld [vmem:[%s733_s0 + $0x8] ss:$16 sps:$4 sm:$0xff]  }
   0xe   :  { %519 = vmatprep.subr.bf16.mxu1 %v554_v13  ;;  %v578_v35 = vld [vmem:[%s733_s0 + $0xc] ss:$16 sps:$4 sm:$0xff]   ;;  %350 = vmatprep.mubr.bf16.mxu0 %v575_v33 }
   0xf   :  { %398 = vmatprep.mubr.bf16.mxu1 %v578_v35 }
  0x10   :  { %492 = vmatpush3.bf16.msra.mxu0 %v555_v14 }
  0x11   :  { %520 = vmatpush3.bf16.msra.mxu1 %v556_v15  ;;  %493 = vmatprep.subr.bf16.mxu0 %v557_v16 }
  0x12   :  { %521 = vmatprep.subr.bf16.mxu1 %v558_v17 }
  0x14   :  { %494 = vmatpush3.bf16.msra.mxu0 %v559_v18 }
  0x15   :  { %522 = vmatpush3.bf16.msra.mxu1 %v560_v19  ;;  %495 = vmatprep.subr.bf16.mxu0 %v561_v20 }
  0x16   :  { %523 = vmatprep.subr.bf16.mxu1 %v562_v21 }
  0x18   :  { %496 = vmatpush3.bf16.msra.mxu0 %v563_v22 }
  0x19   :  { %524 = vmatpush3.bf16.msra.mxu1 %v564_v23  ;;  %497 = vmatprep.subr.bf16.mxu0 %v565_v24 }
  0x1a   :  { %525 = vmatprep.subr.bf16.mxu1 %v566_v25 }
  0x1c   :  { %498 = vmatpush3.bf16.msra.mxu0 %v567_v26 }
  0x1d   :  { %526 = vmatpush3.bf16.msra.mxu1 %v568_v27  ;;  %499 = vmatprep.subr.bf16.mxu0 %v569_v28 }
  0x1e   :  { %527 = vmatprep.subr.bf16.mxu1 %v570_v29 }
  0x20   :  { %500 = vmatpush3.bf16.msra.mxu0 %v571_v30 }
  0x21   :  { %528 = vmatpush3.bf16.msra.mxu1 %v572_v31 }
  0x23   :  { %351 = vmatmul.mubr.bf16.vlgmr.msra.gmra.mrb[0].mxu0 %v573_v32 }
  0x24   :  { %399 = vmatmul.mubr.bf16.vlgmr.msra.gmra.mrb[0].mxu1 %v576_v34  ;;  %358 = vmatprep.mubr.bf16.mxu0 %v444_v37 }
  0x25   :  { %406 = vmatprep.mubr.bf16.mxu1 %v446_v39 }
  0x2b   :  { %359 = vmatmul.mubr.bf16.gmra.mrb[4].mxu0 %v443_v40 }
  0x2c   :  { %407 = vmatmul.mubr.bf16.gmra.mrb[4].mxu1 %v445_v41 }
  0xf6   :  { %v501_v42 = vpop.f32.mrb[0].mxu0 }
  0xf7   :  { %v529_v43 = vpop.f32.mrb[0].mxu1  ;;  %v502_v45 = vpop.f32.mrb[1].mxu0 }
  0xf8   :  { %v503_v46 = vadd.f32 %v502_v45, %v501_v42  ;;  %v530_v47 = vpop.f32.mrb[1].mxu1  ;;  %v504_v48 = vpop.f32.mrb[2].mxu0 }
  0xf9   :  { %v531_v49 = vadd.f32 %v530_v47, %v529_v43  ;;  %v532_v50 = vpop.f32.mrb[2].mxu1  ;;  %v505_v51 = vpop.f32.mrb[3].mxu0 }
  0xfa   :  { %v353_v52 = vadd.f32 %v503_v46, %v438_v44  ;;  %v506_v53 = vadd.f32 %v505_v51, %v504_v48  ;;  %v533_v54 = vpop.f32.mrb[3].mxu1 }
  0xfb   :  { %v534_v55 = vadd.f32 %v533_v54, %v532_v50 }
  0xfc   :  { %v401_v56 = vadd.f32 %v531_v49, %v353_v52  ;;  %v356_v57 = vadd.f32 %v506_v53, %v438_v44 }
  0xfe   :  { %v414_v58 = vmax.f32 %v401_v56, 0.0  ;;  %v404_v59 = vadd.f32 %v534_v55, %v356_v57  ;;  %v507_v60 = vpop.f32.mrb[4].mxu0 }
  0xff   :  { %v535_v61 = vpop.f32.mrb[4].mxu1  ;;  %v508_v62 = vpop.f32.mrb[5].mxu0 }
 0x100   :  { %v482_v63 = vpack.c.bf16 %v414_v58, %v414_v58  ;;  %v415_v0 = vmax.f32 %v404_v59, 0.0  ;;  %v509_v1 = vadd.f32 %v508_v62, %v507_v60  ;;  %v536_v2 = vpop.f32.mrb[5].mxu1  ;;  %v510_v3 = vpop.f32.mrb[6].mxu0 }
 0x101   :  { %v537_v4 = vadd.f32 %v536_v2, %v535_v61  ;;  %v538_v5 = vpop.f32.mrb[6].mxu1  ;;  %v511_v6 = vpop.f32.mrb[7].mxu0 }
 0x102   :  { %431 = vst.msk [vmem:[%s735_s3] sm:$0xf] %vm430_vm0, %v482_v63  ;;  %v483_v7 = vpack.c.bf16 %v415_v0, %v415_v0  ;;  %v361_v8 = vadd.f32 %v509_v1, %v438_v44  ;;  %v539_v9 = vpop.f32.mrb[7].mxu1 }
 0x104   :  { %432 = vst.msk [vmem:[%s735_s3 + $0x4] sm:$0xf] %vm430_vm0, %v483_v7  ;;  %v409_v10 = vadd.f32 %v537_v4, %v361_v8 }
 0x106   :  { %v416_v11 = vmax.f32 %v409_v10, 0.0 }
 0x108   :  { %v484_v12 = vpack.c.bf16 %v416_v11, %v416_v11 }
 0x10a   :  { %433 = vst.msk [vmem:[%s735_s3 + $0x8] sm:$0xf] %vm430_vm0, %v484_v12 }

// kernel: squeezenet_forward.34
= control target key start
LH: loop header
LB: loop body
LE: loop exit
PB: predicated region body
PF: predicated region fallthrough
CT: control target
= control target key end

     0   :  { %vm952_vm0 = vcmask 523264   ;;  %s2268_s1 = inlined_call_operand.vmem [shape: bf16[576,512], index: 1, kind: input, shape index: {}]   ;;  %s2269_s0 = inlined_call_operand.vmem [shape: bf16[18,576], index: 0, kind: input, shape index: {}]   ;;  %s2270_s2 = inlined_call_operand.vmem [shape: f32[1,512], index: 2, kind: input, shape index: {}]   ;;  %s2271_s3 = inlined_call_operand.vmem [shape: bf16[18,512], index: 3, kind: output, shape index: {}]  }
   0x1   :  { %v1542_v0 = vld [vmem:[%s2268_s1 + $0x4] ss:$16 sps:$4 sm:$0xff]   ;;  %v1544_v1 = vld [vmem:[%s2268_s1 + $0xc] ss:$16 sps:$4 sm:$0xff]   ;;  %v1546_v2 = vld [vmem:[%s2268_s1] ss:$16 sps:$4 sm:$0xff]  }
   0x2   :  { %959 = vmatprep.subr.bf16.mxu0 %v1542_v0  ;;  %v1547_v3 = vld [vmem:[%s2268_s1 + $0x8] ss:$16 sps:$4 sm:$0xff]   ;;  %1112 = vmatprep.subr.bf16.mxu1 %v1544_v1  ;;  %v1548_v4 = vld [vmem:[%s2268_s1 + $0x24] ss:$16 sps:$4 sm:$0xff]   ;;  %v1550_v5 = vld [vmem:[%s2268_s1 + $0x2c] ss:$16 sps:$4 sm:$0xff]  }
   0x3   :  { %960 = vmatpush1.bf16.msra.mxu0 %v1546_v2  ;;  %1113 = vmatpush1.bf16.msra.mxu1 %v1547_v3  ;;  %v1552_v6 = vld [vmem:[%s2268_s1 + $0x20] ss:$16 sps:$4 sm:$0xff]   ;;  %v1553_v7 = vld [vmem:[%s2268_s1 + $0x28] ss:$16 sps:$4 sm:$0xff]   ;;  %v1554_v8 = vld [vmem:[%s2268_s1 + $0x44] ss:$16 sps:$4 sm:$0xff]  }
   0x4   :  { %961 = vmatprep.subr.bf16.mxu0 %v1548_v4  ;;  %1114 = vmatprep.subr.bf16.mxu1 %v1550_v5  ;;  %v1556_v9 = vld [vmem:[%s2268_s1 + $0x4c] ss:$16 sps:$4 sm:$0xff]   ;;  %v1558_v10 = vld [vmem:[%s2268_s1 + $0x40] ss:$16 sps:$4 sm:$0xff]   ;;  %v1559_v11 = vld [vmem:[%s2268_s1 + $0x48] ss:$16 sps:$4 sm:$0xff]  }
   0x5   :  { %v1560_v12 = vld [vmem:[%s2268_s1 + $0x64] ss:$16 sps:$4 sm:$0xff]   ;;  %v1562_v13 = vld [vmem:[%s2268_s1 + $0x6c] ss:$16 sps:$4 sm:$0xff]   ;;  %v1564_v14 = vld [vmem:[%s2268_s1 + $0x60] ss:$16 sps:$4 sm:$0xff]  }
   0x6   :  { %v1565_v15 = vld [vmem:[%s2268_s1 + $0x68] ss:$16 sps:$4 sm:$0xff]   ;;  %v1566_v16 = vld [vmem:[%s2268_s1 + $0x84] ss:$16 sps:$4 sm:$0xff]   ;;  %v1568_v17 = vld [vmem:[%s2268_s1 + $0x8c] ss:$16 sps:$4 sm:$0xff]  }
   0x7   :  { %962 = vmatpush1.bf16.msra.mxu0 %v1552_v6  ;;  %1115 = vmatpush1.bf16.msra.mxu1 %v1553_v7  ;;  %v1570_v18 = vld [vmem:[%s2268_s1 + $0x80] ss:$16 sps:$4 sm:$0xff]   ;;  %v1571_v19 = vld [vmem:[%s2268_s1 + $0x88] ss:$16 sps:$4 sm:$0xff]   ;;  %v1572_v20 = vld [vmem:[%s2268_s1 + $0xa4] ss:$16 sps:$4 sm:$0xff]  }
   0x8   :  { %963 = vmatprep.subr.bf16.mxu0 %v1554_v8  ;;  %1116 = vmatprep.subr.bf16.mxu1 %v1556_v9  ;;  %v1574_v21 = vld [vmem:[%s2268_s1 + $0xac] ss:$16 sps:$4 sm:$0xff]   ;;  %v1576_v22 = vld [vmem:[%s2268_s1 + $0xa0] ss:$16 sps:$4 sm:$0xff]   ;;  %v1577_v23 = vld [vmem:[%s2268_s1 + $0xa8] ss:$16 sps:$4 sm:$0xff]  }
   0x9   :  { %v1578_v24 = vld [vmem:[%s2268_s1 + $0xc4] ss:$16 sps:$4 sm:$0xff]   ;;  %v1580_v25 = vld [vmem:[%s2268_s1 + $0xcc] ss:$16 sps:$4 sm:$0xff]   ;;  %v1582_v26 = vld [vmem:[%s2268_s1 + $0xc0] ss:$16 sps:$4 sm:$0xff]  }
   0xa   :  { %v1583_v27 = vld [vmem:[%s2268_s1 + $0xc8] ss:$16 sps:$4 sm:$0xff]   ;;  %v1584_v28 = vld [vmem:[%s2268_s1 + $0xe4] ss:$16 sps:$4 sm:$0xff]   ;;  %v1586_v29 = vld [vmem:[%s2268_s1 + $0xec] ss:$16 sps:$4 sm:$0xff]  }
   0xb   :  { %964 = vmatpush1.bf16.msra.mxu0 %v1558_v10  ;;  %1117 = vmatpush1.bf16.msra.mxu1 %v1559_v11  ;;  %v1588_v30 = vld [vmem:[%s2268_s1 + $0xe0] ss:$16 sps:$4 sm:$0xff]   ;;  %v1589_v31 = vld [vmem:[%s2268_s1 + $0xe8] ss:$16 sps:$4 sm:$0xff]   ;;  %v1590_v32 = vld [vmem:[%s2268_s1 + $0x104] ss:$16 sps:$4 sm:$0xff]  }
   0xc   :  { %965 = vmatprep.subr.bf16.mxu0 %v1560_v12  ;;  %1118 = vmatprep.subr.bf16.mxu1 %v1562_v13  ;;  %v1592_v33 = vld [vmem:[%s2268_s1 + $0x10c] ss:$16 sps:$4 sm:$0xff]   ;;  %v1594_v34 = vld [vmem:[%s2268_s1 + $0x100] ss:$16 sps:$4 sm:$0xff]   ;;  %v1595_v35 = vld [vmem:[%s2268_s1 + $0x108] ss:$16 sps:$4 sm:$0xff]  }
   0xd   :  { %v1596_v36 = vld [vmem:[%s2268_s1 + $0x124] ss:$16 sps:$4 sm:$0xff]   ;;  %v1598_v37 = vld [vmem:[%s2268_s1 + $0x12c] ss:$16 sps:$4 sm:$0xff]   ;;  %v1600_v38 = vld [vmem:[%s2268_s1 + $0x120] ss:$16 sps:$4 sm:$0xff]  }
   0xe   :  { %v1601_v39 = vld [vmem:[%s2268_s1 + $0x128] ss:$16 sps:$4 sm:$0xff]   ;;  %v1602_v40 = vld [vmem:[%s2268_s1 + $0x144] ss:$16 sps:$4 sm:$0xff]   ;;  %v1604_v41 = vld [vmem:[%s2268_s1 + $0x14c] ss:$16 sps:$4 sm:$0xff]  }
   0xf   :  { %966 = vmatpush1.bf16.msra.mxu0 %v1564_v14  ;;  %1119 = vmatpush1.bf16.msra.mxu1 %v1565_v15  ;;  %v1606_v42 = vld [vmem:[%s2268_s1 + $0x140] ss:$16 sps:$4 sm:$0xff]   ;;  %v1607_v43 = vld [vmem:[%s2268_s1 + $0x148] ss:$16 sps:$4 sm:$0xff]   ;;  %v1608_v44 = vld [vmem:[%s2268_s1 + $0x164] ss:$16 sps:$4 sm:$0xff]  }
  0x10   :  { %967 = vmatprep.subr.bf16.mxu0 %v1566_v16  ;;  %1120 = vmatprep.subr.bf16.mxu1 %v1568_v17  ;;  %v1610_v45 = vld [vmem:[%s2268_s1 + $0x16c] ss:$16 sps:$4 sm:$0xff]   ;;  %v1612_v46 = vld [vmem:[%s2268_s1 + $0x160] ss:$16 sps:$4 sm:$0xff]   ;;  %v1613_v47 = vld [vmem:[%s2268_s1 + $0x168] ss:$16 sps:$4 sm:$0xff]  }
  0x11   :  { %v1640_v48 = vld [vmem:[%s2269_s0 + $0x4] ss:$20 sps:$4 sm:$0xff]   ;;  %v1616_v50 = vld [vmem:[%s2268_s1 + $0x18c] ss:$16 sps:$4 sm:$0xff]   ;;  %v1618_v51 = vld [vmem:[%s2268_s1 + $0x180] ss:$16 sps:$4 sm:$0xff]  }
  0x12   :  { %v1614_v49 = vld [vmem:[%s2268_s1 + $0x184] ss:$16 sps:$4 sm:$0xff]   ;;  %991 = vmatprep.mubr.bf16.mxu0 %v1640_v48  ;;  %1144 = vmatprep.mubr.bf16.mxu1 %v1640_v48  ;;  %v1619_v52 = vld [vmem:[%s2268_s1 + $0x188] ss:$16 sps:$4 sm:$0xff]   ;;  %v1622_v54 = vld [vmem:[%s2268_s1 + $0x1ac] ss:$16 sps:$4 sm:$0xff]  }
  0x13   :  { %968 = vmatpush1.bf16.msra.mxu0 %v1570_v18  ;;  %1121 = vmatpush1.bf16.msra.mxu1 %v1571_v19  ;;  %v1620_v53 = vld [vmem:[%s2268_s1 + $0x1a4] ss:$16 sps:$4 sm:$0xff]   ;;  %v1624_v55 = vld [vmem:[%s2268_s1 + $0x1a0] ss:$16 sps:$4 sm:$0xff]   ;;  %v1625_v56 = vld [vmem:[%s2268_s1 + $0x1a8] ss:$16 sps:$4 sm:$0xff]  }
  0x14   :  { %969 = vmatprep.subr.bf16.mxu0 %v1572_v20  ;;  %1122 = vmatprep.subr.bf16.mxu1 %v1574_v21  ;;  %v1626_v57 = vld [vmem:[%s2268_s1 + $0x1c4] ss:$16 sps:$4 sm:$0xff]   ;;  %v1628_v58 = vld [vmem:[%s2268_s1 + $0x1cc] ss:$16 sps:$4 sm:$0xff]   ;;  %v1630_v59 = vld [vmem:[%s2268_s1 + $0x1c0] ss:$16 sps:$4 sm:$0xff]  }
  0x15   :  { %v1631_v60 = vld [vmem:[%s2268_s1 + $0x1c8] ss:$16 sps:$4 sm:$0xff]   ;;  %v1632_v61 = vld [vmem:[%s2268_s1 + $0x1e4] ss:$16 sps:$4 sm:$0xff]   ;;  %v1634_v62 = vld [vmem:[%s2268_s1 + $0x1ec] ss:$16 sps:$4 sm:$0xff]  }
  0x16   :  { %v1636_v63 = vld [vmem:[%s2268_s1 + $0x1e0] ss:$16 sps:$4 sm:$0xff]   ;;  %v1637_v0 = vld [vmem:[%s2268_s1 + $0x1e8] ss:$16 sps:$4 sm:$0xff]   ;;  %v1643_v1 = vld [vmem:[%s2268_s1 + $0x204] ss:$16 sps:$4 sm:$0xff]  }
  0x17   :  { %970 = vmatpush1.bf16.msra.mxu0 %v1576_v22  ;;  %1123 = vmatpush1.bf16.msra.mxu1 %v1577_v23  ;;  %v1646_v2 = vld [vmem:[%s2268_s1 + $0x20c] ss:$16 sps:$4 sm:$0xff]   ;;  %v1638_v3 = vld [vmem:[%s2269_s0] ss:$20 sps:$4 sm:$0xff]   ;;  %v1644_v5 = vld [vmem:[%s2268_s1 + $0x208] ss:$16 sps:$4 sm:$0xff]  }
  0x18   :  { %971 = vmatprep.subr.bf16.mxu0 %v1578_v24  ;;  %1124 = vmatprep.subr.bf16.mxu1 %v1580_v25  ;;  %v1641_v4 = vld [vmem:[%s2268_s1 + $0x200] ss:$16 sps:$4 sm:$0xff]   ;;  %v1649_v6 = vld [vmem:[%s2268_s1 + $0x224] ss:$16 sps:$4 sm:$0xff]   ;;  %v1652_v7 = vld [vmem:[%s2268_s1 + $0x22c] ss:$16 sps:$4 sm:$0xff]  }
  0x19   :  { %v1647_v8 = vld [vmem:[%s2268_s1 + $0x220] ss:$16 sps:$4 sm:$0xff]   ;;  %v1650_v9 = vld [vmem:[%s2268_s1 + $0x228] ss:$16 sps:$4 sm:$0xff]   ;;  %v1655_v10 = vld [vmem:[%s2268_s1 + $0x244] ss:$16 sps:$4 sm:$0xff]  }
  0x1a   :  { %v1658_v11 = vld [vmem:[%s2268_s1 + $0x24c] ss:$16 sps:$4 sm:$0xff]   ;;  %v1653_v12 = vld [vmem:[%s2268_s1 + $0x240] ss:$16 sps:$4 sm:$0xff]   ;;  %v1656_v13 = vld [vmem:[%s2268_s1 + $0x248] ss:$16 sps:$4 sm:$0xff]  }
  0x1b   :  { %972 = vmatpush1.bf16.msra.mxu0 %v1582_v26  ;;  %1125 = vmatpush1.bf16.msra.mxu1 %v1583_v27  ;;  %v1661_v14 = vld [vmem:[%s2268_s1 + $0x264] ss:$16 sps:$4 sm:$0xff]   ;;  %v1664_v15 = vld [vmem:[%s2268_s1 + $0x26c] ss:$16 sps:$4 sm:$0xff]   ;;  %v1659_v16 = vld [vmem:[%s2268_s1 + $0x260] ss:$16 sps:$4 sm:$0xff]  }
  0x1c   :  { %973 = vmatprep.subr.bf16.mxu0 %v1584_v28  ;;  %1126 = vmatprep.subr.bf16.mxu1 %v1586_v29  ;;  %v1662_v17 = vld [vmem:[%s2268_s1 + $0x268] ss:$16 sps:$4 sm:$0xff]   ;;  %v1667_v18 = vld [vmem:[%s2268_s1 + $0x284] ss:$16 sps:$4 sm:$0xff]   ;;  %v1670_v19 = vld [vmem:[%s2268_s1 + $0x28c] ss:$16 sps:$4 sm:$0xff]  }
  0x1d   :  { %v1665_v20 = vld [vmem:[%s2268_s1 + $0x280] ss:$16 sps:$4 sm:$0xff]   ;;  %v1668_v21 = vld [vmem:[%s2268_s1 + $0x288] ss:$16 sps:$4 sm:$0xff]   ;;  %v1673_v22 = vld [vmem:[%s2268_s1 + $0x2a4] ss:$16 sps:$4 sm:$0xff]  }
  0x1e   :  { %v1676_v23 = vld [vmem:[%s2268_s1 + $0x2ac] ss:$16 sps:$4 sm:$0xff]   ;;  %v1671_v26 = vld [vmem:[%s2268_s1 + $0x2a0] ss:$16 sps:$4 sm:$0xff]   ;;  %v1674_v28 = vld [vmem:[%s2268_s1 + $0x2a8] ss:$16 sps:$4 sm:$0xff]  }
  0x1f   :  { %974 = vmatpush1.bf16.msra.mxu0 %v1588_v30  ;;  %1127 = vmatpush1.bf16.msra.mxu1 %v1589_v31  ;;  %v21_v24 = vld [vmem:[%s2269_s0 + $0x28] sm:$0xff]  ;;  %v1679_v29 = vld [vmem:[%s2268_s1 + $0x2c4] ss:$16 sps:$4 sm:$0xff]   ;;  %v1677_v31 = vld [vmem:[%s2268_s1 + $0x2c0] ss:$16 sps:$4 sm:$0xff]  }
  0x20   :  { %975 = vmatprep.subr.bf16.mxu0 %v1590_v32  ;;  %1128 = vmatprep.subr.bf16.mxu1 %v1592_v33  ;;  %v1333_v25 = vcombine.high %v21_v24, %v21_v24  ;;  %v1332_v27 = vcombine.low %v21_v24, %v21_v24  ;;  %v1682_v30 = vld [vmem:[%s2268_s1 + $0x2cc] ss:$16 sps:$4 sm:$0xff]   ;;  %v1680_v32 = vld [vmem:[%s2268_s1 + $0x2c8] ss:$16 sps:$4 sm:$0xff]   ;;  %v1701_v48 = vld [vmem:[%s2268_s1 + $0x340] ss:$16 sps:$4 sm:$0xff]  }
  0x21   :  { %v1741_v33 = vld [vmem:[%s2269_s0 + $0xc] ss:$20 sps:$4 sm:$0xff]  }
  0x22   :  { %v1762_v24 = vld [vmem:[%s2268_s1 + $0x460] ss:$16 sps:$4 sm:$0xff]  }
  0x23   :  { %976 = vmatpush1.bf16.msra.mxu0 %v1594_v34  ;;  %1129 = vmatpush1.bf16.msra.mxu1 %v1595_v35  ;;  %v1685_v34 = vld [vmem:[%s2268_s1 + $0x2e4] ss:$16 sps:$4 sm:$0xff]   ;;  %v1688_v35 = vld [vmem:[%s2268_s1 + $0x2ec] ss:$16 sps:$4 sm:$0xff]  }
  0x24   :  { %977 = vmatprep.subr.bf16.mxu0 %v1596_v36  ;;  %1130 = vmatprep.subr.bf16.mxu1 %v1598_v37  ;;  %v1683_v36 = vld [vmem:[%s2268_s1 + $0x2e0] ss:$16 sps:$4 sm:$0xff]   ;;  %v1686_v37 = vld [vmem:[%s2268_s1 + $0x2e8] ss:$16 sps:$4 sm:$0xff]  }
  0x27   :  { %978 = vmatpush1.bf16.msra.mxu0 %v1600_v38  ;;  %1131 = vmatpush1.bf16.msra.mxu1 %v1601_v39  ;;  %v1691_v38 = vld [vmem:[%s2268_s1 + $0x304] ss:$16 sps:$4 sm:$0xff]   ;;  %v1694_v39 = vld [vmem:[%s2268_s1 + $0x30c] ss:$16 sps:$4 sm:$0xff]  }
  0x28   :  { %979 = vmatprep.subr.bf16.mxu0 %v1602_v40  ;;  %1132 = vmatprep.subr.bf16.mxu1 %v1604_v41  ;;  %v1689_v40 = vld [vmem:[%s2268_s1 + $0x300] ss:$16 sps:$4 sm:$0xff]   ;;  %v1692_v41 = vld [vmem:[%s2268_s1 + $0x308] ss:$16 sps:$4 sm:$0xff]  }
  0x2b   :  { %980 = vmatpush1.bf16.msra.mxu0 %v1606_v42  ;;  %1133 = vmatpush1.bf16.msra.mxu1 %v1607_v43  ;;  %v1697_v42 = vld [vmem:[%s2268_s1 + $0x324] ss:$16 sps:$4 sm:$0xff]   ;;  %v1700_v43 = vld [vmem:[%s2268_s1 + $0x32c] ss:$16 sps:$4 sm:$0xff]  }
  0x2c   :  { %981 = vmatprep.subr.bf16.mxu0 %v1608_v44  ;;  %1134 = vmatprep.subr.bf16.mxu1 %v1610_v45  ;;  %v1695_v44 = vld [vmem:[%s2268_s1 + $0x320] ss:$16 sps:$4 sm:$0xff]   ;;  %v1698_v45 = vld [vmem:[%s2268_s1 + $0x328] ss:$16 sps:$4 sm:$0xff]  }
  0x2f   :  { %982 = vmatpush1.bf16.msra.mxu0 %v1612_v46  ;;  %1135 = vmatpush1.bf16.msra.mxu1 %v1613_v47  ;;  %v1703_v46 = vld [vmem:[%s2268_s1 + $0x344] ss:$16 sps:$4 sm:$0xff]   ;;  %v1706_v47 = vld [vmem:[%s2268_s1 + $0x34c] ss:$16 sps:$4 sm:$0xff]  }
  0x30   :  { %983 = vmatprep.subr.bf16.mxu0 %v1614_v49  ;;  %1136 = vmatprep.subr.bf16.mxu1 %v1616_v50  ;;  %v1704_v49 = vld [vmem:[%s2268_s1 + $0x348] ss:$16 sps:$4 sm:$0xff]   ;;  %v1709_v50 = vld [vmem:[%s2268_s1 + $0x364] ss:$16 sps:$4 sm:$0xff]  }
  0x33   :  { %984 = vmatpush1.bf16.msra.mxu0 %v1618_v51  ;;  %1137 = vmatpush1.bf16.msra.mxu1 %v1619_v52  ;;  %v1712_v51 = vld [vmem:[%s2268_s1 + $0x36c] ss:$16 sps:$4 sm:$0xff]   ;;  %v1707_v52 = vld [vmem:[%s2268_s1 + $0x360] ss:$16 sps:$4 sm:$0xff]  }
  0x34   :  { %985 = vmatprep.subr.bf16.mxu0 %v1620_v53  ;;  %1138 = vmatprep.subr.bf16.mxu1 %v1622_v54  ;;  %v1710_v53 = vld [vmem:[%s2268_s1 + $0x368] ss:$16 sps:$4 sm:$0xff]   ;;  %v1715_v54 = vld [vmem:[%s2268_s1 + $0x384] ss:$16 sps:$4 sm:$0xff]  }
  0x37   :  { %986 = vmatpush1.bf16.msra.mxu0 %v1624_v55  ;;  %1139 = vmatpush1.bf16.msra.mxu1 %v1625_v56  ;;  %v1718_v55 = vld [vmem:[%s2268_s1 + $0x38c] ss:$16 sps:$4 sm:$0xff]   ;;  %v1713_v56 = vld [vmem:[%s2268_s1 + $0x380] ss:$16 sps:$4 sm:$0xff]  }
  0x38   :  { %987 = vmatprep.subr.bf16.mxu0 %v1626_v57  ;;  %1140 = vmatprep.subr.bf16.mxu1 %v1628_v58  ;;  %v1716_v57 = vld [vmem:[%s2268_s1 + $0x388] ss:$16 sps:$4 sm:$0xff]   ;;  %v1721_v58 = vld [vmem:[%s2268_s1 + $0x3a4] ss:$16 sps:$4 sm:$0xff]  }
  0x3b   :  { %988 = vmatpush1.bf16.msra.mxu0 %v1630_v59  ;;  %1141 = vmatpush1.bf16.msra.mxu1 %v1631_v60  ;;  %v1724_v59 = vld [vmem:[%s2268_s1 + $0x3ac] ss:$16 sps:$4 sm:$0xff]   ;;  %v1719_v60 = vld [vmem:[%s2268_s1 + $0x3a0] ss:$16 sps:$4 sm:$0xff]  }
  0x3c   :  { %989 = vmatprep.subr.bf16.mxu0 %v1632_v61  ;;  %1142 = vmatprep.subr.bf16.mxu1 %v1634_v62  ;;  %v1722_v61 = vld [vmem:[%s2268_s1 + $0x3a8] ss:$16 sps:$4 sm:$0xff]   ;;  %v1729_v62 = vld [vmem:[%s2268_s1 + $0x3c4] ss:$16 sps:$4 sm:$0xff]  }
  0x3f   :  { %990 = vmatpush1.bf16.msra.mxu0 %v1636_v63  ;;  %1143 = vmatpush1.bf16.msra.mxu1 %v1637_v0  ;;  %v1732_v63 = vld [vmem:[%s2268_s1 + $0x3cc] ss:$16 sps:$4 sm:$0xff]   ;;  %v1727_v0 = vld [vmem:[%s2268_s1 + $0x3c0] ss:$16 sps:$4 sm:$0xff]  }
  0x40   :  { %1010 = vmatprep.subr.bf16.mxu0 %v1643_v1  ;;  %1163 = vmatprep.subr.bf16.mxu1 %v1646_v2  ;;  %v1730_v1 = vld [vmem:[%s2268_s1 + $0x3c8] ss:$16 sps:$4 sm:$0xff]   ;;  %v1735_v2 = vld [vmem:[%s2268_s1 + $0x3e4] ss:$16 sps:$4 sm:$0xff]  }
  0x42   :  { %992 = vmatmul.mubr.bf16.vlgmr.msra.gmra.mrb[0].mxu0 %v1638_v3  ;;  %1145 = vmatmul.mubr.bf16.vlgmr.msra.gmra.mrb[0].mxu1 %v1638_v3  ;;  %v1738_v3 = vld [vmem:[%s2268_s1 + $0x3ec] ss:$16 sps:$4 sm:$0xff]  }
  0x43   :  { %1011 = vmatpush1.bf16.msra.mxu0 %v1641_v4  ;;  %1164 = vmatpush1.bf16.msra.mxu1 %v1644_v5  ;;  %v1733_v4 = vld [vmem:[%s2268_s1 + $0x3e0] ss:$16 sps:$4 sm:$0xff]   ;;  %v1736_v5 = vld [vmem:[%s2268_s1 + $0x3e8] ss:$16 sps:$4 sm:$0xff]  }
  0x44   :  { %1012 = vmatprep.subr.bf16.mxu0 %v1649_v6  ;;  %1165 = vmatprep.subr.bf16.mxu1 %v1652_v7  ;;  %v1744_v6 = vld [vmem:[%s2268_s1 + $0x404] ss:$16 sps:$4 sm:$0xff]   ;;  %v1747_v7 = vld [vmem:[%s2268_s1 + $0x40c] ss:$16 sps:$4 sm:$0xff]  }
  0x45   :  { %1001 = vmatprep.mubr.bf16.mxu0 %v1333_v25  ;;  %1154 = vmatprep.mubr.bf16.mxu1 %v1333_v25  ;;  %v1765_v25 = vld [vmem:[%s2268_s1 + $0x468] ss:$16 sps:$4 sm:$0xff]  }
  0x47   :  { %1013 = vmatpush1.bf16.msra.mxu0 %v1647_v8  ;;  %1166 = vmatpush1.bf16.msra.mxu1 %v1650_v9  ;;  %v1739_v8 = vld [vmem:[%s2269_s0 + $0x8] ss:$20 sps:$4 sm:$0xff]   ;;  %v22_v9 = vld [vmem:[%s2269_s0 + $0x30] sm:$0xff] }
  0x48   :  { %1014 = vmatprep.subr.bf16.mxu0 %v1655_v10  ;;  %1167 = vmatprep.subr.bf16.mxu1 %v1658_v11  ;;  %v1742_v10 = vld [vmem:[%s2268_s1 + $0x400] ss:$16 sps:$4 sm:$0xff]   ;;  %v1745_v11 = vld [vmem:[%s2268_s1 + $0x408] ss:$16 sps:$4 sm:$0xff]  }
  0x4a   :  { %1002 = vmatmul.mubr.bf16.gmra.mrb[4].mxu0 %v1332_v27  ;;  %1155 = vmatmul.mubr.bf16.gmra.mrb[4].mxu1 %v1332_v27  ;;  %v1768_v27 = vld [vmem:[%s2269_s0 + $0x10] ss:$20 sps:$4 sm:$0xff]  }
  0x4b   :  { %1015 = vmatpush1.bf16.msra.mxu0 %v1653_v12  ;;  %1168 = vmatpush1.bf16.msra.mxu1 %v1656_v13  ;;  %v1750_v12 = vld [vmem:[%s2268_s1 + $0x424] ss:$16 sps:$4 sm:$0xff]   ;;  %v1753_v13 = vld [vmem:[%s2268_s1 + $0x42c] ss:$16 sps:$4 sm:$0xff]  }
  0x4c   :  { %1016 = vmatprep.subr.bf16.mxu0 %v1661_v14  ;;  %1169 = vmatprep.subr.bf16.mxu1 %v1664_v15  ;;  %v1335_v14 = vcombine.high %v22_v9, %v22_v9  ;;  %v1748_v15 = vld [vmem:[%s2268_s1 + $0x420] ss:$16 sps:$4 sm:$0xff]  }
  0x4d   :  { %1042 = vmatprep.mubr.bf16.mxu0 %v1741_v33  ;;  %1195 = vmatprep.mubr.bf16.mxu1 %v1741_v33  ;;  %v168_v33 = vld [vmem:[%s2270_s2] sm:$0xf] }
  0x4f   :  { %1017 = vmatpush1.bf16.msra.mxu0 %v1659_v16  ;;  %1170 = vmatpush1.bf16.msra.mxu1 %v1662_v17  ;;  %v1751_v16 = vld [vmem:[%s2268_s1 + $0x428] ss:$16 sps:$4 sm:$0xff]   ;;  %v1758_v17 = vld [vmem:[%s2268_s1 + $0x444] ss:$16 sps:$4 sm:$0xff]  }
  0x50   :  { %1018 = vmatprep.subr.bf16.mxu0 %v1667_v18  ;;  %1171 = vmatprep.subr.bf16.mxu1 %v1670_v19  ;;  %v1761_v18 = vld [vmem:[%s2268_s1 + $0x44c] ss:$16 sps:$4 sm:$0xff]   ;;  %v1334_v19 = vcombine.low %v22_v9, %v22_v9 }
  0x53   :  { %1019 = vmatpush1.bf16.msra.mxu0 %v1665_v20  ;;  %1172 = vmatpush1.bf16.msra.mxu1 %v1668_v21  ;;  %v1756_v20 = vld [vmem:[%s2268_s1 + $0x440] ss:$16 sps:$4 sm:$0xff]   ;;  %v1759_v21 = vld [vmem:[%s2268_s1 + $0x448] ss:$16 sps:$4 sm:$0xff]  }
  0x54   :  { %1020 = vmatprep.subr.bf16.mxu0 %v1673_v22  ;;  %1173 = vmatprep.subr.bf16.mxu1 %v1676_v23  ;;  %v1764_v22 = vld [vmem:[%s2268_s1 + $0x464] ss:$16 sps:$4 sm:$0xff]   ;;  %v1767_v23 = vld [vmem:[%s2268_s1 + $0x46c] ss:$16 sps:$4 sm:$0xff]  }
  0x57   :  { %1021 = vmatpush1.bf16.msra.mxu0 %v1671_v26  ;;  %1174 = vmatpush1.bf16.msra.mxu1 %v1674_v28  ;;  %v1770_v26 = vmov 0   ;;  %v1769_v28 = vld [vmem:[%s2269_s0 + $0x38] ss:$0 sps:$4 sm:$0xff]  }
  0x58   :  { %1022 = vmatprep.subr.bf16.mxu0 %v1679_v29  ;;  %1175 = vmatprep.subr.bf16.mxu1 %v1682_v30  ;;  %v170_v29 = vlaneseq }
  0x5a   :  { %v171_v30 = vshrl.u32 %v170_v29, 7 }
  0x5b   :  { %1023 = vmatpush1.bf16.msra.mxu0 %v1677_v31  ;;  %1176 = vmatpush1.bf16.msra.mxu1 %v1680_v32 }
  0x5c   :  { %1024 = vmatprep.subr.bf16.mxu0 %v1685_v34  ;;  %1177 = vmatprep.subr.bf16.mxu1 %v1688_v35  ;;  %v172_v31 = vsub.s32 0, %v171_v30  ;;  %v180_v32 = vsub.s32 2, %v171_v30  ;;  %v176_v34 = vsub.s32 1, %v171_v30  ;;  %v184_v35 = vsub.s32 3, %v171_v30 }
  0x5f   :  { %1025 = vmatpush1.bf16.msra.mxu0 %v1683_v36  ;;  %1178 = vmatpush1.bf16.msra.mxu1 %v1686_v37  ;;  %v173_v36 = vrot.slane %v168_v33, %v172_v31  ;;  %v181_v37 = vrot.slane %v168_v33, %v180_v32 }
  0x60   :  { %1026 = vmatprep.subr.bf16.mxu0 %v1691_v38  ;;  %1179 = vmatprep.subr.bf16.mxu1 %v1694_v39  ;;  %v177_v38 = vrot.slane %v168_v33, %v176_v34  ;;  %v185_v39 = vrot.slane %v168_v33, %v184_v35 }
  0x63   :  { %1027 = vmatpush1.bf16.msra.mxu0 %v1689_v40  ;;  %1180 = vmatpush1.bf16.msra.mxu1 %v1692_v41 }
  0x64   :  { %1028 = vmatprep.subr.bf16.mxu0 %v1697_v42  ;;  %1181 = vmatprep.subr.bf16.mxu1 %v1700_v43 }
  0x67   :  { %1029 = vmatpush1.bf16.msra.mxu0 %v1695_v44  ;;  %1182 = vmatpush1.bf16.msra.mxu1 %v1698_v45 }
  0x68   :  { %1030 = vmatprep.subr.bf16.mxu0 %v1703_v46  ;;  %1183 = vmatprep.subr.bf16.mxu1 %v1706_v47 }
  0x6b   :  { %1031 = vmatpush1.bf16.msra.mxu0 %v1701_v48  ;;  %1184 = vmatpush1.bf16.msra.mxu1 %v1704_v49 }
  0x6c   :  { %1032 = vmatprep.subr.bf16.mxu0 %v1709_v50  ;;  %1185 = vmatprep.subr.bf16.mxu1 %v1712_v51 }
  0x6f   :  { %1033 = vmatpush1.bf16.msra.mxu0 %v1707_v52  ;;  %1186 = vmatpush1.bf16.msra.mxu1 %v1710_v53 }
  0x70   :  { %1034 = vmatprep.subr.bf16.mxu0 %v1715_v54  ;;  %1187 = vmatprep.subr.bf16.mxu1 %v1718_v55 }
  0x73   :  { %1035 = vmatpush1.bf16.msra.mxu0 %v1713_v56  ;;  %1188 = vmatpush1.bf16.msra.mxu1 %v1716_v57 }
  0x74   :  { %1036 = vmatprep.subr.bf16.mxu0 %v1721_v58  ;;  %1189 = vmatprep.subr.bf16.mxu1 %v1724_v59 }
  0x77   :  { %1037 = vmatpush1.bf16.msra.mxu0 %v1719_v60  ;;  %1190 = vmatpush1.bf16.msra.mxu1 %v1722_v61 }
  0x78   :  { %1038 = vmatprep.subr.bf16.mxu0 %v1729_v62  ;;  %1191 = vmatprep.subr.bf16.mxu1 %v1732_v63 }
  0x7b   :  { %1039 = vmatpush1.bf16.msra.mxu0 %v1727_v0  ;;  %1192 = vmatpush1.bf16.msra.mxu1 %v1730_v1 }
  0x7c   :  { %1040 = vmatprep.subr.bf16.mxu0 %v1735_v2  ;;  %1193 = vmatprep.subr.bf16.mxu1 %v1738_v3 }
  0x7f   :  { %1041 = vmatpush1.bf16.msra.mxu0 %v1733_v4  ;;  %1194 = vmatpush1.bf16.msra.mxu1 %v1736_v5 }
  0x80   :  { %1061 = vmatprep.subr.bf16.mxu0 %v1744_v6  ;;  %1214 = vmatprep.subr.bf16.mxu1 %v1747_v7 }
  0x82   :  { %1043 = vmatmul.mubr.bf16.vlgmr.msra.gmra.mrb[0].mxu0 %v1739_v8  ;;  %1196 = vmatmul.mubr.bf16.vlgmr.msra.gmra.mrb[0].mxu1 %v1739_v8 }
  0x83   :  { %1062 = vmatpush1.bf16.msra.mxu0 %v1742_v10  ;;  %1215 = vmatpush1.bf16.msra.mxu1 %v1745_v11 }
  0x84   :  { %1063 = vmatprep.subr.bf16.mxu0 %v1750_v12  ;;  %1216 = vmatprep.subr.bf16.mxu1 %v1753_v13 }
  0x85   :  { %1052 = vmatprep.mubr.bf16.mxu0 %v1335_v14  ;;  %1205 = vmatprep.mubr.bf16.mxu1 %v1335_v14 }
  0x87   :  { %1064 = vmatpush1.bf16.msra.mxu0 %v1748_v15  ;;  %1217 = vmatpush1.bf16.msra.mxu1 %v1751_v16 }
  0x88   :  { %1065 = vmatprep.subr.bf16.mxu0 %v1758_v17  ;;  %1218 = vmatprep.subr.bf16.mxu1 %v1761_v18 }
  0x8a   :  { %1053 = vmatmul.mubr.bf16.gmra.mrb[4].mxu0 %v1334_v19  ;;  %1206 = vmatmul.mubr.bf16.gmra.mrb[4].mxu1 %v1334_v19 }
  0x8b   :  { %1066 = vmatpush1.bf16.msra.mxu0 %v1756_v20  ;;  %1219 = vmatpush1.bf16.msra.mxu1 %v1759_v21 }
  0x8c   :  { %1067 = vmatprep.subr.bf16.mxu0 %v1764_v22  ;;  %1220 = vmatprep.subr.bf16.mxu1 %v1767_v23 }
  0x8d   :  { %1093 = vmatprep.mubr.bf16.mxu0 %v1770_v26  ;;  %1246 = vmatprep.mubr.bf16.mxu1 %v1770_v26 }
  0x8f   :  { %1068 = vmatpush1.bf16.msra.mxu0 %v1762_v24  ;;  %1221 = vmatpush1.bf16.msra.mxu1 %v1765_v25 }
  0x92   :  { %1481 = vmatmul.mubr.msk.bf16.vlgmr.msra.gmra.mrb[0].mxu0 %vm952_vm0, %v1768_v27  ;;  %1483 = vmatmul.mubr.msk.bf16.vlgmr.msra.gmra.mrb[0].mxu1 %vm952_vm0, %v1768_v27 }
  0x93   :  { %1103 = vmatprep.mubr.bf16.mxu0 %v1770_v26  ;;  %1256 = vmatprep.mubr.bf16.mxu1 %v1770_v26 }
  0x9a   :  { %1482 = vmatmul.mubr.msk.bf16.gmra.mrb[4].mxu0 %vm952_vm0, %v1769_v28  ;;  %1484 = vmatmul.mubr.msk.bf16.gmra.mrb[4].mxu1 %vm952_vm0, %v1769_v28 }
 0x165   :  { %v1095_v40 = vpop.f32.mrb[0].mxu0  ;;  %v1248_v41 = vpop.f32.mrb[0].mxu1 }
 0x166   :  { %v1497_v42 = vadd.f32 %v1095_v40, %v173_v36  ;;  %v1503_v43 = vadd.f32 %v1248_v41, %v181_v37  ;;  %v1097_v44 = vpop.f32.mrb[1].mxu0  ;;  %v1250_v45 = vpop.f32.mrb[1].mxu1 }
 0x167   :  { %v1498_v46 = vadd.f32 %v1097_v44, %v177_v38  ;;  %v1504_v47 = vadd.f32 %v1250_v45, %v185_v39  ;;  %v1099_v48 = vpop.f32.mrb[2].mxu0  ;;  %v1252_v49 = vpop.f32.mrb[2].mxu1 }
 0x168   :  { %v1265_v50 = vmax.f32 %v1497_v42, 0.0  ;;  %v1267_v51 = vmax.f32 %v1503_v43, 0.0  ;;  %v1499_v52 = vadd.f32 %v1099_v48, %v173_v36  ;;  %v1505_v53 = vadd.f32 %v1252_v49, %v181_v37  ;;  %v1101_v54 = vpop.f32.mrb[3].mxu0  ;;  %v1254_v55 = vpop.f32.mrb[3].mxu1 }
 0x169   :  { %v1266_v56 = vmax.f32 %v1498_v46, 0.0  ;;  %v1268_v57 = vmax.f32 %v1504_v47, 0.0  ;;  %v1500_v58 = vadd.f32 %v1101_v54, %v177_v38  ;;  %v1506_v59 = vadd.f32 %v1254_v55, %v185_v39 }
 0x16a   :  { %v1269_v60 = vmax.f32 %v1499_v52, 0.0  ;;  %v1271_v61 = vmax.f32 %v1505_v53, 0.0 }
 0x16b   :  { %v1491_v62 = vpack.c.bf16 %v1266_v56, %v1265_v50  ;;  %v1492_v63 = vpack.c.bf16 %v1268_v57, %v1267_v51  ;;  %v1270_v0 = vmax.f32 %v1500_v58, 0.0  ;;  %v1272_v1 = vmax.f32 %v1506_v59, 0.0 }
 0x16d   :  { %1317 = vst [vmem:[%s2271_s3] sm:$0xff] %v1491_v62  ;;  %1318 = vst [vmem:[%s2271_s3 + $0x8] sm:$0xff] %v1492_v63  ;;  %v1493_v2 = vpack.c.bf16 %v1270_v0, %v1269_v60  ;;  %v1494_v3 = vpack.c.bf16 %v1272_v1, %v1271_v61  ;;  %v1105_v4 = vpop.f32.mrb[4].mxu0  ;;  %v1258_v5 = vpop.f32.mrb[4].mxu1 }
 0x16e   :  { %v1501_v6 = vadd.f32 %v1105_v4, %v173_v36  ;;  %v1507_v7 = vadd.f32 %v1258_v5, %v181_v37  ;;  %v1107_v8 = vpop.f32.mrb[5].mxu0  ;;  %v1260_v9 = vpop.f32.mrb[5].mxu1 }
 0x16f   :  { %1319 = vst [vmem:[%s2271_s3 + $0x10] sm:$0xff] %v1493_v2  ;;  %1320 = vst [vmem:[%s2271_s3 + $0x18] sm:$0xff] %v1494_v3  ;;  %v1502_v10 = vadd.f32 %v1107_v8, %v177_v38  ;;  %v1508_v11 = vadd.f32 %v1260_v9, %v185_v39  ;;  %v1109_v12 = vpop.f32.mrb[6].mxu0  ;;  %v1262_v13 = vpop.f32.mrb[6].mxu1 }
 0x170   :  { %v1273_v14 = vmax.f32 %v1501_v6, 0.0  ;;  %v1275_v15 = vmax.f32 %v1507_v7, 0.0  ;;  %v1110_v16 = vpop.f32.mrb[7].mxu0  ;;  %v1263_v17 = vpop.f32.mrb[7].mxu1 }
 0x171   :  { %v1274_v18 = vmax.f32 %v1502_v10, 0.0  ;;  %v1276_v19 = vmax.f32 %v1508_v11, 0.0 }
 0x173   :  { %v1495_v20 = vpack.c.bf16 %v1274_v18, %v1273_v14  ;;  %v1496_v21 = vpack.c.bf16 %v1276_v19, %v1275_v15 }
 0x175   :  { %1321 = vst [vmem:[%s2271_s3 + $0x20] sm:$0xff] %v1495_v20  ;;  %1322 = vst [vmem:[%s2271_s3 + $0x28] sm:$0xff] %v1496_v21 }

// kernel: squeezenet_forward.35
= control target key start
LH: loop header
LB: loop body
LE: loop exit
PB: predicated region body
PF: predicated region fallthrough
CT: control target
= control target key end

     0   :  { %s5876_s1 = inlined_call_operand.vmem [shape: bf16[4608,128], index: 1, kind: input, shape index: {}]   ;;  %s5877_s0 = inlined_call_operand.vmem [shape: bf16[18,4608], index: 0, kind: input, shape index: {}]   ;;  %s5878_s2 = inlined_call_operand.vmem [shape: f32[1,128], index: 2, kind: input, shape index: {}]   ;;  %s5879_s3 = inlined_call_operand.vmem [shape: f32[18,128], index: 3, kind: output, shape index: {}]  }
   0x1   :  { %v4425_v0 = vld [vmem:[%s5876_s1 + $0x40] sm:$0xff]   ;;  %v4429_v4 = vld [vmem:[%s5876_s1 + $0x48] sm:$0xff]   ;;  %v4433_v8 = vld [vmem:[%s5876_s1 + $0x50] sm:$0xff]  }
   0x2   :  { %v4426_v1 = vld [vmem:[%s5876_s1 + $0xc0] sm:$0xff]   ;;  %3921 = vmatprep.subr.bf16.mxu0 %v4425_v0  ;;  %v4430_v5 = vld [vmem:[%s5876_s1 + $0xc8] sm:$0xff]   ;;  %v4434_v9 = vld [vmem:[%s5876_s1 + $0xd0] sm:$0xff]  }
   0x3   :  { %v4427_v2 = vld [vmem:[%s5876_s1] sm:$0xff]   ;;  %3949 = vmatprep.subr.bf16.mxu1 %v4426_v1  ;;  %v4431_v6 = vld [vmem:[%s5876_s1 + $0x8] sm:$0xff]   ;;  %v4435_v10 = vld [vmem:[%s5876_s1 + $0x10] sm:$0xff]  }
   0x4   :  { %v4428_v3 = vld [vmem:[%s5876_s1 + $0x80] sm:$0xff]   ;;  %3922 = vmatpush3.bf16.msra.mxu0 %v4427_v2  ;;  %v4432_v7 = vld [vmem:[%s5876_s1 + $0x88] sm:$0xff]   ;;  %v4436_v11 = vld [vmem:[%s5876_s1 + $0x90] sm:$0xff]  }
   0x5   :  { %3950 = vmatpush3.bf16.msra.mxu1 %v4428_v3  ;;  %3923 = vmatprep.subr.bf16.mxu0 %v4429_v4  ;;  %v4437_v12 = vld [vmem:[%s5876_s1 + $0x58] sm:$0xff]   ;;  %v4441_v16 = vld [vmem:[%s5876_s1 + $0x60] sm:$0xff]   ;;  %v4445_v20 = vld [vmem:[%s5876_s1 + $0x68] sm:$0xff]  }
   0x6   :  { %3951 = vmatprep.subr.bf16.mxu1 %v4430_v5  ;;  %v4438_v13 = vld [vmem:[%s5876_s1 + $0xd8] sm:$0xff]   ;;  %v4442_v17 = vld [vmem:[%s5876_s1 + $0xe0] sm:$0xff]   ;;  %v4446_v21 = vld [vmem:[%s5876_s1 + $0xe8] sm:$0xff]  }
   0x7   :  { %v4439_v14 = vld [vmem:[%s5876_s1 + $0x18] sm:$0xff]   ;;  %v4443_v18 = vld [vmem:[%s5876_s1 + $0x20] sm:$0xff]   ;;  %v4447_v22 = vld [vmem:[%s5876_s1 + $0x28] sm:$0xff]  }
   0x8   :  { %3924 = vmatpush3.bf16.msra.mxu0 %v4431_v6  ;;  %v4440_v15 = vld [vmem:[%s5876_s1 + $0x98] sm:$0xff]   ;;  %v4444_v19 = vld [vmem:[%s5876_s1 + $0xa0] sm:$0xff]   ;;  %v4448_v23 = vld [vmem:[%s5876_s1 + $0xa8] sm:$0xff]  }
   0x9   :  { %3952 = vmatpush3.bf16.msra.mxu1 %v4432_v7  ;;  %3925 = vmatprep.subr.bf16.mxu0 %v4433_v8  ;;  %v4449_v24 = vld [vmem:[%s5876_s1 + $0x70] sm:$0xff]   ;;  %v4453_v28 = vld [vmem:[%s5876_s1 + $0x78] sm:$0xff]   ;;  %v4463_v36 = vld [vmem:[%s5876_s1 + $0x140] sm:$0xff]  }
   0xa   :  { %3953 = vmatprep.subr.bf16.mxu1 %v4434_v9  ;;  %v4450_v25 = vld [vmem:[%s5876_s1 + $0xf0] sm:$0xff]   ;;  %v4454_v29 = vld [vmem:[%s5876_s1 + $0xf8] sm:$0xff]   ;;  %v4464_v37 = vld [vmem:[%s5876_s1 + $0x1c0] sm:$0xff]  }
   0xb   :  { %v4451_v26 = vld [vmem:[%s5876_s1 + $0x30] sm:$0xff]   ;;  %v4455_v30 = vld [vmem:[%s5876_s1 + $0x38] sm:$0xff]   ;;  %v4465_v38 = vld [vmem:[%s5876_s1 + $0x100] sm:$0xff]  }
   0xc   :  { %3926 = vmatpush3.bf16.msra.mxu0 %v4435_v10  ;;  %v4452_v27 = vld [vmem:[%s5876_s1 + $0xb0] sm:$0xff]   ;;  %v4456_v31 = vld [vmem:[%s5876_s1 + $0xb8] sm:$0xff]   ;;  %v4466_v39 = vld [vmem:[%s5876_s1 + $0x180] sm:$0xff]  }
   0xd   :  { %3954 = vmatpush3.bf16.msra.mxu1 %v4436_v11  ;;  %3927 = vmatprep.subr.bf16.mxu0 %v4437_v12  ;;  %v4457_v32 = vld [vmem:[%s5877_s0] ss:$144 sps:$4 sm:$0xff]   ;;  %v4459_v33 = vld [vmem:[%s5877_s0 + $0x4] ss:$144 sps:$4 sm:$0xff]   ;;  %v4460_v34 = vld [vmem:[%s5877_s0 + $0x8] ss:$144 sps:$4 sm:$0xff]  }
   0xe   :  { %3955 = vmatprep.subr.bf16.mxu1 %v4438_v13  ;;  %v4462_v35 = vld [vmem:[%s5877_s0 + $0xc] ss:$144 sps:$4 sm:$0xff]   ;;  %2718 = vmatprep.mubr.bf16.mxu0 %v4459_v33  ;;  %v4471_v44 = vld [vmem:[%s5876_s1 + $0x150] sm:$0xff]   ;;  %v4479_v52 = vld [vmem:[%s5876_s1 + $0x160] sm:$0xff]  }
   0xf   :  { %2766 = vmatprep.mubr.bf16.mxu1 %v4462_v35  ;;  %v4467_v40 = vld [vmem:[%s5876_s1 + $0x148] sm:$0xff]   ;;  %v4472_v45 = vld [vmem:[%s5876_s1 + $0x1d0] sm:$0xff]   ;;  %v4475_v48 = vld [vmem:[%s5876_s1 + $0x158] sm:$0xff]  }
  0x10   :  { %3928 = vmatpush3.bf16.msra.mxu0 %v4439_v14  ;;  %v4468_v41 = vld [vmem:[%s5876_s1 + $0x1c8] sm:$0xff]   ;;  %v4473_v46 = vld [vmem:[%s5876_s1 + $0x110] sm:$0xff]   ;;  %v4476_v49 = vld [vmem:[%s5876_s1 + $0x1d8] sm:$0xff]  }
  0x11   :  { %3956 = vmatpush3.bf16.msra.mxu1 %v4440_v15  ;;  %3929 = vmatprep.subr.bf16.mxu0 %v4441_v16  ;;  %v4469_v42 = vld [vmem:[%s5876_s1 + $0x108] sm:$0xff]   ;;  %v4474_v47 = vld [vmem:[%s5876_s1 + $0x190] sm:$0xff]   ;;  %v4477_v50 = vld [vmem:[%s5876_s1 + $0x118] sm:$0xff]  }
  0x12   :  { %3957 = vmatprep.subr.bf16.mxu1 %v4442_v17  ;;  %v4470_v43 = vld [vmem:[%s5876_s1 + $0x188] sm:$0xff]   ;;  %v4478_v51 = vld [vmem:[%s5876_s1 + $0x198] sm:$0xff]   ;;  %v4480_v53 = vld [vmem:[%s5876_s1 + $0x1e0] sm:$0xff]  }
  0x13   :  { %v4481_v54 = vld [vmem:[%s5876_s1 + $0x120] sm:$0xff]   ;;  %v4483_v56 = vld [vmem:[%s5876_s1 + $0x168] sm:$0xff]   ;;  %v4491_v2 = vld [vmem:[%s5876_s1 + $0x170] sm:$0xff]  }
  0x14   :  { %3930 = vmatpush3.bf16.msra.mxu0 %v4443_v18  ;;  %v4482_v55 = vld [vmem:[%s5876_s1 + $0x1a0] sm:$0xff]   ;;  %v4484_v57 = vld [vmem:[%s5876_s1 + $0x1e8] sm:$0xff]   ;;  %v4492_v3 = vld [vmem:[%s5876_s1 + $0x1f0] sm:$0xff]  }
  0x15   :  { %3958 = vmatpush3.bf16.msra.mxu1 %v4444_v19  ;;  %3931 = vmatprep.subr.bf16.mxu0 %v4445_v20  ;;  %v51_v58 = vld [vmem:[%s5877_s0 + $0x120] sm:$0xff]  ;;  %v4486_v60 = vld [vmem:[%s5876_s1 + $0x128] sm:$0xff]   ;;  %v4493_v4 = vld [vmem:[%s5876_s1 + $0x130] sm:$0xff]  }
  0x16   :  { %3959 = vmatprep.subr.bf16.mxu1 %v4446_v21  ;;  %v3598_v59 = vcombine.high %v51_v58, %v51_v58  ;;  %v3597_v61 = vcombine.low %v51_v58, %v51_v58  ;;  %v4487_v62 = vld [vmem:[%s5876_s1 + $0x1a8] sm:$0xff]   ;;  %v4494_v5 = vld [vmem:[%s5876_s1 + $0x1b0] sm:$0xff]   ;;  %v4495_v6 = vld [vmem:[%s5876_s1 + $0x178] sm:$0xff]  }
  0x17   :  { %v52_v63 = vld [vmem:[%s5877_s0 + $0x128] sm:$0xff]  ;;  %v4496_v7 = vld [vmem:[%s5876_s1 + $0x1f8] sm:$0xff]   ;;  %v4499_v10 = vld [vmem:[%s5877_s0 + $0x10] ss:$144 sps:$4 sm:$0xff]  }
  0x18   :  { %3932 = vmatpush3.bf16.msra.mxu0 %v4447_v22  ;;  %v3600_v0 = vcombine.high %v52_v63, %v52_v63  ;;  %v3599_v1 = vcombine.low %v52_v63, %v52_v63  ;;  %v4497_v8 = vld [vmem:[%s5876_s1 + $0x138] sm:$0xff]   ;;  %v4501_v11 = vld [vmem:[%s5877_s0 + $0x14] ss:$144 sps:$4 sm:$0xff]   ;;  %v4509_v18 = vld [vmem:[%s5876_s1 + $0x248] sm:$0xff]  }
  0x19   :  { %3960 = vmatpush3.bf16.msra.mxu1 %v4448_v23  ;;  %3933 = vmatprep.subr.bf16.mxu0 %v4449_v24  ;;  %v4498_v9 = vld [vmem:[%s5876_s1 + $0x1b8] sm:$0xff]   ;;  %v4505_v14 = vld [vmem:[%s5876_s1 + $0x240] sm:$0xff]   ;;  %v4510_v19 = vld [vmem:[%s5876_s1 + $0x2c8] sm:$0xff]  }
  0x1a   :  { %3961 = vmatprep.subr.bf16.mxu1 %v4450_v25  ;;  %v4502_v12 = vld [vmem:[%s5877_s0 + $0x18] ss:$144 sps:$4 sm:$0xff]   ;;  %v4504_v13 = vld [vmem:[%s5877_s0 + $0x1c] ss:$144 sps:$4 sm:$0xff]   ;;  %v4506_v15 = vld [vmem:[%s5876_s1 + $0x2c0] sm:$0xff]  }
  0x1b   :  { %v4507_v16 = vld [vmem:[%s5876_s1 + $0x200] sm:$0xff]   ;;  %v4511_v20 = vld [vmem:[%s5876_s1 + $0x208] sm:$0xff]   ;;  %v53_v22 = vld [vmem:[%s5877_s0 + $0x130] sm:$0xff] }
  0x1c   :  { %3934 = vmatpush3.bf16.msra.mxu0 %v4451_v26  ;;  %v4508_v17 = vld [vmem:[%s5876_s1 + $0x280] sm:$0xff]   ;;  %v4512_v21 = vld [vmem:[%s5876_s1 + $0x288] sm:$0xff]   ;;  %v3602_v23 = vcombine.high %v53_v22, %v53_v22  ;;  %v3601_v24 = vcombine.low %v53_v22, %v53_v22  ;;  %v4515_v25 = vld [vmem:[%s5876_s1 + $0x250] sm:$0xff]  }
  0x1d   :  { %3962 = vmatpush3.bf16.msra.mxu1 %v4452_v27  ;;  %3935 = vmatprep.subr.bf16.mxu0 %v4453_v28  ;;  %v4516_v26 = vld [vmem:[%s5876_s1 + $0x2d0] sm:$0xff]   ;;  %v54_v27 = vld [vmem:[%s5877_s0 + $0x138] sm:$0xff]  ;;  %v4549_v58 = vld [vmem:[%s5876_s1 + $0x300] sm:$0xff]  }
  0x1e   :  { %3963 = vmatprep.subr.bf16.mxu1 %v4454_v29  ;;  %v3604_v28 = vcombine.high %v54_v27, %v54_v27  ;;  %v4518_v29 = vld [vmem:[%s5876_s1 + $0x210] sm:$0xff]   ;;  %v4522_v33 = vld [vmem:[%s5876_s1 + $0x2d8] sm:$0xff]   ;;  %v4554_v63 = vld [vmem:[%s5876_s1 + $0x388] sm:$0xff]  }
  0x1f   :  { %v4524_v35 = vld [vmem:[%s5876_s1 + $0x298] sm:$0xff]   ;;  %v4575_v22 = vld [vmem:[%s5876_s1 + $0x370] sm:$0xff]  }
  0x20   :  { %3936 = vmatpush3.bf16.msra.mxu0 %v4455_v30  ;;  %v3603_v30 = vcombine.low %v54_v27, %v54_v27  ;;  %v4580_v27 = vld [vmem:[%s5876_s1 + $0x3f8] sm:$0xff]  }
  0x21   :  { %3964 = vmatpush3.bf16.msra.mxu1 %v4456_v31  ;;  %3977 = vmatprep.subr.bf16.mxu0 %v4463_v36  ;;  %v4519_v31 = vld [vmem:[%s5876_s1 + $0x290] sm:$0xff]   ;;  %v4525_v36 = vld [vmem:[%s5876_s1 + $0x260] sm:$0xff]  }
  0x22   :  { %4005 = vmatprep.subr.bf16.mxu1 %v4464_v37  ;;  %v4526_v37 = vld [vmem:[%s5876_s1 + $0x2e0] sm:$0xff]  }
  0x23   :  { %2719 = vmatmul.mubr.bf16.vlgmr.msra.gmra.mrb[0].mxu0 %v4457_v32  ;;  %v4521_v32 = vld [vmem:[%s5876_s1 + $0x258] sm:$0xff]  }
  0x24   :  { %2767 = vmatmul.mubr.bf16.vlgmr.msra.gmra.mrb[0].mxu1 %v4460_v34  ;;  %3978 = vmatpush3.bf16.msra.mxu0 %v4465_v38  ;;  %v4523_v34 = vld [vmem:[%s5876_s1 + $0x218] sm:$0xff]   ;;  %v4527_v38 = vld [vmem:[%s5876_s1 + $0x220] sm:$0xff]  }
  0x25   :  { %4006 = vmatpush3.bf16.msra.mxu1 %v4466_v39  ;;  %3979 = vmatprep.subr.bf16.mxu0 %v4467_v40  ;;  %v4528_v39 = vld [vmem:[%s5876_s1 + $0x2a0] sm:$0xff]   ;;  %v4529_v40 = vld [vmem:[%s5876_s1 + $0x268] sm:$0xff]  }
  0x26   :  { %4007 = vmatprep.subr.bf16.mxu1 %v4468_v41  ;;  %2726 = vmatprep.mubr.bf16.mxu0 %v3598_v59  ;;  %v4530_v41 = vld [vmem:[%s5876_s1 + $0x2e8] sm:$0xff]   ;;  %v4550_v59 = vld [vmem:[%s5876_s1 + $0x380] sm:$0xff]  }
  0x27   :  { %2774 = vmatprep.mubr.bf16.mxu1 %v3600_v0  ;;  %v55_v0 = vld [vmem:[%s5877_s0 + $0x140] sm:$0xff] }
  0x28   :  { %3980 = vmatpush3.bf16.msra.mxu0 %v4469_v42  ;;  %v4531_v42 = vld [vmem:[%s5876_s1 + $0x228] sm:$0xff]  }
  0x29   :  { %4008 = vmatpush3.bf16.msra.mxu1 %v4470_v43  ;;  %3981 = vmatprep.subr.bf16.mxu0 %v4471_v44  ;;  %v4532_v43 = vld [vmem:[%s5876_s1 + $0x2a8] sm:$0xff]   ;;  %v4533_v44 = vld [vmem:[%s5876_s1 + $0x270] sm:$0xff]  }
  0x2a   :  { %4009 = vmatprep.subr.bf16.mxu1 %v4472_v45  ;;  %v4534_v45 = vld [vmem:[%s5876_s1 + $0x2f0] sm:$0xff]  }
  0x2b   :  { %2727 = vmatmul.mubr.bf16.gmra.mrb[4].mxu0 %v3597_v61  ;;  %v4552_v61 = vld [vmem:[%s5876_s1 + $0x3c8] sm:$0xff]  }
  0x2c   :  { %3982 = vmatpush3.bf16.msra.mxu0 %v4473_v46  ;;  %2775 = vmatmul.mubr.bf16.gmra.mrb[4].mxu1 %v3599_v1  ;;  %v4535_v46 = vld [vmem:[%s5876_s1 + $0x230] sm:$0xff]   ;;  %v3606_v1 = vcombine.high %v55_v0, %v55_v0 }
  0x2d   :  { %4010 = vmatpush3.bf16.msra.mxu1 %v4474_v47  ;;  %3983 = vmatprep.subr.bf16.mxu0 %v4475_v48  ;;  %v4536_v47 = vld [vmem:[%s5876_s1 + $0x2b0] sm:$0xff]   ;;  %v4537_v48 = vld [vmem:[%s5876_s1 + $0x278] sm:$0xff]  }
  0x2e   :  { %4011 = vmatprep.subr.bf16.mxu1 %v4476_v49  ;;  %2814 = vmatprep.mubr.bf16.mxu0 %v4501_v11  ;;  %v4538_v49 = vld [vmem:[%s5876_s1 + $0x2f8] sm:$0xff]  }
  0x2f   :  { %2862 = vmatprep.mubr.bf16.mxu1 %v4504_v13  ;;  %v4564_v11 = vld [vmem:[%s5876_s1 + $0x3d8] sm:$0xff]  }
  0x30   :  { %3984 = vmatpush3.bf16.msra.mxu0 %v4477_v50  ;;  %v4539_v50 = vld [vmem:[%s5876_s1 + $0x238] sm:$0xff]  }
  0x31   :  { %4012 = vmatpush3.bf16.msra.mxu1 %v4478_v51  ;;  %3985 = vmatprep.subr.bf16.mxu0 %v4479_v52  ;;  %v4540_v51 = vld [vmem:[%s5876_s1 + $0x2b8] sm:$0xff]   ;;  %v4541_v52 = vld [vmem:[%s5877_s0 + $0x20] ss:$144 sps:$4 sm:$0xff]  }
  0x32   :  { %4013 = vmatprep.subr.bf16.mxu1 %v4480_v53  ;;  %v4543_v53 = vld [vmem:[%s5877_s0 + $0x24] ss:$144 sps:$4 sm:$0xff]   ;;  %v4566_v13 = vld [vmem:[%s5876_s1 + $0x398] sm:$0xff]  }
  0x34   :  { %3986 = vmatpush3.bf16.msra.mxu0 %v4481_v54  ;;  %v4544_v54 = vld [vmem:[%s5877_s0 + $0x28] ss:$144 sps:$4 sm:$0xff]  }
  0x35   :  { %4014 = vmatpush3.bf16.msra.mxu1 %v4482_v55  ;;  %3987 = vmatprep.subr.bf16.mxu0 %v4483_v56  ;;  %v4546_v55 = vld [vmem:[%s5877_s0 + $0x2c] ss:$144 sps:$4 sm:$0xff]   ;;  %v4547_v56 = vld [vmem:[%s5876_s1 + $0x340] sm:$0xff]  }
  0x36   :  { %4015 = vmatprep.subr.bf16.mxu1 %v4484_v57  ;;  %v4548_v57 = vld [vmem:[%s5876_s1 + $0x3c0] sm:$0xff]  }
  0x38   :  { %3988 = vmatpush3.bf16.msra.mxu0 %v4486_v60  ;;  %v4551_v60 = vld [vmem:[%s5876_s1 + $0x348] sm:$0xff]  }
  0x39   :  { %4016 = vmatpush3.bf16.msra.mxu1 %v4487_v62  ;;  %3989 = vmatprep.subr.bf16.mxu0 %v4491_v2  ;;  %v4553_v62 = vld [vmem:[%s5876_s1 + $0x308] sm:$0xff]   ;;  %v3605_v2 = vcombine.low %v55_v0, %v55_v0  ;;  %v4617_v0 = vld [vmem:[%s5876_s1 + $0x470] sm:$0xff]  }
  0x3a   :  { %4017 = vmatprep.subr.bf16.mxu1 %v4492_v3  ;;  %v4557_v3 = vld [vmem:[%s5876_s1 + $0x350] sm:$0xff]  }
  0x3c   :  { %3990 = vmatpush3.bf16.msra.mxu0 %v4493_v4  ;;  %v4558_v4 = vld [vmem:[%s5876_s1 + $0x3d0] sm:$0xff]  }
  0x3d   :  { %4018 = vmatpush3.bf16.msra.mxu1 %v4494_v5  ;;  %3991 = vmatprep.subr.bf16.mxu0 %v4495_v6  ;;  %v56_v5 = vld [vmem:[%s5877_s0 + $0x148] sm:$0xff] }
  0x3e   :  { %4019 = vmatprep.subr.bf16.mxu1 %v4496_v7  ;;  %v3608_v6 = vcombine.high %v56_v5, %v56_v5  ;;  %v4560_v7 = vld [vmem:[%s5876_s1 + $0x310] sm:$0xff]  }
  0x40   :  { %3992 = vmatpush3.bf16.msra.mxu0 %v4497_v8  ;;  %v3607_v8 = vcombine.low %v56_v5, %v56_v5  ;;  %v4622_v5 = vld [vmem:[%s5876_s1 + $0x4f8] sm:$0xff]  }
  0x41   :  { %4020 = vmatpush3.bf16.msra.mxu1 %v4498_v9  ;;  %4033 = vmatprep.subr.bf16.mxu0 %v4505_v14  ;;  %v4561_v9 = vld [vmem:[%s5876_s1 + $0x390] sm:$0xff]   ;;  %v4567_v14 = vld [vmem:[%s5876_s1 + $0x360] sm:$0xff]  }
  0x42   :  { %4061 = vmatprep.subr.bf16.mxu1 %v4506_v15  ;;  %v4568_v15 = vld [vmem:[%s5876_s1 + $0x3e0] sm:$0xff]  }
  0x43   :  { %2815 = vmatmul.mubr.bf16.vlgmr.msra.gmra.mrb[8].mxu0 %v4499_v10  ;;  %v4563_v10 = vld [vmem:[%s5876_s1 + $0x358] sm:$0xff]  }
  0x44   :  { %2863 = vmatmul.mubr.bf16.vlgmr.msra.gmra.mrb[8].mxu1 %v4502_v12  ;;  %4034 = vmatpush3.bf16.msra.mxu0 %v4507_v16  ;;  %v4565_v12 = vld [vmem:[%s5876_s1 + $0x318] sm:$0xff]   ;;  %v4569_v16 = vld [vmem:[%s5876_s1 + $0x320] sm:$0xff]  }
  0x45   :  { %4062 = vmatpush3.bf16.msra.mxu1 %v4508_v17  ;;  %4035 = vmatprep.subr.bf16.mxu0 %v4509_v18  ;;  %v4570_v17 = vld [vmem:[%s5876_s1 + $0x3a0] sm:$0xff]   ;;  %v4571_v18 = vld [vmem:[%s5876_s1 + $0x368] sm:$0xff]  }
  0x46   :  { %4063 = vmatprep.subr.bf16.mxu1 %v4510_v19  ;;  %2822 = vmatprep.mubr.bf16.mxu0 %v3602_v23  ;;  %v4572_v19 = vld [vmem:[%s5876_s1 + $0x3e8] sm:$0xff]   ;;  %v4576_v23 = vld [vmem:[%s5876_s1 + $0x3f0] sm:$0xff]  }
  0x47   :  { %2870 = vmatprep.mubr.bf16.mxu1 %v3604_v28  ;;  %v4581_v28 = vld [vmem:[%s5876_s1 + $0x338] sm:$0xff]  }
  0x48   :  { %4036 = vmatpush3.bf16.msra.mxu0 %v4511_v20  ;;  %v4573_v20 = vld [vmem:[%s5876_s1 + $0x328] sm:$0xff]  }
  0x49   :  { %4064 = vmatpush3.bf16.msra.mxu1 %v4512_v21  ;;  %4037 = vmatprep.subr.bf16.mxu0 %v4515_v25  ;;  %v4574_v21 = vld [vmem:[%s5876_s1 + $0x3a8] sm:$0xff]   ;;  %v4578_v25 = vld [vmem:[%s5876_s1 + $0x3b0] sm:$0xff]  }
  0x4a   :  { %4065 = vmatprep.subr.bf16.mxu1 %v4516_v26  ;;  %v4579_v26 = vld [vmem:[%s5876_s1 + $0x378] sm:$0xff]  }
  0x4b   :  { %2823 = vmatmul.mubr.bf16.gmra.mrb[12].mxu0 %v3601_v24  ;;  %v4577_v24 = vld [vmem:[%s5876_s1 + $0x330] sm:$0xff]  }
  0x4c   :  { %4038 = vmatpush3.bf16.msra.mxu0 %v4518_v29  ;;  %2871 = vmatmul.mubr.bf16.gmra.mrb[12].mxu1 %v3603_v30  ;;  %v4582_v29 = vld [vmem:[%s5876_s1 + $0x3b8] sm:$0xff]   ;;  %v4583_v30 = vld [vmem:[%s5877_s0 + $0x30] ss:$144 sps:$4 sm:$0xff]  }
  0x4d   :  { %4066 = vmatpush3.bf16.msra.mxu1 %v4519_v31  ;;  %4039 = vmatprep.subr.bf16.mxu0 %v4521_v32  ;;  %v4585_v31 = vld [vmem:[%s5877_s0 + $0x34] ss:$144 sps:$4 sm:$0xff]   ;;  %v4586_v32 = vld [vmem:[%s5877_s0 + $0x38] ss:$144 sps:$4 sm:$0xff]  }
  0x4e   :  { %4067 = vmatprep.subr.bf16.mxu1 %v4522_v33  ;;  %2910 = vmatprep.mubr.bf16.mxu0 %v4543_v53  ;;  %v4588_v33 = vld [vmem:[%s5877_s0 + $0x3c] ss:$144 sps:$4 sm:$0xff]  }
  0x4f   :  { %2958 = vmatprep.mubr.bf16.mxu1 %v4546_v55  ;;  %v4606_v53 = vld [vmem:[%s5876_s1 + $0x4d8] sm:$0xff]  }
  0x50   :  { %4040 = vmatpush3.bf16.msra.mxu0 %v4523_v34  ;;  %v4589_v34 = vld [vmem:[%s5876_s1 + $0x440] sm:$0xff]   ;;  %v4608_v55 = vld [vmem:[%s5876_s1 + $0x498] sm:$0xff]  }
  0x51   :  { %4068 = vmatpush3.bf16.msra.mxu1 %v4524_v35  ;;  %4041 = vmatprep.subr.bf16.mxu0 %v4525_v36  ;;  %v4590_v35 = vld [vmem:[%s5876_s1 + $0x4c0] sm:$0xff]  }
  0x52   :  { %4069 = vmatprep.subr.bf16.mxu1 %v4526_v37  ;;  %v4591_v36 = vld [vmem:[%s5876_s1 + $0x400] sm:$0xff]  }
  0x53   :  { %v4592_v37 = vld [vmem:[%s5876_s1 + $0x480] sm:$0xff]  }
  0x54   :  { %4042 = vmatpush3.bf16.msra.mxu0 %v4527_v38  ;;  %v4593_v38 = vld [vmem:[%s5876_s1 + $0x448] sm:$0xff]  }
  0x55   :  { %4070 = vmatpush3.bf16.msra.mxu1 %v4528_v39  ;;  %4043 = vmatprep.subr.bf16.mxu0 %v4529_v40  ;;  %v4594_v39 = vld [vmem:[%s5876_s1 + $0x4c8] sm:$0xff]  }
  0x56   :  { %4071 = vmatprep.subr.bf16.mxu1 %v4530_v41  ;;  %v4595_v40 = vld [vmem:[%s5876_s1 + $0x408] sm:$0xff]  }
  0x57   :  { %v4596_v41 = vld [vmem:[%s5876_s1 + $0x488] sm:$0xff]  }
  0x58   :  { %4044 = vmatpush3.bf16.msra.mxu0 %v4531_v42  ;;  %v57_v42 = vld [vmem:[%s5877_s0 + $0x150] sm:$0xff] }
  0x59   :  { %4072 = vmatpush3.bf16.msra.mxu1 %v4532_v43  ;;  %4045 = vmatprep.subr.bf16.mxu0 %v4533_v44  ;;  %v3610_v43 = vcombine.high %v57_v42, %v57_v42  ;;  %v3609_v44 = vcombine.low %v57_v42, %v57_v42  ;;  %v4659_v42 = vld [vmem:[%s5876_s1 + $0x570] sm:$0xff]  }
  0x5a   :  { %4073 = vmatprep.subr.bf16.mxu1 %v4534_v45  ;;  %v4599_v45 = vld [vmem:[%s5876_s1 + $0x450] sm:$0xff]  }
  0x5c   :  { %4046 = vmatpush3.bf16.msra.mxu0 %v4535_v46  ;;  %v4600_v46 = vld [vmem:[%s5876_s1 + $0x4d0] sm:$0xff]  }
  0x5d   :  { %4074 = vmatpush3.bf16.msra.mxu1 %v4536_v47  ;;  %4047 = vmatprep.subr.bf16.mxu0 %v4537_v48  ;;  %v58_v47 = vld [vmem:[%s5877_s0 + $0x158] sm:$0xff] }
  0x5e   :  { %4075 = vmatprep.subr.bf16.mxu1 %v4538_v49  ;;  %v3612_v48 = vcombine.high %v58_v47, %v58_v47  ;;  %v4602_v49 = vld [vmem:[%s5876_s1 + $0x410] sm:$0xff]  }
  0x60   :  { %4048 = vmatpush3.bf16.msra.mxu0 %v4539_v50  ;;  %v3611_v50 = vcombine.low %v58_v47, %v58_v47  ;;  %v4664_v47 = vld [vmem:[%s5876_s1 + $0x5f8] sm:$0xff]  }
  0x61   :  { %4076 = vmatpush3.bf16.msra.mxu1 %v4540_v51  ;;  %4089 = vmatprep.subr.bf16.mxu0 %v4547_v56  ;;  %v4603_v51 = vld [vmem:[%s5876_s1 + $0x490] sm:$0xff]   ;;  %v4609_v56 = vld [vmem:[%s5876_s1 + $0x460] sm:$0xff]  }
  0x62   :  { %4117 = vmatprep.subr.bf16.mxu1 %v4548_v57  ;;  %v4610_v57 = vld [vmem:[%s5876_s1 + $0x4e0] sm:$0xff]  }
  0x63   :  { %2911 = vmatmul.mubr.bf16.vlgmr.msra.gmra.mrb[16].mxu0 %v4541_v52  ;;  %v4605_v52 = vld [vmem:[%s5876_s1 + $0x458] sm:$0xff]  }
  0x64   :  { %2959 = vmatmul.mubr.bf16.vlgmr.msra.gmra.mrb[16].mxu1 %v4544_v54  ;;  %4090 = vmatpush3.bf16.msra.mxu0 %v4549_v58  ;;  %v4607_v54 = vld [vmem:[%s5876_s1 + $0x418] sm:$0xff]   ;;  %v4611_v58 = vld [vmem:[%s5876_s1 + $0x420] sm:$0xff]  }
  0x65   :  { %4118 = vmatpush3.bf16.msra.mxu1 %v4550_v59  ;;  %4091 = vmatprep.subr.bf16.mxu0 %v4551_v60  ;;  %v4612_v59 = vld [vmem:[%s5876_s1 + $0x4a0] sm:$0xff]   ;;  %v4613_v60 = vld [vmem:[%s5876_s1 + $0x468] sm:$0xff]  }
  0x66   :  { %4119 = vmatprep.subr.bf16.mxu1 %v4552_v61  ;;  %2918 = vmatprep.mubr.bf16.mxu0 %v3606_v1  ;;  %v4614_v61 = vld [vmem:[%s5876_s1 + $0x4e8] sm:$0xff]   ;;  %v4618_v1 = vld [vmem:[%s5876_s1 + $0x4f0] sm:$0xff]  }
  0x67   :  { %2966 = vmatprep.mubr.bf16.mxu1 %v3608_v6  ;;  %v4623_v6 = vld [vmem:[%s5876_s1 + $0x438] sm:$0xff]  }
  0x68   :  { %4092 = vmatpush3.bf16.msra.mxu0 %v4553_v62  ;;  %v4615_v62 = vld [vmem:[%s5876_s1 + $0x428] sm:$0xff]  }
  0x69   :  { %4120 = vmatpush3.bf16.msra.mxu1 %v4554_v63  ;;  %4093 = vmatprep.subr.bf16.mxu0 %v4557_v3  ;;  %v4616_v63 = vld [vmem:[%s5876_s1 + $0x4a8] sm:$0xff]   ;;  %v4620_v3 = vld [vmem:[%s5876_s1 + $0x4b0] sm:$0xff]  }
  0x6a   :  { %4121 = vmatprep.subr.bf16.mxu1 %v4558_v4  ;;  %v4621_v4 = vld [vmem:[%s5876_s1 + $0x478] sm:$0xff]  }
  0x6b   :  { %2919 = vmatmul.mubr.bf16.gmra.mrb[20].mxu0 %v3605_v2  ;;  %v4619_v2 = vld [vmem:[%s5876_s1 + $0x430] sm:$0xff]  }
  0x6c   :  { %4094 = vmatpush3.bf16.msra.mxu0 %v4560_v7  ;;  %2967 = vmatmul.mubr.bf16.gmra.mrb[20].mxu1 %v3607_v8  ;;  %v4624_v7 = vld [vmem:[%s5876_s1 + $0x4b8] sm:$0xff]   ;;  %v4625_v8 = vld [vmem:[%s5877_s0 + $0x40] ss:$144 sps:$4 sm:$0xff]  }
  0x6d   :  { %4122 = vmatpush3.bf16.msra.mxu1 %v4561_v9  ;;  %4095 = vmatprep.subr.bf16.mxu0 %v4563_v10  ;;  %v4627_v9 = vld [vmem:[%s5877_s0 + $0x44] ss:$144 sps:$4 sm:$0xff]   ;;  %v4628_v10 = vld [vmem:[%s5877_s0 + $0x48] ss:$144 sps:$4 sm:$0xff]  }
  0x6e   :  { %4123 = vmatprep.subr.bf16.mxu1 %v4564_v11  ;;  %3006 = vmatprep.mubr.bf16.mxu0 %v4585_v31  ;;  %v4630_v11 = vld [vmem:[%s5877_s0 + $0x4c] ss:$144 sps:$4 sm:$0xff]  }
  0x6f   :  { %3054 = vmatprep.mubr.bf16.mxu1 %v4588_v33  ;;  %v4648_v31 = vld [vmem:[%s5876_s1 + $0x5d8] sm:$0xff]  }
  0x70   :  { %4096 = vmatpush3.bf16.msra.mxu0 %v4565_v12  ;;  %v4631_v12 = vld [vmem:[%s5876_s1 + $0x540] sm:$0xff]   ;;  %v4650_v33 = vld [vmem:[%s5876_s1 + $0x598] sm:$0xff]  }
  0x71   :  { %4124 = vmatpush3.bf16.msra.mxu1 %v4566_v13  ;;  %4097 = vmatprep.subr.bf16.mxu0 %v4567_v14  ;;  %v4632_v13 = vld [vmem:[%s5876_s1 + $0x5c0] sm:$0xff]  }
  0x72   :  { %4125 = vmatprep.subr.bf16.mxu1 %v4568_v15  ;;  %v4633_v14 = vld [vmem:[%s5876_s1 + $0x500] sm:$0xff]  }
  0x73   :  { %v4634_v15 = vld [vmem:[%s5876_s1 + $0x580] sm:$0xff]  }
  0x74   :  { %4098 = vmatpush3.bf16.msra.mxu0 %v4569_v16  ;;  %v4635_v16 = vld [vmem:[%s5876_s1 + $0x548] sm:$0xff]  }
  0x75   :  { %4126 = vmatpush3.bf16.msra.mxu1 %v4570_v17  ;;  %4099 = vmatprep.subr.bf16.mxu0 %v4571_v18  ;;  %v4636_v17 = vld [vmem:[%s5876_s1 + $0x5c8] sm:$0xff]  }
  0x76   :  { %4127 = vmatprep.subr.bf16.mxu1 %v4572_v19  ;;  %v4637_v18 = vld [vmem:[%s5876_s1 + $0x508] sm:$0xff]  }
  0x77   :  { %v4638_v19 = vld [vmem:[%s5876_s1 + $0x588] sm:$0xff]  }
  0x78   :  { %4100 = vmatpush3.bf16.msra.mxu0 %v4573_v20  ;;  %v59_v20 = vld [vmem:[%s5877_s0 + $0x160] sm:$0xff] }
  0x79   :  { %4128 = vmatpush3.bf16.msra.mxu1 %v4574_v21  ;;  %4101 = vmatprep.subr.bf16.mxu0 %v4575_v22  ;;  %v3614_v21 = vcombine.high %v59_v20, %v59_v20  ;;  %v3613_v22 = vcombine.low %v59_v20, %v59_v20  ;;  %v4701_v20 = vld [vmem:[%s5876_s1 + $0x670] sm:$0xff]  }
  0x7a   :  { %4129 = vmatprep.subr.bf16.mxu1 %v4576_v23  ;;  %v4641_v23 = vld [vmem:[%s5876_s1 + $0x550] sm:$0xff]  }
  0x7c   :  { %4102 = vmatpush3.bf16.msra.mxu0 %v4577_v24  ;;  %v4642_v24 = vld [vmem:[%s5876_s1 + $0x5d0] sm:$0xff]  }
  0x7d   :  { %4130 = vmatpush3.bf16.msra.mxu1 %v4578_v25  ;;  %4103 = vmatprep.subr.bf16.mxu0 %v4579_v26  ;;  %v60_v25 = vld [vmem:[%s5877_s0 + $0x168] sm:$0xff] }
  0x7e   :  { %4131 = vmatprep.subr.bf16.mxu1 %v4580_v27  ;;  %v3616_v26 = vcombine.high %v60_v25, %v60_v25  ;;  %v4644_v27 = vld [vmem:[%s5876_s1 + $0x510] sm:$0xff]  }
  0x80   :  { %4104 = vmatpush3.bf16.msra.mxu0 %v4581_v28  ;;  %v3615_v28 = vcombine.low %v60_v25, %v60_v25  ;;  %v4706_v25 = vld [vmem:[%s5876_s1 + $0x6f8] sm:$0xff]  }
  0x81   :  { %4132 = vmatpush3.bf16.msra.mxu1 %v4582_v29  ;;  %4145 = vmatprep.subr.bf16.mxu0 %v4589_v34  ;;  %v4645_v29 = vld [vmem:[%s5876_s1 + $0x590] sm:$0xff]   ;;  %v4651_v34 = vld [vmem:[%s5876_s1 + $0x560] sm:$0xff]  }
  0x82   :  { %4173 = vmatprep.subr.bf16.mxu1 %v4590_v35  ;;  %v4652_v35 = vld [vmem:[%s5876_s1 + $0x5e0] sm:$0xff]  }
  0x83   :  { %3007 = vmatmul.mubr.bf16.vlgmr.msra.gmra.mrb[24].mxu0 %v4583_v30  ;;  %v4647_v30 = vld [vmem:[%s5876_s1 + $0x558] sm:$0xff]  }
  0x84   :  { %3055 = vmatmul.mubr.bf16.vlgmr.msra.gmra.mrb[24].mxu1 %v4586_v32  ;;  %4146 = vmatpush3.bf16.msra.mxu0 %v4591_v36  ;;  %v4649_v32 = vld [vmem:[%s5876_s1 + $0x518] sm:$0xff]   ;;  %v4653_v36 = vld [vmem:[%s5876_s1 + $0x520] sm:$0xff]  }
  0x85   :  { %4174 = vmatpush3.bf16.msra.mxu1 %v4592_v37  ;;  %4147 = vmatprep.subr.bf16.mxu0 %v4593_v38  ;;  %v4654_v37 = vld [vmem:[%s5876_s1 + $0x5a0] sm:$0xff]   ;;  %v4655_v38 = vld [vmem:[%s5876_s1 + $0x568] sm:$0xff]  }
  0x86   :  { %4175 = vmatprep.subr.bf16.mxu1 %v4594_v39  ;;  %3014 = vmatprep.mubr.bf16.mxu0 %v3610_v43  ;;  %v4656_v39 = vld [vmem:[%s5876_s1 + $0x5e8] sm:$0xff]   ;;  %v4660_v43 = vld [vmem:[%s5876_s1 + $0x5f0] sm:$0xff]  }
  0x87   :  { %3062 = vmatprep.mubr.bf16.mxu1 %v3612_v48  ;;  %v4665_v48 = vld [vmem:[%s5876_s1 + $0x538] sm:$0xff]  }
  0x88   :  { %4148 = vmatpush3.bf16.msra.mxu0 %v4595_v40  ;;  %v4657_v40 = vld [vmem:[%s5876_s1 + $0x528] sm:$0xff]  }
  0x89   :  { %4176 = vmatpush3.bf16.msra.mxu1 %v4596_v41  ;;  %4149 = vmatprep.subr.bf16.mxu0 %v4599_v45  ;;  %v4658_v41 = vld [vmem:[%s5876_s1 + $0x5a8] sm:$0xff]   ;;  %v4662_v45 = vld [vmem:[%s5876_s1 + $0x5b0] sm:$0xff]  }
  0x8a   :  { %4177 = vmatprep.subr.bf16.mxu1 %v4600_v46  ;;  %v4663_v46 = vld [vmem:[%s5876_s1 + $0x578] sm:$0xff]  }
  0x8b   :  { %3015 = vmatmul.mubr.bf16.gmra.mrb[28].mxu0 %v3609_v44  ;;  %v4661_v44 = vld [vmem:[%s5876_s1 + $0x530] sm:$0xff]  }
  0x8c   :  { %4150 = vmatpush3.bf16.msra.mxu0 %v4602_v49  ;;  %3063 = vmatmul.mubr.bf16.gmra.mrb[28].mxu1 %v3611_v50  ;;  %v4666_v49 = vld [vmem:[%s5876_s1 + $0x5b8] sm:$0xff]   ;;  %v4667_v50 = vld [vmem:[%s5877_s0 + $0x50] ss:$144 sps:$4 sm:$0xff]  }
  0x8d   :  { %4178 = vmatpush3.bf16.msra.mxu1 %v4603_v51  ;;  %4151 = vmatprep.subr.bf16.mxu0 %v4605_v52  ;;  %v4669_v51 = vld [vmem:[%s5877_s0 + $0x54] ss:$144 sps:$4 sm:$0xff]   ;;  %v4670_v52 = vld [vmem:[%s5877_s0 + $0x58] ss:$144 sps:$4 sm:$0xff]  }
  0x8e   :  { %4179 = vmatprep.subr.bf16.mxu1 %v4606_v53  ;;  %3102 = vmatprep.mubr.bf16.mxu0 %v4627_v9  ;;  %v4672_v53 = vld [vmem:[%s5877_s0 + $0x5c] ss:$144 sps:$4 sm:$0xff]  }
  0x8f   :  { %3150 = vmatprep.mubr.bf16.mxu1 %v4630_v11  ;;  %v4690_v9 = vld [vmem:[%s5876_s1 + $0x6d8] sm:$0xff]  }
  0x90   :  { %4152 = vmatpush3.bf16.msra.mxu0 %v4607_v54  ;;  %v4673_v54 = vld [vmem:[%s5876_s1 + $0x640] sm:$0xff]   ;;  %v4692_v11 = vld [vmem:[%s5876_s1 + $0x698] sm:$0xff]  }
  0x91   :  { %4180 = vmatpush3.bf16.msra.mxu1 %v4608_v55  ;;  %4153 = vmatprep.subr.bf16.mxu0 %v4609_v56  ;;  %v4674_v55 = vld [vmem:[%s5876_s1 + $0x6c0] sm:$0xff]  }
  0x92   :  { %4181 = vmatprep.subr.bf16.mxu1 %v4610_v57  ;;  %v4675_v56 = vld [vmem:[%s5876_s1 + $0x600] sm:$0xff]  }
  0x93   :  { %v4676_v57 = vld [vmem:[%s5876_s1 + $0x680] sm:$0xff]  }
  0x94   :  { %4154 = vmatpush3.bf16.msra.mxu0 %v4611_v58  ;;  %v4677_v58 = vld [vmem:[%s5876_s1 + $0x648] sm:$0xff]  }
  0x95   :  { %4182 = vmatpush3.bf16.msra.mxu1 %v4612_v59  ;;  %4155 = vmatprep.subr.bf16.mxu0 %v4613_v60  ;;  %v4678_v59 = vld [vmem:[%s5876_s1 + $0x6c8] sm:$0xff]  }
  0x96   :  { %4183 = vmatprep.subr.bf16.mxu1 %v4614_v61  ;;  %v4679_v60 = vld [vmem:[%s5876_s1 + $0x608] sm:$0xff]  }
  0x97   :  { %v4680_v61 = vld [vmem:[%s5876_s1 + $0x688] sm:$0xff]  }
  0x98   :  { %4156 = vmatpush3.bf16.msra.mxu0 %v4615_v62  ;;  %v61_v62 = vld [vmem:[%s5877_s0 + $0x170] sm:$0xff] }
  0x99   :  { %4184 = vmatpush3.bf16.msra.mxu1 %v4616_v63  ;;  %4157 = vmatprep.subr.bf16.mxu0 %v4617_v0  ;;  %v3618_v63 = vcombine.high %v61_v62, %v61_v62  ;;  %v3617_v0 = vcombine.low %v61_v62, %v61_v62  ;;  %v4731_v62 = vld [vmem:[%s5876_s1 + $0x758] sm:$0xff]  }
  0x9a   :  { %4185 = vmatprep.subr.bf16.mxu1 %v4618_v1  ;;  %v4683_v1 = vld [vmem:[%s5876_s1 + $0x650] sm:$0xff]  }
  0x9c   :  { %4158 = vmatpush3.bf16.msra.mxu0 %v4619_v2  ;;  %v4684_v2 = vld [vmem:[%s5876_s1 + $0x6d0] sm:$0xff]  }
  0x9d   :  { %4186 = vmatpush3.bf16.msra.mxu1 %v4620_v3  ;;  %4159 = vmatprep.subr.bf16.mxu0 %v4621_v4  ;;  %v62_v3 = vld [vmem:[%s5877_s0 + $0x178] sm:$0xff] }
  0x9e   :  { %4187 = vmatprep.subr.bf16.mxu1 %v4622_v5  ;;  %v3620_v4 = vcombine.high %v62_v3, %v62_v3  ;;  %v4686_v5 = vld [vmem:[%s5876_s1 + $0x610] sm:$0xff]  }
  0xa0   :  { %4160 = vmatpush3.bf16.msra.mxu0 %v4623_v6  ;;  %v3619_v6 = vcombine.low %v62_v3, %v62_v3  ;;  %v4736_v3 = vld [vmem:[%s5876_s1 + $0x7e0] sm:$0xff]  }
  0xa1   :  { %4188 = vmatpush3.bf16.msra.mxu1 %v4624_v7  ;;  %4201 = vmatprep.subr.bf16.mxu0 %v4631_v12  ;;  %v4687_v7 = vld [vmem:[%s5876_s1 + $0x690] sm:$0xff]   ;;  %v4693_v12 = vld [vmem:[%s5876_s1 + $0x660] sm:$0xff]  }
  0xa2   :  { %4229 = vmatprep.subr.bf16.mxu1 %v4632_v13  ;;  %v4694_v13 = vld [vmem:[%s5876_s1 + $0x6e0] sm:$0xff]  }
  0xa3   :  { %3103 = vmatmul.mubr.bf16.vlgmr.msra.gmra.mrb[32].mxu0 %v4625_v8  ;;  %v4689_v8 = vld [vmem:[%s5876_s1 + $0x658] sm:$0xff]  }
  0xa4   :  { %3151 = vmatmul.mubr.bf16.vlgmr.msra.gmra.mrb[32].mxu1 %v4628_v10  ;;  %4202 = vmatpush3.bf16.msra.mxu0 %v4633_v14  ;;  %v4691_v10 = vld [vmem:[%s5876_s1 + $0x618] sm:$0xff]   ;;  %v4695_v14 = vld [vmem:[%s5876_s1 + $0x620] sm:$0xff]  }
  0xa5   :  { %4230 = vmatpush3.bf16.msra.mxu1 %v4634_v15  ;;  %4203 = vmatprep.subr.bf16.mxu0 %v4635_v16  ;;  %v4696_v15 = vld [vmem:[%s5876_s1 + $0x6a0] sm:$0xff]   ;;  %v4697_v16 = vld [vmem:[%s5876_s1 + $0x668] sm:$0xff]  }
  0xa6   :  { %4231 = vmatprep.subr.bf16.mxu1 %v4636_v17  ;;  %3110 = vmatprep.mubr.bf16.mxu0 %v3614_v21  ;;  %v4698_v17 = vld [vmem:[%s5876_s1 + $0x6e8] sm:$0xff]   ;;  %v4702_v21 = vld [vmem:[%s5876_s1 + $0x6f0] sm:$0xff]  }
  0xa7   :  { %3158 = vmatprep.mubr.bf16.mxu1 %v3616_v26  ;;  %v4707_v26 = vld [vmem:[%s5876_s1 + $0x638] sm:$0xff]  }
  0xa8   :  { %4204 = vmatpush3.bf16.msra.mxu0 %v4637_v18  ;;  %v4699_v18 = vld [vmem:[%s5876_s1 + $0x628] sm:$0xff]  }
  0xa9   :  { %4232 = vmatpush3.bf16.msra.mxu1 %v4638_v19  ;;  %4205 = vmatprep.subr.bf16.mxu0 %v4641_v23  ;;  %v4700_v19 = vld [vmem:[%s5876_s1 + $0x6a8] sm:$0xff]   ;;  %v4704_v23 = vld [vmem:[%s5876_s1 + $0x6b0] sm:$0xff]  }
  0xaa   :  { %4233 = vmatprep.subr.bf16.mxu1 %v4642_v24  ;;  %v4705_v24 = vld [vmem:[%s5876_s1 + $0x678] sm:$0xff]  }
  0xab   :  { %3111 = vmatmul.mubr.bf16.gmra.mrb[36].mxu0 %v3613_v22  ;;  %v4703_v22 = vld [vmem:[%s5876_s1 + $0x630] sm:$0xff]  }
  0xac   :  { %4206 = vmatpush3.bf16.msra.mxu0 %v4644_v27  ;;  %3159 = vmatmul.mubr.bf16.gmra.mrb[36].mxu1 %v3615_v28  ;;  %v4708_v27 = vld [vmem:[%s5876_s1 + $0x6b8] sm:$0xff]   ;;  %v4709_v28 = vld [vmem:[%s5877_s0 + $0x60] ss:$144 sps:$4 sm:$0xff]  }
  0xad   :  { %4234 = vmatpush3.bf16.msra.mxu1 %v4645_v29  ;;  %4207 = vmatprep.subr.bf16.mxu0 %v4647_v30  ;;  %v4711_v29 = vld [vmem:[%s5877_s0 + $0x64] ss:$144 sps:$4 sm:$0xff]   ;;  %v4712_v30 = vld [vmem:[%s5877_s0 + $0x68] ss:$144 sps:$4 sm:$0xff]  }
  0xae   :  { %4235 = vmatprep.subr.bf16.mxu1 %v4648_v31  ;;  %3198 = vmatprep.mubr.bf16.mxu0 %v4669_v51  ;;  %v4714_v31 = vld [vmem:[%s5877_s0 + $0x6c] ss:$144 sps:$4 sm:$0xff]  }
  0xaf   :  { %3246 = vmatprep.mubr.bf16.mxu1 %v4672_v53 }
  0xb0   :  { %4208 = vmatpush3.bf16.msra.mxu0 %v4649_v32  ;;  %v4715_v32 = vld [vmem:[%s5876_s1 + $0x740] sm:$0xff]  }
  0xb1   :  { %4236 = vmatpush3.bf16.msra.mxu1 %v4650_v33  ;;  %4209 = vmatprep.subr.bf16.mxu0 %v4651_v34  ;;  %v4716_v34 = vld [vmem:[%s5876_s1 + $0x7c0] sm:$0xff]  }
  0xb2   :  { %4237 = vmatprep.subr.bf16.mxu1 %v4652_v35 }
  0xb4   :  { %4210 = vmatpush3.bf16.msra.mxu0 %v4653_v36  ;;  %v4717_v36 = vld [vmem:[%s5876_s1 + $0x700] sm:$0xff]  }
  0xb5   :  { %4238 = vmatpush3.bf16.msra.mxu1 %v4654_v37  ;;  %4211 = vmatprep.subr.bf16.mxu0 %v4655_v38  ;;  %v4718_v38 = vld [vmem:[%s5876_s1 + $0x780] sm:$0xff]  }
  0xb6   :  { %4239 = vmatprep.subr.bf16.mxu1 %v4656_v39 }
  0xb8   :  { %4212 = vmatpush3.bf16.msra.mxu0 %v4657_v40 }
  0xb9   :  { %4240 = vmatpush3.bf16.msra.mxu1 %v4658_v41  ;;  %4213 = vmatprep.subr.bf16.mxu0 %v4659_v42  ;;  %v4719_v41 = vld [vmem:[%s5876_s1 + $0x748] sm:$0xff]  }
  0xba   :  { %4241 = vmatprep.subr.bf16.mxu1 %v4660_v43 }
  0xbc   :  { %4214 = vmatpush3.bf16.msra.mxu0 %v4661_v44  ;;  %v4720_v44 = vld [vmem:[%s5876_s1 + $0x7c8] sm:$0xff]  }
  0xbd   :  { %4242 = vmatpush3.bf16.msra.mxu1 %v4662_v45  ;;  %4215 = vmatprep.subr.bf16.mxu0 %v4663_v46  ;;  %v4721_v46 = vld [vmem:[%s5876_s1 + $0x708] sm:$0xff]  }
  0xbe   :  { %4243 = vmatprep.subr.bf16.mxu1 %v4664_v47 }
  0xc0   :  { %4216 = vmatpush3.bf16.msra.mxu0 %v4665_v48  ;;  %v4722_v48 = vld [vmem:[%s5876_s1 + $0x788] sm:$0xff]  }
  0xc1   :  { %4244 = vmatpush3.bf16.msra.mxu1 %v4666_v49  ;;  %4257 = vmatprep.subr.bf16.mxu0 %v4673_v54  ;;  %v63_v49 = vld [vmem:[%s5877_s0 + $0x180] sm:$0xff]  ;;  %v4725_v54 = vld [vmem:[%s5876_s1 + $0x750] sm:$0xff]  }
  0xc2   :  { %4285 = vmatprep.subr.bf16.mxu1 %v4674_v55  ;;  %v3621_v53 = vcombine.low %v63_v49, %v63_v49 }
  0xc3   :  { %3199 = vmatmul.mubr.bf16.vlgmr.msra.gmra.mrb[40].mxu0 %v4667_v50 }
  0xc4   :  { %3247 = vmatmul.mubr.bf16.vlgmr.msra.gmra.mrb[40].mxu1 %v4670_v52  ;;  %4258 = vmatpush3.bf16.msra.mxu0 %v4675_v56  ;;  %v3622_v52 = vcombine.high %v63_v49, %v63_v49  ;;  %v4726_v56 = vld [vmem:[%s5876_s1 + $0x7d0] sm:$0xff]  }
  0xc5   :  { %4286 = vmatpush3.bf16.msra.mxu1 %v4676_v57  ;;  %4259 = vmatprep.subr.bf16.mxu0 %v4677_v58  ;;  %v64_v57 = vld [vmem:[%s5877_s0 + $0x188] sm:$0xff] }
  0xc6   :  { %4287 = vmatprep.subr.bf16.mxu1 %v4678_v59  ;;  %3206 = vmatprep.mubr.bf16.mxu0 %v3618_v63  ;;  %v3624_v58 = vcombine.high %v64_v57, %v64_v57  ;;  %v4728_v59 = vld [vmem:[%s5876_s1 + $0x710] sm:$0xff]   ;;  %v4732_v63 = vld [vmem:[%s5876_s1 + $0x7d8] sm:$0xff]  }
  0xc7   :  { %3254 = vmatprep.mubr.bf16.mxu1 %v3620_v4  ;;  %v4737_v4 = vld [vmem:[%s5876_s1 + $0x720] sm:$0xff]  }
  0xc8   :  { %4260 = vmatpush3.bf16.msra.mxu0 %v4679_v60  ;;  %v3623_v60 = vcombine.low %v64_v57, %v64_v57  ;;  %v65_v57 = vld [vmem:[%s5877_s0 + $0x190] sm:$0xff] }
  0xc9   :  { %4288 = vmatpush3.bf16.msra.mxu1 %v4680_v61  ;;  %4261 = vmatprep.subr.bf16.mxu0 %v4683_v1  ;;  %v4729_v61 = vld [vmem:[%s5876_s1 + $0x790] sm:$0xff]   ;;  %v4734_v1 = vld [vmem:[%s5876_s1 + $0x798] sm:$0xff]  }
  0xca   :  { %4289 = vmatprep.subr.bf16.mxu1 %v4684_v2  ;;  %v4735_v2 = vld [vmem:[%s5876_s1 + $0x760] sm:$0xff]  }
  0xcb   :  { %3207 = vmatmul.mubr.bf16.gmra.mrb[44].mxu0 %v3617_v0  ;;  %v4733_v0 = vld [vmem:[%s5876_s1 + $0x718] sm:$0xff]  }
  0xcc   :  { %4262 = vmatpush3.bf16.msra.mxu0 %v4686_v5  ;;  %3255 = vmatmul.mubr.bf16.gmra.mrb[44].mxu1 %v3619_v6  ;;  %v4738_v5 = vld [vmem:[%s5876_s1 + $0x7a0] sm:$0xff]  }
  0xcd   :  { %4290 = vmatpush3.bf16.msra.mxu1 %v4687_v7  ;;  %4263 = vmatprep.subr.bf16.mxu0 %v4689_v8  ;;  %v3560_v6 = vld [vmem:[%s5878_s2] ss:$0 sm:$0xff]  ;;  %v4739_v8 = vld [vmem:[%s5876_s1 + $0x768] sm:$0xff]  }
  0xce   :  { %4291 = vmatprep.subr.bf16.mxu1 %v4690_v9  ;;  %3294 = vmatprep.mubr.bf16.mxu0 %v4711_v29 }
  0xcf   :  { %3342 = vmatprep.mubr.bf16.mxu1 %v4714_v31  ;;  %v4749_v31 = vld [vmem:[%s5876_s1 + $0x738] sm:$0xff]  }
  0xd0   :  { %4264 = vmatpush3.bf16.msra.mxu0 %v4691_v10  ;;  %v4740_v10 = vld [vmem:[%s5876_s1 + $0x7e8] sm:$0xff]  }
  0xd1   :  { %4292 = vmatpush3.bf16.msra.mxu1 %v4692_v11  ;;  %4265 = vmatprep.subr.bf16.mxu0 %v4693_v12  ;;  %v4741_v12 = vld [vmem:[%s5876_s1 + $0x728] sm:$0xff]  }
  0xd2   :  { %4293 = vmatprep.subr.bf16.mxu1 %v4694_v13 }
  0xd4   :  { %4266 = vmatpush3.bf16.msra.mxu0 %v4695_v14  ;;  %v4742_v14 = vld [vmem:[%s5876_s1 + $0x7a8] sm:$0xff]  }
  0xd5   :  { %4294 = vmatpush3.bf16.msra.mxu1 %v4696_v15  ;;  %4267 = vmatprep.subr.bf16.mxu0 %v4697_v16  ;;  %v4743_v16 = vld [vmem:[%s5876_s1 + $0x770] sm:$0xff]  }
  0xd6   :  { %4295 = vmatprep.subr.bf16.mxu1 %v4698_v17 }
  0xd8   :  { %4268 = vmatpush3.bf16.msra.mxu0 %v4699_v18  ;;  %v4744_v18 = vld [vmem:[%s5876_s1 + $0x7f0] sm:$0xff]  }
  0xd9   :  { %4296 = vmatpush3.bf16.msra.mxu1 %v4700_v19  ;;  %4269 = vmatprep.subr.bf16.mxu0 %v4701_v20 }
  0xda   :  { %4297 = vmatprep.subr.bf16.mxu1 %v4702_v21  ;;  %v4745_v21 = vld [vmem:[%s5876_s1 + $0x730] sm:$0xff]  }
  0xdc   :  { %4270 = vmatpush3.bf16.msra.mxu0 %v4703_v22 }
  0xdd   :  { %4298 = vmatpush3.bf16.msra.mxu1 %v4704_v23  ;;  %4271 = vmatprep.subr.bf16.mxu0 %v4705_v24  ;;  %v4746_v23 = vld [vmem:[%s5876_s1 + $0x7b0] sm:$0xff]  }
  0xde   :  { %4299 = vmatprep.subr.bf16.mxu1 %v4706_v25 }
  0xe0   :  { %4272 = vmatpush3.bf16.msra.mxu0 %v4707_v26  ;;  %v4747_v26 = vld [vmem:[%s5876_s1 + $0x778] sm:$0xff]  }
  0xe1   :  { %4300 = vmatpush3.bf16.msra.mxu1 %v4708_v27  ;;  %4313 = vmatprep.subr.bf16.mxu0 %v4715_v32 }
  0xe2   :  { %4341 = vmatprep.subr.bf16.mxu1 %v4716_v34 }
  0xe3   :  { %3295 = vmatmul.mubr.bf16.vlgmr.msra.gmra.mrb[48].mxu0 %v4709_v28  ;;  %v4748_v28 = vld [vmem:[%s5876_s1 + $0x7f8] sm:$0xff]  }
  0xe4   :  { %3343 = vmatmul.mubr.bf16.vlgmr.msra.gmra.mrb[48].mxu1 %v4712_v30  ;;  %4314 = vmatpush3.bf16.msra.mxu0 %v4717_v36  ;;  %v4753_v36 = vld [vmem:[%s5877_s0 + $0x74] ss:$144 sps:$4 sm:$0xff]  }
  0xe5   :  { %4342 = vmatpush3.bf16.msra.mxu1 %v4718_v38  ;;  %4315 = vmatprep.subr.bf16.mxu0 %v4719_v41  ;;  %v4756_v38 = vld [vmem:[%s5877_s0 + $0x7c] ss:$144 sps:$4 sm:$0xff]   ;;  %v4758_v41 = vld [vmem:[%s5876_s1 + $0x8c0] sm:$0xff]  }
  0xe6   :  { %4343 = vmatprep.subr.bf16.mxu1 %v4720_v44  ;;  %3302 = vmatprep.mubr.bf16.mxu0 %v3622_v52 }
  0xe7   :  { %3350 = vmatprep.mubr.bf16.mxu1 %v3624_v58 }
  0xe8   :  { %4316 = vmatpush3.bf16.msra.mxu0 %v4721_v46 }
  0xe9   :  { %4344 = vmatpush3.bf16.msra.mxu1 %v4722_v48  ;;  %4317 = vmatprep.subr.bf16.mxu0 %v4725_v54  ;;  %v4761_v48 = vld [vmem:[%s5876_s1 + $0x848] sm:$0xff]  }
  0xea   :  { %4345 = vmatprep.subr.bf16.mxu1 %v4726_v56  ;;  %v4763_v54 = vld [vmem:[%s5876_s1 + $0x808] sm:$0xff]  }
  0xeb   :  { %3303 = vmatmul.mubr.bf16.gmra.mrb[52].mxu0 %v3621_v53  ;;  %v4764_v56 = vld [vmem:[%s5876_s1 + $0x888] sm:$0xff]  }
  0xec   :  { %4318 = vmatpush3.bf16.msra.mxu0 %v4728_v59  ;;  %3351 = vmatmul.mubr.bf16.gmra.mrb[52].mxu1 %v3623_v60 }
  0xed   :  { %4346 = vmatpush3.bf16.msra.mxu1 %v4729_v61  ;;  %4319 = vmatprep.subr.bf16.mxu0 %v4731_v62  ;;  %v3626_v61 = vcombine.high %v65_v57, %v65_v57  ;;  %v3625_v62 = vcombine.low %v65_v57, %v65_v57 }
  0xee   :  { %4347 = vmatprep.subr.bf16.mxu1 %v4732_v63  ;;  %3390 = vmatprep.mubr.bf16.mxu0 %v4753_v36  ;;  %v4767_v63 = vld [vmem:[%s5876_s1 + $0x850] sm:$0xff]  }
  0xef   :  { %3438 = vmatprep.mubr.bf16.mxu1 %v4756_v38  ;;  %v4788_v36 = vld [vmem:[%s5876_s1 + $0x8b0] sm:$0xff]   ;;  %v4790_v38 = vld [vmem:[%s5876_s1 + $0x8f8] sm:$0xff]  }
  0xf0   :  { %4320 = vmatpush3.bf16.msra.mxu0 %v4733_v0 }
  0xf1   :  { %4348 = vmatpush3.bf16.msra.mxu1 %v4734_v1  ;;  %4321 = vmatprep.subr.bf16.mxu0 %v4735_v2  ;;  %v4768_v1 = vld [vmem:[%s5876_s1 + $0x8d0] sm:$0xff]   ;;  %v66_v2 = vld [vmem:[%s5877_s0 + $0x198] sm:$0xff] }
  0xf2   :  { %4349 = vmatprep.subr.bf16.mxu1 %v4736_v3 }
  0xf4   :  { %4322 = vmatpush3.bf16.msra.mxu0 %v4737_v4  ;;  %v3628_v4 = vcombine.high %v66_v2, %v66_v2 }
  0xf5   :  { %4350 = vmatpush3.bf16.msra.mxu1 %v4738_v5  ;;  %4323 = vmatprep.subr.bf16.mxu0 %v4739_v8  ;;  %v4770_v5 = vld [vmem:[%s5876_s1 + $0x810] sm:$0xff]  }
  0xf6   :  { %v3937_v33 = vpop.f32.mrb[0].mxu0  ;;  %4351 = vmatprep.subr.bf16.mxu1 %v4740_v10  ;;  %v4771_v8 = vld [vmem:[%s5876_s1 + $0x890] sm:$0xff]  }
  0xf7   :  { %v3965_v35 = vpop.f32.mrb[0].mxu1  ;;  %v3938_v37 = vpop.f32.mrb[1].mxu0 }
  0xf8   :  { %v3939_v39 = vadd.f32 %v3938_v37, %v3937_v33  ;;  %v3966_v40 = vpop.f32.mrb[1].mxu1  ;;  %v3940_v43 = vpop.f32.mrb[2].mxu0  ;;  %4324 = vmatpush3.bf16.msra.mxu0 %v4741_v12  ;;  %v4750_v33 = vld [vmem:[%s5876_s1 + $0x7b8] sm:$0xff]  }
  0xf9   :  { %v3967_v42 = vadd.f32 %v3966_v40, %v3965_v35  ;;  %v3968_v45 = vpop.f32.mrb[2].mxu1  ;;  %v3941_v47 = vpop.f32.mrb[3].mxu0  ;;  %4352 = vmatpush3.bf16.msra.mxu1 %v4742_v14  ;;  %4325 = vmatprep.subr.bf16.mxu0 %v4743_v16  ;;  %v4751_v35 = vld [vmem:[%s5877_s0 + $0x70] ss:$144 sps:$4 sm:$0xff]   ;;  %v4754_v37 = vld [vmem:[%s5877_s0 + $0x78] ss:$144 sps:$4 sm:$0xff]  }
  0xfa   :  { %v3942_v50 = vadd.f32 %v3941_v47, %v3940_v43  ;;  %v3969_v51 = vpop.f32.mrb[3].mxu1  ;;  %v2721_v7 = vadd.f32 %v3939_v39, %v3560_v6  ;;  %4353 = vmatprep.subr.bf16.mxu1 %v4744_v18  ;;  %v4757_v39 = vld [vmem:[%s5876_s1 + $0x840] sm:$0xff]   ;;  %v4774_v14 = vld [vmem:[%s5876_s1 + $0x8d8] sm:$0xff]  }
  0xfb   :  { %v3970_v55 = vadd.f32 %v3969_v51, %v3968_v45  ;;  %v4759_v43 = vld [vmem:[%s5876_s1 + $0x800] sm:$0xff]   ;;  %v4762_v51 = vld [vmem:[%s5876_s1 + $0x8c8] sm:$0xff]   ;;  %v4775_v16 = vld [vmem:[%s5876_s1 + $0x818] sm:$0xff]  }
  0xfc   :  { %v2724_v9 = vadd.f32 %v3942_v50, %v3560_v6  ;;  %v2769_v11 = vadd.f32 %v3967_v42, %v2721_v7  ;;  %4326 = vmatpush3.bf16.msra.mxu0 %v4745_v21  ;;  %v4760_v45 = vld [vmem:[%s5876_s1 + $0x880] sm:$0xff]  }
  0xfd   :  { %4354 = vmatpush3.bf16.msra.mxu1 %v4746_v23  ;;  %4327 = vmatprep.subr.bf16.mxu0 %v4747_v26 }
  0xfe   :  { %v5693_v13 = vadd.f32 %v3970_v55, %v2724_v9  ;;  %v3943_v15 = vpop.f32.mrb[4].mxu0  ;;  %4355 = vmatprep.subr.bf16.mxu1 %v4748_v28  ;;  %v4780_v28 = vld [vmem:[%s5876_s1 + $0x8a0] sm:$0xff]  }
  0xff   :  { %v3944_v17 = vpop.f32.mrb[5].mxu0  ;;  %v3971_v22 = vpop.f32.mrb[4].mxu1 }
 0x100   :  { %v3945_v19 = vadd.f32 %v3944_v17, %v3943_v15  ;;  %v3946_v20 = vpop.f32.mrb[6].mxu0  ;;  %v3972_v27 = vpop.f32.mrb[5].mxu1  ;;  %4328 = vmatpush3.bf16.msra.mxu0 %v4749_v31  ;;  %v4783_v31 = vld [vmem:[%s5876_s1 + $0x828] sm:$0xff]  }
 0x101   :  { %v3947_v25 = vpop.f32.mrb[7].mxu0  ;;  %v3973_v29 = vadd.f32 %v3972_v27, %v3971_v22  ;;  %v3974_v30 = vpop.f32.mrb[6].mxu1  ;;  %4356 = vmatpush3.bf16.msra.mxu1 %v4750_v33  ;;  %4369 = vmatprep.subr.bf16.mxu0 %v4757_v39  ;;  %v4777_v22 = vld [vmem:[%s5876_s1 + $0x860] sm:$0xff]   ;;  %v4785_v33 = vld [vmem:[%s5876_s1 + $0x870] sm:$0xff]   ;;  %v4791_v39 = vld [vmem:[%s5876_s1 + $0x838] sm:$0xff]  }
 0x102   :  { %v2729_v24 = vadd.f32 %v3945_v19, %v3560_v6  ;;  %v3975_v32 = vpop.f32.mrb[7].mxu1  ;;  %4397 = vmatprep.subr.bf16.mxu1 %v4758_v41  ;;  %v3627_v6 = vcombine.low %v66_v2, %v66_v2  ;;  %v4776_v19 = vld [vmem:[%s5876_s1 + $0x898] sm:$0xff]   ;;  %v4779_v27 = vld [vmem:[%s5876_s1 + $0x820] sm:$0xff]   ;;  %v4782_v30 = vld [vmem:[%s5876_s1 + $0x8e8] sm:$0xff]  }
 0x103   :  { %3391 = vmatmul.mubr.bf16.vlgmr.msra.gmra.mrb[56].mxu0 %v4751_v35  ;;  %v4784_v32 = vld [vmem:[%s5876_s1 + $0x8a8] sm:$0xff]   ;;  %v4787_v35 = vld [vmem:[%s5876_s1 + $0x830] sm:$0xff]  }
 0x104   :  { %v5722_v34 = vadd.f32 %v3973_v29, %v2729_v24  ;;  %3439 = vmatmul.mubr.bf16.vlgmr.msra.gmra.mrb[56].mxu1 %v4754_v37  ;;  %4370 = vmatpush3.bf16.msra.mxu0 %v4759_v43  ;;  %v4778_v24 = vld [vmem:[%s5876_s1 + $0x8e0] sm:$0xff]   ;;  %v4781_v29 = vld [vmem:[%s5876_s1 + $0x868] sm:$0xff]   ;;  %v4789_v37 = vld [vmem:[%s5876_s1 + $0x878] sm:$0xff]  }
 0x105   :  { %4398 = vmatpush3.bf16.msra.mxu1 %v4760_v45  ;;  %4371 = vmatprep.subr.bf16.mxu0 %v4761_v48  ;;  %v4793_v41 = vld [vmem:[%s5877_s0 + $0x80] ss:$144 sps:$4 sm:$0xff]   ;;  %v4796_v43 = vld [vmem:[%s5877_s0 + $0x88] ss:$144 sps:$4 sm:$0xff]  }
 0x106   :  { %4399 = vmatprep.subr.bf16.mxu1 %v4762_v51  ;;  %3398 = vmatprep.mubr.bf16.mxu0 %v3626_v61  ;;  %v67_v45 = vld [vmem:[%s5877_s0 + $0x1a0] sm:$0xff]  ;;  %v68_v48 = vld [vmem:[%s5877_s0 + $0x1a8] sm:$0xff] }
 0x107   :  { %3446 = vmatprep.mubr.bf16.mxu1 %v3628_v4  ;;  %v3631_v2 = vcombine.low %v68_v48, %v68_v48 }
 0x108   :  { %4372 = vmatpush3.bf16.msra.mxu0 %v4763_v54 }
 0x109   :  { %4400 = vmatpush3.bf16.msra.mxu1 %v4764_v56  ;;  %4373 = vmatprep.subr.bf16.mxu0 %v4767_v63 }
 0x10a   :  { %4401 = vmatprep.subr.bf16.mxu1 %v4768_v1 }
 0x10b   :  { %3399 = vmatmul.mubr.bf16.gmra.mrb[60].mxu0 %v3625_v62  ;;  %v3629_v62 = vcombine.low %v67_v45, %v67_v45 }
 0x10c   :  { %4374 = vmatpush3.bf16.msra.mxu0 %v4770_v5  ;;  %3447 = vmatmul.mubr.bf16.gmra.mrb[60].mxu1 %v3627_v6 }
 0x10d   :  { %4402 = vmatpush3.bf16.msra.mxu1 %v4771_v8 }
 0x10e   :  { %4403 = vmatprep.subr.bf16.mxu1 %v4774_v14 }
 0x111   :  { %4404 = vmatpush3.bf16.msra.mxu1 %v4776_v19 }
 0x112   :  { %4405 = vmatprep.subr.bf16.mxu1 %v4778_v24 }
 0x115   :  { %4406 = vmatpush3.bf16.msra.mxu1 %v4780_v28 }
 0x116   :  { %v3993_v40 = vpop.f32.mrb[8].mxu0  ;;  %4407 = vmatprep.subr.bf16.mxu1 %v4782_v30 }
 0x117   :  { %v4021_v42 = vpop.f32.mrb[8].mxu1  ;;  %v3994_v44 = vpop.f32.mrb[9].mxu0 }
 0x118   :  { %v3995_v46 = vadd.f32 %v3994_v44, %v3993_v40  ;;  %v4022_v47 = vpop.f32.mrb[9].mxu1  ;;  %v3996_v50 = vpop.f32.mrb[10].mxu0  ;;  %v4792_v40 = vld [vmem:[%s5876_s1 + $0x8b8] sm:$0xff]  }
 0x119   :  { %v4023_v49 = vadd.f32 %v4022_v47, %v4021_v42  ;;  %v4024_v53 = vpop.f32.mrb[10].mxu1  ;;  %v3997_v55 = vpop.f32.mrb[11].mxu0  ;;  %4408 = vmatpush3.bf16.msra.mxu1 %v4784_v32  ;;  %v4795_v42 = vld [vmem:[%s5877_s0 + $0x84] ss:$144 sps:$4 sm:$0xff]   ;;  %v4798_v44 = vld [vmem:[%s5877_s0 + $0x8c] ss:$144 sps:$4 sm:$0xff]   ;;  %v3630_v47 = vcombine.high %v67_v45, %v67_v45 }
 0x11a   :  { %v2817_v52 = vadd.f32 %v3995_v46, %v2769_v11  ;;  %v3998_v59 = vadd.f32 %v3997_v55, %v3996_v50  ;;  %v4025_v60 = vpop.f32.mrb[11].mxu1  ;;  %v4773_v11 = vld [vmem:[%s5876_s1 + $0x858] sm:$0xff]   ;;  %3486 = vmatprep.mubr.bf16.mxu0 %v4795_v42  ;;  %3534 = vmatprep.mubr.bf16.mxu1 %v4798_v44  ;;  %v3632_v50 = vcombine.high %v68_v48, %v68_v48 }
 0x11b   :  { %v4026_v0 = vadd.f32 %v4025_v60, %v4024_v53  ;;  %4375 = vmatprep.subr.bf16.mxu0 %v4773_v11 }
 0x11c   :  { %v5763_v58 = vadd.f32 %v4023_v49, %v2817_v52  ;;  %v2820_v3 = vadd.f32 %v3998_v59, %v5693_v13  ;;  %4376 = vmatpush3.bf16.msra.mxu0 %v4775_v16 }
 0x11d   :  { %4377 = vmatprep.subr.bf16.mxu0 %v4777_v22 }
 0x11e   :  { %v3999_v7 = vpop.f32.mrb[12].mxu0  ;;  %v5781_v9 = vadd.f32 %v4026_v0, %v2820_v3 }
 0x11f   :  { %v4000_v10 = vpop.f32.mrb[13].mxu0  ;;  %v4027_v15 = vpop.f32.mrb[12].mxu1 }
 0x120   :  { %v4001_v12 = vadd.f32 %v4000_v10, %v3999_v7  ;;  %v4002_v13 = vpop.f32.mrb[14].mxu0  ;;  %v4028_v18 = vpop.f32.mrb[13].mxu1  ;;  %4378 = vmatpush3.bf16.msra.mxu0 %v4779_v27 }
 0x121   :  { %v4029_v20 = vadd.f32 %v4028_v18, %v4027_v15  ;;  %v4003_v21 = vpop.f32.mrb[15].mxu0  ;;  %v4030_v23 = vpop.f32.mrb[14].mxu1  ;;  %4379 = vmatprep.subr.bf16.mxu0 %v4781_v29 }
 0x122   :  { %v2825_v17 = vadd.f32 %v4001_v12, %v5722_v34  ;;  %v4031_v26 = vpop.f32.mrb[15].mxu1  ;;  %v4786_v34 = vld [vmem:[%s5876_s1 + $0x8f0] sm:$0xff]  }
 0x123   :  { %4409 = vmatprep.subr.bf16.mxu1 %v4786_v34 }
 0x124   :  { %v5802_v25 = vadd.f32 %v4029_v20, %v2825_v17  ;;  %4380 = vmatpush3.bf16.msra.mxu0 %v4783_v31  ;;  %4410 = vmatpush3.bf16.msra.mxu1 %v4788_v36 }
 0x125   :  { %4381 = vmatprep.subr.bf16.mxu0 %v4785_v33  ;;  %4411 = vmatprep.subr.bf16.mxu1 %v4790_v38 }
 0x128   :  { %4382 = vmatpush3.bf16.msra.mxu0 %v4787_v35  ;;  %4412 = vmatpush3.bf16.msra.mxu1 %v4792_v40 }
 0x129   :  { %4383 = vmatprep.subr.bf16.mxu0 %v4789_v37 }
 0x12b   :  { %3535 = vmatmul.mubr.bf16.vlgmr.msra.gmra.mrb[64].mxu1 %v4796_v43 }
 0x12c   :  { %4384 = vmatpush3.bf16.msra.mxu0 %v4791_v39  ;;  %3542 = vmatprep.mubr.bf16.mxu1 %v3632_v50 }
 0x12f   :  { %3487 = vmatmul.mubr.bf16.vlgmr.msra.gmra.mrb[64].mxu0 %v4793_v41 }
 0x130   :  { %3494 = vmatprep.mubr.bf16.mxu0 %v3630_v47 }
 0x133   :  { %3543 = vmatmul.mubr.bf16.gmra.mrb[68].mxu1 %v3631_v2 }
 0x136   :  { %v4049_v46 = vpop.f32.mrb[16].mxu0 }
 0x137   :  { %v4050_v49 = vpop.f32.mrb[17].mxu0  ;;  %v4077_v51 = vpop.f32.mrb[16].mxu1  ;;  %3495 = vmatmul.mubr.bf16.gmra.mrb[68].mxu0 %v3629_v62 }
 0x138   :  { %v4051_v52 = vadd.f32 %v4050_v49, %v4049_v46  ;;  %v4052_v53 = vpop.f32.mrb[18].mxu0  ;;  %v4078_v54 = vpop.f32.mrb[17].mxu1 }
 0x139   :  { %v4053_v55 = vpop.f32.mrb[19].mxu0  ;;  %v4079_v57 = vadd.f32 %v4078_v54, %v4077_v51  ;;  %v4080_v59 = vpop.f32.mrb[18].mxu1 }
 0x13a   :  { %v2913_v56 = vadd.f32 %v4051_v52, %v5763_v58  ;;  %v4054_v60 = vadd.f32 %v4053_v55, %v4052_v53  ;;  %v4081_v61 = vpop.f32.mrb[19].mxu1 }
 0x13b   :  { %v4082_v1 = vadd.f32 %v4081_v61, %v4080_v59 }
 0x13c   :  { %v2961_v63 = vadd.f32 %v4079_v57, %v2913_v56  ;;  %v2916_v0 = vadd.f32 %v4054_v60, %v5781_v9 }
 0x13e   :  { %v2964_v3 = vadd.f32 %v4082_v1, %v2916_v0  ;;  %v4055_v4 = vpop.f32.mrb[20].mxu0 }
 0x13f   :  { %v4056_v5 = vpop.f32.mrb[21].mxu0  ;;  %v4083_v8 = vpop.f32.mrb[20].mxu1 }
 0x140   :  { %v4057_v6 = vadd.f32 %v4056_v5, %v4055_v4  ;;  %v4058_v7 = vpop.f32.mrb[22].mxu0  ;;  %v4084_v11 = vpop.f32.mrb[21].mxu1 }
 0x141   :  { %v4059_v10 = vpop.f32.mrb[23].mxu0  ;;  %v4085_v12 = vadd.f32 %v4084_v11, %v4083_v8  ;;  %v4086_v13 = vpop.f32.mrb[22].mxu1 }
 0x142   :  { %v2921_v58 = vadd.f32 %v4057_v6, %v5802_v25  ;;  %v4087_v14 = vpop.f32.mrb[23].mxu1 }
 0x144   :  { %v2969_v15 = vadd.f32 %v4085_v12, %v2921_v58 }
 0x156   :  { %v4105_v16 = vpop.f32.mrb[24].mxu0 }
 0x157   :  { %v4133_v9 = vpop.f32.mrb[24].mxu1  ;;  %v4106_v17 = vpop.f32.mrb[25].mxu0 }
 0x158   :  { %v4107_v18 = vadd.f32 %v4106_v17, %v4105_v16  ;;  %v4134_v19 = vpop.f32.mrb[25].mxu1  ;;  %v4108_v20 = vpop.f32.mrb[26].mxu0 }
 0x159   :  { %v4135_v21 = vadd.f32 %v4134_v19, %v4133_v9  ;;  %v4136_v22 = vpop.f32.mrb[26].mxu1  ;;  %v4109_v23 = vpop.f32.mrb[27].mxu0 }
 0x15a   :  { %v3009_v24 = vadd.f32 %v4107_v18, %v2961_v63  ;;  %v4110_v26 = vadd.f32 %v4109_v23, %v4108_v20  ;;  %v4137_v27 = vpop.f32.mrb[27].mxu1 }
 0x15b   :  { %v4138_v28 = vadd.f32 %v4137_v27, %v4136_v22 }
 0x15c   :  { %v3057_v29 = vadd.f32 %v4135_v21, %v3009_v24  ;;  %v3012_v25 = vadd.f32 %v4110_v26, %v2964_v3 }
 0x15e   :  { %v3060_v30 = vadd.f32 %v4138_v28, %v3012_v25  ;;  %v4111_v31 = vpop.f32.mrb[28].mxu0 }
 0x15f   :  { %v4112_v32 = vpop.f32.mrb[29].mxu0  ;;  %v4139_v37 = vpop.f32.mrb[28].mxu1 }
 0x160   :  { %v4113_v33 = vadd.f32 %v4112_v32, %v4111_v31  ;;  %v4114_v34 = vpop.f32.mrb[30].mxu0  ;;  %v4140_v38 = vpop.f32.mrb[29].mxu1 }
 0x161   :  { %v4115_v35 = vpop.f32.mrb[31].mxu0  ;;  %v4141_v39 = vadd.f32 %v4140_v38, %v4139_v37  ;;  %v4142_v40 = vpop.f32.mrb[30].mxu1 }
 0x162   :  { %v3017_v36 = vadd.f32 %v4113_v33, %v2969_v15  ;;  %v4143_v41 = vpop.f32.mrb[31].mxu1 }
 0x164   :  { %v3065_v42 = vadd.f32 %v4141_v39, %v3017_v36 }
 0x176   :  { %v4161_v43 = vpop.f32.mrb[32].mxu0 }
 0x177   :  { %v4189_v44 = vpop.f32.mrb[32].mxu1  ;;  %v4162_v45 = vpop.f32.mrb[33].mxu0 }
 0x178   :  { %v4163_v46 = vadd.f32 %v4162_v45, %v4161_v43  ;;  %v4190_v47 = vpop.f32.mrb[33].mxu1  ;;  %v4164_v48 = vpop.f32.mrb[34].mxu0 }
 0x179   :  { %v4191_v49 = vadd.f32 %v4190_v47, %v4189_v44  ;;  %v4192_v50 = vpop.f32.mrb[34].mxu1  ;;  %v4165_v51 = vpop.f32.mrb[35].mxu0 }
 0x17a   :  { %v3105_v52 = vadd.f32 %v4163_v46, %v3057_v29  ;;  %v4166_v53 = vadd.f32 %v4165_v51, %v4164_v48  ;;  %v4193_v54 = vpop.f32.mrb[35].mxu1 }
 0x17b   :  { %v4194_v55 = vadd.f32 %v4193_v54, %v4192_v50 }
 0x17c   :  { %v3153_v56 = vadd.f32 %v4191_v49, %v3105_v52  ;;  %v3108_v57 = vadd.f32 %v4166_v53, %v3060_v30 }
 0x17e   :  { %v3156_v59 = vadd.f32 %v4194_v55, %v3108_v57  ;;  %v4167_v60 = vpop.f32.mrb[36].mxu0 }
 0x17f   :  { %v4168_v61 = vpop.f32.mrb[37].mxu0  ;;  %v4195_v0 = vpop.f32.mrb[36].mxu1 }
 0x180   :  { %v4169_v62 = vadd.f32 %v4168_v61, %v4167_v60  ;;  %v4170_v63 = vpop.f32.mrb[38].mxu0  ;;  %v4196_v3 = vpop.f32.mrb[37].mxu1 }
 0x181   :  { %v4171_v1 = vpop.f32.mrb[39].mxu0  ;;  %v4197_v4 = vadd.f32 %v4196_v3, %v4195_v0  ;;  %v4198_v5 = vpop.f32.mrb[38].mxu1 }
 0x182   :  { %v3113_v2 = vadd.f32 %v4169_v62, %v3065_v42  ;;  %v4199_v6 = vpop.f32.mrb[39].mxu1 }
 0x184   :  { %v3161_v7 = vadd.f32 %v4197_v4, %v3113_v2 }
 0x196   :  { %v4217_v8 = vpop.f32.mrb[40].mxu0 }
 0x197   :  { %v4218_v10 = vpop.f32.mrb[41].mxu0  ;;  %v4245_v58 = vpop.f32.mrb[40].mxu1 }
 0x198   :  { %v4219_v11 = vadd.f32 %v4218_v10, %v4217_v8  ;;  %v4220_v12 = vpop.f32.mrb[42].mxu0  ;;  %v4246_v13 = vpop.f32.mrb[41].mxu1 }
 0x199   :  { %v4221_v14 = vpop.f32.mrb[43].mxu0  ;;  %v4247_v16 = vadd.f32 %v4246_v13, %v4245_v58  ;;  %v4248_v9 = vpop.f32.mrb[42].mxu1 }
 0x19a   :  { %v3201_v15 = vadd.f32 %v4219_v11, %v3153_v56  ;;  %v4222_v17 = vadd.f32 %v4221_v14, %v4220_v12  ;;  %v4249_v18 = vpop.f32.mrb[43].mxu1 }
 0x19b   :  { %v4250_v21 = vadd.f32 %v4249_v18, %v4248_v9 }
 0x19c   :  { %v3249_v19 = vadd.f32 %v4247_v16, %v3201_v15  ;;  %v3204_v20 = vadd.f32 %v4222_v17, %v3156_v59 }
 0x19e   :  { %v3252_v22 = vadd.f32 %v4250_v21, %v3204_v20  ;;  %v4223_v23 = vpop.f32.mrb[44].mxu0 }
 0x19f   :  { %v4224_v24 = vpop.f32.mrb[45].mxu0  ;;  %v4251_v28 = vpop.f32.mrb[44].mxu1 }
 0x1a0   :  { %v4225_v26 = vadd.f32 %v4224_v24, %v4223_v23  ;;  %v4226_v27 = vpop.f32.mrb[46].mxu0  ;;  %v4252_v30 = vpop.f32.mrb[45].mxu1 }
 0x1a1   :  { %v4227_v29 = vpop.f32.mrb[47].mxu0  ;;  %v4253_v31 = vadd.f32 %v4252_v30, %v4251_v28  ;;  %v4254_v32 = vpop.f32.mrb[46].mxu1 }
 0x1a2   :  { %v3209_v25 = vadd.f32 %v4225_v26, %v3161_v7  ;;  %v4255_v33 = vpop.f32.mrb[47].mxu1 }
 0x1a4   :  { %v3257_v34 = vadd.f32 %v4253_v31, %v3209_v25 }
 0x1b6   :  { %v4273_v35 = vpop.f32.mrb[48].mxu0 }
 0x1b7   :  { %v4301_v36 = vpop.f32.mrb[48].mxu1  ;;  %v4274_v37 = vpop.f32.mrb[49].mxu0 }
 0x1b8   :  { %v4275_v38 = vadd.f32 %v4274_v37, %v4273_v35  ;;  %v4302_v39 = vpop.f32.mrb[49].mxu1  ;;  %v4276_v40 = vpop.f32.mrb[50].mxu0 }
 0x1b9   :  { %v4303_v41 = vadd.f32 %v4302_v39, %v4301_v36  ;;  %v4304_v42 = vpop.f32.mrb[50].mxu1  ;;  %v4277_v43 = vpop.f32.mrb[51].mxu0 }
 0x1ba   :  { %v3297_v44 = vadd.f32 %v4275_v38, %v3249_v19  ;;  %v4278_v45 = vadd.f32 %v4277_v43, %v4276_v40  ;;  %v4305_v46 = vpop.f32.mrb[51].mxu1 }
 0x1bb   :  { %v4306_v47 = vadd.f32 %v4305_v46, %v4304_v42 }
 0x1bc   :  { %v3345_v48 = vadd.f32 %v4303_v41, %v3297_v44  ;;  %v3300_v49 = vadd.f32 %v4278_v45, %v3252_v22 }
 0x1be   :  { %v3348_v50 = vadd.f32 %v4306_v47, %v3300_v49  ;;  %v4279_v51 = vpop.f32.mrb[52].mxu0 }
 0x1bf   :  { %v4280_v52 = vpop.f32.mrb[53].mxu0  ;;  %v4307_v57 = vpop.f32.mrb[52].mxu1 }
 0x1c0   :  { %v4281_v53 = vadd.f32 %v4280_v52, %v4279_v51  ;;  %v4282_v54 = vpop.f32.mrb[54].mxu0  ;;  %v4308_v59 = vpop.f32.mrb[53].mxu1 }
 0x1c1   :  { %v4283_v55 = vpop.f32.mrb[55].mxu0  ;;  %v4309_v60 = vadd.f32 %v4308_v59, %v4307_v57  ;;  %v4310_v61 = vpop.f32.mrb[54].mxu1 }
 0x1c2   :  { %v3305_v56 = vadd.f32 %v4281_v53, %v3257_v34  ;;  %v4311_v62 = vpop.f32.mrb[55].mxu1 }
 0x1c4   :  { %v3353_v63 = vadd.f32 %v4309_v60, %v3305_v56 }
 0x1d6   :  { %v4329_v0 = vpop.f32.mrb[56].mxu0 }
 0x1d7   :  { %v4330_v1 = vpop.f32.mrb[57].mxu0  ;;  %v4357_v2 = vpop.f32.mrb[56].mxu1 }
 0x1d8   :  { %v4331_v3 = vadd.f32 %v4330_v1, %v4329_v0  ;;  %v4332_v4 = vpop.f32.mrb[58].mxu0  ;;  %v4358_v5 = vpop.f32.mrb[57].mxu1 }
 0x1d9   :  { %v4333_v6 = vpop.f32.mrb[59].mxu0  ;;  %v4359_v8 = vadd.f32 %v4358_v5, %v4357_v2  ;;  %v4360_v10 = vpop.f32.mrb[58].mxu1 }
 0x1da   :  { %v3393_v7 = vadd.f32 %v4331_v3, %v3345_v48  ;;  %v4334_v58 = vadd.f32 %v4333_v6, %v4332_v4  ;;  %v4361_v11 = vpop.f32.mrb[59].mxu1 }
 0x1db   :  { %v4362_v14 = vadd.f32 %v4361_v11, %v4360_v10 }
 0x1dc   :  { %v3441_v12 = vadd.f32 %v4359_v8, %v3393_v7  ;;  %v3396_v13 = vadd.f32 %v4334_v58, %v3348_v50 }
 0x1de   :  { %v3444_v15 = vadd.f32 %v4362_v14, %v3396_v13  ;;  %v4335_v16 = vpop.f32.mrb[60].mxu0 }
 0x1df   :  { %v4336_v9 = vpop.f32.mrb[61].mxu0  ;;  %v4363_v19 = vpop.f32.mrb[60].mxu1 }
 0x1e0   :  { %v4337_v17 = vadd.f32 %v4336_v9, %v4335_v16  ;;  %v4338_v18 = vpop.f32.mrb[62].mxu0  ;;  %v4364_v22 = vpop.f32.mrb[61].mxu1 }
 0x1e1   :  { %v4339_v20 = vpop.f32.mrb[63].mxu0  ;;  %v4365_v23 = vadd.f32 %v4364_v22, %v4363_v19  ;;  %v4366_v24 = vpop.f32.mrb[62].mxu1 }
 0x1e2   :  { %v3401_v21 = vadd.f32 %v4337_v17, %v3353_v63  ;;  %v4367_v26 = vpop.f32.mrb[63].mxu1 }
 0x1e4   :  { %v3449_v27 = vadd.f32 %v4365_v23, %v3401_v21 }
 0x1fe   :  { %v4413_v29 = vpop.f32.mrb[64].mxu1 }
 0x1ff   :  { %v4414_v31 = vpop.f32.mrb[65].mxu1 }
 0x200   :  { %v4415_v33 = vadd.f32 %v4414_v31, %v4413_v29  ;;  %v4416_v34 = vpop.f32.mrb[66].mxu1 }
 0x201   :  { %v4417_v38 = vpop.f32.mrb[67].mxu1 }
 0x202   :  { %v4385_v28 = vpop.f32.mrb[64].mxu0  ;;  %v4418_v39 = vadd.f32 %v4417_v38, %v4416_v34 }
 0x203   :  { %v4386_v25 = vpop.f32.mrb[65].mxu0 }
 0x204   :  { %v4387_v30 = vadd.f32 %v4386_v25, %v4385_v28  ;;  %v4388_v32 = vpop.f32.mrb[66].mxu0 }
 0x205   :  { %v4389_v35 = vpop.f32.mrb[67].mxu0 }
 0x206   :  { %v3489_v36 = vadd.f32 %v4387_v30, %v3441_v12  ;;  %v4390_v37 = vadd.f32 %v4389_v35, %v4388_v32  ;;  %v4419_v45 = vpop.f32.mrb[68].mxu1 }
 0x207   :  { %v4420_v49 = vpop.f32.mrb[69].mxu1 }
 0x208   :  { %v3537_v40 = vadd.f32 %v4415_v33, %v3489_v36  ;;  %v3492_v41 = vadd.f32 %v4390_v37, %v3444_v15  ;;  %v4421_v51 = vadd.f32 %v4420_v49, %v4419_v45  ;;  %v4422_v52 = vpop.f32.mrb[70].mxu1 }
 0x209   :  { %v4423_v55 = vpop.f32.mrb[71].mxu1 }
 0x20a   :  { %v3550_v42 = vmax.f32 %v3537_v40, 0.0  ;;  %v3540_v43 = vadd.f32 %v4418_v39, %v3492_v41  ;;  %v4391_v44 = vpop.f32.mrb[68].mxu0 }
 0x20b   :  { %v4392_v46 = vpop.f32.mrb[69].mxu0 }
 0x20c   :  { %3553 = vst [vmem:[%s5879_s3] sm:$0xff] %v3550_v42  ;;  %v3551_v47 = vmax.f32 %v3540_v43, 0.0  ;;  %v4393_v48 = vadd.f32 %v4392_v46, %v4391_v44  ;;  %v4394_v50 = vpop.f32.mrb[70].mxu0 }
 0x20d   :  { %v4395_v53 = vpop.f32.mrb[71].mxu0 }
 0x20e   :  { %3554 = vst [vmem:[%s5879_s3 + $0x8] sm:$0xff] %v3551_v47  ;;  %v3497_v54 = vadd.f32 %v4393_v48, %v3449_v27 }
 0x210   :  { %v3545_v56 = vadd.f32 %v4421_v51, %v3497_v54 }
 0x212   :  { %v3552_v57 = vmax.f32 %v3545_v56, 0.0 }
 0x214   :  { %3555 = vst [vmem:[%s5879_s3 + $0x10] sm:$0xff] %v3552_v57 }

</bundles_post_ra>
